<compile_context>
chip_gen: v6e
topology: v6e:2x2x1
jax: 0.10.0
libtpu: 0.0.40
codegen_flags: <defaults>
</compile_context>

<pallas_src>
import jax
import jax.numpy as jnp
from jax import lax
from jax.experimental import pallas as pl
from jax.experimental.pallas import tpu as pltpu


# ------------------------------- fused kernel -------------------------------

def mnist_kernel(x_ref, wb1_ref, cb1_ref, wb2_ref, cb2_ref,
                 w1p_ref, f1b_ref, w2_ref, f2b_ref, o_ref):
    """Whole MNIST_Small_Net forward for one batch tile of `bt` images.

    x_ref:   (2, 16, bt, 32) bf16  image, rows split even/odd: x[p,r,b,w] = img[b,2r+p,w]
    wb1_ref: (5, 32, 768)    bf16  banded conv1 weight per ki; cols = (dj, pw, co)
    cb1_ref: (1, 768)        f32   conv1 bias tiled over (dj, pw)
    wb2_ref: (5, 384, 256)   bf16  banded conv2 weight per ki; cols = (dj, pw, co)
    cb2_ref: (1, 256)        f32   conv2 bias tiled over (dj, pw)
    w1p_ref: (4, 128, 128)   f32   fc1 weight split by ph, rows in (pw, co) order
    f1b_ref: (1, 128)        f32   fc1 bias
    w2_ref:  (128, 10)       f32   fc2 weight (transposed)
    f2b_ref: (1, 10)         f32   fc2 bias
    o_ref:   (bt, 10)        f32   log_softmax output
    """
    bt = x_ref.shape[2]
    x = x_ref[...]                                    # (2, 16, bt, 32) bf16

    # ---- conv1 (5x5, 1->32) + ReLU + 2x2/2 max-pool, banded over ki --------
    def conv1_half(di):
        acc = jnp.zeros((12 * bt, 768), jnp.float32)
        for ki in range(5):                           # static unroll
            j = di + ki
            s = x[j % 2, j // 2:j // 2 + 12]          # (12, bt, 32): leading-axis slice
            s = s.reshape(12 * bt, 32)                # bt % 8 == 0 -> free view
            acc = acc + jnp.dot(s, wb1_ref[ki],
                                preferred_element_type=jnp.float32)
        return jnp.maximum(acc + cb1_ref[...], 0.0)   # bias + ReLU (commutes with max)

    v = jnp.maximum(conv1_half(0), conv1_half(1))     # vertical pool (max over di)
    y1 = jnp.maximum(v[:, :384], v[:, 384:])          # horizontal pool (max over dj)
    y1 = y1.astype(jnp.bfloat16)                      # (12*bt, 384): rows=(h,b), lanes=(w,ci)

    # ---- conv2 (5x5, 32->32) + ReLU + 2x2/2 max-pool, banded over ki -------
    acc2 = jnp.zeros((8 * bt, 256), jnp.float32)
    for ki in range(5):
        s = y1[ki * bt:(ki + 8) * bt, :]              # sublane-aligned band slice
        acc2 = acc2 + jnp.dot(s, wb2_ref[ki], preferred_element_type=jnp.float32)
    z2 = jnp.maximum(acc2 + cb2_ref[...], 0.0)        # rows=(oh,b), lanes=(dj,pw,co)
    zp = jnp.maximum(z2[:, :128], z2[:, 128:])        # horizontal pool -> (8*bt, 128)

    # ---- vertical pool + fc1 (+ReLU): aligned bt-row blocks, no sel matmuls --
    h = jnp.zeros((bt, 128), jnp.float32)
    for ph in range(4):
        blk = jnp.maximum(zp[(2 * ph) * bt:(2 * ph + 1) * bt, :],
                          zp[(2 * ph + 1) * bt:(2 * ph + 2) * bt, :])
        h = h + jnp.dot(blk, w1p_ref[ph], preferred_element_type=jnp.float32)
    h = jnp.maximum(h + f1b_ref[...], 0.0)

    # ---- fc2 + log_softmax --------------------------------------------------
    logits = jnp.dot(h, w2_ref[...], preferred_element_type=jnp.float32) + f2b_ref[...]
    m = jnp.max(logits, axis=1, keepdims=True)
    shifted = logits - m
    lse = jnp.log(jnp.sum(jnp.exp(shifted), axis=1, keepdims=True))
    o_ref[...] = shifted - lse


# ------------------------------ wrappers ------------------------------------

def _round_up(x, m):
    return ((x + m - 1) // m) * m


def _pick_tile(n, cap=32):
    """Batch tile (multiple of 8, capped) and the zero-padded batch it implies."""
    if n <= 8:
        bt = 8
    else:
        bt = min(cap, max(8, _round_up((n + 1) // 2, 8)))   # >=2 grid steps when possible
    return bt, _round_up(n, bt)


def _prep_input(x_nchw, n_pad):
    """(N,1,28,28) f32 -> (2, 16, n_pad, 32) bf16 with rows split even/odd."""
    n = x_nchw.shape[0]
    x = x_nchw[:, 0]
    x = jnp.pad(x, ((0, n_pad - n), (0, 4), (0, 4)))    # batch pad, h/w: 28 -> 32
    x = x.reshape(n_pad, 16, 2, 32)                     # [b, r, parity, w]
    return jnp.transpose(x, (2, 1, 0, 3)).astype(jnp.bfloat16)


_VMEM_LIMIT = 48 * 1024 * 1024    # fits v7x's 64 MiB/TC; ample on v5e/v6e


def mnist_small_net_forward(prep, x_nchw):
    n = x_nchw.shape[0]
    bt, n_pad = _pick_tile(n)
    xp = _prep_input(x_nchw, n_pad)
    out = pl.pallas_call(
        mnist_kernel,
        out_shape=jax.ShapeDtypeStruct((n_pad, 10), jnp.float32),
        grid=(n_pad // bt,),
        in_specs=[
            pl.BlockSpec((2, 16, bt, 32), lambda i: (0, 0, i, 0)),
            pl.BlockSpec((5, 32, 768), lambda i: (0, 0, 0)),
            pl.BlockSpec((1, 768), lambda i: (0, 0)),
            pl.BlockSpec((5, 384, 256), lambda i: (0, 0, 0)),
            pl.BlockSpec((1, 256), lambda i: (0, 0)),
            pl.BlockSpec((4, 128, 128), lambda i: (0, 0, 0)),
            pl.BlockSpec((1, 128), lambda i: (0, 0)),
            pl.BlockSpec((128, 10), lambda i: (0, 0)),
            pl.BlockSpec((1, 10), lambda i: (0, 0)),
        ],
        out_specs=pl.BlockSpec((bt, 10), lambda i: (i, 0)),
        compiler_params=pltpu.CompilerParams(
            dimension_semantics=("parallel",),
            vmem_limit_bytes=_VMEM_LIMIT,
        ),
    )(xp, prep["wb1"], prep["cb1"], prep["wb2"], prep["cb2"],
      prep["w1p"], prep["f1b"], prep["w2"], prep["f2b"])
    return out[:n]


# --------------------------- parameters / model ------------------------------

def init_params(key):
    ks = jax.random.split(key, 8)

    def uniform(k, shape, fan_in):
        bound = 1.0 / float(fan_in) ** 0.5
        return jax.random.uniform(k, shape, jnp.float32, -bound, bound)

    return {
        "conv1_w": uniform(ks[0], (32, 1, 5, 5), 1 * 25),
        "conv1_b": uniform(ks[1], (32,), 1 * 25),
        "conv2_w": uniform(ks[2], (32, 32, 5, 5), 32 * 25),
        "conv2_b": uniform(ks[3], (32,), 32 * 25),
        "fc1_w": uniform(ks[4], (128, 4 * 4 * 32), 4 * 4 * 32),
        "fc1_b": uniform(ks[5], (128,), 4 * 4 * 32),
        "fc2_w": uniform(ks[6], (10, 128), 128),
        "fc2_b": uniform(ks[7], (10,), 128),
    }


def prepare_params(params):
    """One-time repack of the PyTorch-layout parameters into kernel layouts."""
    # conv1 banded weight: WB1[ki, w, dj*384 + pw*32 + co] = w1[co, 0, ki, w-(2*pw+dj)]
    w1 = params["conv1_w"][:, 0]                          # (co, ki, kj)
    wb1 = jnp.zeros((5, 32, 2, 12, 32), jnp.float32)      # (ki, w, dj, pw, co)
    for kj in range(5):
        blk = jnp.transpose(w1[:, :, kj], (1, 0))         # (ki, co)
        for dj in range(2):
            for pw in range(12):
                wb1 = wb1.at[:, 2 * pw + dj + kj, dj, pw, :].set(blk)
    wb1 = wb1.reshape(5, 32, 768)

    # conv2 banded weight: WB2[ki, w*32+ci, dj*128+pw*32+co] = w2[co, ci, ki, w-(2*pw+dj)]
    w2c = params["conv2_w"]                               # (co, ci, ki, kj)
    wb6 = jnp.zeros((5, 12, 32, 2, 4, 32), jnp.float32)   # (ki, w, ci, dj, pw, co)
    for kj in range(5):
        blk = jnp.transpose(w2c[:, :, :, kj], (2, 1, 0))  # (ki, ci, co)
        for dj in range(2):
            for pw in range(4):
                wb6 = wb6.at[:, 2 * pw + dj + kj, :, dj, pw, :].set(blk)
    wb2 = wb6.reshape(5, 384, 256)

    # fc1 weight rows permuted to (ph, pw, co): bakes torch's NCHW .view(-1,512) in.
    w1p = jnp.transpose(params["fc1_w"].reshape(128, 32, 4, 4), (2, 3, 1, 0))
    w1p = w1p.reshape(4, 128, 128)

    return {
        "wb1": wb1.astype(jnp.bfloat16),
        "cb1": jnp.tile(params["conv1_b"], 24).reshape(1, 768),
        "wb2": wb2.astype(jnp.bfloat16),
        "cb2": jnp.tile(params["conv2_b"], 8).reshape(1, 256),
        "w1p": w1p,                                       # f32: fc matmuls are tiny
        "f1b": params["fc1_b"].reshape(1, 128),
        "w2": params["fc2_w"].T,
        "f2b": params["fc2_b"].reshape(1, 10),
    }


def reference_forward(params, x):
    """Pure-JAX reference matching the PyTorch module (f32 everywhere)."""
    n = x.shape[0]
    y = lax.conv_general_dilated(x, params["conv1_w"], (1, 1), "VALID",
                                 dimension_numbers=("NCHW", "OIHW", "NCHW"))
    y = jnp.maximum(y + params["conv1_b"].reshape(1, 32, 1, 1), 0.0)
    y = y.reshape(n, 32, 12, 2, 12, 2).max(axis=(3, 5))
    y = lax.conv_general_dilated(y, params["conv2_w"], (1, 1), "VALID",
                                 dimension_numbers=("NCHW", "OIHW", "NCHW"))
    y = jnp.maximum(y + params["conv2_b"].reshape(1, 32, 1, 1), 0.0)
    y = y.reshape(n, 32, 4, 2, 4, 2).max(axis=(3, 5))
    f = y.reshape(n, 32 * 4 * 4)
    h = jnp.maximum(f @ params["fc1_w"].T + params["fc1_b"], 0.0)
    logits = h @ params["fc2_w"].T + params["fc2_b"]
    return jax.nn.log_softmax(logits, axis=1)


if __name__ == "__main__":
    key = jax.random.PRNGKey(0)
    pkey, xkey, xkey2 = jax.random.split(key, 3)
    params = init_params(pkey)
    prep = prepare_params(params)

    fwd = jax.jit(mnist_small_net_forward)
    ref_fn = jax.jit(reference_forward)

    # small batch (single grid step)
    x = jax.random.normal(xkey, (2, 1, 28, 28), jnp.float32)
    out = jax.block_until_ready(fwd(prep, x))
    assert out.shape == (2, 10)
    assert bool(jnp.all(jnp.isfinite(out)))
    assert bool(jnp.allclose(jnp.sum(jnp.exp(out), axis=1), 1.0, atol=1e-4))
    ref = jax.block_until_ready(ref_fn(params, x))
    err = float(jnp.max(jnp.abs(out - ref)))
    assert err < 5e-2, f"mismatch vs reference (batch=2): {err}"

    # larger batch: exercises multi-step grid + batch padding + output slice
    x2 = jax.random.normal(xkey2, (40, 1, 28, 28), jnp.float32)
    out2 = jax.block_until_ready(fwd(prep, x2))
    assert out2.shape == (40, 10)
    assert bool(jnp.all(jnp.isfinite(out2)))
    assert bool(jnp.allclose(jnp.sum(jnp.exp(out2), axis=1), 1.0, atol=1e-4))
    ref2 = jax.block_until_ready(ref_fn(params, x2))
    err2 = float(jnp.max(jnp.abs(out2 - ref2)))
    assert err2 < 1e-1, f"mismatch vs reference (batch=40): {err2}"

    print("KERNEL_OK")
</pallas_src>

<mosaic_0001>
module attributes {stable_mosaic.version = 11 : i64} {
  func.func @mnist_kernel(%arg0: i32, %arg1: memref<2x16x8x32xbf16, #tpu.memory_space<vmem>>, %arg2: memref<5x32x768xbf16, #tpu.memory_space<vmem>>, %arg3: memref<1x768xf32, #tpu.memory_space<vmem>>, %arg4: memref<5x384x256xbf16, #tpu.memory_space<vmem>>, %arg5: memref<1x256xf32, #tpu.memory_space<vmem>>, %arg6: memref<4x128x128xf32, #tpu.memory_space<vmem>>, %arg7: memref<1x128xf32, #tpu.memory_space<vmem>>, %arg8: memref<128x10xf32, #tpu.memory_space<vmem>>, %arg9: memref<1x10xf32, #tpu.memory_space<vmem>>, %arg10: memref<8x10xf32, #tpu.memory_space<vmem>>) attributes {dimension_semantics = [#tpu.dimension_semantics<parallel>], iteration_bounds = array<i64: 1>, scalar_prefetch = 0 : i64, scratch_operands = 0 : i64, tpu.core_type = #tpu.core_type<tc>, window_params = [{transform_indices = @transform_0, window_bounds = array<i64: 2, 16, 8, 32>}, {pipeline_mode = #tpu.pipeline_mode<synchronous>, transform_indices = @transform_1, window_bounds = array<i64: 5, 32, 768>}, {pipeline_mode = #tpu.pipeline_mode<synchronous>, transform_indices = @transform_2, window_bounds = array<i64: 1, 768>}, {pipeline_mode = #tpu.pipeline_mode<synchronous>, transform_indices = @transform_3, window_bounds = array<i64: 5, 384, 256>}, {pipeline_mode = #tpu.pipeline_mode<synchronous>, transform_indices = @transform_4, window_bounds = array<i64: 1, 256>}, {pipeline_mode = #tpu.pipeline_mode<synchronous>, transform_indices = @transform_5, window_bounds = array<i64: 4, 128, 128>}, {pipeline_mode = #tpu.pipeline_mode<synchronous>, transform_indices = @transform_6, window_bounds = array<i64: 1, 128>}, {pipeline_mode = #tpu.pipeline_mode<synchronous>, transform_indices = @transform_7, window_bounds = array<i64: 128, 10>}, {pipeline_mode = #tpu.pipeline_mode<synchronous>, transform_indices = @transform_8, window_bounds = array<i64: 1, 10>}, {transform_indices = @transform_9, window_bounds = array<i64: 8, 10>}]} {
    %c0 = arith.constant 0 : index
    %c0_0 = arith.constant 0 : index
    %c0_1 = arith.constant 0 : index
    %c0_2 = arith.constant 0 : index
    %0 = vector.load %arg1[%c0, %c0_0, %c0_1, %c0_2] : memref<2x16x8x32xbf16, #tpu.memory_space<vmem>>, vector<2x16x8x32xbf16>
    %cst = arith.constant 0.000000e+00 : f32
    %1 = vector.broadcast %cst : f32 to vector<96x768xf32>
    %2 = vector.extract_strided_slice %0 {offsets = [0, 0, 0, 0], sizes = [1, 12, 8, 32], strides = [1, 1, 1, 1]} : vector<2x16x8x32xbf16> to vector<1x12x8x32xbf16>
    %3 = vector.shape_cast %2 : vector<1x12x8x32xbf16> to vector<12x8x32xbf16>
    %4 = vector.shape_cast %3 : vector<12x8x32xbf16> to vector<96x32xbf16>
    %c0_3 = arith.constant 0 : index
    %c0_4 = arith.constant 0 : index
    %c0_5 = arith.constant 0 : index
    %5 = vector.load %arg2[%c0_3, %c0_4, %c0_5] : memref<5x32x768xbf16, #tpu.memory_space<vmem>>, vector<1x32x768xbf16>
    %6 = vector.shape_cast %5 : vector<1x32x768xbf16> to vector<32x768xbf16>
    %cst_6 = arith.constant dense<0.000000e+00> : vector<96x768xf32>
    %7 = tpu.matmul %4, %6, %cst_6 {dimension_numbers = #tpu.dot_dimension_numbers<[1], [0], [0], [1], [0, 0, 1, 1], [], []>} : vector<96x32xbf16>, vector<32x768xbf16>, vector<96x768xf32> -> vector<96x768xf32>
    %8 = arith.addf %1, %7 : vector<96x768xf32>
    %9 = vector.extract_strided_slice %0 {offsets = [1, 0, 0, 0], sizes = [1, 12, 8, 32], strides = [1, 1, 1, 1]} : vector<2x16x8x32xbf16> to vector<1x12x8x32xbf16>
    %10 = vector.shape_cast %9 : vector<1x12x8x32xbf16> to vector<12x8x32xbf16>
    %11 = vector.shape_cast %10 : vector<12x8x32xbf16> to vector<96x32xbf16>
    %c1 = arith.constant 1 : index
    %c0_7 = arith.constant 0 : index
    %c0_8 = arith.constant 0 : index
    %12 = vector.load %arg2[%c1, %c0_7, %c0_8] : memref<5x32x768xbf16, #tpu.memory_space<vmem>>, vector<1x32x768xbf16>
    %13 = vector.shape_cast %12 : vector<1x32x768xbf16> to vector<32x768xbf16>
    %cst_9 = arith.constant dense<0.000000e+00> : vector<96x768xf32>
    %14 = tpu.matmul %11, %13, %cst_9 {dimension_numbers = #tpu.dot_dimension_numbers<[1], [0], [0], [1], [0, 0, 1, 1], [], []>} : vector<96x32xbf16>, vector<32x768xbf16>, vector<96x768xf32> -> vector<96x768xf32>
    %15 = arith.addf %8, %14 : vector<96x768xf32>
    %16 = vector.extract_strided_slice %0 {offsets = [0, 1, 0, 0], sizes = [1, 12, 8, 32], strides = [1, 1, 1, 1]} : vector<2x16x8x32xbf16> to vector<1x12x8x32xbf16>
    %17 = vector.shape_cast %16 : vector<1x12x8x32xbf16> to vector<12x8x32xbf16>
    %18 = vector.shape_cast %17 : vector<12x8x32xbf16> to vector<96x32xbf16>
    %c2 = arith.constant 2 : index
    %c0_10 = arith.constant 0 : index
    %c0_11 = arith.constant 0 : index
    %19 = vector.load %arg2[%c2, %c0_10, %c0_11] : memref<5x32x768xbf16, #tpu.memory_space<vmem>>, vector<1x32x768xbf16>
    %20 = vector.shape_cast %19 : vector<1x32x768xbf16> to vector<32x768xbf16>
    %cst_12 = arith.constant dense<0.000000e+00> : vector<96x768xf32>
    %21 = tpu.matmul %18, %20, %cst_12 {dimension_numbers = #tpu.dot_dimension_numbers<[1], [0], [0], [1], [0, 0, 1, 1], [], []>} : vector<96x32xbf16>, vector<32x768xbf16>, vector<96x768xf32> -> vector<96x768xf32>
    %22 = arith.addf %15, %21 : vector<96x768xf32>
    %23 = vector.extract_strided_slice %0 {offsets = [1, 1, 0, 0], sizes = [1, 12, 8, 32], strides = [1, 1, 1, 1]} : vector<2x16x8x32xbf16> to vector<1x12x8x32xbf16>
    %24 = vector.shape_cast %23 : vector<1x12x8x32xbf16> to vector<12x8x32xbf16>
    %25 = vector.shape_cast %24 : vector<12x8x32xbf16> to vector<96x32xbf16>
    %c3 = arith.constant 3 : index
    %c0_13 = arith.constant 0 : index
    %c0_14 = arith.constant 0 : index
    %26 = vector.load %arg2[%c3, %c0_13, %c0_14] : memref<5x32x768xbf16, #tpu.memory_space<vmem>>, vector<1x32x768xbf16>
    %27 = vector.shape_cast %26 : vector<1x32x768xbf16> to vector<32x768xbf16>
    %cst_15 = arith.constant dense<0.000000e+00> : vector<96x768xf32>
    %28 = tpu.matmul %25, %27, %cst_15 {dimension_numbers = #tpu.dot_dimension_numbers<[1], [0], [0], [1], [0, 0, 1, 1], [], []>} : vector<96x32xbf16>, vector<32x768xbf16>, vector<96x768xf32> -> vector<96x768xf32>
    %29 = arith.addf %22, %28 : vector<96x768xf32>
    %30 = vector.extract_strided_slice %0 {offsets = [0, 2, 0, 0], sizes = [1, 12, 8, 32], strides = [1, 1, 1, 1]} : vector<2x16x8x32xbf16> to vector<1x12x8x32xbf16>
    %31 = vector.shape_cast %30 : vector<1x12x8x32xbf16> to vector<12x8x32xbf16>
    %32 = vector.shape_cast %31 : vector<12x8x32xbf16> to vector<96x32xbf16>
    %c4 = arith.constant 4 : index
    %c0_16 = arith.constant 0 : index
    %c0_17 = arith.constant 0 : index
    %33 = vector.load %arg2[%c4, %c0_16, %c0_17] : memref<5x32x768xbf16, #tpu.memory_space<vmem>>, vector<1x32x768xbf16>
    %34 = vector.shape_cast %33 : vector<1x32x768xbf16> to vector<32x768xbf16>
    %cst_18 = arith.constant dense<0.000000e+00> : vector<96x768xf32>
    %35 = tpu.matmul %32, %34, %cst_18 {dimension_numbers = #tpu.dot_dimension_numbers<[1], [0], [0], [1], [0, 0, 1, 1], [], []>} : vector<96x32xbf16>, vector<32x768xbf16>, vector<96x768xf32> -> vector<96x768xf32>
    %36 = arith.addf %29, %35 : vector<96x768xf32>
    %c0_19 = arith.constant 0 : index
    %c0_20 = arith.constant 0 : index
    %37 = vector.load %arg3[%c0_19, %c0_20] : memref<1x768xf32, #tpu.memory_space<vmem>>, vector<1x768xf32>
    %38 = vector.broadcast %37 : vector<1x768xf32> to vector<96x768xf32>
    %39 = arith.addf %36, %38 : vector<96x768xf32>
    %cst_21 = arith.constant 0.000000e+00 : f32
    %40 = vector.broadcast %cst_21 : f32 to vector<96x768xf32>
    %41 = arith.maximumf %39, %40 : vector<96x768xf32>
    %cst_22 = arith.constant 0.000000e+00 : f32
    %42 = vector.broadcast %cst_22 : f32 to vector<96x768xf32>
    %43 = vector.extract_strided_slice %0 {offsets = [1, 0, 0, 0], sizes = [1, 12, 8, 32], strides = [1, 1, 1, 1]} : vector<2x16x8x32xbf16> to vector<1x12x8x32xbf16>
    %44 = vector.shape_cast %43 : vector<1x12x8x32xbf16> to vector<12x8x32xbf16>
    %45 = vector.shape_cast %44 : vector<12x8x32xbf16> to vector<96x32xbf16>
    %c0_23 = arith.constant 0 : index
    %c0_24 = arith.constant 0 : index
    %c0_25 = arith.constant 0 : index
    %46 = vector.load %arg2[%c0_23, %c0_24, %c0_25] : memref<5x32x768xbf16, #tpu.memory_space<vmem>>, vector<1x32x768xbf16>
    %47 = vector.shape_cast %46 : vector<1x32x768xbf16> to vector<32x768xbf16>
    %cst_26 = arith.constant dense<0.000000e+00> : vector<96x768xf32>
    %48 = tpu.matmul %45, %47, %cst_26 {dimension_numbers = #tpu.dot_dimension_numbers<[1], [0], [0], [1], [0, 0, 1, 1], [], []>} : vector<96x32xbf16>, vector<32x768xbf16>, vector<96x768xf32> -> vector<96x768xf32>
    %49 = arith.addf %42, %48 : vector<96x768xf32>
    %50 = vector.extract_strided_slice %0 {offsets = [0, 1, 0, 0], sizes = [1, 12, 8, 32], strides = [1, 1, 1, 1]} : vector<2x16x8x32xbf16> to vector<1x12x8x32xbf16>
    %51 = vector.shape_cast %50 : vector<1x12x8x32xbf16> to vector<12x8x32xbf16>
    %52 = vector.shape_cast %51 : vector<12x8x32xbf16> to vector<96x32xbf16>
    %c1_27 = arith.constant 1 : index
    %c0_28 = arith.constant 0 : index
    %c0_29 = arith.constant 0 : index
    %53 = vector.load %arg2[%c1_27, %c0_28, %c0_29] : memref<5x32x768xbf16, #tpu.memory_space<vmem>>, vector<1x32x768xbf16>
    %54 = vector.shape_cast %53 : vector<1x32x768xbf16> to vector<32x768xbf16>
    %cst_30 = arith.constant dense<0.000000e+00> : vector<96x768xf32>
    %55 = tpu.matmul %52, %54, %cst_30 {dimension_numbers = #tpu.dot_dimension_numbers<[1], [0], [0], [1], [0, 0, 1, 1], [], []>} : vector<96x32xbf16>, vector<32x768xbf16>, vector<96x768xf32> -> vector<96x768xf32>
    %56 = arith.addf %49, %55 : vector<96x768xf32>
    %57 = vector.extract_strided_slice %0 {offsets = [1, 1, 0, 0], sizes = [1, 12, 8, 32], strides = [1, 1, 1, 1]} : vector<2x16x8x32xbf16> to vector<1x12x8x32xbf16>
    %58 = vector.shape_cast %57 : vector<1x12x8x32xbf16> to vector<12x8x32xbf16>
    %59 = vector.shape_cast %58 : vector<12x8x32xbf16> to vector<96x32xbf16>
    %c2_31 = arith.constant 2 : index
    %c0_32 = arith.constant 0 : index
    %c0_33 = arith.constant 0 : index
    %60 = vector.load %arg2[%c2_31, %c0_32, %c0_33] : memref<5x32x768xbf16, #tpu.memory_space<vmem>>, vector<1x32x768xbf16>
    %61 = vector.shape_cast %60 : vector<1x32x768xbf16> to vector<32x768xbf16>
    %cst_34 = arith.constant dense<0.000000e+00> : vector<96x768xf32>
    %62 = tpu.matmul %59, %61, %cst_34 {dimension_numbers = #tpu.dot_dimension_numbers<[1], [0], [0], [1], [0, 0, 1, 1], [], []>} : vector<96x32xbf16>, vector<32x768xbf16>, vector<96x768xf32> -> vector<96x768xf32>
    %63 = arith.addf %56, %62 : vector<96x768xf32>
    %64 = vector.extract_strided_slice %0 {offsets = [0, 2, 0, 0], sizes = [1, 12, 8, 32], strides = [1, 1, 1, 1]} : vector<2x16x8x32xbf16> to vector<1x12x8x32xbf16>
    %65 = vector.shape_cast %64 : vector<1x12x8x32xbf16> to vector<12x8x32xbf16>
    %66 = vector.shape_cast %65 : vector<12x8x32xbf16> to vector<96x32xbf16>
    %c3_35 = arith.constant 3 : index
    %c0_36 = arith.constant 0 : index
    %c0_37 = arith.constant 0 : index
    %67 = vector.load %arg2[%c3_35, %c0_36, %c0_37] : memref<5x32x768xbf16, #tpu.memory_space<vmem>>, vector<1x32x768xbf16>
    %68 = vector.shape_cast %67 : vector<1x32x768xbf16> to vector<32x768xbf16>
    %cst_38 = arith.constant dense<0.000000e+00> : vector<96x768xf32>
    %69 = tpu.matmul %66, %68, %cst_38 {dimension_numbers = #tpu.dot_dimension_numbers<[1], [0], [0], [1], [0, 0, 1, 1], [], []>} : vector<96x32xbf16>, vector<32x768xbf16>, vector<96x768xf32> -> vector<96x768xf32>
    %70 = arith.addf %63, %69 : vector<96x768xf32>
    %71 = vector.extract_strided_slice %0 {offsets = [1, 2, 0, 0], sizes = [1, 12, 8, 32], strides = [1, 1, 1, 1]} : vector<2x16x8x32xbf16> to vector<1x12x8x32xbf16>
    %72 = vector.shape_cast %71 : vector<1x12x8x32xbf16> to vector<12x8x32xbf16>
    %73 = vector.shape_cast %72 : vector<12x8x32xbf16> to vector<96x32xbf16>
    %c4_39 = arith.constant 4 : index
    %c0_40 = arith.constant 0 : index
    %c0_41 = arith.constant 0 : index
    %74 = vector.load %arg2[%c4_39, %c0_40, %c0_41] : memref<5x32x768xbf16, #tpu.memory_space<vmem>>, vector<1x32x768xbf16>
    %75 = vector.shape_cast %74 : vector<1x32x768xbf16> to vector<32x768xbf16>
    %cst_42 = arith.constant dense<0.000000e+00> : vector<96x768xf32>
    %76 = tpu.matmul %73, %75, %cst_42 {dimension_numbers = #tpu.dot_dimension_numbers<[1], [0], [0], [1], [0, 0, 1, 1], [], []>} : vector<96x32xbf16>, vector<32x768xbf16>, vector<96x768xf32> -> vector<96x768xf32>
    %77 = arith.addf %70, %76 : vector<96x768xf32>
    %c0_43 = arith.constant 0 : index
    %c0_44 = arith.constant 0 : index
    %78 = vector.load %arg3[%c0_43, %c0_44] : memref<1x768xf32, #tpu.memory_space<vmem>>, vector<1x768xf32>
    %79 = vector.broadcast %78 : vector<1x768xf32> to vector<96x768xf32>
    %80 = arith.addf %77, %79 : vector<96x768xf32>
    %cst_45 = arith.constant 0.000000e+00 : f32
    %81 = vector.broadcast %cst_45 : f32 to vector<96x768xf32>
    %82 = arith.maximumf %80, %81 : vector<96x768xf32>
    %83 = arith.maximumf %41, %82 : vector<96x768xf32>
    %84 = vector.extract_strided_slice %83 {offsets = [0, 0], sizes = [96, 384], strides = [1, 1]} : vector<96x768xf32> to vector<96x384xf32>
    %85 = vector.extract_strided_slice %83 {offsets = [0, 384], sizes = [96, 384], strides = [1, 1]} : vector<96x768xf32> to vector<96x384xf32>
    %86 = arith.maximumf %84, %85 : vector<96x384xf32>
    %87 = arith.truncf %86 : vector<96x384xf32> to vector<96x384xbf16>
    %cst_46 = arith.constant 0.000000e+00 : f32
    %88 = vector.broadcast %cst_46 : f32 to vector<64x256xf32>
    %89 = vector.extract_strided_slice %87 {offsets = [0, 0], sizes = [64, 384], strides = [1, 1]} : vector<96x384xbf16> to vector<64x384xbf16>
    %c0_47 = arith.constant 0 : index
    %c0_48 = arith.constant 0 : index
    %c0_49 = arith.constant 0 : index
    %90 = vector.load %arg4[%c0_47, %c0_48, %c0_49] : memref<5x384x256xbf16, #tpu.memory_space<vmem>>, vector<1x384x256xbf16>
    %91 = vector.shape_cast %90 : vector<1x384x256xbf16> to vector<384x256xbf16>
    %cst_50 = arith.constant dense<0.000000e+00> : vector<64x256xf32>
    %92 = tpu.matmul %89, %91, %cst_50 {dimension_numbers = #tpu.dot_dimension_numbers<[1], [0], [0], [1], [0, 0, 1, 1], [], []>} : vector<64x384xbf16>, vector<384x256xbf16>, vector<64x256xf32> -> vector<64x256xf32>
    %93 = arith.addf %88, %92 : vector<64x256xf32>
    %94 = vector.extract_strided_slice %87 {offsets = [8, 0], sizes = [64, 384], strides = [1, 1]} : vector<96x384xbf16> to vector<64x384xbf16>
    %c1_51 = arith.constant 1 : index
    %c0_52 = arith.constant 0 : index
    %c0_53 = arith.constant 0 : index
    %95 = vector.load %arg4[%c1_51, %c0_52, %c0_53] : memref<5x384x256xbf16, #tpu.memory_space<vmem>>, vector<1x384x256xbf16>
    %96 = vector.shape_cast %95 : vector<1x384x256xbf16> to vector<384x256xbf16>
    %cst_54 = arith.constant dense<0.000000e+00> : vector<64x256xf32>
    %97 = tpu.matmul %94, %96, %cst_54 {dimension_numbers = #tpu.dot_dimension_numbers<[1], [0], [0], [1], [0, 0, 1, 1], [], []>} : vector<64x384xbf16>, vector<384x256xbf16>, vector<64x256xf32> -> vector<64x256xf32>
    %98 = arith.addf %93, %97 : vector<64x256xf32>
    %99 = vector.extract_strided_slice %87 {offsets = [16, 0], sizes = [64, 384], strides = [1, 1]} : vector<96x384xbf16> to vector<64x384xbf16>
    %c2_55 = arith.constant 2 : index
    %c0_56 = arith.constant 0 : index
    %c0_57 = arith.constant 0 : index
    %100 = vector.load %arg4[%c2_55, %c0_56, %c0_57] : memref<5x384x256xbf16, #tpu.memory_space<vmem>>, vector<1x384x256xbf16>
    %101 = vector.shape_cast %100 : vector<1x384x256xbf16> to vector<384x256xbf16>
    %cst_58 = arith.constant dense<0.000000e+00> : vector<64x256xf32>
    %102 = tpu.matmul %99, %101, %cst_58 {dimension_numbers = #tpu.dot_dimension_numbers<[1], [0], [0], [1], [0, 0, 1, 1], [], []>} : vector<64x384xbf16>, vector<384x256xbf16>, vector<64x256xf32> -> vector<64x256xf32>
    %103 = arith.addf %98, %102 : vector<64x256xf32>
    %104 = vector.extract_strided_slice %87 {offsets = [24, 0], sizes = [64, 384], strides = [1, 1]} : vector<96x384xbf16> to vector<64x384xbf16>
    %c3_59 = arith.constant 3 : index
    %c0_60 = arith.constant 0 : index
    %c0_61 = arith.constant 0 : index
    %105 = vector.load %arg4[%c3_59, %c0_60, %c0_61] : memref<5x384x256xbf16, #tpu.memory_space<vmem>>, vector<1x384x256xbf16>
    %106 = vector.shape_cast %105 : vector<1x384x256xbf16> to vector<384x256xbf16>
    %cst_62 = arith.constant dense<0.000000e+00> : vector<64x256xf32>
    %107 = tpu.matmul %104, %106, %cst_62 {dimension_numbers = #tpu.dot_dimension_numbers<[1], [0], [0], [1], [0, 0, 1, 1], [], []>} : vector<64x384xbf16>, vector<384x256xbf16>, vector<64x256xf32> -> vector<64x256xf32>
    %108 = arith.addf %103, %107 : vector<64x256xf32>
    %109 = vector.extract_strided_slice %87 {offsets = [32, 0], sizes = [64, 384], strides = [1, 1]} : vector<96x384xbf16> to vector<64x384xbf16>
    %c4_63 = arith.constant 4 : index
    %c0_64 = arith.constant 0 : index
    %c0_65 = arith.constant 0 : index
    %110 = vector.load %arg4[%c4_63, %c0_64, %c0_65] : memref<5x384x256xbf16, #tpu.memory_space<vmem>>, vector<1x384x256xbf16>
    %111 = vector.shape_cast %110 : vector<1x384x256xbf16> to vector<384x256xbf16>
    %cst_66 = arith.constant dense<0.000000e+00> : vector<64x256xf32>
    %112 = tpu.matmul %109, %111, %cst_66 {dimension_numbers = #tpu.dot_dimension_numbers<[1], [0], [0], [1], [0, 0, 1, 1], [], []>} : vector<64x384xbf16>, vector<384x256xbf16>, vector<64x256xf32> -> vector<64x256xf32>
    %113 = arith.addf %108, %112 : vector<64x256xf32>
    %c0_67 = arith.constant 0 : index
    %c0_68 = arith.constant 0 : index
    %114 = vector.load %arg5[%c0_67, %c0_68] : memref<1x256xf32, #tpu.memory_space<vmem>>, vector<1x256xf32>
    %115 = vector.broadcast %114 : vector<1x256xf32> to vector<64x256xf32>
    %116 = arith.addf %113, %115 : vector<64x256xf32>
    %cst_69 = arith.constant 0.000000e+00 : f32
    %117 = vector.broadcast %cst_69 : f32 to vector<64x256xf32>
    %118 = arith.maximumf %116, %117 : vector<64x256xf32>
    %119 = vector.extract_strided_slice %118 {offsets = [0, 0], sizes = [64, 128], strides = [1, 1]} : vector<64x256xf32> to vector<64x128xf32>
    %120 = vector.extract_strided_slice %118 {offsets = [0, 128], sizes = [64, 128], strides = [1, 1]} : vector<64x256xf32> to vector<64x128xf32>
    %121 = arith.maximumf %119, %120 : vector<64x128xf32>
    %cst_70 = arith.constant 0.000000e+00 : f32
    %122 = vector.broadcast %cst_70 : f32 to vector<8x128xf32>
    %123 = vector.extract_strided_slice %121 {offsets = [0, 0], sizes = [8, 128], strides = [1, 1]} : vector<64x128xf32> to vector<8x128xf32>
    %124 = vector.extract_strided_slice %121 {offsets = [8, 0], sizes = [8, 128], strides = [1, 1]} : vector<64x128xf32> to vector<8x128xf32>
    %125 = arith.maximumf %123, %124 : vector<8x128xf32>
    %c0_71 = arith.constant 0 : index
    %c0_72 = arith.constant 0 : index
    %c0_73 = arith.constant 0 : index
    %126 = vector.load %arg6[%c0_71, %c0_72, %c0_73] : memref<4x128x128xf32, #tpu.memory_space<vmem>>, vector<1x128x128xf32>
    %127 = vector.shape_cast %126 : vector<1x128x128xf32> to vector<128x128xf32>
    %cst_74 = arith.constant dense<0.000000e+00> : vector<8x128xf32>
    %128 = tpu.matmul %125, %127, %cst_74 {dimension_numbers = #tpu.dot_dimension_numbers<[1], [0], [0], [1], [0, 0, 1, 1], [], []>} : vector<8x128xf32>, vector<128x128xf32>, vector<8x128xf32> -> vector<8x128xf32>
    %129 = arith.addf %122, %128 : vector<8x128xf32>
    %130 = vector.extract_strided_slice %121 {offsets = [16, 0], sizes = [8, 128], strides = [1, 1]} : vector<64x128xf32> to vector<8x128xf32>
    %131 = vector.extract_strided_slice %121 {offsets = [24, 0], sizes = [8, 128], strides = [1, 1]} : vector<64x128xf32> to vector<8x128xf32>
    %132 = arith.maximumf %130, %131 : vector<8x128xf32>
    %c1_75 = arith.constant 1 : index
    %c0_76 = arith.constant 0 : index
    %c0_77 = arith.constant 0 : index
    %133 = vector.load %arg6[%c1_75, %c0_76, %c0_77] : memref<4x128x128xf32, #tpu.memory_space<vmem>>, vector<1x128x128xf32>
    %134 = vector.shape_cast %133 : vector<1x128x128xf32> to vector<128x128xf32>
    %cst_78 = arith.constant dense<0.000000e+00> : vector<8x128xf32>
    %135 = tpu.matmul %132, %134, %cst_78 {dimension_numbers = #tpu.dot_dimension_numbers<[1], [0], [0], [1], [0, 0, 1, 1], [], []>} : vector<8x128xf32>, vector<128x128xf32>, vector<8x128xf32> -> vector<8x128xf32>
    %136 = arith.addf %129, %135 : vector<8x128xf32>
    %137 = vector.extract_strided_slice %121 {offsets = [32, 0], sizes = [8, 128], strides = [1, 1]} : vector<64x128xf32> to vector<8x128xf32>
    %138 = vector.extract_strided_slice %121 {offsets = [40, 0], sizes = [8, 128], strides = [1, 1]} : vector<64x128xf32> to vector<8x128xf32>
    %139 = arith.maximumf %137, %138 : vector<8x128xf32>
    %c2_79 = arith.constant 2 : index
    %c0_80 = arith.constant 0 : index
    %c0_81 = arith.constant 0 : index
    %140 = vector.load %arg6[%c2_79, %c0_80, %c0_81] : memref<4x128x128xf32, #tpu.memory_space<vmem>>, vector<1x128x128xf32>
    %141 = vector.shape_cast %140 : vector<1x128x128xf32> to vector<128x128xf32>
    %cst_82 = arith.constant dense<0.000000e+00> : vector<8x128xf32>
    %142 = tpu.matmul %139, %141, %cst_82 {dimension_numbers = #tpu.dot_dimension_numbers<[1], [0], [0], [1], [0, 0, 1, 1], [], []>} : vector<8x128xf32>, vector<128x128xf32>, vector<8x128xf32> -> vector<8x128xf32>
    %143 = arith.addf %136, %142 : vector<8x128xf32>
    %144 = vector.extract_strided_slice %121 {offsets = [48, 0], sizes = [8, 128], strides = [1, 1]} : vector<64x128xf32> to vector<8x128xf32>
    %145 = vector.extract_strided_slice %121 {offsets = [56, 0], sizes = [8, 128], strides = [1, 1]} : vector<64x128xf32> to vector<8x128xf32>
    %146 = arith.maximumf %144, %145 : vector<8x128xf32>
    %c3_83 = arith.constant 3 : index
    %c0_84 = arith.constant 0 : index
    %c0_85 = arith.constant 0 : index
    %147 = vector.load %arg6[%c3_83, %c0_84, %c0_85] : memref<4x128x128xf32, #tpu.memory_space<vmem>>, vector<1x128x128xf32>
    %148 = vector.shape_cast %147 : vector<1x128x128xf32> to vector<128x128xf32>
    %cst_86 = arith.constant dense<0.000000e+00> : vector<8x128xf32>
    %149 = tpu.matmul %146, %148, %cst_86 {dimension_numbers = #tpu.dot_dimension_numbers<[1], [0], [0], [1], [0, 0, 1, 1], [], []>} : vector<8x128xf32>, vector<128x128xf32>, vector<8x128xf32> -> vector<8x128xf32>
    %150 = arith.addf %143, %149 : vector<8x128xf32>
    %c0_87 = arith.constant 0 : index
    %c0_88 = arith.constant 0 : index
    %151 = vector.load %arg7[%c0_87, %c0_88] : memref<1x128xf32, #tpu.memory_space<vmem>>, vector<1x128xf32>
    %152 = vector.broadcast %151 : vector<1x128xf32> to vector<8x128xf32>
    %153 = arith.addf %150, %152 : vector<8x128xf32>
    %cst_89 = arith.constant 0.000000e+00 : f32
    %154 = vector.broadcast %cst_89 : f32 to vector<8x128xf32>
    %155 = arith.maximumf %153, %154 : vector<8x128xf32>
    %c0_90 = arith.constant 0 : index
    %c0_91 = arith.constant 0 : index
    %156 = vector.load %arg8[%c0_90, %c0_91] : memref<128x10xf32, #tpu.memory_space<vmem>>, vector<128x10xf32>
    %cst_92 = arith.constant dense<0.000000e+00> : vector<8x10xf32>
    %157 = tpu.matmul %155, %156, %cst_92 {dimension_numbers = #tpu.dot_dimension_numbers<[1], [0], [0], [1], [0, 0, 1, 1], [], []>} : vector<8x128xf32>, vector<128x10xf32>, vector<8x10xf32> -> vector<8x10xf32>
    %c0_93 = arith.constant 0 : index
    %c0_94 = arith.constant 0 : index
    %158 = vector.load %arg9[%c0_93, %c0_94] : memref<1x10xf32, #tpu.memory_space<vmem>>, vector<1x10xf32>
    %159 = vector.broadcast %158 : vector<1x10xf32> to vector<8x10xf32>
    %160 = arith.addf %157, %159 : vector<8x10xf32>
    %cst_95 = arith.constant dense<0xFF800000> : vector<8xf32>
    %161 = vector.multi_reduction <maximumf>, %160, %cst_95 [1] : vector<8x10xf32> to vector<8xf32>
    %162 = vector.shape_cast %161 : vector<8xf32> to vector<8x1xf32>
    %163 = vector.broadcast %162 : vector<8x1xf32> to vector<8x10xf32>
    %164 = arith.subf %160, %163 : vector<8x10xf32>
    %165 = math.exp %164 : vector<8x10xf32>
    %cst_96 = arith.constant dense<0.000000e+00> : vector<8xf32>
    %166 = vector.multi_reduction <add>, %165, %cst_96 [1] : vector<8x10xf32> to vector<8xf32>
    %167 = vector.shape_cast %166 : vector<8xf32> to vector<8x1xf32>
    %168 = math.log %167 : vector<8x1xf32>
    %169 = vector.broadcast %168 : vector<8x1xf32> to vector<8x10xf32>
    %170 = arith.subf %164, %169 : vector<8x10xf32>
    %c0_97 = arith.constant 0 : index
    %c0_98 = arith.constant 0 : index
    %171 = vector.load %arg10[%c0_97, %c0_98] : memref<8x10xf32, #tpu.memory_space<vmem>>, vector<8x10xf32>
    tpu.vector_store %arg10[%c0_97, %c0_98], %170 {strides = array<i32>} : memref<8x10xf32, #tpu.memory_space<vmem>>, vector<8x10xf32>,
    return
  }
  func.func @transform_0(%arg0: i32) -> (i32, i32, i32, i32) {
    %c0_i32 = arith.constant 0 : i32
    %c0_i32_0 = arith.constant 0 : i32
    %c0_i32_1 = arith.constant 0 : i32
    %c0_i32_2 = arith.constant 0 : i32
    return %c0_i32, %c0_i32_0, %arg0, %c0_i32_1 : i32, i32, i32, i32
  }
  func.func @transform_1(%arg0: i32) -> (i32, i32, i32) {
    %c0_i32 = arith.constant 0 : i32
    %c0_i32_0 = arith.constant 0 : i32
    %c0_i32_1 = arith.constant 0 : i32
    %c0_i32_2 = arith.constant 0 : i32
    return %c0_i32, %c0_i32_0, %c0_i32_1 : i32, i32, i32
  }
  func.func @transform_2(%arg0: i32) -> (i32, i32) {
    %c0_i32 = arith.constant 0 : i32
    %c0_i32_0 = arith.constant 0 : i32
    %c0_i32_1 = arith.constant 0 : i32
    return %c0_i32, %c0_i32_0 : i32, i32
  }
  func.func @transform_3(%arg0: i32) -> (i32, i32, i32) {
    %c0_i32 = arith.constant 0 : i32
    %c0_i32_0 = arith.constant 0 : i32
    %c0_i32_1 = arith.constant 0 : i32
    %c0_i32_2 = arith.constant 0 : i32
    return %c0_i32, %c0_i32_0, %c0_i32_1 : i32, i32, i32
  }
  func.func @transform_4(%arg0: i32) -> (i32, i32) {
    %c0_i32 = arith.constant 0 : i32
    %c0_i32_0 = arith.constant 0 : i32
    %c0_i32_1 = arith.constant 0 : i32
    return %c0_i32, %c0_i32_0 : i32, i32
  }
  func.func @transform_5(%arg0: i32) -> (i32, i32, i32) {
    %c0_i32 = arith.constant 0 : i32
    %c0_i32_0 = arith.constant 0 : i32
    %c0_i32_1 = arith.constant 0 : i32
    %c0_i32_2 = arith.constant 0 : i32
    return %c0_i32, %c0_i32_0, %c0_i32_1 : i32, i32, i32
  }
  func.func @transform_6(%arg0: i32) -> (i32, i32) {
    %c0_i32 = arith.constant 0 : i32
    %c0_i32_0 = arith.constant 0 : i32
    %c0_i32_1 = arith.constant 0 : i32
    return %c0_i32, %c0_i32_0 : i32, i32
  }
  func.func @transform_7(%arg0: i32) -> (i32, i32) {
    %c0_i32 = arith.constant 0 : i32
    %c0_i32_0 = arith.constant 0 : i32
    %c0_i32_1 = arith.constant 0 : i32
    return %c0_i32, %c0_i32_0 : i32, i32
  }
  func.func @transform_8(%arg0: i32) -> (i32, i32) {
    %c0_i32 = arith.constant 0 : i32
    %c0_i32_0 = arith.constant 0 : i32
    %c0_i32_1 = arith.constant 0 : i32
    return %c0_i32, %c0_i32_0 : i32, i32
  }
  func.func @transform_9(%arg0: i32) -> (i32, i32) {
    %c0_i32 = arith.constant 0 : i32
    %c0_i32_0 = arith.constant 0 : i32
    return %arg0, %c0_i32 : i32, i32
  }
}

</mosaic_0001>

<bundles_post_ra>
// kernel: mnist_small_net_forward.1
= control target key start
LH: loop header
LB: loop body
LE: loop exit
PB: predicated region body
PF: predicated region fallthrough
CT: control target
= control target key end

     0   :  { %14 = vsyncpa [#allocation3], 0  ;;  %s12736_s0 = inlined_call_operand.vmem [shape: bf16[2,16,8,32], index: 0, kind: input, shape index: {}]   ;;  %s12737_s1 = inlined_call_operand.hbm [shape: bf16[5,32,768], index: 1, kind: input, shape index: {}]   ;;  %s12738_s2 = inlined_call_operand.vmem [shape: f32[1,768], index: 2, kind: input, shape index: {}]   ;;  %s12739_s3 = inlined_call_operand.hbm [shape: bf16[5,384,256], index: 3, kind: input, shape index: {}]   ;;  %s12740_s4 = inlined_call_operand.vmem [shape: f32[1,256], index: 4, kind: input, shape index: {}]   ;;  %s12741_s5 = inlined_call_operand.vmem [shape: f32[4,128,128], index: 5, kind: input, shape index: {}]   ;;  %s12742_s6 = inlined_call_operand.vmem [shape: f32[1,128], index: 6, kind: input, shape index: {}]   ;;  %s12743_s7 = inlined_call_operand.vmem [shape: f32[128,10], index: 7, kind: input, shape index: {}]   ;;  %s12744_s8 = inlined_call_operand.vmem [shape: f32[1,10], index: 8, kind: input, shape index: {}]   ;;  %s12745_s9 = inlined_call_operand.vmem [shape: f32[8,10], index: 9, kind: output, shape index: {}]  }
   0x1   :  { %15 = vsyncpa [#allocation5], 0  ;;  %s8512_s30 = smov [#allocation2]  }
   0x2   :  { %s23_s10 = sshll.u32 %s8512_s30, 4  ;;  %s24_s10 = int_to_ptr.vmem [resolvable:$true] %s23_s10 }
   0x3   :  { %s8476_s11 = scalar_lea.vmem %s24_s10, 7680  ;;  %p8481_p1 = scmp.lt.s32.totalorder %s24_s10, %s24_s10 }
   0x4   :  { %p8477_p0 = scmp.ne.s32.totalorder %s24_s10, %s8476_s11  ;;  %p8482_p2 = scmp.lt.s32.totalorder %s8476_s11, %s8476_s11 }
   0x6   :  { %p8483_p3 = por %p8482_p2, %p8481_p1 }
   0x8   :  { %p8484_p4 = pnand %p8483_p3, %p8477_p0 }
   0xa   :  { %8487 = shalt.err (!%p8484_p4)
}
   0xb   :  { %s8513_s12 = smov 384   ;;  %s8514_s13 = smov 24  }
   0xc   :  { %29 = dma.hbm_to_vmem [thread:$0]  %s12737_s1, 7680, %s24_s10, [#allocation3], %s8513_s12, %s8513_s12, %s8514_s13  }
   0xd   :  { %s8515_s16 = smov [#allocation4]  }
   0xe   :  { %s37_s17 = sshll.u32 %s8515_s16, 4  ;;  %s38_s17 = int_to_ptr.vmem [resolvable:$true] %s37_s17 }
   0xf   :  { %s8496_s18 = scalar_lea.vmem %s38_s17, 30720  ;;  %p8501_p6 = scmp.lt.s32.totalorder %s38_s17, %s38_s17 }
  0x10   :  { %p8497_p5 = scmp.ne.s32.totalorder %s38_s17, %s8496_s18  ;;  %p8502_p7 = scmp.lt.s32.totalorder %s8496_s18, %s8496_s18 }
  0x12   :  { %p8503_p8 = por %p8502_p7, %p8501_p6 }
  0x14   :  { %p8504_p9 = pnand %p8503_p8, %p8497_p5 }
  0x16   :  { %8507 = shalt.err (!%p8504_p9)
}
  0x17   :  { %s8516_s19 = smov 128   ;;  %s8517_s20 = smov 8  }
  0x18   :  { %43 = dma.hbm_to_vmem [thread:$0]  %s12739_s3, 30720, %s38_s17, [#allocation5], %s8516_s19, %s8516_s19, %s8517_s20  }
  0x19   :  { %8508 = dma.done.wait [#allocation3], 7680  }
  0x1a   :  { %8509 = vsyncadd [#allocation3], 4294959616 }
  0x1b   :  { %8510 = dma.done.wait [#allocation5], 30720  }
  0x1c   :  { %8511 = vsyncadd [#allocation5], 4294936576  ;;  %v12756_v0 = vmov 0   ;;  %v7927_v1 = vld [vmem:[#allocation2 + $0x94] ss:$24 sps:$4 sm:$0xff]   ;;  %vm204_vm0 = vcmask 261120  }
  0x1d   :  { %255 = vmatprep.mubr.bf16.mxu0 %v12756_v0  ;;  %358 = vmatprep.mubr.bf16.mxu1 %v12756_v0  ;;  %v7929_v2 = vld [vmem:[#allocation2 + $0x9c] ss:$24 sps:$4 sm:$0xff]   ;;  %v7931_v3 = vld [vmem:[#allocation2 + $0x90] ss:$24 sps:$4 sm:$0xff]   ;;  %v7935_v6 = vld [vmem:[#allocation2 + $0x6c] ss:$24 sps:$4 sm:$0xff]  }
  0x1e   :  { %235 = vmatprep.subr.bf16.mxu0 %v7927_v1  ;;  %v7932_v4 = vld [vmem:[#allocation2 + $0x98] ss:$24 sps:$4 sm:$0xff]   ;;  %7914 = vmatprep.subr.bf16.mxu1 %v7929_v2  ;;  %v7933_v5 = vld [vmem:[#allocation2 + $0x64] ss:$24 sps:$4 sm:$0xff]   ;;  %v7938_v8 = vld [vmem:[#allocation2 + $0x68] ss:$24 sps:$4 sm:$0xff]  }
  0x1f   :  { %236 = vmatpush1.bf16.msra.mxu0 %v7931_v3  ;;  %7916 = vmatpush1.bf16.msra.mxu1 %v7932_v4  ;;  %v7937_v7 = vld [vmem:[#allocation2 + $0x60] ss:$24 sps:$4 sm:$0xff]   ;;  %v8585_v10 = vld [vmem:[%s12736_s0 + $0x44] sm:$0xf]  ;;  %v8590_v11 = vld [vmem:[%s12736_s0 + $0x48] sm:$0xf] }
  0x20   :  { %237 = vmatprep.subr.bf16.mxu0 %v7933_v5  ;;  %v75_v9 = vld [vmem:[%s12736_s0 + $0x40] sm:$0xf]  ;;  %7915 = vmatprep.subr.bf16.mxu1 %v7935_v6  ;;  %v8595_v12 = vld [vmem:[%s12736_s0 + $0x4c] sm:$0xf]  ;;  %v7943_v16 = vld [vmem:[#allocation2 + $0x30] ss:$24 sps:$4 sm:$0xff]   ;;  %v8753_v62 = vcombine.low %v8585_v10, %v8590_v11 }
  0x21   :  { %v8598_v13 = vcombine.low %v75_v9, %v8585_v10  ;;  %v8602_v14 = vcombine.low %v8590_v11, %v8595_v12  ;;  %v7945_v15 = vld [vmem:[#allocation2 + $0x34] ss:$24 sps:$4 sm:$0xff]   ;;  %v7950_v17 = vld [vmem:[#allocation2 + $0x4] ss:$24 sps:$4 sm:$0xff]   ;;  %v8612_v18 = vld [vmem:[%s12736_s0 + $0x50] sm:$0xf] }
  0x22   :  { %v8617_v19 = vld [vmem:[%s12736_s0 + $0x54] sm:$0xf]  ;;  %v7954_v20 = vld [vmem:[#allocation2 + $0xa4] ss:$24 sps:$4 sm:$0xff]   ;;  %v7948_v21 = vld [vmem:[#allocation2] ss:$24 sps:$4 sm:$0xff]  }
  0x23   :  { %12842 = vst [vmem:[#allocation8_spill] sm:$0xff] %v8598_v13  ;;  %12843 = vst [vmem:[#allocation9_spill] sm:$0xff] %v8602_v14  ;;  %238 = vmatpush1.bf16.msra.mxu0 %v7937_v7  ;;  %7917 = vmatpush1.bf16.msra.mxu1 %v7938_v8  ;;  %v8622_v22 = vcombine.low %v8612_v18, %v8617_v19  ;;  %v62_v23 = vld [vmem:[%s12736_s0 + $0x4] sm:$0xf]  ;;  %v63_v24 = vld [vmem:[%s12736_s0 + $0x8] sm:$0xf] }
  0x24   :  { %328 = vmatprep.subr.bf16.mxu0 %v7929_v2  ;;  %622 = vmatprep.subr.bf16.mxu1 %v7945_v15  ;;  %v8630_v25 = vcombine.low %v62_v23, %v63_v24  ;;  %v7965_v26 = vld [vmem:[#allocation2 + $0x44] ss:$24 sps:$4 sm:$0xff]   ;;  %v8641_v27 = vld [vmem:[%s12736_s0 + $0x58] sm:$0xf]  ;;  %v64_v30 = vld [vmem:[%s12736_s0 + $0xc] sm:$0xf] }
  0x25   :  { %12844 = vst [vmem:[#allocation10_spill] sm:$0xff] %v8622_v22  ;;  %v8646_v28 = vld [vmem:[%s12736_s0 + $0x5c] sm:$0xf]  ;;  %v65_v31 = vld [vmem:[%s12736_s0 + $0x10] sm:$0xf]  ;;  %v8741_v55 = vcombine.low %v63_v24, %v64_v30  ;;  %12851 = vst [vmem:[#allocation17_spill] sm:$0xff] %v8753_v62 }
  0x26   :  { %7116 = vmatmul.mubr.msk.bf16.vlgmr.msra.gmra.mxu0 %vm204_vm0, %v8598_v13  ;;  %7123 = vmatmul.mubr.msk.bf16.vlgmr.msra.gmra.mxu1 %vm204_vm0, %v8602_v14  ;;  %v8650_v29 = vcombine.low %v8641_v27, %v8646_v28  ;;  %v8658_v32 = vcombine.low %v64_v30, %v65_v31  ;;  %v8667_v33 = vld [vmem:[%s12736_s0 + $0x60] sm:$0xf]  ;;  %v8674_v34 = vld [vmem:[%s12736_s0 + $0x64] sm:$0xf]  ;;  %v66_v35 = vld [vmem:[%s12736_s0 + $0x14] sm:$0xf] }
  0x27   :  { %329 = vmatpush1.bf16.msra.mxu0 %v7932_v4  ;;  %265 = vmatprep.mubr.bf16.mxu0 %v12756_v0  ;;  %v67_v36 = vld [vmem:[%s12736_s0 + $0x18] sm:$0xf]  ;;  %v8684_v37 = vcombine.low %v8667_v33, %v8674_v34  ;;  %v8695_v39 = vld [vmem:[%s12736_s0 + $0x68] sm:$0xf]  ;;  %v8702_v40 = vld [vmem:[%s12736_s0 + $0x6c] sm:$0xf]  ;;  %v8749_v60 = vcombine.low %v65_v31, %v66_v35 }
  0x28   :  { %368 = vmatprep.mubr.bf16.mxu1 %v12756_v0  ;;  %623 = vmatpush1.bf16.msra.mxu1 %v7943_v16  ;;  %12845 = vst [vmem:[#allocation11_spill] sm:$0xff] %v8650_v29  ;;  %v8686_v38 = vcombine.low %v66_v35, %v67_v36  ;;  %v68_v41 = vld [vmem:[%s12736_s0 + $0x1c] sm:$0xf]  ;;  %v69_v42 = vld [vmem:[%s12736_s0 + $0x20] sm:$0xf]  ;;  %v8712_v43 = vcombine.low %v8695_v39, %v8702_v40  ;;  %12849 = vst [vmem:[#allocation15_spill] sm:$0xff] %v8741_v55 }
  0x29   :  { %330 = vmatprep.subr.bf16.mxu0 %v7935_v6  ;;  %624 = vmatprep.subr.bf16.mxu1 %v7950_v17  ;;  %12846 = vst [vmem:[#allocation12_spill] sm:$0xff] %v8684_v37  ;;  %v8714_v44 = vcombine.low %v68_v41, %v69_v42  ;;  %v61_v45 = vld [vmem:[%s12736_s0] sm:$0xf]  ;;  %v70_v46 = vld [vmem:[%s12736_s0 + $0x24] sm:$0xf]  ;;  %12850 = vst [vmem:[#allocation16_spill] sm:$0xff] %v8749_v60  ;;  %v8761_v2 = vcombine.low %v67_v36, %v68_v41 }
  0x2a   :  { %12847 = vst [vmem:[#allocation13_spill] sm:$0xff] %v8712_v43  ;;  %v71_v47 = vld [vmem:[%s12736_s0 + $0x28] sm:$0xf]  ;;  %v8731_v48 = vcombine.low %v61_v45, %v62_v23  ;;  %v7963_v49 = vld [vmem:[#allocation2 + $0x40] ss:$24 sps:$4 sm:$0xff]   ;;  %v8769_v3 = vcombine.low %v69_v42, %v70_v46  ;;  %vm4394_vm1 = vcmask 1043456  }
  0x2b   :  { %331 = vmatpush1.bf16.msra.mxu0 %v7938_v8  ;;  %v7974_v50 = vld [vmem:[#allocation2 + $0x14] ss:$24 sps:$4 sm:$0xff]   ;;  %v8733_v51 = vcombine.low %v70_v46, %v71_v47  ;;  %v7972_v52 = vld [vmem:[#allocation2 + $0x10] ss:$24 sps:$4 sm:$0xff]   ;;  %v7952_v54 = vld [vmem:[#allocation2 + $0xa0] ss:$24 sps:$4 sm:$0xff]  }
  0x2c   :  { %421 = vmatprep.subr.bf16.mxu0 %v7954_v20  ;;  %625 = vmatpush1.bf16.msra.mxu1 %v7948_v21  ;;  %v7980_v53 = vld [vmem:[#allocation2 + $0xfc] ss:$24 sps:$4 sm:$0xff]   ;;  %v7956_v57 = vld [vmem:[#allocation2 + $0x70] ss:$24 sps:$4 sm:$0xff]   ;;  %v7971_v61 = vld [vmem:[#allocation2 + $0xc] ss:$24 sps:$4 sm:$0xff]  }
  0x2d   :  { %808 = vmatprep.subr.bf16.mxu1 %v7965_v26  ;;  %12848 = vst [vmem:[#allocation14_spill] sm:$0xff] %v8733_v51  ;;  %v7958_v56 = vld [vmem:[#allocation2 + $0x74] ss:$24 sps:$4 sm:$0xff]   ;;  %v7960_v59 = vld [vmem:[#allocation2 + $0x38] ss:$24 sps:$4 sm:$0xff]   ;;  %12852 = vst [vmem:[#allocation18_spill] sm:$0xff] %v8761_v2 }
  0x2e   :  { %7117 = vmatmul.mubr.msk.bf16.gmra.mxu0 %vm204_vm0, %v8602_v14  ;;  %7124 = vmatmul.mubr.msk.bf16.gmra.mxu1 %vm204_vm0, %v8622_v22  ;;  %v7962_v58 = vld [vmem:[#allocation2 + $0x3c] ss:$24 sps:$4 sm:$0xff]   ;;  %v7969_v63 = vld [vmem:[#allocation2 + $0x8] ss:$24 sps:$4 sm:$0xff]   ;;  %12853 = vst [vmem:[#allocation19_spill] sm:$0xff] %v8769_v3  ;;  %vm8520_vm2 = vmmov 0  }
  0x2f   :  { %275 = vmatprep.mubr.bf16.mxu0 %v12756_v0  ;;  %378 = vmatprep.mubr.bf16.mxu1 %v12756_v0  ;;  %v7977_v1 = vld [vmem:[#allocation2 + $0xf4] ss:$24 sps:$4 sm:$0xff]   ;;  %v7978_v6 = vld [vmem:[#allocation2 + $0xf8] ss:$24 sps:$4 sm:$0xff]   ;;  %v7984_v8 = vld [vmem:[#allocation2 + $0xc8] ss:$24 sps:$4 sm:$0xff]  }
  0x30   :  { %v8780_v4 = vld [vmem:[%s12736_s0 + $0x2c] sm:$0xf]  ;;  %v7975_v10 = vld [vmem:[#allocation2 + $0xf0] ss:$24 sps:$4 sm:$0xff]   ;;  %v7983_v11 = vld [vmem:[#allocation2 + $0xc4] ss:$24 sps:$4 sm:$0xff]  }
  0x31   :  { %v8783_v5 = vcombine.low %v71_v47, %v8780_v4  ;;  %v7986_v7 = vld [vmem:[#allocation2 + $0xcc] ss:$24 sps:$4 sm:$0xff]   ;;  %v7981_v15 = vld [vmem:[#allocation2 + $0xc0] ss:$24 sps:$4 sm:$0xff]   ;;  %v7993_v17 = vld [vmem:[#allocation2 + $0x150] ss:$24 sps:$4 sm:$0xff]   ;;  %v8880_v47 = vcombine.low %v8595_v12, %v8612_v18 }
  0x32   :  { %v7995_v9 = vld [vmem:[#allocation2 + $0x154] ss:$24 sps:$4 sm:$0xff]   ;;  %v7992_v16 = vld [vmem:[#allocation2 + $0x104] ss:$24 sps:$4 sm:$0xff]   ;;  %v8002_v21 = vld [vmem:[#allocation2 + $0x120] ss:$24 sps:$4 sm:$0xff]  }
  0x33   :  { %12854 = vst [vmem:[#allocation20_spill] sm:$0xff] %v8783_v5  ;;  %v8004_v20 = vld [vmem:[#allocation2 + $0x124] ss:$24 sps:$4 sm:$0xff]   ;;  %v7990_v24 = vld [vmem:[#allocation2 + $0x100] ss:$24 sps:$4 sm:$0xff]   ;;  %12856 = vst [vmem:[#allocation22_spill] sm:$0xff] %v8880_v47 }
  0x34   :  { %v8013_v23 = vld [vmem:[#allocation2 + $0x164] ss:$24 sps:$4 sm:$0xff]   ;;  %v8001_v26 = vld [vmem:[#allocation2 + $0xd4] ss:$24 sps:$4 sm:$0xff]   ;;  %v7999_v30 = vld [vmem:[#allocation2 + $0xd0] ss:$24 sps:$4 sm:$0xff]  }
  0x35   :  { %v8010_v31 = vld [vmem:[#allocation2 + $0x15c] ss:$24 sps:$4 sm:$0xff]   ;;  %v8860_v35 = vld [vmem:[%s12736_s0 + $0x30] sm:$0xf]  ;;  %v8011_v41 = vld [vmem:[#allocation2 + $0x160] ss:$24 sps:$4 sm:$0xff]  }
  0x36   :  { %7118 = vmatmul.mubr.msk.bf16.gmra.mxu0 %vm204_vm0, %v8622_v22  ;;  %7125 = vmatmul.mubr.msk.bf16.gmra.mxu1 %vm204_vm0, %v8650_v29  ;;  %v8864_v36 = vcombine.low %v8780_v4, %v8860_v35  ;;  %v8022_v42 = vld [vmem:[#allocation2 + $0x134] ss:$24 sps:$4 sm:$0xff]   ;;  %v8020_v45 = vld [vmem:[#allocation2 + $0x130] ss:$24 sps:$4 sm:$0xff]   ;;  %vm7078_vm3 = vcmask 80896  }
  0x37   :  { %285 = vmatprep.mubr.bf16.mxu0 %v12756_v0  ;;  %388 = vmatprep.mubr.bf16.mxu1 %v12756_v0  ;;  %v8028_v46 = vld [vmem:[#allocation2 + $0x1bc] ss:$24 sps:$4 sm:$0xff]  }
  0x38   :  { %12855 = vst [vmem:[#allocation21_spill] sm:$0xff] %v8864_v36 }
  0x3e   :  { %7119 = vmatmul.mubr.msk.bf16.gmra.mxu0 %vm204_vm0, %v8650_v29  ;;  %7126 = vmatmul.mubr.msk.bf16.gmra.mxu1 %vm204_vm0, %v8684_v37 }
  0x3f   :  { %295 = vmatprep.mubr.bf16.mxu0 %v12756_v0  ;;  %398 = vmatprep.mubr.bf16.mxu1 %v12756_v0 }
  0x46   :  { %7120 = vmatmul.mubr.msk.bf16.gmra.mxu0 %vm204_vm0, %v8684_v37  ;;  %7127 = vmatmul.mubr.msk.bf16.gmra.mxu1 %vm204_vm0, %v8712_v43 }
  0x47   :  { %305 = vmatprep.mubr.bf16.mxu0 %v12756_v0  ;;  %642 = vmatprep.mubr.bf16.mxu1 %v12756_v0 }
  0x4e   :  { %7121 = vmatmul.mubr.msk.bf16.gmra.mxu0 %vm204_vm0, %v8712_v43  ;;  %7152 = vmatmul.mubr.msk.bf16.vlgmr.msra.gmra.mxu1 %vm204_vm0, %v8731_v48 }
  0x4f   :  { %348 = vmatprep.mubr.bf16.mxu0 %v12756_v0  ;;  %652 = vmatprep.mubr.bf16.mxu1 %v12756_v0 }
  0x50   :  { %809 = vmatpush1.bf16.msra.mxu1 %v7963_v49 }
  0x51   :  { %810 = vmatprep.subr.bf16.mxu1 %v7974_v50 }
  0x54   :  { %811 = vmatpush1.bf16.msra.mxu1 %v7972_v52 }
  0x55   :  { %1093 = vmatprep.subr.bf16.mxu1 %v7980_v53  ;;  %v8902_v53 = vcombine.low %v8617_v19, %v8641_v27  ;;  %v8017_v19 = vld [vmem:[#allocation2 + $0x128] ss:$24 sps:$4 sm:$0xff]  }
  0x56   :  { %7122 = vmatmul.mubr.msk.bf16.vlgmr.msra.gmra.mxu0 %vm204_vm0, %v8598_v13  ;;  %7153 = vmatmul.mubr.msk.bf16.gmra.mxu1 %vm204_vm0, %v8741_v55 }
  0x57   :  { %422 = vmatpush1.bf16.msra.mxu0 %v7952_v54  ;;  %441 = vmatprep.mubr.bf16.mxu0 %v12756_v0  ;;  %12857 = vst [vmem:[#allocation23_spill] sm:$0xff] %v8902_v53  ;;  %v8008_v54 = vld [vmem:[#allocation2 + $0x158] ss:$24 sps:$4 sm:$0xff]  }
  0x58   :  { %423 = vmatprep.subr.bf16.mxu0 %v7958_v56  ;;  %662 = vmatprep.mubr.bf16.mxu1 %v12756_v0 }
  0x5b   :  { %424 = vmatpush1.bf16.msra.mxu0 %v7956_v57 }
  0x5c   :  { %715 = vmatprep.subr.bf16.mxu0 %v7962_v58  ;;  %v8019_v58 = vld [vmem:[#allocation2 + $0x12c] ss:$24 sps:$4 sm:$0xff]  }
  0x5e   :  { %7128 = vmatmul.mubr.msk.bf16.vlgmr.msra.gmra.mxu0 %vm204_vm0, %v8598_v13  ;;  %7154 = vmatmul.mubr.msk.bf16.gmra.mxu1 %vm204_vm0, %v8749_v60  ;;  %v12871_v13 = vmov 0  }
  0x5f   :  { %716 = vmatpush1.bf16.msra.mxu0 %v7960_v59  ;;  %451 = vmatprep.mubr.bf16.mxu0 %v12756_v0 }
  0x60   :  { %672 = vmatprep.mubr.bf16.mxu1 %v12756_v0  ;;  %717 = vmatprep.subr.bf16.mxu0 %v7971_v61 }
  0x63   :  { %718 = vmatpush1.bf16.msra.mxu0 %v7969_v63 }
  0x64   :  { %1000 = vmatprep.subr.bf16.mxu0 %v7977_v1  ;;  %v8025_v1 = vld [vmem:[#allocation2 + $0x1b4] ss:$24 sps:$4 sm:$0xff]  }
  0x66   :  { %7129 = vmatmul.mubr.msk.bf16.gmra.mxu0 %vm204_vm0, %v8602_v14  ;;  %7155 = vmatmul.mubr.msk.bf16.gmra.mxu1 %vm204_vm0, %v8761_v2 }
  0x67   :  { %461 = vmatprep.mubr.bf16.mxu0 %v12756_v0  ;;  %682 = vmatprep.mubr.bf16.mxu1 %v12756_v0 }
  0x6e   :  { %7130 = vmatmul.mubr.msk.bf16.gmra.mxu0 %vm204_vm0, %v8622_v22  ;;  %7156 = vmatmul.mubr.msk.bf16.gmra.mxu1 %vm204_vm0, %v8769_v3 }
  0x6f   :  { %471 = vmatprep.mubr.bf16.mxu0 %v12756_v0  ;;  %692 = vmatprep.mubr.bf16.mxu1 %v12756_v0 }
  0x76   :  { %7131 = vmatmul.mubr.msk.bf16.gmra.mxu0 %vm204_vm0, %v8650_v29  ;;  %7157 = vmatmul.mubr.msk.bf16.gmra.mxu1 %vm204_vm0, %v8783_v5  ;;  %v8034_v29 = vld [vmem:[#allocation2 + $0x18c] ss:$24 sps:$4 sm:$0xff]  }
  0x77   :  { %481 = vmatprep.mubr.bf16.mxu0 %v12756_v0  ;;  %828 = vmatprep.mubr.bf16.mxu1 %v12756_v0 }
  0x7e   :  { %7132 = vmatmul.mubr.msk.bf16.gmra.mxu0 %vm204_vm0, %v8684_v37  ;;  %7164 = vmatmul.mubr.msk.bf16.vlgmr.msra.gmra.mxu1 %vm204_vm0, %v8731_v48  ;;  %v8026_v37 = vld [vmem:[#allocation2 + $0x1b8] ss:$24 sps:$4 sm:$0xff]  }
  0x7f   :  { %491 = vmatprep.mubr.bf16.mxu0 %v12756_v0  ;;  %838 = vmatprep.mubr.bf16.mxu1 %v12756_v0 }
  0x80   :  { %1094 = vmatpush1.bf16.msra.mxu1 %v7978_v6 }
  0x81   :  { %1095 = vmatprep.subr.bf16.mxu1 %v7986_v7  ;;  %v8928_v7 = vcombine.low %v8646_v28, %v8667_v33 }
  0x83   :  { %12858 = vst [vmem:[#allocation24_spill] sm:$0xff] %v8928_v7 }
  0x84   :  { %1096 = vmatpush1.bf16.msra.mxu1 %v7984_v8 }
  0x85   :  { %1450 = vmatprep.subr.bf16.mxu1 %v7995_v9 }
  0x86   :  { %7133 = vmatmul.mubr.msk.bf16.gmra.mxu0 %vm204_vm0, %v8712_v43  ;;  %7165 = vmatmul.mubr.msk.bf16.gmra.mxu1 %vm204_vm0, %v8741_v55 }
  0x87   :  { %735 = vmatprep.mubr.bf16.mxu0 %v12756_v0  ;;  %848 = vmatprep.mubr.bf16.mxu1 %v12756_v0 }
  0x8e   :  { %7158 = vmatmul.mubr.msk.bf16.vlgmr.msra.gmra.mxu0 %vm204_vm0, %v8731_v48  ;;  %7166 = vmatmul.mubr.msk.bf16.gmra.mxu1 %vm204_vm0, %v8749_v60 }
  0x8f   :  { %1001 = vmatpush1.bf16.msra.mxu0 %v7975_v10  ;;  %745 = vmatprep.mubr.bf16.mxu0 %v12756_v0 }
  0x90   :  { %858 = vmatprep.mubr.bf16.mxu1 %v12756_v0  ;;  %1002 = vmatprep.subr.bf16.mxu0 %v7983_v11 }
  0x93   :  { %1003 = vmatpush1.bf16.msra.mxu0 %v7981_v15 }
  0x94   :  { %1186 = vmatprep.subr.bf16.mxu0 %v7992_v16 }
  0x96   :  { %7159 = vmatmul.mubr.msk.bf16.gmra.mxu0 %vm204_vm0, %v8741_v55  ;;  %7167 = vmatmul.mubr.msk.bf16.gmra.mxu1 %vm204_vm0, %v8761_v2 }
  0x97   :  { %755 = vmatprep.mubr.bf16.mxu0 %v12756_v0  ;;  %868 = vmatprep.mubr.bf16.mxu1 %v12756_v0 }
  0x9e   :  { %7160 = vmatmul.mubr.msk.bf16.gmra.mxu0 %vm204_vm0, %v8749_v60  ;;  %7168 = vmatmul.mubr.msk.bf16.gmra.mxu1 %vm204_vm0, %v8769_v3 }
  0x9f   :  { %765 = vmatprep.mubr.bf16.mxu0 %v12756_v0  ;;  %878 = vmatprep.mubr.bf16.mxu1 %v12756_v0 }
  0xa6   :  { %7161 = vmatmul.mubr.msk.bf16.gmra.mxu0 %vm204_vm0, %v8761_v2  ;;  %7169 = vmatmul.mubr.msk.bf16.gmra.mxu1 %vm204_vm0, %v8783_v5 }
  0xa7   :  { %775 = vmatprep.mubr.bf16.mxu0 %v12756_v0  ;;  %1113 = vmatprep.mubr.bf16.mxu1 %v12756_v0 }
  0xae   :  { %7162 = vmatmul.mubr.msk.bf16.gmra.mxu0 %vm204_vm0, %v8769_v3  ;;  %7194 = vmatmul.mubr.msk.bf16.vlgmr.msra.gmra.mxu1 %vm204_vm0, %v8630_v25 }
  0xaf   :  { %785 = vmatprep.mubr.bf16.mxu0 %v12756_v0  ;;  %1123 = vmatprep.mubr.bf16.mxu1 %v12756_v0 }
  0xb0   :  { %1451 = vmatpush1.bf16.msra.mxu1 %v7993_v17  ;;  %v8954_v17 = vcombine.low %v8674_v34, %v8695_v39  ;;  %v87_v34 = vld [vmem:[%s12736_s0 + $0x70] sm:$0xf] }
  0xb1   :  { %1452 = vmatprep.subr.bf16.mxu1 %v8004_v20 }
  0xb2   :  { %12860 = vst [vmem:[#allocation26_spill] sm:$0xff] %v8954_v17 }
  0xb4   :  { %1453 = vmatpush1.bf16.msra.mxu1 %v8002_v21 }
  0xb5   :  { %1636 = vmatprep.subr.bf16.mxu1 %v8013_v23 }
  0xb6   :  { %7163 = vmatmul.mubr.msk.bf16.gmra.mxu0 %vm204_vm0, %v8783_v5  ;;  %7195 = vmatmul.mubr.msk.bf16.gmra.mxu1 %vm204_vm0, %v8658_v32 }
  0xb7   :  { %1020 = vmatprep.mubr.bf16.mxu0 %v12756_v0  ;;  %1133 = vmatprep.mubr.bf16.mxu1 %v12756_v0 }
  0xbe   :  { %7188 = vmatmul.mubr.msk.bf16.vlgmr.msra.gmra.mxu0 %vm204_vm0, %v8630_v25  ;;  %7196 = vmatmul.mubr.msk.bf16.gmra.mxu1 %vm204_vm0, %v8686_v38 }
  0xbf   :  { %1187 = vmatpush1.bf16.msra.mxu0 %v7990_v24  ;;  %1030 = vmatprep.mubr.bf16.mxu0 %v12756_v0 }
  0xc0   :  { %1143 = vmatprep.mubr.bf16.mxu1 %v12756_v0  ;;  %1188 = vmatprep.subr.bf16.mxu0 %v8001_v26 }
  0xc3   :  { %1189 = vmatpush1.bf16.msra.mxu0 %v7999_v30 }
  0xc4   :  { %1543 = vmatprep.subr.bf16.mxu0 %v8010_v31 }
  0xc6   :  { %7189 = vmatmul.mubr.msk.bf16.gmra.mxu0 %vm204_vm0, %v8658_v32  ;;  %7197 = vmatmul.mubr.msk.bf16.gmra.mxu1 %vm204_vm0, %v8714_v44 }
  0xc7   :  { %1040 = vmatprep.mubr.bf16.mxu0 %v12756_v0  ;;  %1153 = vmatprep.mubr.bf16.mxu1 %v12756_v0 }
  0xce   :  { %7190 = vmatmul.mubr.msk.bf16.gmra.mxu0 %vm204_vm0, %v8686_v38  ;;  %7198 = vmatmul.mubr.msk.bf16.gmra.mxu1 %vm204_vm0, %v8733_v51 }
  0xcf   :  { %1050 = vmatprep.mubr.bf16.mxu0 %v12756_v0  ;;  %1163 = vmatprep.mubr.bf16.mxu1 %v12756_v0 }
  0xd6   :  { %7191 = vmatmul.mubr.msk.bf16.gmra.mxu0 %vm204_vm0, %v8714_v44  ;;  %7199 = vmatmul.mubr.msk.bf16.gmra.mxu1 %vm204_vm0, %v8864_v36 }
  0xd7   :  { %1060 = vmatprep.mubr.bf16.mxu0 %v12756_v0  ;;  %1470 = vmatprep.mubr.bf16.mxu1 %v12756_v0 }
  0xde   :  { %7192 = vmatmul.mubr.msk.bf16.gmra.mxu0 %vm204_vm0, %v8733_v51  ;;  %7224 = vmatmul.mubr.msk.bf16.vlgmr.msra.gmra.mxu1 %vm204_vm0, %v8753_v62 }
  0xdf   :  { %1070 = vmatprep.mubr.bf16.mxu0 %v12756_v0  ;;  %1480 = vmatprep.mubr.bf16.mxu1 %v12756_v0 }
  0xe0   :  { %1637 = vmatpush1.bf16.msra.mxu1 %v8011_v41  ;;  %v8982_v41 = vcombine.low %v8702_v40, %v87_v34 }
  0xe1   :  { %1638 = vmatprep.subr.bf16.mxu1 %v8022_v42 }
  0xe2   :  { %12865 = vst [vmem:[#allocation31_spill] sm:$0xff] %v8982_v41 }
  0xe4   :  { %1639 = vmatpush1.bf16.msra.mxu1 %v8020_v45 }
  0xe5   :  { %1973 = vmatprep.subr.bf16.mxu1 %v8028_v46 }
  0xe6   :  { %v8882_v48 = vpop.f32.mrf.mxu0  ;;  %v8884_v49 = vpop.f32.mrf.mxu1  ;;  %7193 = vmatmul.mubr.msk.bf16.gmra.mxu0 %vm204_vm0, %v8864_v36  ;;  %7225 = vmatmul.mubr.msk.bf16.gmra.mxu1 %vm204_vm0, %v8880_v47 }
  0xe7   :  { %1206 = vmatprep.mubr.bf16.mxu0 %v12756_v0  ;;  %1490 = vmatprep.mubr.bf16.mxu1 %v12756_v0 }
  0xe8   :  { %v8892_v50 = vpop.f32.mrf.mxu0  ;;  %v8894_v12 = vpop.f32.mrf.mxu1 }
  0xea   :  { %v8896_v18 = vpop.f32.mrf.mxu0  ;;  %v8898_v52 = vpop.f32.mrf.mxu1 }
  0xec   :  { %v8904_v56 = vpop.f32.mrf.mxu0  ;;  %v8906_v57 = vpop.f32.mrf.mxu1 }
  0xee   :  { %v8908_v59 = vpop.f32.mrf.mxu0  ;;  %v8910_v61 = vpop.f32.mrf.mxu1  ;;  %7200 = vmatmul.mubr.msk.bf16.vlgmr.msra.gmra.mxu0 %vm204_vm0, %v8630_v25  ;;  %7226 = vmatmul.mubr.msk.bf16.gmra.mxu1 %vm204_vm0, %v8902_v53 }
  0xef   :  { %1544 = vmatpush1.bf16.msra.mxu0 %v8008_v54  ;;  %1216 = vmatprep.mubr.bf16.mxu0 %v12756_v0 }
  0xf0   :  { %v8917_v27 = vpop.f32.mrf.mxu0  ;;  %v8919_v63 = vpop.f32.mrf.mxu1  ;;  %1500 = vmatprep.mubr.bf16.mxu1 %v12756_v0  ;;  %1545 = vmatprep.subr.bf16.mxu0 %v8019_v58 }
  0xf2   :  { %v8922_v4 = vpop.f32.mrf.mxu0  ;;  %v8924_v6 = vpop.f32.mrf.mxu1 }
  0xf3   :  { %1546 = vmatpush1.bf16.msra.mxu0 %v8017_v19 }
  0xf4   :  { %v8930_v8 = vpop.f32.mrf.mxu0  ;;  %v8932_v9 = vpop.f32.mrf.mxu1  ;;  %1880 = vmatprep.subr.bf16.mxu0 %v8025_v1 }
  0xf6   :  { %v8934_v10 = vpop.f32.mrf.mxu0  ;;  %v8936_v11 = vpop.f32.mrf.mxu1  ;;  %7201 = vmatmul.mubr.msk.bf16.gmra.mxu0 %vm204_vm0, %v8658_v32  ;;  %7227 = vmatmul.mubr.msk.bf16.gmra.mxu1 %vm204_vm0, %v8928_v7 }
  0xf7   :  { %1226 = vmatprep.mubr.bf16.mxu0 %v12756_v0  ;;  %1510 = vmatprep.mubr.bf16.mxu1 %v12756_v0 }
  0xf8   :  { %v8944_v28 = vpop.f32.mrf.mxu0  ;;  %v8946_v33 = vpop.f32.mrf.mxu1 }
  0xfa   :  { %v8948_v15 = vpop.f32.mrf.mxu0  ;;  %v8950_v16 = vpop.f32.mrf.mxu1 }
  0xfb   :  { %12859 = vst [vmem:[#allocation25_spill] sm:$0xff] %v8950_v16 }
  0xfc   :  { %v8956_v20 = vpop.f32.mrf.mxu0  ;;  %v8958_v21 = vpop.f32.mrf.mxu1 }
  0xfd   :  { %12861 = vst [vmem:[#allocation27_spill] sm:$0xff] %v8958_v21 }
  0xfe   :  { %v8960_v23 = vpop.f32.mrf.mxu0  ;;  %v8962_v24 = vpop.f32.mrf.mxu1  ;;  %7202 = vmatmul.mubr.msk.bf16.gmra.mxu0 %vm204_vm0, %v8686_v38  ;;  %7228 = vmatmul.mubr.msk.bf16.gmra.mxu1 %vm204_vm0, %v8954_v17 }
  0xff   :  { %12862 = vst [vmem:[#allocation28_spill] sm:$0xff] %v8962_v24  ;;  %1236 = vmatprep.mubr.bf16.mxu0 %v12756_v0  ;;  %1520 = vmatprep.mubr.bf16.mxu1 %v12756_v0  ;;  %v8407_v24 = vld [vmem:[#allocation2 + $0x94] ss:$24 sps:$4 sm:$0xff]  }
 0x100   :  { %v8973_v39 = vpop.f32.mrf.mxu0  ;;  %v8975_v26 = vpop.f32.mrf.mxu1 }
 0x101   :  { %12863 = vst [vmem:[#allocation29_spill] sm:$0xff] %v8975_v26 }
 0x102   :  { %v8977_v30 = vpop.f32.mrf.mxu0  ;;  %v8979_v31 = vpop.f32.mrf.mxu1 }
 0x103   :  { %12864 = vst [vmem:[#allocation30_spill] sm:$0xff] %v8979_v31 }
 0x104   :  { %v8984_v42 = vpop.f32.mrf.mxu0  ;;  %v8986_v45 = vpop.f32.mrf.mxu1 }
 0x105   :  { %12866 = vst [vmem:[#allocation32_spill] sm:$0xff] %v8986_v45 }
 0x106   :  { %v8988_v46 = vpop.f32.mrf.mxu0  ;;  %v8990_v54 = vpop.f32.mrf.mxu1  ;;  %7203 = vmatmul.mubr.msk.bf16.gmra.mxu0 %vm204_vm0, %v8714_v44  ;;  %7229 = vmatmul.mubr.msk.bf16.gmra.mxu1 %vm204_vm0, %v8982_v41 }
 0x107   :  { %12867 = vst [vmem:[#allocation33_spill] sm:$0xff] %v8990_v54  ;;  %1246 = vmatprep.mubr.bf16.mxu0 %v12756_v0  ;;  %1656 = vmatprep.mubr.bf16.mxu1 %v12756_v0 }
 0x108   :  { %v8998_v40 = vpop.f32.mrf.mxu0  ;;  %v9000_v58 = vpop.f32.mrf.mxu1 }
 0x109   :  { %12868 = vst [vmem:[#allocation34_spill] sm:$0xff] %v9000_v58  ;;  %v8032_v58 = vld [vmem:[#allocation2 + $0x188] ss:$24 sps:$4 sm:$0xff]  }
 0x10a   :  { %v9002_v19 = vpop.f32.mrf.mxu0  ;;  %v9004_v1 = vpop.f32.mrf.mxu1 }
 0x10b   :  { %12869 = vst [vmem:[#allocation35_spill] sm:$0xff] %v9004_v1 }
 0x10c   :  { %v9006_v34 = vpop.f32.mrf.mxu0  ;;  %v9008_v43 = vpop.f32.mrf.mxu1 }
 0x10d   :  { %12870 = vst [vmem:[#allocation36_spill] sm:$0xff] %v9008_v43 }
 0x10e   :  { %v9010_v22 = vpop.f32.mrf.mxu0  ;;  %v644_v14 = vpop.f32.mrf.mxu1  ;;  %7204 = vmatmul.mubr.msk.bf16.gmra.mxu0 %vm204_vm0, %v8733_v51  ;;  %7236 = vmatmul.mubr.msk.bf16.vlgmr.msra.gmra.mxu1 %vm204_vm0, %v8753_v62 }
 0x10f   :  { %v9017_v0 = vadd.f32 %v644_v14, %v8882_v48  ;;  %1256 = vmatprep.mubr.bf16.mxu0 %v12871_v13  ;;  %1666 = vmatprep.mubr.bf16.mxu1 %v12871_v13 }
 0x110   :  { %v9021_v1 = vpop.f32.mrf.mxu0  ;;  %v646_v43 = vpop.f32.mrf.mxu1  ;;  %1974 = vmatpush1.bf16.msra.mxu1 %v8026_v37 }
 0x111   :  { %v9024_v54 = vadd.f32 %v646_v43, %v8892_v50  ;;  %1975 = vmatprep.subr.bf16.mxu1 %v8034_v29 }
 0x112   :  { %v9026_v45 = vpop.f32.mrf.mxu0  ;;  %v648_v31 = vpop.f32.mrf.mxu1 }
 0x113   :  { %v9029_v26 = vadd.f32 %v648_v31, %v8896_v18 }
 0x114   :  { %v9031_v14 = vpop.f32.mrf.mxu0  ;;  %v650_v48 = vpop.f32.mrf.mxu1  ;;  %1976 = vmatpush1.bf16.msra.mxu1 %v8032_v58 }
 0x115   :  { %v9034_v51 = vadd.f32 %v650_v48, %v8904_v56  ;;  %2407 = vmatprep.subr.bf16.mxu1 %v8407_v24  ;;  %v8023_v48 = vld [vmem:[#allocation2 + $0x1b0] ss:$24 sps:$4 sm:$0xff]  }
 0x116   :  { %v9036_v37 = vpop.f32.mrf.mxu0  ;;  %v654_v43 = vpop.f32.mrf.mxu1  ;;  %7205 = vmatmul.mubr.msk.bf16.gmra.mxu0 %vm204_vm0, %v8864_v36  ;;  %7237 = vmatmul.mubr.msk.bf16.gmra.mxu1 %vm204_vm0, %v8880_v47 }
 0x117   :  { %v9043_v29 = vadd.f32 %v654_v43, %v8908_v59  ;;  %1563 = vmatprep.mubr.bf16.mxu0 %v12871_v13  ;;  %1676 = vmatprep.mubr.bf16.mxu1 %v12871_v13  ;;  %v8031_v43 = vld [vmem:[#allocation2 + $0x184] ss:$24 sps:$4 sm:$0xff]  }
 0x118   :  { %v9047_v50 = vpop.f32.mrf.mxu0  ;;  %v656_v18 = vpop.f32.mrf.mxu1 }
 0x119   :  { %12872 = vst [vmem:[#allocation37_spill] sm:$0xff] %v9043_v29  ;;  %v9050_v56 = vadd.f32 %v656_v18, %v8917_v27 }
 0x11a   :  { %v9052_v24 = vpop.f32.mrf.mxu0  ;;  %v658_v31 = vpop.f32.mrf.mxu1 }
 0x11b   :  { %v9055_v58 = vadd.f32 %v658_v31, %v8922_v4  ;;  %v8029_v4 = vld [vmem:[#allocation2 + $0x180] ss:$24 sps:$4 sm:$0xff]   ;;  %v8037_v31 = vld [vmem:[#allocation2 + $0x1c4] ss:$24 sps:$4 sm:$0xff]  }
 0x11c   :  { %v9057_v36 = vpop.f32.mrf.mxu0  ;;  %v660_v59 = vpop.f32.mrf.mxu1 }
 0x11d   :  { %12873 = vst [vmem:[#allocation38_spill] sm:$0xff] %v9055_v58  ;;  %v9060_v21 = vadd.f32 %v660_v59, %v8930_v8 }
 0x11e   :  { %v9062_v16 = vpop.f32.mrf.mxu0  ;;  %v664_v29 = vpop.f32.mrf.mxu1  ;;  %7230 = vmatmul.mubr.msk.bf16.vlgmr.msra.gmra.mxu0 %vm204_vm0, %v8753_v62  ;;  %7238 = vmatmul.mubr.msk.bf16.gmra.mxu1 %vm204_vm0, %v8902_v53 }
 0x11f   :  { %12874 = vst [vmem:[#allocation39_spill] sm:$0xff] %v9060_v21  ;;  %v9069_v27 = vadd.f32 %v664_v29, %v8934_v10  ;;  %1881 = vmatpush1.bf16.msra.mxu0 %v8023_v48  ;;  %1573 = vmatprep.mubr.bf16.mxu0 %v12871_v13 }
 0x120   :  { %v9072_v18 = vpop.f32.mrf.mxu0  ;;  %v666_v8 = vpop.f32.mrf.mxu1  ;;  %1686 = vmatprep.mubr.bf16.mxu1 %v12871_v13  ;;  %1882 = vmatprep.subr.bf16.mxu0 %v8031_v43 }
 0x121   :  { %12875 = vst [vmem:[#allocation40_spill] sm:$0xff] %v9069_v27  ;;  %v9076_v59 = vadd.f32 %v666_v8, %v8944_v28 }
 0x122   :  { %v9078_v62 = vpop.f32.mrf.mxu0  ;;  %v668_v21 = vpop.f32.mrf.mxu1 }
 0x123   :  { %v9081_v10 = vadd.f32 %v668_v21, %v8948_v15  ;;  %1883 = vmatpush1.bf16.msra.mxu0 %v8029_v4 }
 0x124   :  { %v9083_v29 = vpop.f32.mrf.mxu0  ;;  %v670_v48 = vpop.f32.mrf.mxu1  ;;  %2066 = vmatprep.subr.bf16.mxu0 %v8037_v31 }
 0x125   :  { %v9086_v27 = vadd.f32 %v670_v48, %v8956_v20 }
 0x126   :  { %v9088_v58 = vpop.f32.mrf.mxu0  ;;  %v674_v43 = vpop.f32.mrf.mxu1  ;;  %7231 = vmatmul.mubr.msk.bf16.gmra.mxu0 %vm204_vm0, %v8880_v47  ;;  %7239 = vmatmul.mubr.msk.bf16.gmra.mxu1 %vm204_vm0, %v8928_v7 }
 0x127   :  { %v9095_v28 = vadd.f32 %v674_v43, %v8960_v23  ;;  %1583 = vmatprep.mubr.bf16.mxu0 %v12871_v13  ;;  %1696 = vmatprep.mubr.bf16.mxu1 %v12871_v13 }
 0x128   :  { %v9099_v15 = vpop.f32.mrf.mxu0  ;;  %v676_v20 = vpop.f32.mrf.mxu1 }
 0x129   :  { %12876 = vst [vmem:[#allocation41_spill] sm:$0xff] %v9095_v28  ;;  %v9102_v21 = vadd.f32 %v676_v20, %v8973_v39 }
 0x12a   :  { %v9104_v4 = vpop.f32.mrf.mxu0  ;;  %v678_v8 = vpop.f32.mrf.mxu1 }
 0x12b   :  { %v9107_v31 = vadd.f32 %v678_v8, %v8977_v30 }
 0x12c   :  { %v9109_v48 = vpop.f32.mrf.mxu0  ;;  %v680_v23 = vpop.f32.mrf.mxu1 }
 0x12d   :  { %12877 = vst [vmem:[#allocation42_spill] sm:$0xff] %v9107_v31  ;;  %v9112_v43 = vadd.f32 %v680_v23, %v8984_v42 }
 0x12e   :  { %v9114_v47 = vpop.f32.mrf.mxu0  ;;  %v684_v28 = vpop.f32.mrf.mxu1  ;;  %7232 = vmatmul.mubr.msk.bf16.gmra.mxu0 %vm204_vm0, %v8902_v53  ;;  %7240 = vmatmul.mubr.msk.bf16.gmra.mxu1 %vm204_vm0, %v8954_v17 }
 0x12f   :  { %12878 = vst [vmem:[#allocation43_spill] sm:$0xff] %v9112_v43  ;;  %v9121_v39 = vadd.f32 %v684_v28, %v8988_v46  ;;  %1593 = vmatprep.mubr.bf16.mxu0 %v12871_v13  ;;  %1706 = vmatprep.mubr.bf16.mxu1 %v12871_v13 }
 0x130   :  { %v9125_v30 = vpop.f32.mrf.mxu0  ;;  %v686_v42 = vpop.f32.mrf.mxu1 }
 0x131   :  { %12879 = vst [vmem:[#allocation44_spill] sm:$0xff] %v9121_v39  ;;  %v9128_v20 = vadd.f32 %v686_v42, %v8998_v40 }
 0x132   :  { %v9130_v8 = vpop.f32.mrf.mxu0  ;;  %v688_v23 = vpop.f32.mrf.mxu1 }
 0x133   :  { %v9133_v53 = vadd.f32 %v688_v23, %v9002_v19 }
 0x134   :  { %v9135_v43 = vpop.f32.mrf.mxu0  ;;  %v690_v46 = vpop.f32.mrf.mxu1 }
 0x135   :  { %12880 = vst [vmem:[#allocation45_spill] sm:$0xff] %v9133_v53  ;;  %v9138_v28 = vadd.f32 %v690_v46, %v9006_v34 }
 0x136   :  { %v9140_v39 = vpop.f32.mrf.mxu0  ;;  %v694_v31 = vpop.f32.mrf.mxu1  ;;  %7233 = vmatmul.mubr.msk.bf16.gmra.mxu0 %vm204_vm0, %v8928_v7  ;;  %7241 = vmatmul.mubr.msk.bf16.gmra.mxu1 %vm204_vm0, %v8982_v41 }
 0x137   :  { %12881 = vst [vmem:[#allocation46_spill] sm:$0xff] %v9138_v28  ;;  %v9147_v40 = vadd.f32 %v694_v31, %v9010_v22  ;;  %1603 = vmatprep.mubr.bf16.mxu0 %v12871_v13  ;;  %1993 = vmatprep.mubr.bf16.mxu1 %v12871_v13 }
 0x138   :  { %v9151_v19 = vpop.f32.mrf.mxu0  ;;  %v696_v34 = vpop.f32.mrf.mxu1 }
 0x139   :  { %12882 = vst [vmem:[#allocation47_spill] sm:$0xff] %v9147_v40  ;;  %v9154_v42 = vadd.f32 %v696_v34, %v9021_v1  ;;  %v8408_v34 = vld [vmem:[#allocation2 + $0x90] ss:$24 sps:$4 sm:$0xff]  }
 0x13a   :  { %v9156_v23 = vpop.f32.mrf.mxu0  ;;  %v698_v46 = vpop.f32.mrf.mxu1 }
 0x13b   :  { %12883 = vst [vmem:[#allocation48_spill] sm:$0xff] %v9154_v42  ;;  %v9159_v7 = vadd.f32 %v698_v46, %v9026_v45 }
 0x13c   :  { %v9161_v28 = vpop.f32.mrf.mxu0  ;;  %v700_v22 = vpop.f32.mrf.mxu1 }
 0x13d   :  { %12884 = vst [vmem:[#allocation49_spill] sm:$0xff] %v9159_v7  ;;  %v9164_v31 = vadd.f32 %v700_v22, %v9031_v14  ;;  %v8409_v22 = vld [vmem:[#allocation2 + $0x64] ss:$24 sps:$4 sm:$0xff]   ;;  %v8410_v7 = vld [vmem:[#allocation2 + $0x60] ss:$24 sps:$4 sm:$0xff]  }
 0x13e   :  { %v9166_v40 = vpop.f32.mrf.mxu0  ;;  %v830_v53 = vpop.f32.mrf.mxu1  ;;  %7234 = vmatmul.mubr.msk.bf16.gmra.mxu0 %vm204_vm0, %v8954_v17  ;;  %7261 = vmatmul.mubr.msk.bf16.vlgmr.msra.gmra.mxu1 %vm204_vm0, %v8741_v55 }
 0x13f   :  { %12885 = vst [vmem:[#allocation50_spill] sm:$0xff] %v9164_v31  ;;  %v9173_v1 = vadd.f32 %v830_v53, %v9062_v16  ;;  %1613 = vmatprep.mubr.bf16.mxu0 %v12871_v13  ;;  %2003 = vmatprep.mubr.bf16.mxu1 %v12871_v13 }
 0x140   :  { %v9177_v45 = vpop.f32.mrf.mxu0  ;;  %v832_v14 = vpop.f32.mrf.mxu1  ;;  %2408 = vmatpush1.bf16.msra.mxu1 %v8408_v34  ;;  %v8411_v34 = vld [vmem:[#allocation2 + $0xa4] ss:$24 sps:$4 sm:$0xff]  }
 0x141   :  { %12886 = vst [vmem:[#allocation51_spill] sm:$0xff] %v9173_v1  ;;  %v9180_v46 = vadd.f32 %v832_v14, %v9072_v18  ;;  %2409 = vmatprep.subr.bf16.mxu1 %v8409_v22 }
 0x142   :  { %v9182_v17 = vpop.f32.mrf.mxu0  ;;  %v834_v31 = vpop.f32.mrf.mxu1 }
 0x143   :  { %12887 = vst [vmem:[#allocation52_spill] sm:$0xff] %v9180_v46  ;;  %v9185_v53 = vadd.f32 %v834_v31, %v9078_v62 }
 0x144   :  { %v9187_v16 = vpop.f32.mrf.mxu0  ;;  %v836_v1 = vpop.f32.mrf.mxu1  ;;  %2410 = vmatpush1.bf16.msra.mxu1 %v8410_v7 }
 0x145   :  { %12888 = vst [vmem:[#allocation53_spill] sm:$0xff] %v9185_v53  ;;  %v9190_v42 = vadd.f32 %v836_v1, %v9083_v29  ;;  %2593 = vmatprep.subr.bf16.mxu1 %v8411_v34 }
 0x146   :  { %v9192_v18 = vpop.f32.mrf.mxu0  ;;  %v840_v14 = vpop.f32.mrf.mxu1  ;;  %7235 = vmatmul.mubr.msk.bf16.gmra.mxu0 %vm204_vm0, %v8982_v41  ;;  %7262 = vmatmul.mubr.msk.bf16.gmra.mxu1 %vm204_vm0, %v8749_v60  ;;  %v8035_v41 = vld [vmem:[#allocation2 + $0x1c0] ss:$24 sps:$4 sm:$0xff]  }
 0x147   :  { %12889 = vst [vmem:[#allocation54_spill] sm:$0xff] %v9190_v42  ;;  %v9199_v62 = vadd.f32 %v840_v14, %v9088_v58  ;;  %1900 = vmatprep.mubr.bf16.mxu0 %v12871_v13  ;;  %2013 = vmatprep.mubr.bf16.mxu1 %v12871_v13  ;;  %v8041_v14 = vld [vmem:[#allocation2 + $0x194] ss:$24 sps:$4 sm:$0xff]  }
 0x148   :  { %v9203_v7 = vpop.f32.mrf.mxu0  ;;  %v842_v29 = vpop.f32.mrf.mxu1 }
 0x149   :  { %12890 = vst [vmem:[#allocation55_spill] sm:$0xff] %v9199_v62  ;;  %v9206_v31 = vadd.f32 %v842_v29, %v9099_v15  ;;  %v8039_v29 = vld [vmem:[#allocation2 + $0x190] ss:$24 sps:$4 sm:$0xff]  }
 0x14a   :  { %v9208_v1 = vpop.f32.mrf.mxu0  ;;  %v844_v22 = vpop.f32.mrf.mxu1 }
 0x14b   :  { %v9211_v34 = vadd.f32 %v844_v22, %v9104_v4 }
 0x14c   :  { %v9213_v42 = vpop.f32.mrf.mxu0  ;;  %v846_v58 = vpop.f32.mrf.mxu1 }
 0x14d   :  { %12891 = vst [vmem:[#allocation56_spill] sm:$0xff] %v9211_v34  ;;  %v9216_v62 = vadd.f32 %v846_v58, %v9109_v48  ;;  %v8412_v34 = vld [vmem:[#allocation2 + $0x9c] ss:$24 sps:$4 sm:$0xff]  }
 0x14e   :  { %v737_v53 = vpop.f32.mrf.mxu0  ;;  %v850_v46 = vpop.f32.mrf.mxu1  ;;  %7255 = vmatmul.mubr.msk.bf16.vlgmr.msra.gmra.mxu0 %vm204_vm0, %v8741_v55  ;;  %7263 = vmatmul.mubr.msk.bf16.gmra.mxu1 %vm204_vm0, %v8761_v2 }
 0x14f   :  { %12892 = vst [vmem:[#allocation57_spill] sm:$0xff] %v9216_v62  ;;  %v9223_v15 = vadd.f32 %v737_v53, %v9036_v37  ;;  %v9226_v4 = vadd.f32 %v850_v46, %v9114_v47  ;;  %2067 = vmatpush1.bf16.msra.mxu0 %v8035_v41  ;;  %1910 = vmatprep.mubr.bf16.mxu0 %v12871_v13 }
 0x150   :  { %v739_v48 = vpop.f32.mrf.mxu0  ;;  %v852_v22 = vpop.f32.mrf.mxu1  ;;  %2023 = vmatprep.mubr.bf16.mxu1 %v12871_v13  ;;  %2068 = vmatprep.subr.bf16.mxu0 %v8041_v14 }
 0x151   :  { %12893 = vst [vmem:[#allocation58_spill] sm:$0xff] %v9226_v4  ;;  %v9231_v58 = vadd.f32 %v739_v48, %v9047_v50  ;;  %v9234_v62 = vadd.f32 %v852_v22, %v9125_v30 }
 0x152   :  { %v741_v37 = vpop.f32.mrf.mxu0  ;;  %v854_v53 = vpop.f32.mrf.mxu1 }
 0x153   :  { %v9237_v47 = vadd.f32 %v741_v37, %v9052_v24  ;;  %v9240_v41 = vadd.f32 %v854_v53, %v9130_v8  ;;  %2069 = vmatpush1.bf16.msra.mxu0 %v8039_v29 }
 0x154   :  { %v743_v46 = vpop.f32.mrf.mxu0  ;;  %v856_v4 = vpop.f32.mrf.mxu1  ;;  %2500 = vmatprep.subr.bf16.mxu0 %v8412_v34 }
 0x155   :  { %v9243_v14 = vadd.f32 %v743_v46, %v9057_v36  ;;  %v9246_v50 = vadd.f32 %v856_v4, %v9135_v43 }
 0x156   :  { %v9248_v30 = vpop.f32.mrf.mxu0  ;;  %v860_v48 = vpop.f32.mrf.mxu1  ;;  %7256 = vmatmul.mubr.msk.bf16.gmra.mxu0 %vm204_vm0, %v8749_v60  ;;  %7264 = vmatmul.mubr.msk.bf16.gmra.mxu1 %vm204_vm0, %v8769_v3 }
 0x157   :  { %v9255_v24 = vadd.f32 %v860_v48, %v9140_v39  ;;  %1920 = vmatprep.mubr.bf16.mxu0 %v12871_v13  ;;  %2033 = vmatprep.mubr.bf16.mxu1 %v12871_v13 }
 0x158   :  { %v9259_v36 = vpop.f32.mrf.mxu0  ;;  %v862_v43 = vpop.f32.mrf.mxu1 }
 0x159   :  { %12894 = vst [vmem:[#allocation59_spill] sm:$0xff] %v9255_v24  ;;  %v9262_v8 = vadd.f32 %v862_v43, %v9151_v19 }
 0x15a   :  { %v9264_v34 = vpop.f32.mrf.mxu0  ;;  %v864_v4 = vpop.f32.mrf.mxu1 }
 0x15b   :  { %12895 = vst [vmem:[#allocation60_spill] sm:$0xff] %v9262_v8  ;;  %v9267_v29 = vadd.f32 %v864_v4, %v9156_v23 }
 0x15c   :  { %v9269_v22 = vpop.f32.mrf.mxu0  ;;  %v866_v39 = vpop.f32.mrf.mxu1 }
 0x15d   :  { %12896 = vst [vmem:[#allocation61_spill] sm:$0xff] %v9267_v29  ;;  %v9272_v37 = vadd.f32 %v866_v39, %v9161_v28  ;;  %v74_v28 = vld [vmem:[%s12736_s0 + $0x34] sm:$0xf] }
 0x15e   :  { %v9274_v53 = vpop.f32.mrf.mxu0  ;;  %v870_v46 = vpop.f32.mrf.mxu1  ;;  %7257 = vmatmul.mubr.msk.bf16.gmra.mxu0 %vm204_vm0, %v8761_v2  ;;  %7265 = vmatmul.mubr.msk.bf16.gmra.mxu1 %vm204_vm0, %v8783_v5 }
 0x15f   :  { %12897 = vst [vmem:[#allocation62_spill] sm:$0xff] %v9272_v37  ;;  %v9281_v19 = vadd.f32 %v870_v46, %v9166_v40  ;;  %1930 = vmatprep.mubr.bf16.mxu0 %v12871_v13  ;;  %2043 = vmatprep.mubr.bf16.mxu1 %v12871_v13  ;;  %v9296_v40 = vcombine.low %v8860_v35, %v74_v28 }
 0x160   :  { %v9288_v23 = vpop.f32.mrf.mxu0  ;;  %v872_v48 = vpop.f32.mrf.mxu1 }
 0x161   :  { %12898 = vst [vmem:[#allocation63_spill] sm:$0xff] %v9281_v19  ;;  %v9291_v43 = vadd.f32 %v872_v48, %v9177_v45  ;;  %12899 = vst [vmem:[#allocation64_spill] sm:$0xff] %v9296_v40 }
 0x162   :  { %v9293_v4 = vpop.f32.mrf.mxu0  ;;  %v874_v39 = vpop.f32.mrf.mxu1 }
 0x163   :  { %v9299_v46 = vadd.f32 %v874_v39, %v9182_v17 }
 0x164   :  { %v9301_v19 = vpop.f32.mrf.mxu0  ;;  %v876_v37 = vpop.f32.mrf.mxu1 }
 0x165   :  { %12900 = vst [vmem:[#allocation65_spill] sm:$0xff] %v9299_v46  ;;  %v9304_v29 = vadd.f32 %v876_v37, %v9187_v16  ;;  %v748_v46 = vadd.f32 %v9248_v30, %v8884_v49  ;;  %v752_v30 = vadd.f32 %v9264_v34, %v8898_v52 }
 0x166   :  { %v9306_v8 = vpop.f32.mrf.mxu0  ;;  %v880_v24 = vpop.f32.mrf.mxu1  ;;  %7258 = vmatmul.mubr.msk.bf16.gmra.mxu0 %vm204_vm0, %v8769_v3  ;;  %7266 = vmatmul.mubr.msk.bf16.gmra.mxu1 %vm204_vm0, %v9296_v40 }
 0x167   :  { %12901 = vst [vmem:[#allocation66_spill] sm:$0xff] %v9304_v29  ;;  %v9313_v35 = vadd.f32 %v880_v24, %v9192_v18  ;;  %1940 = vmatprep.mubr.bf16.mxu0 %v12871_v13  ;;  %2427 = vmatprep.mubr.bf16.mxu1 %v12871_v13 }
 0x168   :  { %v9317_v17 = vpop.f32.mrf.mxu0  ;;  %v882_v45 = vpop.f32.mrf.mxu1 }
 0x169   :  { %12902 = vst [vmem:[#allocation67_spill] sm:$0xff] %v9313_v35  ;;  %v9320_v16 = vadd.f32 %v882_v45, %v9203_v7  ;;  %v8413_v45 = vld [vmem:[#allocation2 + $0xa0] ss:$24 sps:$4 sm:$0xff]  }
 0x16a   :  { %v9322_v37 = vpop.f32.mrf.mxu0  ;;  %v884_v28 = vpop.f32.mrf.mxu1 }
 0x16b   :  { %12903 = vst [vmem:[#allocation68_spill] sm:$0xff] %v9320_v16  ;;  %v9325_v48 = vadd.f32 %v884_v28, %v9208_v1  ;;  %v8415_v16 = vld [vmem:[#allocation2 + $0x70] ss:$24 sps:$4 sm:$0xff]  }
 0x16c   :  { %v9327_v39 = vpop.f32.mrf.mxu0  ;;  %v886_v18 = vpop.f32.mrf.mxu1 }
 0x16d   :  { %12904 = vst [vmem:[#allocation69_spill] sm:$0xff] %v9325_v48  ;;  %v9330_v24 = vadd.f32 %v886_v18, %v9213_v42  ;;  %v8414_v18 = vld [vmem:[#allocation2 + $0x74] ss:$24 sps:$4 sm:$0xff]  }
 0x16e   :  { %v9332_v35 = vpop.f32.mrf.mxu0  ;;  %v1115_v29 = vpop.f32.mrf.mxu1  ;;  %7259 = vmatmul.mubr.msk.bf16.gmra.mxu0 %vm204_vm0, %v8783_v5  ;;  %7273 = vmatmul.mubr.msk.bf16.vlgmr.msra.gmra.mxu1 %vm204_vm0, %v8630_v25 }
 0x16f   :  { %12905 = vst [vmem:[#allocation70_spill] sm:$0xff] %v9330_v24  ;;  %v9339_v7 = vadd.f32 %v1115_v29, %v9223_v15  ;;  %1950 = vmatprep.mubr.bf16.mxu0 %v12871_v13  ;;  %2437 = vmatprep.mubr.bf16.mxu1 %v12871_v13 }
 0x170   :  { %v9343_v1 = vpop.f32.mrf.mxu0  ;;  %v1117_v42 = vpop.f32.mrf.mxu1  ;;  %2594 = vmatpush1.bf16.msra.mxu1 %v8413_v45 }
 0x171   :  { %12906 = vst [vmem:[#allocation71_spill] sm:$0xff] %v9339_v7  ;;  %v9346_v28 = vadd.f32 %v1117_v42, %v9231_v58  ;;  %2595 = vmatprep.subr.bf16.mxu1 %v8414_v18  ;;  %v8416_v58 = vld [vmem:[#allocation2 + $0x3c] ss:$24 sps:$4 sm:$0xff]  }
 0x172   :  { %v9348_v24 = vpop.f32.mrf.mxu0  ;;  %v1119_v48 = vpop.f32.mrf.mxu1 }
 0x173   :  { %v9351_v15 = vadd.f32 %v1119_v48, %v9237_v47  ;;  %v750_v47 = vadd.f32 %v9259_v36, %v8894_v12  ;;  %v754_v12 = vadd.f32 %v9269_v22, %v8906_v57  ;;  %v760_v57 = vadd.f32 %v9288_v23, %v8919_v63 }
 0x174   :  { %v9353_v29 = vpop.f32.mrf.mxu0  ;;  %v1121_v7 = vpop.f32.mrf.mxu1  ;;  %2596 = vmatpush1.bf16.msra.mxu1 %v8415_v16 }
 0x175   :  { %12907 = vst [vmem:[#allocation72_spill] sm:$0xff] %v9351_v15  ;;  %v9358_v45 = vadd.f32 %v1121_v7, %v9243_v14  ;;  %2779 = vmatprep.subr.bf16.mxu1 %v8416_v58 }
 0x176   :  { %v9360_v42 = vpop.f32.mrf.mxu0  ;;  %v1125_v18 = vpop.f32.mrf.mxu1  ;;  %7260 = vmatmul.mubr.msk.bf16.gmra.mxu0 %vm204_vm0, %v9296_v40  ;;  %7274 = vmatmul.mubr.msk.bf16.gmra.mxu1 %vm204_vm0, %v8658_v32 }
 0x177   :  { %12908 = vst [vmem:[#allocation73_spill] sm:$0xff] %v9358_v45  ;;  %v9368_v16 = vadd.f32 %v1125_v18, %v748_v46  ;;  %2086 = vmatprep.mubr.bf16.mxu0 %v12871_v13  ;;  %2447 = vmatprep.mubr.bf16.mxu1 %v12871_v13 }
 0x178   :  { %v9372_v49 = vpop.f32.mrf.mxu0  ;;  %v1127_v14 = vpop.f32.mrf.mxu1 }
 0x179   :  { %12909 = vst [vmem:[#allocation74_spill] sm:$0xff] %v9368_v16  ;;  %v9376_v48 = vadd.f32 %v1127_v14, %v750_v47  ;;  %v758_v16 = vadd.f32 %v9274_v53, %v8910_v61  ;;  %v8417_v47 = vld [vmem:[#allocation2 + $0x98] ss:$24 sps:$4 sm:$0xff]   ;;  %v8418_v14 = vld [vmem:[#allocation2 + $0x6c] ss:$24 sps:$4 sm:$0xff]  }
 0x17a   :  { %v9378_v7 = vpop.f32.mrf.mxu0  ;;  %v1129_v58 = vpop.f32.mrf.mxu1 }
 0x17b   :  { %v9382_v36 = vadd.f32 %v1129_v58, %v752_v30  ;;  %v762_v30 = vadd.f32 %v9293_v4, %v8924_v6  ;;  %v8420_v6 = vld [vmem:[#allocation2 + $0x34] ss:$24 sps:$4 sm:$0xff]  }
 0x17c   :  { %v9384_v46 = vpop.f32.mrf.mxu0  ;;  %v1131_v18 = vpop.f32.mrf.mxu1 }
 0x17d   :  { %v9388_v45 = vadd.f32 %v1131_v18, %v754_v12  ;;  %v8419_v18 = vld [vmem:[#allocation2 + $0x68] ss:$24 sps:$4 sm:$0xff]  }
 0x17e   :  { %v1022_v15 = vpop.f32.mrf.mxu0  ;;  %v1135_v52 = vpop.f32.mrf.mxu1  ;;  %7267 = vmatmul.mubr.msk.bf16.vlgmr.msra.gmra.mxu0 %vm204_vm0, %v8741_v55  ;;  %7275 = vmatmul.mubr.msk.bf16.gmra.mxu1 %vm204_vm0, %v8686_v38 }
 0x17f   :  { %v9397_v34 = vadd.f32 %v1022_v15, %v9017_v0  ;;  %v9399_v22 = vadd.f32 %v1135_v52, %v758_v16  ;;  %2501 = vmatpush1.bf16.msra.mxu0 %v8417_v47  ;;  %2096 = vmatprep.mubr.bf16.mxu0 %v12871_v13  ;;  %v764_v16 = vadd.f32 %v9301_v19, %v8932_v9 }
 0x180   :  { %v1024_v61 = vpop.f32.mrf.mxu0  ;;  %v1137_v53 = vpop.f32.mrf.mxu1  ;;  %2457 = vmatprep.mubr.bf16.mxu1 %v12871_v13  ;;  %2502 = vmatprep.subr.bf16.mxu0 %v8418_v14  ;;  %v12911_v14 = vld [vmem:[#allocation25_spill] sm:$0xff] }
 0x181   :  { %v9406_v63 = vadd.f32 %v1024_v61, %v9024_v54  ;;  %v9408_v0 = vadd.f32 %v1137_v53, %v760_v57  ;;  %v768_v54 = vadd.f32 %v9306_v8, %v8936_v11  ;;  %v12910_v61 = vld [vmem:[#allocation37_spill] sm:$0xff] }
 0x182   :  { %v1026_v23 = vpop.f32.mrf.mxu0  ;;  %v1139_v15 = vpop.f32.mrf.mxu1 }
 0x183   :  { %v9413_v58 = vadd.f32 %v1026_v23, %v9029_v26  ;;  %v9415_v12 = vadd.f32 %v1139_v15, %v762_v30  ;;  %2503 = vmatpush1.bf16.msra.mxu0 %v8419_v18  ;;  %v770_v26 = vadd.f32 %v9317_v17, %v8946_v33  ;;  %v772_v30 = vadd.f32 %v9322_v37, %v12911_v14  ;;  %v12917_v14 = vld [vmem:[#allocation29_spill] sm:$0xff] }
 0x184   :  { %v1028_v52 = vpop.f32.mrf.mxu0  ;;  %v1141_v47 = vpop.f32.mrf.mxu1  ;;  %2686 = vmatprep.subr.bf16.mxu0 %v8420_v6 }
 0x185   :  { %v9420_v4 = vadd.f32 %v1028_v52, %v9034_v51  ;;  %v9422_v57 = vadd.f32 %v1141_v47, %v764_v16  ;;  %v12912_v16 = vld [vmem:[#allocation27_spill] sm:$0xff]  ;;  %v12913_v52 = vld [vmem:[#allocation38_spill] sm:$0xff] }
 0x186   :  { %v1032_v9 = vpop.f32.mrf.mxu0  ;;  %v1145_v19 = vpop.f32.mrf.mxu1  ;;  %7268 = vmatmul.mubr.msk.bf16.gmra.mxu0 %vm204_vm0, %v8749_v60  ;;  %7276 = vmatmul.mubr.msk.bf16.gmra.mxu1 %vm204_vm0, %v8714_v44  ;;  %v774_v18 = vadd.f32 %v9327_v39, %v12912_v16  ;;  %v12916_v39 = vld [vmem:[#allocation14_spill] sm:$0xff]  ;;  %v12921_v60 = vld [vmem:[#allocation33_spill] sm:$0xff] }
 0x187   :  { %v9431_v53 = vadd.f32 %v1032_v9, %v12910_v61  ;;  %v9433_v11 = vadd.f32 %v1145_v19, %v768_v54  ;;  %2106 = vmatprep.mubr.bf16.mxu0 %v12871_v13  ;;  %2467 = vmatprep.mubr.bf16.mxu1 %v12871_v13  ;;  %v12914_v19 = vld [vmem:[#allocation28_spill] sm:$0xff]  ;;  %v12915_v61 = vld [vmem:[#allocation39_spill] sm:$0xff] }
 0x188   :  { %v1034_v51 = vpop.f32.mrf.mxu0  ;;  %v1147_v8 = vpop.f32.mrf.mxu1  ;;  %v778_v37 = vadd.f32 %v9332_v35, %v12914_v19 }
 0x189   :  { %v9440_v23 = vadd.f32 %v1034_v51, %v9050_v56  ;;  %v9442_v15 = vadd.f32 %v1147_v8, %v770_v26 }
 0x18a   :  { %v1036_v33 = vpop.f32.mrf.mxu0  ;;  %v1149_v17 = vpop.f32.mrf.mxu1 }
 0x18b   :  { %v9447_v47 = vadd.f32 %v1036_v33, %v12913_v52  ;;  %v9449_v6 = vadd.f32 %v1149_v17, %v772_v30  ;;  %v780_v30 = vadd.f32 %v9343_v1, %v12917_v14  ;;  %v12918_v33 = vld [vmem:[#allocation40_spill] sm:$0xff]  ;;  %v12919_v52 = vld [vmem:[#allocation30_spill] sm:$0xff] }
 0x18c   :  { %v1038_v54 = vpop.f32.mrf.mxu0  ;;  %v1151_v9 = vpop.f32.mrf.mxu1 }
 0x18d   :  { %v9454_v56 = vadd.f32 %v1038_v54, %v12915_v61  ;;  %v9456_v26 = vadd.f32 %v1151_v9, %v774_v18  ;;  %v782_v54 = vadd.f32 %v9348_v24, %v12919_v52  ;;  %v788_v24 = vadd.f32 %v9360_v42, %v12921_v60  ;;  %v12927_v42 = vld [vmem:[#allocation35_spill] sm:$0xff] }
 0x18e   :  { %v1042_v51 = vpop.f32.mrf.mxu0  ;;  %v1155_v8 = vpop.f32.mrf.mxu1  ;;  %7269 = vmatmul.mubr.msk.bf16.gmra.mxu0 %vm204_vm0, %v8761_v2  ;;  %7277 = vmatmul.mubr.msk.bf16.gmra.mxu1 %vm204_vm0, %v12916_v39 }
 0x18f   :  { %v9465_v17 = vadd.f32 %v1042_v51, %v12918_v33  ;;  %v9467_v35 = vadd.f32 %v1155_v8, %v778_v37  ;;  %2116 = vmatprep.mubr.bf16.mxu0 %v12871_v13  ;;  %2477 = vmatprep.mubr.bf16.mxu1 %v12871_v13  ;;  %v12920_v51 = vld [vmem:[#allocation32_spill] sm:$0xff] }
 0x190   :  { %v1044_v16 = vpop.f32.mrf.mxu0  ;;  %v1157_v18 = vpop.f32.mrf.mxu1  ;;  %v784_v37 = vadd.f32 %v9353_v29, %v12920_v51  ;;  %v12923_v29 = vld [vmem:[#allocation21_spill] sm:$0xff] }
 0x191   :  { %v9474_v9 = vadd.f32 %v1044_v16, %v9076_v59  ;;  %v9476_v19 = vadd.f32 %v1157_v18, %v780_v30 }
 0x192   :  { %v1046_v1 = vpop.f32.mrf.mxu0  ;;  %v1159_v61 = vpop.f32.mrf.mxu1 }
 0x193   :  { %v9481_v8 = vadd.f32 %v1046_v1, %v9081_v10  ;;  %v9483_v14 = vadd.f32 %v1159_v61, %v782_v54  ;;  %v12924_v10 = vld [vmem:[#allocation34_spill] sm:$0xff]  ;;  %v12925_v54 = vld [vmem:[#allocation41_spill] sm:$0xff]  ;;  %v792_v61 = vadd.f32 %v9378_v7, %v12927_v42 }
 0x194   :  { %v1048_v33 = vpop.f32.mrf.mxu0  ;;  %v1161_v2 = vpop.f32.mrf.mxu1  ;;  %v790_v52 = vadd.f32 %v9372_v49, %v12924_v10 }
 0x195   :  { %v9488_v59 = vadd.f32 %v1048_v33, %v9086_v27  ;;  %v9490_v30 = vadd.f32 %v1161_v2, %v784_v37 }
 0x196   :  { %v1052_v16 = vpop.f32.mrf.mxu0  ;;  %v1165_v18 = vpop.f32.mrf.mxu1  ;;  %7270 = vmatmul.mubr.msk.bf16.gmra.mxu0 %vm204_vm0, %v8769_v3  ;;  %7278 = vmatmul.mubr.msk.bf16.gmra.mxu1 %vm204_vm0, %v12923_v29 }
 0x197   :  { %12922 = vst [vmem:[#allocation37_spill] sm:$0xff] %v9490_v30  ;;  %v9499_v1 = vadd.f32 %v1052_v16, %v12925_v54  ;;  %v9501_v60 = vadd.f32 %v1165_v18, %v788_v24  ;;  %2126 = vmatprep.mubr.bf16.mxu0 %v12871_v13  ;;  %2613 = vmatprep.mubr.bf16.mxu1 %v12871_v13  ;;  %v12928_v16 = vld [vmem:[#allocation36_spill] sm:$0xff]  ;;  %v12929_v18 = vld [vmem:[#allocation42_spill] sm:$0xff] }
 0x198   :  { %v1054_v2 = vpop.f32.mrf.mxu0  ;;  %v1167_v27 = vpop.f32.mrf.mxu1  ;;  %v794_v24 = vadd.f32 %v9384_v46, %v12928_v16  ;;  %v12931_v46 = vld [vmem:[#allocation44_spill] sm:$0xff] }
 0x199   :  { %12926 = vst [vmem:[#allocation25_spill] sm:$0xff] %v9501_v60  ;;  %v9508_v51 = vadd.f32 %v1054_v2, %v9102_v21  ;;  %v9510_v37 = vadd.f32 %v1167_v27, %v790_v52  ;;  %v12930_v60 = vld [vmem:[#allocation43_spill] sm:$0xff] }
 0x19a   :  { %v1056_v49 = vpop.f32.mrf.mxu0  ;;  %v1169_v33 = vpop.f32.mrf.mxu1 }
 0x19b   :  { %v9515_v10 = vadd.f32 %v1056_v49, %v12929_v18  ;;  %v9517_v54 = vadd.f32 %v1169_v33, %v792_v61  ;;  %v8422_v49 = vld [vmem:[#allocation2 + $0xc] ss:$24 sps:$4 sm:$0xff]  }
 0x19c   :  { %v1058_v3 = vpop.f32.mrf.mxu0  ;;  %v1171_v55 = vpop.f32.mrf.mxu1 }
 0x19d   :  { %v9520_v30 = vadd.f32 %v1058_v3, %v12930_v60  ;;  %v9522_v7 = vadd.f32 %v1171_v55, %v794_v24  ;;  %v8421_v60 = vld [vmem:[#allocation2 + $0x38] ss:$24 sps:$4 sm:$0xff]  }
 0x19e   :  { %v1062_v21 = vpop.f32.mrf.mxu0  ;;  %v1472_v52 = vpop.f32.mrf.mxu1  ;;  %7271 = vmatmul.mubr.msk.bf16.gmra.mxu0 %vm204_vm0, %v8783_v5  ;;  %7285 = vmatmul.mubr.msk.bf16.vlgmr.msra.gmra.mxu1 %vm204_vm0, %v8630_v25  ;;  %v12940_v5 = vld [vmem:[#allocation50_spill] sm:$0xff] }
 0x19f   :  { %v9529_v2 = vadd.f32 %v1062_v21, %v12931_v46  ;;  %v9532_v27 = vadd.f32 %v1472_v52, %v9397_v34  ;;  %2136 = vmatprep.mubr.bf16.mxu0 %v12871_v13  ;;  %2623 = vmatprep.mubr.bf16.mxu1 %v12871_v13  ;;  %v12932_v34 = vld [vmem:[#allocation45_spill] sm:$0xff] }
 0x1a0   :  { %v1064_v55 = vpop.f32.mrf.mxu0  ;;  %v1474_v3 = vpop.f32.mrf.mxu1  ;;  %2780 = vmatpush1.bf16.msra.mxu1 %v8421_v60  ;;  %v8423_v46 = vld [vmem:[#allocation2 + $0x8] ss:$24 sps:$4 sm:$0xff]   ;;  %v12933_v60 = vld [vmem:[#allocation46_spill] sm:$0xff] }
 0x1a1   :  { %v9537_v42 = vadd.f32 %v1064_v55, %v9128_v20  ;;  %v9540_v61 = vadd.f32 %v1474_v3, %v9406_v63  ;;  %2781 = vmatprep.subr.bf16.mxu1 %v8422_v49  ;;  %v8424_v55 = vld [vmem:[#allocation2 + $0xf4] ss:$24 sps:$4 sm:$0xff]  }
 0x1a2   :  { %v1066_v33 = vpop.f32.mrf.mxu0  ;;  %v1476_v16 = vpop.f32.mrf.mxu1 }
 0x1a3   :  { %v9543_v24 = vadd.f32 %v1066_v33, %v12932_v34  ;;  %v9546_v18 = vadd.f32 %v1476_v16, %v9413_v58  ;;  %v12935_v58 = vld [vmem:[#allocation47_spill] sm:$0xff] }
 0x1a4   :  { %v1068_v21 = vpop.f32.mrf.mxu0  ;;  %v1478_v52 = vpop.f32.mrf.mxu1  ;;  %2782 = vmatpush1.bf16.msra.mxu1 %v8423_v46 }
 0x1a5   :  { %v9549_v20 = vadd.f32 %v1068_v21, %v12933_v60  ;;  %v9552_v63 = vadd.f32 %v1478_v52, %v9420_v4  ;;  %2965 = vmatprep.subr.bf16.mxu1 %v8424_v55  ;;  %v12937_v21 = vld [vmem:[#allocation48_spill] sm:$0xff] }
 0x1a6   :  { %v1072_v3 = vpop.f32.mrf.mxu0  ;;  %v1482_v49 = vpop.f32.mrf.mxu1  ;;  %7272 = vmatmul.mubr.msk.bf16.gmra.mxu0 %vm204_vm0, %v9296_v40  ;;  %7286 = vmatmul.mubr.msk.bf16.gmra.mxu1 %vm204_vm0, %v8658_v32  ;;  %v12938_v40 = vld [vmem:[#allocation49_spill] sm:$0xff] }
 0x1a7   :  { %12934 = vst [vmem:[#allocation27_spill] sm:$0xff] %v9552_v63  ;;  %v9559_v33 = vadd.f32 %v1072_v3, %v12935_v58  ;;  %v9562_v16 = vadd.f32 %v1482_v49, %v9431_v53  ;;  %2520 = vmatprep.mubr.bf16.mxu0 %v12871_v13  ;;  %2633 = vmatprep.mubr.bf16.mxu1 %v12871_v13 }
 0x1a8   :  { %v1074_v4 = vpop.f32.mrf.mxu0  ;;  %v1484_v34 = vpop.f32.mrf.mxu1 }
 0x1a9   :  { %12936 = vst [vmem:[#allocation38_spill] sm:$0xff] %v9562_v16  ;;  %v9567_v52 = vadd.f32 %v1074_v4, %v12937_v21  ;;  %v9570_v46 = vadd.f32 %v1484_v34, %v9440_v23  ;;  %v8425_v34 = vld [vmem:[#allocation2 + $0x30] ss:$24 sps:$4 sm:$0xff]  }
 0x1aa   :  { %v1076_v60 = vpop.f32.mrf.mxu0  ;;  %v1486_v55 = vpop.f32.mrf.mxu1 }
 0x1ab   :  { %v9573_v3 = vadd.f32 %v1076_v60, %v12938_v40  ;;  %v9576_v53 = vadd.f32 %v1486_v55, %v9447_v47  ;;  %v12942_v40 = vld [vmem:[#allocation51_spill] sm:$0xff] }
 0x1ac   :  { %v1078_v49 = vpop.f32.mrf.mxu0  ;;  %v1488_v58 = vpop.f32.mrf.mxu1  ;;  %v8426_v60 = vld [vmem:[#allocation2 + $0x4] ss:$24 sps:$4 sm:$0xff]  }
 0x1ad   :  { %12939 = vst [vmem:[#allocation28_spill] sm:$0xff] %v9576_v53  ;;  %v9579_v16 = vadd.f32 %v1078_v49, %v12940_v5  ;;  %v9582_v63 = vadd.f32 %v1488_v58, %v9454_v56  ;;  %v8428_v53 = vld [vmem:[#allocation2 + $0x44] ss:$24 sps:$4 sm:$0xff]  }
 0x1ae   :  { %v1208_v4 = vpop.f32.mrf.mxu0  ;;  %v1492_v21 = vpop.f32.mrf.mxu1  ;;  %7279 = vmatmul.mubr.msk.bf16.vlgmr.msra.gmra.mxu0 %vm204_vm0, %v8630_v25  ;;  %7287 = vmatmul.mubr.msk.bf16.gmra.mxu1 %vm204_vm0, %v8686_v38  ;;  %v12944_v25 = vld [vmem:[#allocation52_spill] sm:$0xff] }
 0x1af   :  { %12941 = vst [vmem:[#allocation39_spill] sm:$0xff] %v9582_v63  ;;  %v9589_v23 = vadd.f32 %v1208_v4, %v12942_v40  ;;  %v9592_v47 = vadd.f32 %v1492_v21, %v9465_v17  ;;  %2687 = vmatpush1.bf16.msra.mxu0 %v8425_v34  ;;  %2530 = vmatprep.mubr.bf16.mxu0 %v12871_v13  ;;  %v12945_v17 = vld [vmem:[#allocation53_spill] sm:$0xff]  ;;  %v8427_v34 = vld [vmem:[#allocation2] ss:$24 sps:$4 sm:$0xff]  }
 0x1b0   :  { %v1210_v5 = vpop.f32.mrf.mxu0  ;;  %v1494_v56 = vpop.f32.mrf.mxu1  ;;  %2643 = vmatprep.mubr.bf16.mxu1 %v12871_v13  ;;  %2688 = vmatprep.subr.bf16.mxu0 %v8426_v60  ;;  %v12946_v60 = vld [vmem:[#allocation54_spill] sm:$0xff] }
 0x1b1   :  { %12943 = vst [vmem:[#allocation14_spill] sm:$0xff] %v9592_v47  ;;  %v9597_v55 = vadd.f32 %v1210_v5, %v12944_v25  ;;  %v9600_v49 = vadd.f32 %v1494_v56, %v9474_v9 }
 0x1b2   :  { %v1212_v58 = vpop.f32.mrf.mxu0  ;;  %v1496_v4 = vpop.f32.mrf.mxu1 }
 0x1b3   :  { %v9603_v21 = vadd.f32 %v1212_v58, %v12945_v17  ;;  %v9606_v40 = vadd.f32 %v1496_v4, %v9481_v8  ;;  %2689 = vmatpush1.bf16.msra.mxu0 %v8427_v34  ;;  %v12948_v8 = vld [vmem:[#allocation55_spill] sm:$0xff]  ;;  %v12950_v34 = vld [vmem:[#allocation56_spill] sm:$0xff] }
 0x1b4   :  { %v1214_v47 = vpop.f32.mrf.mxu0  ;;  %v1498_v63 = vpop.f32.mrf.mxu1  ;;  %2872 = vmatprep.subr.bf16.mxu0 %v8428_v53 }
 0x1b5   :  { %v9609_v5 = vadd.f32 %v1214_v47, %v12946_v60  ;;  %v9612_v9 = vadd.f32 %v1498_v63, %v9488_v59 }
 0x1b6   :  { %v1218_v56 = vpop.f32.mrf.mxu0  ;;  %v1502_v25 = vpop.f32.mrf.mxu1  ;;  %7280 = vmatmul.mubr.msk.bf16.gmra.mxu0 %vm204_vm0, %v8658_v32  ;;  %7288 = vmatmul.mubr.msk.bf16.gmra.mxu1 %vm204_vm0, %v8714_v44 }
 0x1b7   :  { %12947 = vst [vmem:[#allocation29_spill] sm:$0xff] %v9612_v9  ;;  %v9619_v58 = vadd.f32 %v1218_v56, %v12948_v8  ;;  %v9622_v4 = vadd.f32 %v1502_v25, %v9499_v1  ;;  %2540 = vmatprep.mubr.bf16.mxu0 %v12871_v13  ;;  %2653 = vmatprep.mubr.bf16.mxu1 %v12871_v13  ;;  %v12951_v8 = vld [vmem:[#allocation57_spill] sm:$0xff] }
 0x1b8   :  { %v1220_v59 = vpop.f32.mrf.mxu0  ;;  %v1504_v63 = vpop.f32.mrf.mxu1 }
 0x1b9   :  { %12949 = vst [vmem:[#allocation40_spill] sm:$0xff] %v9622_v4  ;;  %v9627_v53 = vadd.f32 %v1220_v59, %v9206_v31  ;;  %v9630_v32 = vadd.f32 %v1504_v63, %v9508_v51  ;;  %v12952_v51 = vld [vmem:[#allocation58_spill] sm:$0xff] }
 0x1ba   :  { %v1222_v47 = vpop.f32.mrf.mxu0  ;;  %v1506_v17 = vpop.f32.mrf.mxu1 }
 0x1bb   :  { %v9633_v60 = vadd.f32 %v1222_v47, %v12950_v34  ;;  %v9636_v1 = vadd.f32 %v1506_v17, %v9515_v10 }
 0x1bc   :  { %v1224_v56 = vpop.f32.mrf.mxu0  ;;  %v1508_v25 = vpop.f32.mrf.mxu1 }
 0x1bd   :  { %v9639_v4 = vadd.f32 %v1224_v56, %v12951_v8  ;;  %v9642_v9 = vadd.f32 %v1508_v25, %v9520_v30 }
 0x1be   :  { %v1228_v31 = vpop.f32.mrf.mxu0  ;;  %v1512_v59 = vpop.f32.mrf.mxu1  ;;  %7281 = vmatmul.mubr.msk.bf16.gmra.mxu0 %vm204_vm0, %v8686_v38  ;;  %7289 = vmatmul.mubr.msk.bf16.gmra.mxu1 %vm204_vm0, %v12916_v39 }
 0x1bf   :  { %v9649_v63 = vadd.f32 %v1228_v31, %v12952_v51  ;;  %v9652_v10 = vadd.f32 %v1512_v59, %v9529_v2  ;;  %2550 = vmatprep.mubr.bf16.mxu0 %v12871_v13  ;;  %2663 = vmatprep.mubr.bf16.mxu1 %v12871_v13 }
 0x1c0   :  { %v1230_v30 = vpop.f32.mrf.mxu0  ;;  %v1514_v47 = vpop.f32.mrf.mxu1 }
 0x1c1   :  { %v9657_v17 = vadd.f32 %v1230_v30, %v9234_v62  ;;  %v9660_v38 = vadd.f32 %v1514_v47, %v9537_v42  ;;  %v12957_v47 = vld [vmem:[#allocation60_spill] sm:$0xff] }
 0x1c2   :  { %v1232_v34 = vpop.f32.mrf.mxu0  ;;  %v1516_v56 = vpop.f32.mrf.mxu1 }
 0x1c3   :  { %v9663_v25 = vadd.f32 %v1232_v34, %v9240_v41  ;;  %v9666_v2 = vadd.f32 %v1516_v56, %v9543_v24  ;;  %v12955_v41 = vld [vmem:[#allocation59_spill] sm:$0xff] }
 0x1c4   :  { %v1234_v8 = vpop.f32.mrf.mxu0  ;;  %v1518_v31 = vpop.f32.mrf.mxu1 }
 0x1c5   :  { %12953 = vst [vmem:[#allocation30_spill] sm:$0xff] %v9666_v2  ;;  %v9669_v59 = vadd.f32 %v1234_v8, %v9246_v50  ;;  %v9672_v51 = vadd.f32 %v1518_v31, %v9549_v20  ;;  %v12958_v31 = vld [vmem:[#allocation61_spill] sm:$0xff] }
 0x1c6   :  { %v1238_v62 = vpop.f32.mrf.mxu0  ;;  %v1522_v30 = vpop.f32.mrf.mxu1  ;;  %7282 = vmatmul.mubr.msk.bf16.gmra.mxu0 %vm204_vm0, %v8714_v44  ;;  %7290 = vmatmul.mubr.msk.bf16.gmra.mxu1 %vm204_vm0, %v12923_v29 }
 0x1c7   :  { %12954 = vst [vmem:[#allocation32_spill] sm:$0xff] %v9672_v51  ;;  %v9679_v42 = vadd.f32 %v1238_v62, %v12955_v41  ;;  %v9682_v24 = vadd.f32 %v1522_v30, %v9559_v33  ;;  %2560 = vmatprep.mubr.bf16.mxu0 %v12871_v13  ;;  %2799 = vmatprep.mubr.bf16.mxu1 %v12871_v13 }
 0x1c8   :  { %v1240_v50 = vpop.f32.mrf.mxu0  ;;  %v1524_v20 = vpop.f32.mrf.mxu1 }
 0x1c9   :  { %12956 = vst [vmem:[#allocation33_spill] sm:$0xff] %v9682_v24  ;;  %v9687_v34 = vadd.f32 %v1240_v50, %v12957_v47  ;;  %v9690_v44 = vadd.f32 %v1524_v20, %v9567_v52  ;;  %v12960_v24 = vld [vmem:[#allocation62_spill] sm:$0xff]  ;;  %v12962_v52 = vld [vmem:[#allocation8_spill] sm:$0xff]  ;;  %v12963_v20 = vld [vmem:[#allocation63_spill] sm:$0xff] }
 0x1ca   :  { %v1242_v56 = vpop.f32.mrf.mxu0  ;;  %v1526_v8 = vpop.f32.mrf.mxu1 }
 0x1cb   :  { %v9693_v62 = vadd.f32 %v1242_v56, %v12958_v31  ;;  %v9696_v33 = vadd.f32 %v1526_v8, %v9573_v3  ;;  %v8429_v8 = vld [vmem:[#allocation2 + $0xf0] ss:$24 sps:$4 sm:$0xff]  }
 0x1cc   :  { %v1244_v30 = vpop.f32.mrf.mxu0  ;;  %v1528_v41 = vpop.f32.mrf.mxu1 }
 0x1cd   :  { %12959 = vst [vmem:[#allocation21_spill] sm:$0xff] %v9696_v33  ;;  %v9699_v51 = vadd.f32 %v1244_v30, %v12960_v24  ;;  %v9702_v2 = vadd.f32 %v1528_v41, %v9579_v16  ;;  %v8430_v30 = vld [vmem:[#allocation2 + $0xc4] ss:$24 sps:$4 sm:$0xff]   ;;  %v8431_v33 = vld [vmem:[#allocation2 + $0xc0] ss:$24 sps:$4 sm:$0xff]  }
 0x1ce   :  { %v1248_v50 = vpop.f32.mrf.mxu0  ;;  %v1658_v47 = vpop.f32.mrf.mxu1  ;;  %7283 = vmatmul.mubr.msk.bf16.gmra.mxu0 %vm204_vm0, %v12916_v39  ;;  %7297 = vmatmul.mubr.msk.bf16.vlgmr.msra.gmra.mxu1 %vm204_vm0, %v12962_v52 }
 0x1cf   :  { %12961 = vst [vmem:[#allocation34_spill] sm:$0xff] %v9702_v2  ;;  %v9709_v56 = vadd.f32 %v1248_v50, %v12963_v20  ;;  %v9712_v3 = vadd.f32 %v1658_v47, %v9589_v23  ;;  %2570 = vmatprep.mubr.bf16.mxu0 %v12871_v13  ;;  %2809 = vmatprep.mubr.bf16.mxu1 %v12871_v13  ;;  %v12966_v23 = vld [vmem:[#allocation65_spill] sm:$0xff] }
 0x1d0   :  { %v1250_v16 = vpop.f32.mrf.mxu0  ;;  %v1660_v24 = vpop.f32.mrf.mxu1  ;;  %2966 = vmatpush1.bf16.msra.mxu1 %v8429_v8  ;;  %v12968_v8 = vld [vmem:[#allocation66_spill] sm:$0xff] }
 0x1d1   :  { %12964 = vst [vmem:[#allocation41_spill] sm:$0xff] %v9712_v3  ;;  %v9717_v31 = vadd.f32 %v1250_v16, %v9291_v43  ;;  %v9720_v39 = vadd.f32 %v1660_v24, %v9597_v55  ;;  %2967 = vmatprep.subr.bf16.mxu1 %v8430_v30  ;;  %v8432_v16 = vld [vmem:[#allocation2 + $0x104] ss:$24 sps:$4 sm:$0xff]  }
 0x1d2   :  { %v1252_v41 = vpop.f32.mrf.mxu0  ;;  %v1662_v50 = vpop.f32.mrf.mxu1 }
 0x1d3   :  { %12965 = vst [vmem:[#allocation35_spill] sm:$0xff] %v9720_v39  ;;  %v9723_v47 = vadd.f32 %v1252_v41, %v12966_v23  ;;  %v9726_v20 = vadd.f32 %v1662_v50, %v9603_v21  ;;  %v12970_v41 = vld [vmem:[#allocation9_spill] sm:$0xff]  ;;  %v12971_v21 = vld [vmem:[#allocation67_spill] sm:$0xff] }
 0x1d4   :  { %v1254_v3 = vpop.f32.mrf.mxu0  ;;  %v1664_v2 = vpop.f32.mrf.mxu1  ;;  %2968 = vmatpush1.bf16.msra.mxu1 %v8431_v33 }
 0x1d5   :  { %12967 = vst [vmem:[#allocation36_spill] sm:$0xff] %v9726_v20  ;;  %v9729_v43 = vadd.f32 %v1254_v3, %v12968_v8  ;;  %v9732_v55 = vadd.f32 %v1664_v2, %v9609_v5  ;;  %3151 = vmatprep.subr.bf16.mxu1 %v8432_v16  ;;  %v12973_v3 = vld [vmem:[#allocation68_spill] sm:$0xff] }
 0x1d6   :  { %v1258_v24 = vpop.f32.mrf.mxu0  ;;  %v1668_v30 = vpop.f32.mrf.mxu1  ;;  %7284 = vmatmul.mubr.msk.bf16.gmra.mxu0 %vm204_vm0, %v12923_v29  ;;  %7298 = vmatmul.mubr.msk.bf16.gmra.mxu1 %vm204_vm0, %v12970_v41 }
 0x1d7   :  { %12969 = vst [vmem:[#allocation42_spill] sm:$0xff] %v9732_v55  ;;  %v9739_v50 = vadd.f32 %v1258_v24, %v12971_v21  ;;  %v9742_v33 = vadd.f32 %v1668_v30, %v9619_v58  ;;  %2706 = vmatprep.mubr.bf16.mxu0 %v12871_v13  ;;  %2819 = vmatprep.mubr.bf16.mxu1 %v12871_v13  ;;  %v12975_v55 = vld [vmem:[#allocation69_spill] sm:$0xff] }
 0x1d8   :  { %v1260_v5 = vpop.f32.mrf.mxu0  ;;  %v1670_v2 = vpop.f32.mrf.mxu1 }
 0x1d9   :  { %12972 = vst [vmem:[#allocation43_spill] sm:$0xff] %v9742_v33  ;;  %v9747_v23 = vadd.f32 %v1260_v5, %v12973_v3  ;;  %v9750_v29 = vadd.f32 %v1670_v2, %v9627_v53  ;;  %v12977_v33 = vld [vmem:[#allocation70_spill] sm:$0xff] }
 0x1da   :  { %v1262_v8 = vpop.f32.mrf.mxu0  ;;  %v1672_v16 = vpop.f32.mrf.mxu1  ;;  %v12979_v53 = vld [vmem:[#allocation10_spill] sm:$0xff] }
 0x1db   :  { %12974 = vst [vmem:[#allocation44_spill] sm:$0xff] %v9750_v29  ;;  %v9753_v24 = vadd.f32 %v1262_v8, %v12975_v55  ;;  %v9756_v58 = vadd.f32 %v1672_v16, %v9633_v60  ;;  %v12980_v55 = vld [vmem:[#allocation71_spill] sm:$0xff]  ;;  %v8434_v16 = vld [vmem:[#allocation2 + $0x14] ss:$24 sps:$4 sm:$0xff]  }
 0x1dc   :  { %v1264_v30 = vpop.f32.mrf.mxu0  ;;  %v1674_v21 = vpop.f32.mrf.mxu1  ;;  %v8433_v8 = vld [vmem:[#allocation2 + $0x40] ss:$24 sps:$4 sm:$0xff]   ;;  %v8436_v29 = vld [vmem:[#allocation2 + $0xfc] ss:$24 sps:$4 sm:$0xff]  }
 0x1dd   :  { %12976 = vst [vmem:[#allocation45_spill] sm:$0xff] %v9756_v58  ;;  %v9759_v20 = vadd.f32 %v1264_v30, %v12977_v33  ;;  %v9762_v39 = vadd.f32 %v1674_v21, %v9639_v4 }
 0x1de   :  { %v1565_v5 = vpop.f32.mrf.mxu0  ;;  %v1678_v3 = vpop.f32.mrf.mxu1  ;;  %7291 = vmatmul.mubr.msk.bf16.vlgmr.msra.gmra.mxu0 %vm204_vm0, %v12962_v52  ;;  %7299 = vmatmul.mubr.msk.bf16.gmra.mxu1 %vm204_vm0, %v12979_v53 }
 0x1df   :  { %12978 = vst [vmem:[#allocation46_spill] sm:$0xff] %v9762_v39  ;;  %v9769_v2 = vadd.f32 %v1565_v5, %v12980_v55  ;;  %v9772_v60 = vadd.f32 %v1678_v3, %v9649_v63  ;;  %2873 = vmatpush1.bf16.msra.mxu0 %v8433_v8  ;;  %2716 = vmatprep.mubr.bf16.mxu0 %v12871_v13  ;;  %v12982_v63 = vld [vmem:[#allocation72_spill] sm:$0xff] }
 0x1e0   :  { %v1567_v4 = vpop.f32.mrf.mxu0  ;;  %v1680_v33 = vpop.f32.mrf.mxu1  ;;  %2829 = vmatprep.mubr.bf16.mxu1 %v12871_v13  ;;  %2874 = vmatprep.subr.bf16.mxu0 %v8434_v16  ;;  %v12983_v16 = vld [vmem:[#allocation73_spill] sm:$0xff] }
 0x1e1   :  { %12981 = vst [vmem:[#allocation47_spill] sm:$0xff] %v9772_v60  ;;  %v9777_v30 = vadd.f32 %v1567_v4, %v9346_v28  ;;  %v9780_v21 = vadd.f32 %v1680_v33, %v9657_v17  ;;  %v8435_v60 = vld [vmem:[#allocation2 + $0x10] ss:$24 sps:$4 sm:$0xff]  }
 0x1e2   :  { %v1569_v5 = vpop.f32.mrf.mxu0  ;;  %v1682_v55 = vpop.f32.mrf.mxu1 }
 0x1e3   :  { %v9783_v3 = vadd.f32 %v1569_v5, %v12982_v63  ;;  %v9786_v8 = vadd.f32 %v1682_v55, %v9663_v25  ;;  %2875 = vmatpush1.bf16.msra.mxu0 %v8435_v60  ;;  %v12985_v5 = vld [vmem:[#allocation11_spill] sm:$0xff]  ;;  %v12986_v25 = vld [vmem:[#allocation74_spill] sm:$0xff] }
 0x1e4   :  { %v1571_v39 = vpop.f32.mrf.mxu0  ;;  %v1684_v58 = vpop.f32.mrf.mxu1  ;;  %3058 = vmatprep.subr.bf16.mxu0 %v8436_v29 }
 0x1e5   :  { %v9789_v28 = vadd.f32 %v1571_v39, %v12983_v16  ;;  %v9792_v17 = vadd.f32 %v1684_v58, %v9669_v59 }
 0x1e6   :  { %v1575_v4 = vpop.f32.mrf.mxu0  ;;  %v1688_v33 = vpop.f32.mrf.mxu1  ;;  %7292 = vmatmul.mubr.msk.bf16.gmra.mxu0 %vm204_vm0, %v12970_v41  ;;  %7300 = vmatmul.mubr.msk.bf16.gmra.mxu1 %vm204_vm0, %v12985_v5 }
 0x1e7   :  { %12984 = vst [vmem:[#allocation48_spill] sm:$0xff] %v9792_v17  ;;  %v9799_v60 = vadd.f32 %v1575_v4, %v12986_v25  ;;  %v9802_v55 = vadd.f32 %v1688_v33, %v9679_v42  ;;  %2726 = vmatprep.mubr.bf16.mxu0 %v12871_v13  ;;  %2839 = vmatprep.mubr.bf16.mxu1 %v12871_v13 }
 0x1e8   :  { %v1577_v59 = vpop.f32.mrf.mxu0  ;;  %v1690_v39 = vpop.f32.mrf.mxu1 }
 0x1e9   :  { %12987 = vst [vmem:[#allocation49_spill] sm:$0xff] %v9802_v55  ;;  %v9807_v29 = vadd.f32 %v1577_v59, %v9376_v48  ;;  %v9810_v58 = vadd.f32 %v1690_v39, %v9687_v34  ;;  %v12988_v34 = vld [vmem:[#allocation12_spill] sm:$0xff] }
 0x1ea   :  { %v1579_v63 = vpop.f32.mrf.mxu0  ;;  %v1692_v16 = vpop.f32.mrf.mxu1 }
 0x1eb   :  { %v9813_v4 = vadd.f32 %v1579_v63, %v9382_v36  ;;  %v9816_v42 = vadd.f32 %v1692_v16, %v9693_v62 }
 0x1ec   :  { %v1581_v33 = vpop.f32.mrf.mxu0  ;;  %v1694_v25 = vpop.f32.mrf.mxu1 }
 0x1ed   :  { %v9819_v55 = vadd.f32 %v1581_v33, %v9388_v45  ;;  %v9822_v17 = vadd.f32 %v1694_v25, %v9699_v51 }
 0x1ee   :  { %v1585_v48 = vpop.f32.mrf.mxu0  ;;  %v1698_v59 = vpop.f32.mrf.mxu1  ;;  %7293 = vmatmul.mubr.msk.bf16.gmra.mxu0 %vm204_vm0, %v12979_v53  ;;  %7301 = vmatmul.mubr.msk.bf16.gmra.mxu1 %vm204_vm0, %v12988_v34 }
 0x1ef   :  { %v9829_v36 = vadd.f32 %v1585_v48, %v9399_v22  ;;  %v9832_v62 = vadd.f32 %v1698_v59, %v9709_v56  ;;  %2736 = vmatprep.mubr.bf16.mxu0 %v12871_v13  ;;  %2849 = vmatprep.mubr.bf16.mxu1 %v12871_v13 }
 0x1f0   :  { %v1587_v45 = vpop.f32.mrf.mxu0  ;;  %v1700_v51 = vpop.f32.mrf.mxu1 }
 0x1f1   :  { %12989 = vst [vmem:[#allocation50_spill] sm:$0xff] %v9832_v62  ;;  %v9837_v39 = vadd.f32 %v1587_v45, %v9408_v0  ;;  %v9840_v63 = vadd.f32 %v1700_v51, %v9717_v31  ;;  %v12990_v31 = vld [vmem:[#allocation13_spill] sm:$0xff] }
 0x1f2   :  { %v1589_v16 = vpop.f32.mrf.mxu0  ;;  %v1702_v33 = vpop.f32.mrf.mxu1 }
 0x1f3   :  { %v9843_v22 = vadd.f32 %v1589_v16, %v9415_v12  ;;  %v9846_v56 = vadd.f32 %v1702_v33, %v9723_v47 }
 0x1f4   :  { %v1591_v25 = vpop.f32.mrf.mxu0  ;;  %v1704_v48 = vpop.f32.mrf.mxu1 }
 0x1f5   :  { %v9849_v59 = vadd.f32 %v1591_v25, %v9422_v57  ;;  %v9852_v62 = vadd.f32 %v1704_v48, %v9729_v43 }
 0x1f6   :  { %v1595_v0 = vpop.f32.mrf.mxu0  ;;  %v1708_v45 = vpop.f32.mrf.mxu1  ;;  %7294 = vmatmul.mubr.msk.bf16.gmra.mxu0 %vm204_vm0, %v12985_v5  ;;  %7302 = vmatmul.mubr.msk.bf16.gmra.mxu1 %vm204_vm0, %v12990_v31 }
 0x1f7   :  { %v9859_v12 = vadd.f32 %v1595_v0, %v9433_v11  ;;  %v9862_v47 = vadd.f32 %v1708_v45, %v9739_v50  ;;  %2746 = vmatprep.mubr.bf16.mxu0 %v12871_v13  ;;  %2985 = vmatprep.mubr.bf16.mxu1 %v12871_v13 }
 0x1f8   :  { %v1597_v57 = vpop.f32.mrf.mxu0  ;;  %v1710_v43 = vpop.f32.mrf.mxu1 }
 0x1f9   :  { %12991 = vst [vmem:[#allocation51_spill] sm:$0xff] %v9862_v47  ;;  %v9867_v51 = vadd.f32 %v1597_v57, %v9442_v15  ;;  %v9870_v16 = vadd.f32 %v1710_v43, %v9747_v23  ;;  %v12993_v23 = vld [vmem:[#allocation17_spill] sm:$0xff]  ;;  %v8437_v43 = vld [vmem:[#allocation2 + $0x100] ss:$24 sps:$4 sm:$0xff]  }
 0x1fa   :  { %v1599_v33 = vpop.f32.mrf.mxu0  ;;  %v1712_v25 = vpop.f32.mrf.mxu1 }
 0x1fb   :  { %v9873_v11 = vadd.f32 %v1599_v33, %v9449_v6  ;;  %v9876_v50 = vadd.f32 %v1712_v25, %v9753_v24 }
 0x1fc   :  { %v1601_v48 = vpop.f32.mrf.mxu0  ;;  %v1714_v0 = vpop.f32.mrf.mxu1 }
 0x1fd   :  { %v9879_v45 = vadd.f32 %v1601_v48, %v9456_v26  ;;  %v9882_v47 = vadd.f32 %v1714_v0, %v9759_v20  ;;  %v8438_v48 = vld [vmem:[#allocation2 + $0xd4] ss:$24 sps:$4 sm:$0xff]  }
 0x1fe   :  { %v1605_v15 = vpop.f32.mrf.mxu0  ;;  %v1995_v57 = vpop.f32.mrf.mxu1  ;;  %7295 = vmatmul.mubr.msk.bf16.gmra.mxu0 %vm204_vm0, %v12988_v34  ;;  %7309 = vmatmul.mubr.msk.bf16.vlgmr.msra.gmra.mxu1 %vm204_vm0, %v12993_v23 }
 0x1ff   :  { %12992 = vst [vmem:[#allocation52_spill] sm:$0xff] %v9882_v47  ;;  %v9889_v6 = vadd.f32 %v1605_v15, %v9467_v35  ;;  %v9892_v24 = vadd.f32 %v1995_v57, %v9769_v2  ;;  %2756 = vmatprep.mubr.bf16.mxu0 %v12871_v13  ;;  %2995 = vmatprep.mubr.bf16.mxu1 %v12871_v13  ;;  %v8439_v47 = vld [vmem:[#allocation2 + $0xd0] ss:$24 sps:$4 sm:$0xff]  }
 0x200   :  { %v1607_v26 = vpop.f32.mrf.mxu0  ;;  %v1997_v20 = vpop.f32.mrf.mxu1  ;;  %3152 = vmatpush1.bf16.msra.mxu1 %v8437_v43  ;;  %v12997_v43 = vld [vmem:[#allocation37_spill] sm:$0xff] }
 0x201   :  { %12994 = vst [vmem:[#allocation53_spill] sm:$0xff] %v9892_v24  ;;  %v9897_v33 = vadd.f32 %v1607_v26, %v9476_v19  ;;  %v9900_v25 = vadd.f32 %v1997_v20, %v9777_v30  ;;  %3153 = vmatprep.subr.bf16.mxu1 %v8438_v48  ;;  %v8440_v26 = vld [vmem:[#allocation2 + $0x15c] ss:$24 sps:$4 sm:$0xff]  }
 0x202   :  { %v1609_v35 = vpop.f32.mrf.mxu0  ;;  %v1999_v0 = vpop.f32.mrf.mxu1 }
 0x203   :  { %12995 = vst [vmem:[#allocation54_spill] sm:$0xff] %v9900_v25  ;;  %v9903_v2 = vadd.f32 %v1609_v35, %v9483_v14  ;;  %v9906_v15 = vadd.f32 %v1999_v0, %v9783_v3  ;;  %v12999_v14 = vld [vmem:[#allocation22_spill] sm:$0xff]  ;;  %v13000_v3 = vld [vmem:[#allocation25_spill] sm:$0xff] }
 0x204   :  { %v1611_v57 = vpop.f32.mrf.mxu0  ;;  %v2001_v24 = vpop.f32.mrf.mxu1  ;;  %3154 = vmatpush1.bf16.msra.mxu1 %v8439_v47 }
 0x205   :  { %12996 = vst [vmem:[#allocation55_spill] sm:$0xff] %v9906_v15  ;;  %v9909_v19 = vadd.f32 %v1611_v57, %v12997_v43  ;;  %v9912_v30 = vadd.f32 %v2001_v24, %v9789_v28  ;;  %3409 = vmatprep.subr.bf16.mxu1 %v8440_v26 }
 0x206   :  { %v1615_v20 = vpop.f32.mrf.mxu0  ;;  %v2005_v48 = vpop.f32.mrf.mxu1  ;;  %7296 = vmatmul.mubr.msk.bf16.gmra.mxu0 %vm204_vm0, %v12990_v31  ;;  %7310 = vmatmul.mubr.msk.bf16.gmra.mxu1 %vm204_vm0, %v12999_v14 }
 0x207   :  { %12998 = vst [vmem:[#allocation56_spill] sm:$0xff] %v9912_v30  ;;  %v9919_v35 = vadd.f32 %v1615_v20, %v13000_v3  ;;  %v9922_v47 = vadd.f32 %v2005_v48, %v9799_v60  ;;  %2892 = vmatprep.mubr.bf16.mxu0 %v12871_v13  ;;  %3005 = vmatprep.mubr.bf16.mxu1 %v12871_v13 }
 0x208   :  { %v1617_v28 = vpop.f32.mrf.mxu0  ;;  %v2007_v24 = vpop.f32.mrf.mxu1 }
 0x209   :  { %13001 = vst [vmem:[#allocation57_spill] sm:$0xff] %v9922_v47  ;;  %v9927_v0 = vadd.f32 %v1617_v28, %v9510_v37  ;;  %v9930_v57 = vadd.f32 %v2007_v24, %v9807_v29  ;;  %v13005_v29 = vld [vmem:[#allocation23_spill] sm:$0xff] }
 0x20a   :  { %v1619_v43 = vpop.f32.mrf.mxu0  ;;  %v2009_v26 = vpop.f32.mrf.mxu1  ;;  %v8441_v24 = vld [vmem:[#allocation2 + $0xf8] ss:$24 sps:$4 sm:$0xff]  }
 0x20b   :  { %13002 = vst [vmem:[#allocation58_spill] sm:$0xff] %v9930_v57  ;;  %v9933_v20 = vadd.f32 %v1619_v43, %v9517_v54  ;;  %v9936_v60 = vadd.f32 %v2009_v26, %v9813_v4  ;;  %v8442_v43 = vld [vmem:[#allocation2 + $0xcc] ss:$24 sps:$4 sm:$0xff]  }
 0x20c   :  { %v1621_v48 = vpop.f32.mrf.mxu0  ;;  %v2011_v3 = vpop.f32.mrf.mxu1  ;;  %v13127_v57 = vld [vmem:[#allocation64_spill] sm:$0xff] }
 0x20d   :  { %13003 = vst [vmem:[#allocation59_spill] sm:$0xff] %v9936_v60  ;;  %v9939_v47 = vadd.f32 %v1621_v48, %v9522_v7  ;;  %v9942_v30 = vadd.f32 %v2011_v3, %v9819_v55  ;;  %v8443_v3 = vld [vmem:[#allocation2 + $0xc8] ss:$24 sps:$4 sm:$0xff]  }
 0x20e   :  { %v1902_v37 = vpop.f32.mrf.mxu0  ;;  %v2015_v28 = vpop.f32.mrf.mxu1  ;;  %7303 = vmatmul.mubr.msk.bf16.vlgmr.msra.gmra.mxu0 %vm204_vm0, %v12962_v52  ;;  %7311 = vmatmul.mubr.msk.bf16.gmra.mxu1 %vm204_vm0, %v13005_v29 }
 0x20f   :  { %13004 = vst [vmem:[#allocation60_spill] sm:$0xff] %v9942_v30  ;;  %v9949_v54 = vadd.f32 %v1902_v37, %v9532_v27  ;;  %v9952_v4 = vadd.f32 %v2015_v28, %v9829_v36  ;;  %3059 = vmatpush1.bf16.msra.mxu0 %v8441_v24  ;;  %2902 = vmatprep.mubr.bf16.mxu0 %v12871_v13 }
 0x210   :  { %v1904_v7 = vpop.f32.mrf.mxu0  ;;  %v2017_v55 = vpop.f32.mrf.mxu1  ;;  %3015 = vmatprep.mubr.bf16.mxu1 %v12871_v13  ;;  %3060 = vmatprep.subr.bf16.mxu0 %v8442_v43  ;;  %v13012_v43 = vld [vmem:[#allocation27_spill] sm:$0xff] }
 0x211   :  { %13006 = vst [vmem:[#allocation61_spill] sm:$0xff] %v9949_v54  ;;  %13007 = vst [vmem:[#allocation62_spill] sm:$0xff] %v9952_v4  ;;  %v9957_v52 = vadd.f32 %v1904_v7, %v9540_v61  ;;  %v9960_v26 = vadd.f32 %v2017_v55, %v9837_v39  ;;  %v8444_v4 = vld [vmem:[#allocation2 + $0x154] ss:$24 sps:$4 sm:$0xff]  }
 0x212   :  { %v1906_v27 = vpop.f32.mrf.mxu0  ;;  %v2019_v48 = vpop.f32.mrf.mxu1 }
 0x213   :  { %13008 = vst [vmem:[#allocation8_spill] sm:$0xff] %v9957_v52  ;;  %13009 = vst [vmem:[#allocation63_spill] sm:$0xff] %v9960_v26  ;;  %v9963_v36 = vadd.f32 %v1906_v27, %v9546_v18  ;;  %3061 = vmatpush1.bf16.msra.mxu0 %v8443_v3  ;;  %v9966_v37 = vadd.f32 %v2019_v48, %v9843_v22  ;;  %v13015_v18 = vld [vmem:[#allocation24_spill] sm:$0xff]  ;;  %v13016_v22 = vld [vmem:[#allocation38_spill] sm:$0xff] }
 0x214   :  { %v1908_v28 = vpop.f32.mrf.mxu0  ;;  %v2021_v24 = vpop.f32.mrf.mxu1  ;;  %3316 = vmatprep.subr.bf16.mxu0 %v8444_v4 }
 0x215   :  { %13010 = vst [vmem:[#allocation65_spill] sm:$0xff] %v9963_v36  ;;  %13011 = vst [vmem:[#allocation66_spill] sm:$0xff] %v9966_v37  ;;  %v9969_v61 = vadd.f32 %v1908_v28, %v13012_v43  ;;  %v9972_v39 = vadd.f32 %v2021_v24, %v9849_v59 }
 0x216   :  { %v1912_v7 = vpop.f32.mrf.mxu0  ;;  %v2025_v55 = vpop.f32.mrf.mxu1  ;;  %7304 = vmatmul.mubr.msk.bf16.gmra.mxu0 %vm204_vm0, %v12970_v41  ;;  %7312 = vmatmul.mubr.msk.bf16.gmra.mxu1 %vm204_vm0, %v13015_v18 }
 0x217   :  { %13013 = vst [vmem:[#allocation9_spill] sm:$0xff] %v9969_v61  ;;  %13014 = vst [vmem:[#allocation67_spill] sm:$0xff] %v9972_v39  ;;  %v9979_v27 = vadd.f32 %v1912_v7, %v13016_v22  ;;  %2912 = vmatprep.mubr.bf16.mxu0 %v12871_v13  ;;  %3025 = vmatprep.mubr.bf16.mxu1 %v12871_v13  ;;  %v9984_v4 = vadd.f32 %v2025_v55, %v9859_v12  ;;  %v13021_v39 = vld [vmem:[#allocation28_spill] sm:$0xff]  ;;  %v13024_v12 = vld [vmem:[#allocation39_spill] sm:$0xff] }
 0x218   :  { %v1914_v59 = vpop.f32.mrf.mxu0  ;;  %v2027_v48 = vpop.f32.mrf.mxu1 }
 0x219   :  { %13017 = vst [vmem:[#allocation68_spill] sm:$0xff] %v9979_v27  ;;  %13018 = vst [vmem:[#allocation69_spill] sm:$0xff] %v9984_v4  ;;  %v9987_v3 = vadd.f32 %v1914_v59, %v9570_v46  ;;  %v9990_v28 = vadd.f32 %v2027_v48, %v9867_v51  ;;  %v13027_v51 = vld [vmem:[#allocation26_spill] sm:$0xff] }
 0x21a   :  { %v1916_v24 = vpop.f32.mrf.mxu0  ;;  %v2029_v43 = vpop.f32.mrf.mxu1 }
 0x21b   :  { %13019 = vst [vmem:[#allocation70_spill] sm:$0xff] %v9987_v3  ;;  %13020 = vst [vmem:[#allocation10_spill] sm:$0xff] %v9990_v28  ;;  %v9993_v7 = vadd.f32 %v1916_v24, %v13021_v39  ;;  %v9996_v22 = vadd.f32 %v2029_v43, %v9873_v11  ;;  %v13028_v39 = vld [vmem:[#allocation14_spill] sm:$0xff]  ;;  %v13122_v3 = vld [vmem:[#allocation20_spill] sm:$0xff] }
 0x21c   :  { %v1918_v27 = vpop.f32.mrf.mxu0  ;;  %v2031_v61 = vpop.f32.mrf.mxu1 }
 0x21d   :  { %13022 = vst [vmem:[#allocation71_spill] sm:$0xff] %v9993_v7  ;;  %13023 = vst [vmem:[#allocation72_spill] sm:$0xff] %v9996_v22  ;;  %v9999_v55 = vadd.f32 %v1918_v27, %v13024_v12  ;;  %v10002_v4 = vadd.f32 %v2031_v61, %v9879_v45 }
 0x21e   :  { %v1922_v46 = vpop.f32.mrf.mxu0  ;;  %v2035_v59 = vpop.f32.mrf.mxu1  ;;  %7305 = vmatmul.mubr.msk.bf16.gmra.mxu0 %vm204_vm0, %v12979_v53  ;;  %7313 = vmatmul.mubr.msk.bf16.gmra.mxu1 %vm204_vm0, %v13027_v51 }
 0x21f   :  { %13025 = vst [vmem:[#allocation73_spill] sm:$0xff] %v9999_v55  ;;  %13026 = vst [vmem:[#allocation11_spill] sm:$0xff] %v10002_v4  ;;  %v10009_v48 = vadd.f32 %v1922_v46, %v13028_v39  ;;  %2922 = vmatprep.mubr.bf16.mxu0 %v12871_v13  ;;  %3035 = vmatprep.mubr.bf16.mxu1 %v12871_v13  ;;  %v10014_v11 = vadd.f32 %v2035_v59, %v9889_v6  ;;  %v13035_v6 = vld [vmem:[#allocation29_spill] sm:$0xff] }
 0x220   :  { %v1924_v45 = vpop.f32.mrf.mxu0  ;;  %v2037_v61 = vpop.f32.mrf.mxu1 }
 0x221   :  { %13029 = vst [vmem:[#allocation74_spill] sm:$0xff] %v10009_v48  ;;  %13030 = vst [vmem:[#allocation12_spill] sm:$0xff] %v10014_v11  ;;  %v10017_v27 = vadd.f32 %v1924_v45, %v9600_v49  ;;  %v10020_v24 = vadd.f32 %v2037_v61, %v9897_v33  ;;  %v13038_v33 = vld [vmem:[#allocation31_spill] sm:$0xff] }
 0x222   :  { %v1926_v43 = vpop.f32.mrf.mxu0  ;;  %v2039_v12 = vpop.f32.mrf.mxu1 }
 0x223   :  { %13031 = vst [vmem:[#allocation13_spill] sm:$0xff] %v10017_v27  ;;  %13032 = vst [vmem:[#allocation17_spill] sm:$0xff] %v10020_v24  ;;  %v10023_v46 = vadd.f32 %v1926_v43, %v9606_v40  ;;  %v10026_v39 = vadd.f32 %v2039_v12, %v9903_v2  ;;  %v13039_v40 = vld [vmem:[#allocation40_spill] sm:$0xff]  ;;  %v13117_v27 = vld [vmem:[#allocation19_spill] sm:$0xff] }
 0x224   :  { %v1928_v48 = vpop.f32.mrf.mxu0  ;;  %v2041_v4 = vpop.f32.mrf.mxu1 }
 0x225   :  { %13033 = vst [vmem:[#allocation37_spill] sm:$0xff] %v10023_v46  ;;  %13034 = vst [vmem:[#allocation22_spill] sm:$0xff] %v10026_v39  ;;  %v10029_v59 = vadd.f32 %v1928_v48, %v13035_v6  ;;  %v10032_v11 = vadd.f32 %v2041_v4, %v9909_v19  ;;  %v8460_v46 = vld [vmem:[#allocation2 + $0x1bc] ss:$24 sps:$4 sm:$0xff]  }
 0x226   :  { %v1932_v49 = vpop.f32.mrf.mxu0  ;;  %v2045_v45 = vpop.f32.mrf.mxu1  ;;  %7306 = vmatmul.mubr.msk.bf16.gmra.mxu0 %vm204_vm0, %v12985_v5  ;;  %7314 = vmatmul.mubr.msk.bf16.gmra.mxu1 %vm204_vm0, %v13038_v33 }
 0x227   :  { %13036 = vst [vmem:[#allocation25_spill] sm:$0xff] %v10029_v59  ;;  %13037 = vst [vmem:[#allocation23_spill] sm:$0xff] %v10032_v11  ;;  %v10039_v61 = vadd.f32 %v1932_v49, %v13039_v40  ;;  %v10042_v2 = vadd.f32 %v2045_v45, %v9919_v35  ;;  %2932 = vmatprep.mubr.bf16.mxu0 %v12871_v13  ;;  %3171 = vmatprep.mubr.bf16.mxu1 %v12871_v13  ;;  %v13068_v11 = vld [vmem:[#allocation42_spill] sm:$0xff] }
 0x228   :  { %v1934_v19 = vpop.f32.mrf.mxu0  ;;  %v2047_v4 = vpop.f32.mrf.mxu1 }
 0x229   :  { %13040 = vst [vmem:[#allocation27_spill] sm:$0xff] %v10039_v61  ;;  %13041 = vst [vmem:[#allocation24_spill] sm:$0xff] %v10042_v2  ;;  %v10047_v48 = vadd.f32 %v1934_v19, %v9630_v32  ;;  %v10050_v43 = vadd.f32 %v2047_v4, %v9927_v0  ;;  %v8446_v4 = vld [vmem:[#allocation2 + $0x12c] ss:$24 sps:$4 sm:$0xff]  }
 0x22a   :  { %v1936_v12 = vpop.f32.mrf.mxu0  ;;  %v2049_v6 = vpop.f32.mrf.mxu1 }
 0x22b   :  { %13042 = vst [vmem:[#allocation38_spill] sm:$0xff] %v10047_v48  ;;  %13043 = vst [vmem:[#allocation28_spill] sm:$0xff] %v10050_v43  ;;  %v10053_v49 = vadd.f32 %v1936_v12, %v9636_v1  ;;  %v10056_v35 = vadd.f32 %v2049_v6, %v9933_v20  ;;  %v13065_v43 = vld [vmem:[#allocation36_spill] sm:$0xff] }
 0x22c   :  { %v1938_v45 = vpop.f32.mrf.mxu0  ;;  %v2051_v40 = vpop.f32.mrf.mxu1  ;;  %v8452_v48 = vld [vmem:[#allocation2 + $0x164] ss:$24 sps:$4 sm:$0xff]  }
 0x22d   :  { %13044 = vst [vmem:[#allocation39_spill] sm:$0xff] %v10053_v49  ;;  %13045 = vst [vmem:[#allocation26_spill] sm:$0xff] %v10056_v35  ;;  %v10059_v2 = vadd.f32 %v1938_v45, %v9642_v9  ;;  %v10062_v61 = vadd.f32 %v2051_v40, %v9939_v47  ;;  %v8445_v47 = vld [vmem:[#allocation2 + $0x158] ss:$24 sps:$4 sm:$0xff]  }
 0x22e   :  { %v1942_v32 = vpop.f32.mrf.mxu0  ;;  %v10064_v19 = vpop.f32.mrf.mxu1  ;;  %7307 = vmatmul.mubr.msk.bf16.gmra.mxu0 %vm204_vm0, %v12988_v34  ;;  %7321 = vmatmul.mubr.msk.bf16.vlgmr.msra.gmra.mxu1 %vm204_vm0, %v12993_v23  ;;  %v13050_v45 = vld [vmem:[#allocation30_spill] sm:$0xff] }
 0x22f   :  { %13046 = vst [vmem:[#allocation14_spill] sm:$0xff] %v10059_v2  ;;  %13047 = vst [vmem:[#allocation29_spill] sm:$0xff] %v10062_v61  ;;  %v10071_v1 = vadd.f32 %v1942_v32, %v9652_v10  ;;  %2942 = vmatprep.mubr.bf16.mxu0 %v12871_v13  ;;  %3181 = vmatprep.mubr.bf16.mxu1 %v12871_v13  ;;  %v8447_v61 = vld [vmem:[#allocation2 + $0x128] ss:$24 sps:$4 sm:$0xff]  }
 0x230   :  { %v1944_v9 = vpop.f32.mrf.mxu0  ;;  %v10075_v0 = vpop.f32.mrf.mxu1  ;;  %3410 = vmatpush1.bf16.msra.mxu1 %v8445_v47  ;;  %v8448_v47 = vld [vmem:[#allocation2 + $0x1b4] ss:$24 sps:$4 sm:$0xff]  }
 0x231   :  { %13048 = vst [vmem:[#allocation31_spill] sm:$0xff] %v10071_v1  ;;  %v10078_v20 = vadd.f32 %v1944_v9, %v9660_v38  ;;  %3411 = vmatprep.subr.bf16.mxu1 %v8446_v4  ;;  %v13052_v1 = vld [vmem:[#allocation32_spill] sm:$0xff]  ;;  %v13054_v4 = vld [vmem:[#allocation33_spill] sm:$0xff] }
 0x232   :  { %v1946_v12 = vpop.f32.mrf.mxu0  ;;  %v10080_v6 = vpop.f32.mrf.mxu1 }
 0x233   :  { %13049 = vst [vmem:[#allocation40_spill] sm:$0xff] %v10078_v20  ;;  %v10083_v10 = vadd.f32 %v1946_v12, %v13050_v45 }
 0x234   :  { %v1948_v40 = vpop.f32.mrf.mxu0  ;;  %v10085_v32 = vpop.f32.mrf.mxu1  ;;  %3412 = vmatpush1.bf16.msra.mxu1 %v8447_v61 }
 0x235   :  { %13051 = vst [vmem:[#allocation30_spill] sm:$0xff] %v10083_v10  ;;  %v10088_v2 = vadd.f32 %v1948_v40, %v13052_v1  ;;  %3673 = vmatprep.subr.bf16.mxu1 %v8448_v47 }
 0x236   :  { %v1952_v38 = vpop.f32.mrf.mxu0  ;;  %v10090_v9 = vpop.f32.mrf.mxu1  ;;  %7308 = vmatmul.mubr.msk.bf16.gmra.mxu0 %vm204_vm0, %v12990_v31  ;;  %7322 = vmatmul.mubr.msk.bf16.gmra.mxu1 %vm204_vm0, %v12999_v14 }
 0x237   :  { %13053 = vst [vmem:[#allocation32_spill] sm:$0xff] %v10088_v2  ;;  %v10097_v12 = vadd.f32 %v1952_v38, %v13054_v4  ;;  %3078 = vmatprep.mubr.bf16.mxu0 %v12871_v13  ;;  %3191 = vmatprep.mubr.bf16.mxu1 %v12871_v13  ;;  %v13057_v2 = vld [vmem:[#allocation21_spill] sm:$0xff]  ;;  %v13059_v38 = vld [vmem:[#allocation34_spill] sm:$0xff] }
 0x238   :  { %v1954_v61 = vpop.f32.mrf.mxu0  ;;  %v10101_v1 = vpop.f32.mrf.mxu1 }
 0x239   :  { %13055 = vst [vmem:[#allocation33_spill] sm:$0xff] %v10097_v12  ;;  %v10104_v45 = vadd.f32 %v1954_v61, %v9690_v44  ;;  %v13061_v44 = vld [vmem:[#allocation41_spill] sm:$0xff] }
 0x23a   :  { %v1956_v40 = vpop.f32.mrf.mxu0  ;;  %v10106_v47 = vpop.f32.mrf.mxu1 }
 0x23b   :  { %13056 = vst [vmem:[#allocation75_spill] sm:$0xff] %v10104_v45  ;;  %v10109_v10 = vadd.f32 %v1956_v40, %v13057_v2  ;;  %v8449_v2 = vld [vmem:[#allocation2 + $0x150] ss:$24 sps:$4 sm:$0xff]  }
 0x23c   :  { %v1958_v20 = vpop.f32.mrf.mxu0  ;;  %v10111_v35 = vpop.f32.mrf.mxu1 }
 0x23d   :  { %13058 = vst [vmem:[#allocation21_spill] sm:$0xff] %v10109_v10  ;;  %v10114_v4 = vadd.f32 %v1958_v20, %v13059_v38  ;;  %v8450_v20 = vld [vmem:[#allocation2 + $0x124] ss:$24 sps:$4 sm:$0xff]  }
 0x23e   :  { %v2088_v12 = vpop.f32.mrf.mxu0  ;;  %v10116_v49 = vpop.f32.mrf.mxu1  ;;  %7315 = vmatmul.mubr.msk.bf16.vlgmr.msra.gmra.mxu0 %vm204_vm0, %v12993_v23  ;;  %7323 = vmatmul.mubr.msk.bf16.gmra.mxu1 %vm204_vm0, %v13005_v29  ;;  %v13063_v38 = vld [vmem:[#allocation35_spill] sm:$0xff] }
 0x23f   :  { %13060 = vst [vmem:[#allocation34_spill] sm:$0xff] %v10114_v4  ;;  %v10123_v61 = vadd.f32 %v2088_v12, %v13061_v44  ;;  %3317 = vmatpush1.bf16.msra.mxu0 %v8449_v2  ;;  %3088 = vmatprep.mubr.bf16.mxu0 %v12871_v13  ;;  %v8451_v44 = vld [vmem:[#allocation2 + $0x120] ss:$24 sps:$4 sm:$0xff]  }
 0x240   :  { %v2090_v40 = vpop.f32.mrf.mxu0  ;;  %v10126_v10 = vpop.f32.mrf.mxu1  ;;  %3201 = vmatprep.mubr.bf16.mxu1 %v12871_v13  ;;  %3318 = vmatprep.subr.bf16.mxu0 %v8450_v20 }
 0x241   :  { %13062 = vst [vmem:[#allocation41_spill] sm:$0xff] %v10123_v61  ;;  %v10130_v4 = vadd.f32 %v2090_v40, %v13063_v38 }
 0x242   :  { %v2092_v23 = vpop.f32.mrf.mxu0  ;;  %v10132_v45 = vpop.f32.mrf.mxu1 }
 0x243   :  { %13064 = vst [vmem:[#allocation35_spill] sm:$0xff] %v10130_v4  ;;  %v10135_v12 = vadd.f32 %v2092_v23, %v13065_v43  ;;  %3319 = vmatpush1.bf16.msra.mxu0 %v8451_v44  ;;  %v13070_v43 = vld [vmem:[#allocation43_spill] sm:$0xff] }
 0x244   :  { %v2094_v2 = vpop.f32.mrf.mxu0  ;;  %v10137_v61 = vpop.f32.mrf.mxu1  ;;  %3502 = vmatprep.subr.bf16.mxu0 %v8452_v48 }
 0x245   :  { %13066 = vst [vmem:[#allocation36_spill] sm:$0xff] %v10135_v12  ;;  %13067 = vst [vmem:[#allocation76_spill] sm:$0xff] %v10137_v61  ;;  %v10140_v59 = vadd.f32 %v2094_v2, %v13068_v11  ;;  %v13072_v11 = vld [vmem:[#allocation44_spill] sm:$0xff] }
 0x246   :  { %v2098_v20 = vpop.f32.mrf.mxu0  ;;  %v10142_v39 = vpop.f32.mrf.mxu1  ;;  %7316 = vmatmul.mubr.msk.bf16.gmra.mxu0 %vm204_vm0, %v12999_v14  ;;  %7324 = vmatmul.mubr.msk.bf16.gmra.mxu1 %vm204_vm0, %v13015_v18  ;;  %v13074_v14 = vld [vmem:[#allocation45_spill] sm:$0xff] }
 0x247   :  { %13069 = vst [vmem:[#allocation42_spill] sm:$0xff] %v10140_v59  ;;  %v10149_v40 = vadd.f32 %v2098_v20, %v13070_v43  ;;  %3098 = vmatprep.mubr.bf16.mxu0 %v12871_v13  ;;  %3211 = vmatprep.mubr.bf16.mxu1 %v12871_v13  ;;  %v13077_v20 = vld [vmem:[#allocation46_spill] sm:$0xff] }
 0x248   :  { %v2100_v48 = vpop.f32.mrf.mxu0  ;;  %v10153_v38 = vpop.f32.mrf.mxu1 }
 0x249   :  { %13071 = vst [vmem:[#allocation43_spill] sm:$0xff] %v10149_v40  ;;  %v10156_v23 = vadd.f32 %v2100_v48, %v13072_v11  ;;  %v13079_v48 = vld [vmem:[#allocation47_spill] sm:$0xff] }
 0x24a   :  { %v2102_v44 = vpop.f32.mrf.mxu0  ;;  %v10158_v2 = vpop.f32.mrf.mxu1 }
 0x24b   :  { %13073 = vst [vmem:[#allocation44_spill] sm:$0xff] %v10156_v23  ;;  %v10161_v61 = vadd.f32 %v2102_v44, %v13074_v14 }
 0x24c   :  { %v2104_v59 = vpop.f32.mrf.mxu0  ;;  %v10163_v12 = vpop.f32.mrf.mxu1 }
 0x24d   :  { %13075 = vst [vmem:[#allocation45_spill] sm:$0xff] %v10161_v61  ;;  %13076 = vst [vmem:[#allocation77_spill] sm:$0xff] %v10163_v12  ;;  %v10166_v43 = vadd.f32 %v2104_v59, %v13077_v20 }
 0x24e   :  { %v2108_v40 = vpop.f32.mrf.mxu0  ;;  %v10168_v4 = vpop.f32.mrf.mxu1  ;;  %7317 = vmatmul.mubr.msk.bf16.gmra.mxu0 %vm204_vm0, %v13005_v29  ;;  %7325 = vmatmul.mubr.msk.bf16.gmra.mxu1 %vm204_vm0, %v13027_v51 }
 0x24f   :  { %13078 = vst [vmem:[#allocation46_spill] sm:$0xff] %v10166_v43  ;;  %v10175_v11 = vadd.f32 %v2108_v40, %v13079_v48  ;;  %3108 = vmatprep.mubr.bf16.mxu0 %v12871_v13  ;;  %3221 = vmatprep.mubr.bf16.mxu1 %v12871_v13  ;;  %v13084_v40 = vld [vmem:[#allocation48_spill] sm:$0xff] }
 0x250   :  { %v2110_v44 = vpop.f32.mrf.mxu0  ;;  %v10179_v14 = vpop.f32.mrf.mxu1 }
 0x251   :  { %13080 = vst [vmem:[#allocation47_spill] sm:$0xff] %v10175_v11  ;;  %v10182_v59 = vadd.f32 %v2110_v44, %v9780_v21  ;;  %v13086_v21 = vld [vmem:[#allocation49_spill] sm:$0xff] }
 0x252   :  { %v2112_v20 = vpop.f32.mrf.mxu0  ;;  %v10184_v12 = vpop.f32.mrf.mxu1 }
 0x253   :  { %13081 = vst [vmem:[#allocation78_spill] sm:$0xff] %v10182_v59  ;;  %v10187_v29 = vadd.f32 %v2112_v20, %v9786_v8 }
 0x254   :  { %v2114_v43 = vpop.f32.mrf.mxu0  ;;  %v10189_v61 = vpop.f32.mrf.mxu1 }
 0x255   :  { %13082 = vst [vmem:[#allocation79_spill] sm:$0xff] %v10187_v29  ;;  %13083 = vst [vmem:[#allocation80_spill] sm:$0xff] %v10189_v61  ;;  %v10192_v48 = vadd.f32 %v2114_v43, %v13084_v40 }
 0x256   :  { %v2118_v11 = vpop.f32.mrf.mxu0  ;;  %v10194_v23 = vpop.f32.mrf.mxu1  ;;  %7318 = vmatmul.mubr.msk.bf16.gmra.mxu0 %vm204_vm0, %v13015_v18  ;;  %7326 = vmatmul.mubr.msk.bf16.gmra.mxu1 %vm204_vm0, %v13038_v33 }
 0x257   :  { %13085 = vst [vmem:[#allocation48_spill] sm:$0xff] %v10192_v48  ;;  %v10201_v44 = vadd.f32 %v2118_v11, %v13086_v21  ;;  %3118 = vmatprep.mubr.bf16.mxu0 %v12871_v13  ;;  %3429 = vmatprep.mubr.bf16.mxu1 %v12871_v13 }
 0x258   :  { %v2120_v8 = vpop.f32.mrf.mxu0  ;;  %v10205_v20 = vpop.f32.mrf.mxu1 }
 0x259   :  { %13087 = vst [vmem:[#allocation49_spill] sm:$0xff] %v10201_v44  ;;  %v10208_v43 = vadd.f32 %v2120_v8, %v9810_v58  ;;  %v13092_v58 = vld [vmem:[#allocation15_spill] sm:$0xff]  ;;  %v13093_v8 = vld [vmem:[#allocation50_spill] sm:$0xff] }
 0x25a   :  { %v2122_v40 = vpop.f32.mrf.mxu0  ;;  %v10210_v61 = vpop.f32.mrf.mxu1 }
 0x25b   :  { %13088 = vst [vmem:[#allocation81_spill] sm:$0xff] %v10208_v43  ;;  %v10213_v18 = vadd.f32 %v2122_v40, %v9816_v42 }
 0x25c   :  { %v2124_v48 = vpop.f32.mrf.mxu0  ;;  %v10215_v29 = vpop.f32.mrf.mxu1 }
 0x25d   :  { %13089 = vst [vmem:[#allocation82_spill] sm:$0xff] %v10213_v18  ;;  %13090 = vst [vmem:[#allocation83_spill] sm:$0xff] %v10215_v29  ;;  %v10218_v11 = vadd.f32 %v2124_v48, %v9822_v17  ;;  %v8453_v17 = vld [vmem:[#allocation2 + $0x1b0] ss:$24 sps:$4 sm:$0xff]   ;;  %v8454_v29 = vld [vmem:[#allocation2 + $0x184] ss:$24 sps:$4 sm:$0xff]  }
 0x25e   :  { %v2128_v21 = vpop.f32.mrf.mxu0  ;;  %v10220_v44 = vpop.f32.mrf.mxu1  ;;  %7319 = vmatmul.mubr.msk.bf16.gmra.mxu0 %vm204_vm0, %v13027_v51  ;;  %7333 = vmatmul.mubr.msk.bf16.vlgmr.msra.gmra.mxu1 %vm204_vm0, %v13092_v58  ;;  %v8455_v18 = vld [vmem:[#allocation2 + $0x180] ss:$24 sps:$4 sm:$0xff]  }
 0x25f   :  { %13091 = vst [vmem:[#allocation84_spill] sm:$0xff] %v10218_v11  ;;  %v10227_v43 = vadd.f32 %v2128_v21, %v13093_v8  ;;  %3128 = vmatprep.mubr.bf16.mxu0 %v12871_v13  ;;  %3439 = vmatprep.mubr.bf16.mxu1 %v12871_v13 }
 0x260   :  { %v2130_v42 = vpop.f32.mrf.mxu0  ;;  %v10231_v40 = vpop.f32.mrf.mxu1  ;;  %3674 = vmatpush1.bf16.msra.mxu1 %v8453_v17  ;;  %v8456_v17 = vld [vmem:[#allocation2 + $0x1c4] ss:$24 sps:$4 sm:$0xff]  }
 0x261   :  { %13094 = vst [vmem:[#allocation15_spill] sm:$0xff] %v10227_v43  ;;  %v10234_v48 = vadd.f32 %v2130_v42, %v9840_v63  ;;  %3675 = vmatprep.subr.bf16.mxu1 %v8454_v29  ;;  %v13101_v29 = vld [vmem:[#allocation16_spill] sm:$0xff] }
 0x262   :  { %v2132_v51 = vpop.f32.mrf.mxu0  ;;  %v10236_v11 = vpop.f32.mrf.mxu1 }
 0x263   :  { %13095 = vst [vmem:[#allocation50_spill] sm:$0xff] %v10234_v48  ;;  %13096 = vst [vmem:[#allocation85_spill] sm:$0xff] %v10236_v11  ;;  %v10239_v21 = vadd.f32 %v2132_v51, %v9846_v56  ;;  %v13102_v56 = vld [vmem:[#allocation51_spill] sm:$0xff] }
 0x264   :  { %v2134_v8 = vpop.f32.mrf.mxu0  ;;  %v10241_v43 = vpop.f32.mrf.mxu1  ;;  %3676 = vmatpush1.bf16.msra.mxu1 %v8455_v18 }
 0x265   :  { %13097 = vst [vmem:[#allocation86_spill] sm:$0xff] %v10239_v21  ;;  %13098 = vst [vmem:[#allocation87_spill] sm:$0xff] %v10241_v43  ;;  %v10244_v59 = vadd.f32 %v2134_v8, %v9852_v62  ;;  %3859 = vmatprep.subr.bf16.mxu1 %v8456_v17 }
 0x266   :  { %v2138_v63 = vpop.f32.mrf.mxu0  ;;  %v10246_v42 = vpop.f32.mrf.mxu1  ;;  %7320 = vmatmul.mubr.msk.bf16.gmra.mxu0 %vm204_vm0, %v13038_v33  ;;  %7334 = vmatmul.mubr.msk.bf16.gmra.mxu1 %vm204_vm0, %v13101_v29 }
 0x267   :  { %13099 = vst [vmem:[#allocation88_spill] sm:$0xff] %v10244_v59  ;;  %13100 = vst [vmem:[#allocation89_spill] sm:$0xff] %v10246_v42  ;;  %v10253_v51 = vadd.f32 %v2138_v63, %v13102_v56  ;;  %3336 = vmatprep.mubr.bf16.mxu0 %v12871_v13  ;;  %3449 = vmatprep.mubr.bf16.mxu1 %v12871_v13  ;;  %v13109_v63 = vld [vmem:[#allocation52_spill] sm:$0xff] }
 0x268   :  { %v2140_v62 = vpop.f32.mrf.mxu0  ;;  %v10257_v18 = vpop.f32.mrf.mxu1 }
 0x269   :  { %13103 = vst [vmem:[#allocation16_spill] sm:$0xff] %v10253_v51  ;;  %13104 = vst [vmem:[#allocation51_spill] sm:$0xff] %v10257_v18  ;;  %v10260_v8 = vadd.f32 %v2140_v62, %v9870_v16  ;;  %v13112_v16 = vld [vmem:[#allocation18_spill] sm:$0xff]  ;;  %v8457_v62 = vld [vmem:[#allocation2 + $0x160] ss:$24 sps:$4 sm:$0xff]  }
 0x26a   :  { %v2142_v17 = vpop.f32.mrf.mxu0  ;;  %v10262_v43 = vpop.f32.mrf.mxu1 }
 0x26b   :  { %13105 = vst [vmem:[#allocation90_spill] sm:$0xff] %v10260_v8  ;;  %13106 = vst [vmem:[#allocation91_spill] sm:$0xff] %v10262_v43  ;;  %v10265_v33 = vadd.f32 %v2142_v17, %v9876_v50 }
 0x26c   :  { %v2144_v59 = vpop.f32.mrf.mxu0  ;;  %v10267_v21 = vpop.f32.mrf.mxu1 }
 0x26d   :  { %13107 = vst [vmem:[#allocation92_spill] sm:$0xff] %v10265_v33  ;;  %13108 = vst [vmem:[#allocation93_spill] sm:$0xff] %v10267_v21  ;;  %v10270_v56 = vadd.f32 %v2144_v59, %v13109_v63  ;;  %v8458_v59 = vld [vmem:[#allocation2 + $0x134] ss:$24 sps:$4 sm:$0xff]  }
 0x26e   :  { %v2522_v51 = vpop.f32.mrf.mxu0  ;;  %v10272_v48 = vpop.f32.mrf.mxu1  ;;  %7327 = vmatmul.mubr.msk.bf16.vlgmr.msra.gmra.mxu0 %vm204_vm0, %v13092_v58  ;;  %7335 = vmatmul.mubr.msk.bf16.gmra.mxu1 %vm204_vm0, %v13112_v16 }
 0x26f   :  { %13110 = vst [vmem:[#allocation52_spill] sm:$0xff] %v10270_v56  ;;  %13111 = vst [vmem:[#allocation94_spill] sm:$0xff] %v10272_v48  ;;  %3503 = vmatpush1.bf16.msra.mxu0 %v8457_v62  ;;  %3346 = vmatprep.mubr.bf16.mxu0 %v12871_v13  ;;  %v8459_v56 = vld [vmem:[#allocation2 + $0x130] ss:$24 sps:$4 sm:$0xff]  }
 0x270   :  { %v2524_v50 = vpop.f32.mrf.mxu0  ;;  %v10279_v17 = vpop.f32.mrf.mxu1  ;;  %3459 = vmatprep.mubr.bf16.mxu1 %v12871_v13  ;;  %3504 = vmatprep.subr.bf16.mxu0 %v8458_v59 }
 0x271   :  { %13113 = vst [vmem:[#allocation18_spill] sm:$0xff] %v10279_v17 }
 0x272   :  { %v2526_v63 = vpop.f32.mrf.mxu0  ;;  %v10282_v21 = vpop.f32.mrf.mxu1 }
 0x273   :  { %13114 = vst [vmem:[#allocation95_spill] sm:$0xff] %v10282_v21  ;;  %3505 = vmatpush1.bf16.msra.mxu0 %v8459_v56  ;;  %v8462_v21 = vld [vmem:[#allocation2 + $0x194] ss:$24 sps:$4 sm:$0xff]  }
 0x274   :  { %v2528_v33 = vpop.f32.mrf.mxu0  ;;  %v10284_v8 = vpop.f32.mrf.mxu1  ;;  %3766 = vmatprep.subr.bf16.mxu0 %v8460_v46 }
 0x275   :  { %13115 = vst [vmem:[#allocation96_spill] sm:$0xff] %v10284_v8 }
 0x276   :  { %v2532_v62 = vpop.f32.mrf.mxu0  ;;  %v10286_v24 = vpop.f32.mrf.mxu1  ;;  %7328 = vmatmul.mubr.msk.bf16.gmra.mxu0 %vm204_vm0, %v13101_v29  ;;  %7336 = vmatmul.mubr.msk.bf16.gmra.mxu1 %vm204_vm0, %v13117_v27 }
 0x277   :  { %13116 = vst [vmem:[#allocation97_spill] sm:$0xff] %v10286_v24  ;;  %3356 = vmatprep.mubr.bf16.mxu0 %v12871_v13  ;;  %3469 = vmatprep.mubr.bf16.mxu1 %v12871_v13  ;;  %v8461_v24 = vld [vmem:[#allocation2 + $0x1c0] ss:$24 sps:$4 sm:$0xff]  }
 0x278   :  { %v2534_v59 = vpop.f32.mrf.mxu0  ;;  %v10294_v56 = vpop.f32.mrf.mxu1 }
 0x279   :  { %13118 = vst [vmem:[#allocation19_spill] sm:$0xff] %v10294_v56 }
 0x27a   :  { %v2536_v55 = vpop.f32.mrf.mxu0  ;;  %v10296_v8 = vpop.f32.mrf.mxu1 }
 0x27b   :  { %13119 = vst [vmem:[#allocation98_spill] sm:$0xff] %v10296_v8 }
 0x27c   :  { %v10298_v46 = vpop.f32.mrf.mxu0  ;;  %v10300_v22 = vpop.f32.mrf.mxu1 }
 0x27d   :  { %13120 = vst [vmem:[#allocation99_spill] sm:$0xff] %v10300_v22 }
 0x27e   :  { %v10302_v7 = vpop.f32.mrf.mxu0  ;;  %v10304_v28 = vpop.f32.mrf.mxu1  ;;  %7329 = vmatmul.mubr.msk.bf16.gmra.mxu0 %vm204_vm0, %v13112_v16  ;;  %7337 = vmatmul.mubr.msk.bf16.gmra.mxu1 %vm204_vm0, %v13122_v3 }
 0x27f   :  { %13121 = vst [vmem:[#allocation100_spill] sm:$0xff] %v10304_v28  ;;  %3366 = vmatprep.mubr.bf16.mxu0 %v12871_v13  ;;  %3479 = vmatprep.mubr.bf16.mxu1 %v12871_v13 }
 0x280   :  { %v10312_v37 = vpop.f32.mrf.mxu0  ;;  %v10314_v36 = vpop.f32.mrf.mxu1 }
 0x281   :  { %13123 = vst [vmem:[#allocation20_spill] sm:$0xff] %v10314_v36 }
 0x282   :  { %v10316_v26 = vpop.f32.mrf.mxu0  ;;  %v10318_v22 = vpop.f32.mrf.mxu1 }
 0x283   :  { %13124 = vst [vmem:[#allocation101_spill] sm:$0xff] %v10318_v22 }
 0x284   :  { %v10320_v52 = vpop.f32.mrf.mxu0  ;;  %v10322_v54 = vpop.f32.mrf.mxu1 }
 0x285   :  { %13125 = vst [vmem:[#allocation102_spill] sm:$0xff] %v10322_v54 }
 0x286   :  { %v10324_v30 = vpop.f32.mrf.mxu0  ;;  %v10326_v60 = vpop.f32.mrf.mxu1  ;;  %7330 = vmatmul.mubr.msk.bf16.gmra.mxu0 %vm204_vm0, %v13117_v27  ;;  %7338 = vmatmul.mubr.msk.bf16.gmra.mxu1 %vm204_vm0, %v13127_v57 }
 0x287   :  { %13126 = vst [vmem:[#allocation103_spill] sm:$0xff] %v10326_v60  ;;  %3376 = vmatprep.mubr.bf16.mxu0 %v12871_v13  ;;  %3693 = vmatprep.mubr.bf16.mxu1 %v12871_v13 }
 0x288   :  { %v10334_v15 = vpop.f32.mrf.mxu0  ;;  %v10336_v25 = vpop.f32.mrf.mxu1 }
 0x289   :  { %13128 = vst [vmem:[#allocation64_spill] sm:$0xff] %v10336_v25 }
 0x28a   :  { %v10338_v22 = vpop.f32.mrf.mxu0  ;;  %v10340_v54 = vpop.f32.mrf.mxu1 }
 0x28b   :  { %13129 = vst [vmem:[#allocation104_spill] sm:$0xff] %v10340_v54 }
 0x28c   :  { %v10342_v36 = vpop.f32.mrf.mxu0  ;;  %v10344_v60 = vpop.f32.mrf.mxu1 }
 0x28d   :  { %13130 = vst [vmem:[#allocation105_spill] sm:$0xff] %v10344_v60 }
 0x28e   :  { %v10346_v28 = vpop.f32.mrf.mxu0  ;;  %v2801_v8 = vpop.f32.mrf.mxu1  ;;  %7331 = vmatmul.mubr.msk.bf16.gmra.mxu0 %vm204_vm0, %v13122_v3  ;;  %7346 = vmatmul.mubr.msk.bf16.vlgmr.msra.gmra.mxu1 %vm204_vm0, %v12970_v41 }
 0x28f   :  { %v10352_v56 = vadd.f32 %v2801_v8, %v2522_v51  ;;  %3386 = vmatprep.mubr.bf16.mxu0 %v12871_v13  ;;  %3703 = vmatprep.mubr.bf16.mxu1 %v12871_v13 }
 0x290   :  { %v10356_v54 = vpop.f32.mrf.mxu0  ;;  %v2803_v25 = vpop.f32.mrf.mxu1  ;;  %3860 = vmatpush1.bf16.msra.mxu1 %v8461_v24 }
 0x291   :  { %13131 = vst [vmem:[#allocation106_spill] sm:$0xff] %v10352_v56  ;;  %v10358_v60 = vadd.f32 %v2803_v25, %v2524_v50  ;;  %3861 = vmatprep.subr.bf16.mxu1 %v8462_v21  ;;  %v8463_v56 = vld [vmem:[#allocation2 + $0x190] ss:$24 sps:$4 sm:$0xff]  }
 0x292   :  { %v10360_v17 = vpop.f32.mrf.mxu0  ;;  %v2805_v48 = vpop.f32.mrf.mxu1 }
 0x293   :  { %v10362_v43 = vadd.f32 %v2805_v48, %v2526_v63 }
 0x294   :  { %v10364_v51 = vpop.f32.mrf.mxu0  ;;  %v2807_v8 = vpop.f32.mrf.mxu1  ;;  %3862 = vmatpush1.bf16.msra.mxu1 %v8463_v56 }
 0x295   :  { %v10366_v18 = vadd.f32 %v2807_v8, %v2528_v33 }
 0x296   :  { %v10368_v42 = vpop.f32.mrf.mxu0  ;;  %v2811_v11 = vpop.f32.mrf.mxu1  ;;  %7332 = vmatmul.mubr.msk.bf16.gmra.mxu0 %vm204_vm0, %v13127_v57  ;;  %7347 = vmatmul.mubr.msk.bf16.gmra.mxu1 %vm204_vm0, %v12979_v53 }
 0x297   :  { %13132 = vst [vmem:[#allocation107_spill] sm:$0xff] %v10366_v18  ;;  %v10374_v25 = vadd.f32 %v2811_v11, %v2532_v62  ;;  %3522 = vmatprep.mubr.bf16.mxu0 %v12871_v13  ;;  %3713 = vmatprep.mubr.bf16.mxu1 %v12871_v13 }
 0x298   :  { %v10378_v24 = vpop.f32.mrf.mxu0  ;;  %v2813_v48 = vpop.f32.mrf.mxu1 }
 0x299   :  { %v10380_v21 = vadd.f32 %v2813_v48, %v2534_v59 }
 0x29a   :  { %v10382_v33 = vpop.f32.mrf.mxu0  ;;  %v2815_v50 = vpop.f32.mrf.mxu1 }
 0x29b   :  { %13133 = vst [vmem:[#allocation108_spill] sm:$0xff] %v10380_v21  ;;  %v10384_v63 = vadd.f32 %v2815_v50, %v2536_v55  ;;  %v8464_v55 = vld [vmem:[#allocation2 + $0x1b8] ss:$24 sps:$4 sm:$0xff]   ;;  %v8465_v50 = vld [vmem:[#allocation2 + $0x18c] ss:$24 sps:$4 sm:$0xff]  }
 0x29c   :  { %v10386_v56 = vpop.f32.mrf.mxu0  ;;  %v2817_v8 = vpop.f32.mrf.mxu1 }
 0x29d   :  { %13134 = vst [vmem:[#allocation109_spill] sm:$0xff] %v10384_v63  ;;  %v10389_v11 = vadd.f32 %v2817_v8, %v10298_v46 }
 0x29e   :  { %v10391_v62 = vpop.f32.mrf.mxu0  ;;  %v2821_v18 = vpop.f32.mrf.mxu1  ;;  %7339 = vmatmul.mubr.msk.bf16.vlgmr.msra.gmra.mxu0 %vm204_vm0, %v13092_v58  ;;  %7348 = vmatmul.mubr.msk.bf16.gmra.mxu1 %vm204_vm0, %v12985_v5 }
 0x29f   :  { %13135 = vst [vmem:[#allocation110_spill] sm:$0xff] %v10389_v11  ;;  %v10398_v59 = vadd.f32 %v2821_v18, %v10302_v7  ;;  %3767 = vmatpush1.bf16.msra.mxu0 %v8464_v55  ;;  %3532 = vmatprep.mubr.bf16.mxu0 %v12871_v13  ;;  %v8466_v18 = vld [vmem:[#allocation2 + $0x188] ss:$24 sps:$4 sm:$0xff]  }
 0x2a0   :  { %v10401_v48 = vpop.f32.mrf.mxu0  ;;  %v2823_v46 = vpop.f32.mrf.mxu1  ;;  %3723 = vmatprep.mubr.bf16.mxu1 %v12871_v13  ;;  %3768 = vmatprep.subr.bf16.mxu0 %v8465_v50 }
 0x2a1   :  { %13136 = vst [vmem:[#allocation111_spill] sm:$0xff] %v10398_v59  ;;  %v10405_v8 = vadd.f32 %v2823_v46, %v10312_v37 }
 0x2a2   :  { %v10407_v58 = vpop.f32.mrf.mxu0  ;;  %v2825_v11 = vpop.f32.mrf.mxu1 }
 0x2a3   :  { %v10410_v7 = vadd.f32 %v2825_v11, %v10316_v26  ;;  %3769 = vmatpush1.bf16.msra.mxu0 %v8466_v18 }
 0x2a4   :  { %v10412_v55 = vpop.f32.mrf.mxu0  ;;  %v2827_v59 = vpop.f32.mrf.mxu1 }
 0x2a5   :  { %v10415_v63 = vadd.f32 %v2827_v59, %v10320_v52 }
 0x2a6   :  { %v10417_v21 = vpop.f32.mrf.mxu0  ;;  %v2831_v50 = vpop.f32.mrf.mxu1  ;;  %7340 = vmatmul.mubr.msk.bf16.gmra.mxu0 %vm204_vm0, %v13101_v29  ;;  %7349 = vmatmul.mubr.msk.bf16.gmra.mxu1 %vm204_vm0, %v12988_v34 }
 0x2a7   :  { %13137 = vst [vmem:[#allocation112_spill] sm:$0xff] %v10415_v63  ;;  %v10424_v26 = vadd.f32 %v2831_v50, %v10324_v30  ;;  %3542 = vmatprep.mubr.bf16.mxu0 %v12871_v13  ;;  %3733 = vmatprep.mubr.bf16.mxu1 %v12871_v13 }
 0x2a8   :  { %v10428_v37 = vpop.f32.mrf.mxu0  ;;  %v2833_v52 = vpop.f32.mrf.mxu1 }
 0x2a9   :  { %13138 = vst [vmem:[#allocation113_spill] sm:$0xff] %v10424_v26  ;;  %v10431_v11 = vadd.f32 %v2833_v52, %v10334_v15 }
 0x2aa   :  { %v10433_v59 = vpop.f32.mrf.mxu0  ;;  %v2835_v46 = vpop.f32.mrf.mxu1 }
 0x2ab   :  { %13139 = vst [vmem:[#allocation114_spill] sm:$0xff] %v10431_v11  ;;  %v10436_v29 = vadd.f32 %v2835_v46, %v10338_v22 }
 0x2ac   :  { %v10438_v18 = vpop.f32.mrf.mxu0  ;;  %v2837_v30 = vpop.f32.mrf.mxu1 }
 0x2ad   :  { %13140 = vst [vmem:[#allocation115_spill] sm:$0xff] %v10436_v29  ;;  %v10441_v50 = vadd.f32 %v2837_v30, %v10342_v36  ;;  %v88_v36 = vld [vmem:[%s12736_s0 + $0x74] sm:$0xf] }
 0x2ae   :  { %v10443_v63 = vpop.f32.mrf.mxu0  ;;  %v2841_v26 = vpop.f32.mrf.mxu1  ;;  %7341 = vmatmul.mubr.msk.bf16.gmra.mxu0 %vm204_vm0, %v13112_v16  ;;  %7350 = vmatmul.mubr.msk.bf16.gmra.mxu1 %vm204_vm0, %v12990_v31 }
 0x2af   :  { %13141 = vst [vmem:[#allocation116_spill] sm:$0xff] %v10441_v50  ;;  %v10450_v15 = vadd.f32 %v2841_v26, %v10346_v28  ;;  %3552 = vmatprep.mubr.bf16.mxu0 %v12871_v13  ;;  %3743 = vmatprep.mubr.bf16.mxu1 %v12871_v13  ;;  %v8467_v28 = vld [vmem:[%s12736_s0 + $0x70] sm:$0xf] }
 0x2b0   :  { %v10457_v22 = vpop.f32.mrf.mxu0  ;;  %v2843_v52 = vpop.f32.mrf.mxu1  ;;  %v10467_v26 = vcombine.low %v8467_v28, %v88_v36 }
 0x2b1   :  { %13142 = vst [vmem:[#allocation117_spill] sm:$0xff] %v10450_v15  ;;  %v10460_v46 = vadd.f32 %v2843_v52, %v10356_v54 }
 0x2b2   :  { %v10462_v16 = vpop.f32.mrf.mxu0  ;;  %v2845_v30 = vpop.f32.mrf.mxu1 }
 0x2b3   :  { %v10470_v50 = vadd.f32 %v2845_v30, %v10360_v17 }
 0x2b4   :  { %v10472_v15 = vpop.f32.mrf.mxu0  ;;  %v2847_v29 = vpop.f32.mrf.mxu1 }
 0x2b5   :  { %13143 = vst [vmem:[#allocation118_spill] sm:$0xff] %v10470_v50  ;;  %13144 = vst [vmem:[#allocation119_spill] sm:$0xff] %v10472_v15  ;;  %v10475_v11 = vadd.f32 %v2847_v29, %v10364_v51 }
 0x2b6   :  { %v10477_v54 = vpop.f32.mrf.mxu0  ;;  %v2851_v52 = vpop.f32.mrf.mxu1  ;;  %7342 = vmatmul.mubr.msk.bf16.gmra.mxu0 %vm204_vm0, %v13117_v27  ;;  %7351 = vmatmul.mubr.msk.bf16.gmra.mxu1 %vm204_vm0, %v10467_v26 }
 0x2b7   :  { %13145 = vst [vmem:[#allocation120_spill] sm:$0xff] %v10475_v11  ;;  %v10484_v36 = vadd.f32 %v2851_v52, %v10368_v42  ;;  %3562 = vmatprep.mubr.bf16.mxu0 %v12871_v13  ;;  %3879 = vmatprep.mubr.bf16.mxu1 %v12871_v13  ;;  %v2709_v52 = vadd.f32 %v10391_v62, %v10064_v19 }
 0x2b8   :  { %v10488_v17 = vpop.f32.mrf.mxu0  ;;  %v2853_v51 = vpop.f32.mrf.mxu1  ;;  %v2713_v62 = vadd.f32 %v10407_v58, %v10080_v6 }
 0x2b9   :  { %13146 = vst [vmem:[#allocation121_spill] sm:$0xff] %v10484_v36  ;;  %v10491_v29 = vadd.f32 %v2853_v51, %v10378_v24  ;;  %v2711_v24 = vadd.f32 %v10401_v48, %v10075_v0  ;;  %v2715_v0 = vadd.f32 %v10412_v55, %v10085_v32  ;;  %v2721_v32 = vadd.f32 %v10428_v37, %v10101_v1 }
 0x2ba   :  { %v10493_v30 = vpop.f32.mrf.mxu0  ;;  %v2855_v28 = vpop.f32.mrf.mxu1  ;;  %v2723_v55 = vadd.f32 %v10433_v59, %v10106_v47  ;;  %v2725_v1 = vadd.f32 %v10438_v18, %v10111_v35  ;;  %v2731_v35 = vadd.f32 %v10457_v22, %v10126_v10  ;;  %v2733_v18 = vadd.f32 %v10462_v16, %v10132_v45 }
 0x2bb   :  { %v10496_v27 = vadd.f32 %v2855_v28, %v10382_v33  ;;  %v2741_v45 = vadd.f32 %v10488_v17, %v10153_v38 }
 0x2bc   :  { %v10498_v11 = vpop.f32.mrf.mxu0  ;;  %v2857_v42 = vpop.f32.mrf.mxu1 }
 0x2bd   :  { %13147 = vst [vmem:[#allocation122_spill] sm:$0xff] %v10498_v11  ;;  %v10503_v15 = vadd.f32 %v2857_v42, %v10386_v56 }
 0x2be   :  { %v10505_v36 = vpop.f32.mrf.mxu0  ;;  %v2987_v50 = vpop.f32.mrf.mxu1  ;;  %7343 = vmatmul.mubr.msk.bf16.gmra.mxu0 %vm204_vm0, %v13122_v3  ;;  %7358 = vmatmul.mubr.msk.bf16.vlgmr.msra.gmra.mxu1 %vm204_vm0, %v12970_v41 }
 0x2bf   :  { %13148 = vst [vmem:[#allocation123_spill] sm:$0xff] %v10503_v15  ;;  %v10513_v33 = vadd.f32 %v2987_v50, %v2709_v52  ;;  %3572 = vmatprep.mubr.bf16.mxu0 %v12871_v13  ;;  %3889 = vmatprep.mubr.bf16.mxu1 %v12871_v13  ;;  %v2719_v52 = vadd.f32 %v10417_v21, %v10090_v9 }
 0x2c0   :  { %v10517_v19 = vpop.f32.mrf.mxu0  ;;  %v2989_v56 = vpop.f32.mrf.mxu1 }
 0x2c1   :  { %v10521_v51 = vadd.f32 %v2989_v56, %v2711_v24 }
 0x2c2   :  { %v10523_v3 = vpop.f32.mrf.mxu0  ;;  %v2991_v28 = vpop.f32.mrf.mxu1 }
 0x2c3   :  { %v10527_v48 = vadd.f32 %v2991_v28, %v2713_v62 }
 0x2c4   :  { %v10529_v50 = vpop.f32.mrf.mxu0  ;;  %v2993_v42 = vpop.f32.mrf.mxu1 }
 0x2c5   :  { %13149 = vst [vmem:[#allocation124_spill] sm:$0xff] %v10529_v50  ;;  %v10533_v15 = vadd.f32 %v2993_v42, %v2715_v0  ;;  %v2729_v0 = vadd.f32 %v10443_v63, %v10116_v49 }
 0x2c6   :  { %v10535_v11 = vpop.f32.mrf.mxu0  ;;  %v2997_v6 = vpop.f32.mrf.mxu1  ;;  %7344 = vmatmul.mubr.msk.bf16.gmra.mxu0 %vm204_vm0, %v13127_v57  ;;  %7359 = vmatmul.mubr.msk.bf16.gmra.mxu1 %vm204_vm0, %v12979_v53 }
 0x2c7   :  { %v10543_v58 = vadd.f32 %v2997_v6, %v2719_v52  ;;  %3786 = vmatprep.mubr.bf16.mxu0 %v12871_v13  ;;  %3899 = vmatprep.mubr.bf16.mxu1 %v12871_v13 }
 0x2c8   :  { %v10547_v9 = vpop.f32.mrf.mxu0  ;;  %v2999_v21 = vpop.f32.mrf.mxu1 }
 0x2c9   :  { %v10551_v24 = vadd.f32 %v2999_v21, %v2721_v32 }
 0x2ca   :  { %v10553_v57 = vpop.f32.mrf.mxu0  ;;  %v3001_v56 = vpop.f32.mrf.mxu1 }
 0x2cb   :  { %v10557_v37 = vadd.f32 %v3001_v56, %v2723_v55  ;;  %v2739_v55 = vadd.f32 %v10477_v54, %v10142_v39  ;;  %v2743_v54 = vadd.f32 %v10493_v30, %v10158_v2  ;;  %v2751_v2 = vadd.f32 %v10517_v19, %v10179_v14 }
 0x2cc   :  { %v10559_v62 = vpop.f32.mrf.mxu0  ;;  %v3003_v28 = vpop.f32.mrf.mxu1 }
 0x2cd   :  { %13150 = vst [vmem:[#allocation125_spill] sm:$0xff] %v10559_v62  ;;  %v10563_v42 = vadd.f32 %v3003_v28, %v2725_v1  ;;  %v13300_v62 = vld [vmem:[#allocation39_spill] sm:$0xff] }
 0x2ce   :  { %v10565_v52 = vpop.f32.mrf.mxu0  ;;  %v3007_v47 = vpop.f32.mrf.mxu1  ;;  %7352 = vmatmul.mubr.msk.bf16.vlgmr.msra.gmra.mxu0 %vm204_vm0, %v12970_v41  ;;  %7360 = vmatmul.mubr.msk.bf16.gmra.mxu1 %vm204_vm0, %v12985_v5 }
 0x2cf   :  { %v10573_v59 = vadd.f32 %v3007_v47, %v2729_v0  ;;  %3796 = vmatprep.mubr.bf16.mxu0 %v12871_v13  ;;  %3909 = vmatprep.mubr.bf16.mxu1 %v12871_v13 }
 0x2d0   :  { %v10577_v49 = vpop.f32.mrf.mxu0  ;;  %v3009_v63 = vpop.f32.mrf.mxu1 }
 0x2d1   :  { %v10581_v6 = vadd.f32 %v3009_v63, %v2731_v35  ;;  %v2749_v63 = vadd.f32 %v10505_v36, %v10168_v4  ;;  %v2753_v36 = vadd.f32 %v10523_v3, %v10184_v12  ;;  %v2761_v12 = vadd.f32 %v10547_v9, %v10205_v20  ;;  %v8043_v20 = vld [vmem:[#allocation4 + $0x1f0] ss:$8 sps:$4 sm:$0xff]  }
 0x2d2   :  { %v10583_v41 = vpop.f32.mrf.mxu0  ;;  %v3011_v32 = vpop.f32.mrf.mxu1 }
 0x2d3   :  { %v10585_v21 = vadd.f32 %v3011_v32, %v2733_v18 }
 0x2d4   :  { %v10587_v10 = vpop.f32.mrf.mxu0  ;;  %v10589_v22 = vpop.f32.mrf.mxu1 }
 0x2d5   :  { %13151 = vst [vmem:[#allocation126_spill] sm:$0xff] %v10587_v10 }
 0x2d6   :  { %v10593_v56 = vpop.f32.mrf.mxu0  ;;  %v3017_v1 = vpop.f32.mrf.mxu1  ;;  %7353 = vmatmul.mubr.msk.bf16.gmra.mxu0 %vm204_vm0, %v12979_v53  ;;  %7361 = vmatmul.mubr.msk.bf16.gmra.mxu1 %vm204_vm0, %v12988_v34 }
 0x2d7   :  { %v10601_v16 = vadd.f32 %v3017_v1, %v2739_v55  ;;  %3806 = vmatprep.mubr.bf16.mxu0 %v12871_v13  ;;  %3919 = vmatprep.mubr.bf16.mxu1 %v12871_v13 }
 0x2d8   :  { %v10605_v28 = vpop.f32.mrf.mxu0  ;;  %v3019_v39 = vpop.f32.mrf.mxu1 }
 0x2d9   :  { %v10609_v0 = vadd.f32 %v3019_v39, %v2741_v45 }
 0x2da   :  { %v10611_v53 = vpop.f32.mrf.mxu0  ;;  %v3021_v47 = vpop.f32.mrf.mxu1 }
 0x2db   :  { %v10613_v35 = vadd.f32 %v3021_v47, %v2743_v54  ;;  %v2759_v54 = vadd.f32 %v10535_v11, %v10194_v23  ;;  %v2763_v11 = vadd.f32 %v10553_v57, %v10210_v61  ;;  %v8048_v57 = vld [vmem:[#allocation4 + $0x1e4] ss:$8 sps:$4 sm:$0xff]  }
 0x2dc   :  { %v10615_v38 = vpop.f32.mrf.mxu0  ;;  %v10617_v17 = vpop.f32.mrf.mxu1 }
 0x2dd   :  { %13152 = vst [vmem:[#allocation127_spill] sm:$0xff] %v10615_v38  ;;  %v8120_v38 = vld [vmem:[#allocation4 + $0x174] ss:$8 sps:$4 sm:$0xff]  }
 0x2de   :  { %v10621_v18 = vpop.f32.mrf.mxu0  ;;  %v3027_v32 = vpop.f32.mrf.mxu1  ;;  %7354 = vmatmul.mubr.msk.bf16.gmra.mxu0 %vm204_vm0, %v12985_v5  ;;  %7362 = vmatmul.mubr.msk.bf16.gmra.mxu1 %vm204_vm0, %v12990_v31 }
 0x2df   :  { %v10629_v30 = vadd.f32 %v3027_v32, %v2749_v63  ;;  %3816 = vmatprep.mubr.bf16.mxu0 %v12871_v13  ;;  %3929 = vmatprep.mubr.bf16.mxu1 %v12871_v13 }
 0x2e0   :  { %v10633_v55 = vpop.f32.mrf.mxu0  ;;  %v3029_v4 = vpop.f32.mrf.mxu1 }
 0x2e1   :  { %v10637_v1 = vadd.f32 %v3029_v4, %v2751_v2 }
 0x2e2   :  { %v10639_v5 = vpop.f32.mrf.mxu0  ;;  %v3031_v45 = vpop.f32.mrf.mxu1 }
 0x2e3   :  { %v10641_v39 = vadd.f32 %v3031_v45, %v2753_v36  ;;  %v8045_v36 = vld [vmem:[#allocation4 + $0x1f4] ss:$8 sps:$4 sm:$0xff]  }
 0x2e4   :  { %v10643_v14 = vpop.f32.mrf.mxu0  ;;  %v10645_v19 = vpop.f32.mrf.mxu1  ;;  %4674 = vmatprep.subr.bf16.mxu0 %v8045_v36 }
 0x2e5   :  { %13153 = vst [vmem:[#allocation128_spill] sm:$0xff] %v10643_v14  ;;  %13154 = vst [vmem:[#allocation129_spill] sm:$0xff] %v10645_v19  ;;  %4675 = vmatpush1.bf16.msra.mxu0 %v8043_v20 }
 0x2e6   :  { %v10649_v47 = vpop.f32.mrf.mxu0  ;;  %v3037_v63 = vpop.f32.mrf.mxu1  ;;  %7355 = vmatmul.mubr.msk.bf16.gmra.mxu0 %vm204_vm0, %v12988_v34  ;;  %7363 = vmatmul.mubr.msk.bf16.gmra.mxu1 %vm204_vm0, %v10467_v26 }
 0x2e7   :  { %v10657_v3 = vadd.f32 %v3037_v63, %v2759_v54  ;;  %3826 = vmatprep.mubr.bf16.mxu0 %v12871_v13  ;;  %4779 = vmatprep.mubr.bf16.mxu1 %v12871_v13  ;;  %v2895_v63 = vadd.f32 %v10565_v52, %v10220_v44  ;;  %v13158_v44 = vld [vmem:[#allocation85_spill] sm:$0xff] }
 0x2e8   :  { %v10661_v32 = vpop.f32.mrf.mxu0  ;;  %v3039_v23 = vpop.f32.mrf.mxu1  ;;  %4676 = vmatprep.subr.bf16.mxu0 %v8048_v57  ;;  %v2899_v52 = vadd.f32 %v10583_v41, %v13158_v44 }
 0x2e9   :  { %v10665_v2 = vadd.f32 %v3039_v23, %v2761_v12  ;;  %v2897_v12 = vadd.f32 %v10577_v49, %v10231_v40  ;;  %v8049_v49 = vld [vmem:[#allocation4 + $0x1d0] ss:$8 sps:$4 sm:$0xff]  }
 0x2ea   :  { %v10667_v34 = vpop.f32.mrf.mxu0  ;;  %v3041_v4 = vpop.f32.mrf.mxu1 }
 0x2eb   :  { %v10669_v45 = vadd.f32 %v3041_v4, %v2763_v11  ;;  %v8046_v11 = vld [vmem:[#allocation4 + $0x1e0] ss:$8 sps:$4 sm:$0xff]  }
 0x2ec   :  { %v10671_v9 = vpop.f32.mrf.mxu0  ;;  %v10673_v54 = vpop.f32.mrf.mxu1  ;;  %4677 = vmatpush1.bf16.msra.mxu0 %v8046_v11  ;;  %v8054_v11 = vld [vmem:[#allocation4 + $0x1c4] ss:$8 sps:$4 sm:$0xff]  }
 0x2ed   :  { %13155 = vst [vmem:[#allocation130_spill] sm:$0xff] %v10671_v9  ;;  %13156 = vst [vmem:[#allocation131_spill] sm:$0xff] %v10673_v54  ;;  %v8051_v9 = vld [vmem:[#allocation4 + $0x1d4] ss:$8 sps:$4 sm:$0xff]  }
 0x2ee   :  { %v10677_v14 = vpop.f32.mrf.mxu0  ;;  %v3173_v61 = vpop.f32.mrf.mxu1  ;;  %7356 = vmatmul.mubr.msk.bf16.gmra.mxu0 %vm204_vm0, %v12990_v31  ;;  %4678 = vmatprep.subr.bf16.mxu0 %v8051_v9 }
 0x2ef   :  { %v10683_v23 = vadd.f32 %v3173_v61, %v2895_v63  ;;  %3836 = vmatprep.mubr.bf16.mxu0 %v12871_v13  ;;  %v13163_v13 = vld [vmem:[#allocation89_spill] sm:$0xff] }
 0x2f0   :  { %v10686_v4 = vpop.f32.mrf.mxu0  ;;  %v3175_v36 = vpop.f32.mrf.mxu1  ;;  %v2905_v57 = vadd.f32 %v10593_v56, %v13163_v13  ;;  %4679 = vmatpush1.bf16.msra.mxu0 %v8049_v49 }
 0x2f1   :  { %13157 = vst [vmem:[#allocation132_spill] sm:$0xff] %v10683_v23  ;;  %v10690_v20 = vadd.f32 %v3175_v36, %v2897_v12  ;;  %v13164_v36 = vld [vmem:[#allocation51_spill] sm:$0xff]  ;;  %4680 = vmatprep.subr.bf16.mxu0 %v8054_v11 }
 0x2f2   :  { %v10692_v31 = vpop.f32.mrf.mxu0  ;;  %v3177_v54 = vpop.f32.mrf.mxu1  ;;  %v8057_v23 = vld [vmem:[#allocation4 + $0x1b4] ss:$8 sps:$4 sm:$0xff]  }
 0x2f3   :  { %13159 = vst [vmem:[#allocation85_spill] sm:$0xff] %v10690_v20  ;;  %v10694_v40 = vadd.f32 %v3177_v54, %v2899_v52  ;;  %v2907_v54 = vadd.f32 %v10605_v28, %v13164_v36  ;;  %v8052_v52 = vld [vmem:[#allocation4 + $0x1c0] ss:$8 sps:$4 sm:$0xff]   ;;  %v13166_v20 = vld [vmem:[#allocation91_spill] sm:$0xff]  ;;  %v13171_v36 = vld [vmem:[#allocation94_spill] sm:$0xff] }
 0x2f4   :  { %v10696_v63 = vpop.f32.mrf.mxu0  ;;  %v10698_v61 = vpop.f32.mrf.mxu1  ;;  %v2909_v13 = vadd.f32 %v10611_v53, %v13166_v20  ;;  %4681 = vmatpush1.bf16.msra.mxu0 %v8052_v52  ;;  %v8055_v28 = vld [vmem:[#allocation4 + $0x1b0] ss:$8 sps:$4 sm:$0xff]   ;;  %v2915_v11 = vadd.f32 %v10621_v18, %v13171_v36 }
 0x2f5   :  { %13160 = vst [vmem:[#allocation133_spill] sm:$0xff] %v10694_v40  ;;  %13161 = vst [vmem:[#allocation134_spill] sm:$0xff] %v10696_v63  ;;  %4682 = vmatprep.subr.bf16.mxu0 %v8057_v23  ;;  %v13172_v52 = vld [vmem:[#allocation18_spill] sm:$0xff]  ;;  %v13175_v23 = vld [vmem:[#allocation95_spill] sm:$0xff] }
 0x2f6   :  { %13162 = vst [vmem:[#allocation135_spill] sm:$0xff] %v10698_v61  ;;  %v10702_v41 = vpop.f32.mrf.mxu0  ;;  %v3183_v12 = vpop.f32.mrf.mxu1  ;;  %7357 = vmatmul.mubr.msk.bf16.gmra.mxu0 %vm204_vm0, %v10467_v26 }
 0x2f7   :  { %v10708_v44 = vadd.f32 %v3183_v12, %v2905_v57 }
 0x2f8   :  { %v10710_v40 = vpop.f32.mrf.mxu0  ;;  %v3185_v9 = vpop.f32.mrf.mxu1  ;;  %4683 = vmatpush1.bf16.msra.mxu0 %v8055_v28 }
 0x2f9   :  { %13165 = vst [vmem:[#allocation89_spill] sm:$0xff] %v10708_v44  ;;  %v10714_v56 = vadd.f32 %v3185_v9, %v2907_v54  ;;  %v8063_v54 = vld [vmem:[#allocation4 + $0x1a4] ss:$8 sps:$4 sm:$0xff]   ;;  %v2917_v9 = vadd.f32 %v10633_v55, %v13172_v52  ;;  %v8069_v52 = vld [vmem:[#allocation4 + $0x194] ss:$8 sps:$4 sm:$0xff]  }
 0x2fa   :  { %v10716_v49 = vpop.f32.mrf.mxu0  ;;  %v3187_v26 = vpop.f32.mrf.mxu1  ;;  %4684 = vmatprep.subr.bf16.mxu0 %v8063_v54 }
 0x2fb   :  { %13167 = vst [vmem:[#allocation51_spill] sm:$0xff] %v10714_v56  ;;  %v10718_v61 = vadd.f32 %v3187_v26, %v2909_v13  ;;  %v13173_v56 = vld [vmem:[#allocation106_spill] sm:$0xff]  ;;  %v8061_v26 = vld [vmem:[#allocation4 + $0x1a0] ss:$8 sps:$4 sm:$0xff]  }
 0x2fc   :  { %v10720_v57 = vpop.f32.mrf.mxu0  ;;  %v10722_v12 = vpop.f32.mrf.mxu1  ;;  %4685 = vmatpush1.bf16.msra.mxu0 %v8061_v26  ;;  %v8072_v26 = vld [vmem:[#allocation4 + $0x184] ss:$8 sps:$4 sm:$0xff]  }
 0x2fd   :  { %13168 = vst [vmem:[#allocation91_spill] sm:$0xff] %v10718_v61  ;;  %13169 = vst [vmem:[#allocation136_spill] sm:$0xff] %v10720_v57  ;;  %4686 = vmatprep.subr.bf16.mxu0 %v8069_v52 }
 0x2fe   :  { %13170 = vst [vmem:[#allocation137_spill] sm:$0xff] %v10722_v12  ;;  %v3080_v53 = vpop.f32.mrf.mxu0  ;;  %v3193_v20 = vpop.f32.mrf.mxu1  ;;  %v2919_v12 = vadd.f32 %v10639_v5, %v13175_v23  ;;  %v8058_v5 = vld [vmem:[#allocation4 + $0x2f0] ss:$8 sps:$4 sm:$0xff]   ;;  %v8060_v23 = vld [vmem:[#allocation4 + $0x2f4] ss:$8 sps:$4 sm:$0xff]  }
 0x2ff   :  { %v10729_v44 = vadd.f32 %v3080_v53, %v13173_v56  ;;  %v10731_v13 = vadd.f32 %v3193_v20, %v2915_v11  ;;  %v8067_v53 = vld [vmem:[#allocation4 + $0x190] ss:$8 sps:$4 sm:$0xff]   ;;  %4747 = vmatprep.subr.bf16.mxu1 %v8060_v23 }
 0x300   :  { %v3082_v61 = vpop.f32.mrf.mxu0  ;;  %v3195_v57 = vpop.f32.mrf.mxu1  ;;  %4687 = vmatpush1.bf16.msra.mxu0 %v8067_v53  ;;  %4748 = vmatpush1.bf16.msra.mxu1 %v8058_v5  ;;  %v13184_v53 = vld [vmem:[#allocation108_spill] sm:$0xff] }
 0x301   :  { %13174 = vst [vmem:[#allocation94_spill] sm:$0xff] %v10731_v13  ;;  %v10736_v18 = vadd.f32 %v3082_v61, %v10358_v60  ;;  %v10738_v28 = vadd.f32 %v3195_v57, %v2917_v9  ;;  %v13180_v60 = vld [vmem:[#allocation97_spill] sm:$0xff]  ;;  %4688 = vmatprep.subr.bf16.mxu0 %v8072_v26  ;;  %v13183_v13 = vld [vmem:[#allocation98_spill] sm:$0xff] }
 0x302   :  { %v3084_v36 = vpop.f32.mrf.mxu0  ;;  %v3197_v55 = vpop.f32.mrf.mxu1  ;;  %v2925_v61 = vadd.f32 %v10649_v47, %v13180_v60  ;;  %v2929_v47 = vadd.f32 %v10667_v34, %v13183_v13  ;;  %v8076_v26 = vld [vmem:[#allocation4 + $0x270] ss:$8 sps:$4 sm:$0xff]   ;;  %v13190_v13 = vld [vmem:[#allocation100_spill] sm:$0xff] }
 0x303   :  { %13176 = vst [vmem:[#allocation18_spill] sm:$0xff] %v10738_v28  ;;  %v10741_v56 = vadd.f32 %v3084_v36, %v10362_v43  ;;  %v10743_v11 = vadd.f32 %v3197_v55, %v2919_v12  ;;  %v13181_v43 = vld [vmem:[#allocation19_spill] sm:$0xff] }
 0x304   :  { %v10745_v20 = vpop.f32.mrf.mxu0  ;;  %v10747_v54 = vpop.f32.mrf.mxu1  ;;  %v2927_v12 = vadd.f32 %v10661_v32, %v13181_v43 }
 0x305   :  { %13177 = vst [vmem:[#allocation106_spill] sm:$0xff] %v10743_v11  ;;  %13178 = vst [vmem:[#allocation95_spill] sm:$0xff] %v10745_v20  ;;  %v8070_v11 = vld [vmem:[#allocation4 + $0x180] ss:$8 sps:$4 sm:$0xff]  }
 0x306   :  { %13179 = vst [vmem:[#allocation138_spill] sm:$0xff] %v10747_v54  ;;  %v3090_v57 = vpop.f32.mrf.mxu0  ;;  %v3203_v9 = vpop.f32.mrf.mxu1  ;;  %4689 = vmatpush1.bf16.msra.mxu0 %v8070_v11 }
 0x307   :  { %v10754_v36 = vadd.f32 %v3090_v57, %v10374_v25  ;;  %v10756_v55 = vadd.f32 %v3203_v9, %v2925_v61  ;;  %v8078_v25 = vld [vmem:[#allocation4 + $0x274] ss:$8 sps:$4 sm:$0xff]   ;;  %v13186_v57 = vld [vmem:[#allocation109_spill] sm:$0xff] }
 0x308   :  { %v3092_v28 = vpop.f32.mrf.mxu0  ;;  %v3205_v52 = vpop.f32.mrf.mxu1  ;;  %v8064_v9 = vld [vmem:[#allocation4 + $0x2e0] ss:$8 sps:$4 sm:$0xff]   ;;  %4690 = vmatprep.subr.bf16.mxu0 %v8078_v25 }
 0x309   :  { %13182 = vst [vmem:[#allocation97_spill] sm:$0xff] %v10756_v55  ;;  %v10761_v60 = vadd.f32 %v3092_v28, %v13184_v53  ;;  %v10763_v23 = vadd.f32 %v3205_v52, %v2927_v12  ;;  %v8066_v55 = vld [vmem:[#allocation4 + $0x2e4] ss:$8 sps:$4 sm:$0xff]   ;;  %v2935_v28 = vadd.f32 %v10677_v14, %v13190_v13 }
 0x30a   :  { %v3094_v32 = vpop.f32.mrf.mxu0  ;;  %v3207_v43 = vpop.f32.mrf.mxu1  ;;  %4749 = vmatprep.subr.bf16.mxu1 %v8066_v55  ;;  %4691 = vmatpush2.bf16.msra.mxu0 %v8076_v26  ;;  %v8084_v52 = vld [vmem:[#allocation4 + $0x264] ss:$8 sps:$4 sm:$0xff]  }
 0x30b   :  { %13185 = vst [vmem:[#allocation19_spill] sm:$0xff] %v10763_v23  ;;  %v10766_v61 = vadd.f32 %v3094_v32, %v13186_v57  ;;  %v10768_v5 = vadd.f32 %v3207_v43, %v2929_v47  ;;  %4750 = vmatpush1.bf16.msra.mxu1 %v8064_v9  ;;  %v13191_v53 = vld [vmem:[#allocation20_spill] sm:$0xff]  ;;  %v13192_v32 = vld [vmem:[#allocation111_spill] sm:$0xff]  ;;  %4692 = vmatprep.subr.bf16.mxu0 %v8084_v52  ;;  %v13194_v14 = vld [vmem:[#allocation101_spill] sm:$0xff] }
 0x30c   :  { %v10770_v54 = vpop.f32.mrf.mxu0  ;;  %v10772_v34 = vpop.f32.mrf.mxu1  ;;  %v2937_v47 = vadd.f32 %v10686_v4, %v13191_v53  ;;  %v2939_v55 = vadd.f32 %v10692_v31, %v13194_v14  ;;  %v8085_v52 = vld [vmem:[#allocation4 + $0x250] ss:$8 sps:$4 sm:$0xff]   ;;  %v13201_v14 = vld [vmem:[#allocation113_spill] sm:$0xff] }
 0x30d   :  { %13187 = vst [vmem:[#allocation98_spill] sm:$0xff] %v10768_v5  ;;  %13188 = vst [vmem:[#allocation108_spill] sm:$0xff] %v10770_v54  ;;  %v8082_v5 = vld [vmem:[#allocation4 + $0x260] ss:$8 sps:$4 sm:$0xff]   ;;  %v8075_v54 = vld [vmem:[#allocation4 + $0x2d4] ss:$8 sps:$4 sm:$0xff]  }
 0x30e   :  { %13189 = vst [vmem:[#allocation109_spill] sm:$0xff] %v10772_v34  ;;  %v3100_v11 = vpop.f32.mrf.mxu0  ;;  %v3213_v12 = vpop.f32.mrf.mxu1  ;;  %v8073_v34 = vld [vmem:[#allocation4 + $0x2d0] ss:$8 sps:$4 sm:$0xff]   ;;  %4693 = vmatpush2.bf16.msra.mxu0 %v8082_v5  ;;  %4751 = vmatprep.subr.bf16.mxu1 %v8075_v54 }
 0x30f   :  { %v10779_v43 = vadd.f32 %v3100_v11, %v13192_v32  ;;  %v10781_v57 = vadd.f32 %v3213_v12, %v2935_v28  ;;  %v8087_v28 = vld [vmem:[#allocation4 + $0x254] ss:$8 sps:$4 sm:$0xff]   ;;  %4752 = vmatpush1.bf16.msra.mxu1 %v8073_v34 }
 0x310   :  { %v3102_v23 = vpop.f32.mrf.mxu0  ;;  %v3215_v25 = vpop.f32.mrf.mxu1  ;;  %4694 = vmatprep.subr.bf16.mxu0 %v8087_v28  ;;  %v8093_v28 = vld [vmem:[#allocation4 + $0x244] ss:$8 sps:$4 sm:$0xff]  }
 0x311   :  { %13193 = vst [vmem:[#allocation100_spill] sm:$0xff] %v10781_v57  ;;  %v10786_v9 = vadd.f32 %v3102_v23, %v10405_v8  ;;  %v10788_v26 = vadd.f32 %v3215_v25, %v2937_v47  ;;  %v8081_v8 = vld [vmem:[#allocation4 + $0x2c4] ss:$8 sps:$4 sm:$0xff]   ;;  %v13199_v23 = vld [vmem:[#allocation103_spill] sm:$0xff]  ;;  %v8079_v47 = vld [vmem:[#allocation4 + $0x2c0] ss:$8 sps:$4 sm:$0xff]  }
 0x312   :  { %v3104_v4 = vpop.f32.mrf.mxu0  ;;  %v3217_v13 = vpop.f32.mrf.mxu1  ;;  %v2945_v5 = vadd.f32 %v10702_v41, %v13199_v23  ;;  %4695 = vmatpush2.bf16.msra.mxu0 %v8085_v52  ;;  %4753 = vmatprep.subr.bf16.mxu1 %v8081_v8  ;;  %v13204_v23 = vld [vmem:[#allocation114_spill] sm:$0xff]  ;;  %v8091_v57 = vld [vmem:[#allocation4 + $0x240] ss:$8 sps:$4 sm:$0xff]  }
 0x313   :  { %13195 = vst [vmem:[#allocation20_spill] sm:$0xff] %v10788_v26  ;;  %v10791_v11 = vadd.f32 %v3104_v4, %v10410_v7  ;;  %v10793_v12 = vadd.f32 %v3217_v13, %v2939_v55  ;;  %v13200_v7 = vld [vmem:[#allocation64_spill] sm:$0xff]  ;;  %4754 = vmatpush1.bf16.msra.mxu1 %v8079_v47  ;;  %v8090_v8 = vld [vmem:[#allocation4 + $0x2b4] ss:$8 sps:$4 sm:$0xff]   ;;  %4696 = vmatprep.subr.bf16.mxu0 %v8093_v28 }
 0x314   :  { %v10795_v53 = vpop.f32.mrf.mxu0  ;;  %v10797_v31 = vpop.f32.mrf.mxu1  ;;  %v2947_v25 = vadd.f32 %v10710_v40, %v13200_v7  ;;  %4755 = vmatprep.subr.bf16.mxu1 %v8090_v8 }
 0x315   :  { %13196 = vst [vmem:[#allocation111_spill] sm:$0xff] %v10793_v12  ;;  %13197 = vst [vmem:[#allocation101_spill] sm:$0xff] %v10795_v53  ;;  %v13203_v12 = vld [vmem:[#allocation104_spill] sm:$0xff] }
 0x316   :  { %13198 = vst [vmem:[#allocation139_spill] sm:$0xff] %v10797_v31  ;;  %v3110_v54 = vpop.f32.mrf.mxu0  ;;  %v3223_v32 = vpop.f32.mrf.mxu1  ;;  %v2949_v41 = vadd.f32 %v10716_v49, %v13203_v12  ;;  %4697 = vmatpush2.bf16.msra.mxu0 %v8091_v57  ;;  %v13253_v31 = vld [vmem:[#allocation8_spill] sm:$0xff] }
 0x317   :  { %v10804_v34 = vadd.f32 %v3110_v54, %v13201_v14  ;;  %v10806_v55 = vadd.f32 %v3223_v32, %v2945_v5  ;;  %v8088_v54 = vld [vmem:[#allocation4 + $0x2b0] ss:$8 sps:$4 sm:$0xff]  }
 0x318   :  { %v3112_v4 = vpop.f32.mrf.mxu0  ;;  %v3225_v13 = vpop.f32.mrf.mxu1  ;;  %v13206_v5 = vld [vmem:[#allocation115_spill] sm:$0xff]  ;;  %4756 = vmatpush1.bf16.msra.mxu1 %v8088_v54 }
 0x319   :  { %13202 = vst [vmem:[#allocation103_spill] sm:$0xff] %v10806_v55  ;;  %v10811_v52 = vadd.f32 %v3112_v4, %v13204_v23  ;;  %v10813_v26 = vadd.f32 %v3225_v13, %v2947_v25  ;;  %v13210_v4 = vld [vmem:[#allocation117_spill] sm:$0xff] }
 0x31a   :  { %v3114_v40 = vpop.f32.mrf.mxu0  ;;  %v3227_v7 = vpop.f32.mrf.mxu1 }
 0x31b   :  { %13205 = vst [vmem:[#allocation64_spill] sm:$0xff] %v10813_v26  ;;  %v10816_v32 = vadd.f32 %v3114_v40, %v13206_v5  ;;  %v10818_v47 = vadd.f32 %v3227_v7, %v2949_v41  ;;  %v13213_v5 = vld [vmem:[#allocation118_spill] sm:$0xff]  ;;  %v8096_v26 = vld [vmem:[#allocation4 + $0x2a4] ss:$8 sps:$4 sm:$0xff]  }
 0x31c   :  { %v10820_v14 = vpop.f32.mrf.mxu0  ;;  %v10822_v49 = vpop.f32.mrf.mxu1  ;;  %4757 = vmatprep.subr.bf16.mxu1 %v8096_v26 }
 0x31d   :  { %13207 = vst [vmem:[#allocation113_spill] sm:$0xff] %v10818_v47  ;;  %13208 = vst [vmem:[#allocation104_spill] sm:$0xff] %v10820_v14 }
 0x31e   :  { %13209 = vst [vmem:[#allocation114_spill] sm:$0xff] %v10822_v49  ;;  %v3120_v12 = vpop.f32.mrf.mxu0  ;;  %v3431_v25 = vpop.f32.mrf.mxu1 }
 0x31f   :  { %v10825_v13 = vadd.f32 %v3120_v12, %v13210_v4  ;;  %v10828_v23 = vadd.f32 %v3431_v25, %v10729_v44  ;;  %v8099_v25 = vld [vmem:[#allocation4 + $0x234] ss:$8 sps:$4 sm:$0xff]   ;;  %v8097_v4 = vld [vmem:[#allocation4 + $0x230] ss:$8 sps:$4 sm:$0xff]  }
 0x320   :  { %v3122_v28 = vpop.f32.mrf.mxu0  ;;  %v3433_v40 = vpop.f32.mrf.mxu1  ;;  %4698 = vmatprep.subr.bf16.mxu0 %v8099_v25  ;;  %v8100_v25 = vld [vmem:[#allocation4 + $0x220] ss:$8 sps:$4 sm:$0xff]  }
 0x321   :  { %13211 = vst [vmem:[#allocation115_spill] sm:$0xff] %v10828_v23  ;;  %v10831_v41 = vadd.f32 %v3122_v28, %v10460_v46  ;;  %v10834_v57 = vadd.f32 %v3433_v40, %v10736_v18  ;;  %v2221_v23 = vlaneseq  ;;  %v13217_v18 = vld [vmem:[#allocation121_spill] sm:$0xff]  ;;  %4699 = vmatpush2.bf16.msra.mxu0 %v8097_v4 }
 0x322   :  { %v3124_v8 = vpop.f32.mrf.mxu0  ;;  %v3435_v7 = vpop.f32.mrf.mxu1 }
 0x323   :  { %13212 = vst [vmem:[#allocation117_spill] sm:$0xff] %v10834_v57  ;;  %v10837_v54 = vadd.f32 %v3124_v8, %v13213_v5  ;;  %v10840_v47 = vadd.f32 %v3435_v7, %v10741_v56  ;;  %v8094_v5 = vld [vmem:[#allocation4 + $0x2a0] ss:$8 sps:$4 sm:$0xff]  }
 0x324   :  { %v10842_v12 = vpop.f32.mrf.mxu0  ;;  %v10844_v44 = vpop.f32.mrf.mxu1  ;;  %4758 = vmatpush1.bf16.msra.mxu1 %v8094_v5  ;;  %v8108_v5 = vld [vmem:[#allocation4 + $0x214] ss:$8 sps:$4 sm:$0xff]  }
 0x325   :  { %13214 = vst [vmem:[#allocation118_spill] sm:$0xff] %v10840_v47  ;;  %13215 = vst [vmem:[#allocation140_spill] sm:$0xff] %v10842_v12  ;;  %v8102_v47 = vld [vmem:[#allocation4 + $0x224] ss:$8 sps:$4 sm:$0xff]  }
 0x326   :  { %13216 = vst [vmem:[#allocation141_spill] sm:$0xff] %v10844_v44  ;;  %v3130_v46 = vpop.f32.mrf.mxu0  ;;  %v3441_v28 = vpop.f32.mrf.mxu1  ;;  %v10858_v44 = vshrl.u32 %v2221_v23, 7  ;;  %4700 = vmatprep.subr.bf16.mxu0 %v8102_v47  ;;  %v8106_v23 = vld [vmem:[#allocation4 + $0x210] ss:$8 sps:$4 sm:$0xff]  }
 0x327   :  { %v10847_v40 = vadd.f32 %v3130_v46, %v13217_v18  ;;  %v10850_v8 = vadd.f32 %v3441_v28, %v10754_v36  ;;  %v8105_v36 = vld [vmem:[#allocation4 + $0x294] ss:$8 sps:$4 sm:$0xff]   ;;  %4701 = vmatpush2.bf16.msra.mxu0 %v8100_v25 }
 0x328   :  { %v3132_v56 = vpop.f32.mrf.mxu0  ;;  %v3443_v7 = vpop.f32.mrf.mxu1  ;;  %13220 = vst [vmem:[#allocation143_spill] sm:$0xff] %v10858_v44  ;;  %4759 = vmatprep.subr.bf16.mxu1 %v8105_v36  ;;  %v2235_v47 = vsub.s32 3, %v10858_v44  ;;  %4702 = vmatprep.subr.bf16.mxu0 %v8108_v5  ;;  %v8109_v36 = vld [vmem:[#allocation4 + $0x280] ss:$8 sps:$4 sm:$0xff]  }
 0x329   :  { %13218 = vst [vmem:[#allocation121_spill] sm:$0xff] %v10850_v8  ;;  %v10853_v57 = vadd.f32 %v3132_v56, %v10491_v29  ;;  %v10856_v55 = vadd.f32 %v3443_v7, %v10761_v60  ;;  %v8103_v29 = vld [vmem:[#allocation4 + $0x290] ss:$8 sps:$4 sm:$0xff]   ;;  %v2231_v56 = vsub.s32 2, %v10858_v44 }
 0x32a   :  { %v3134_v46 = vpop.f32.mrf.mxu0  ;;  %v3445_v18 = vpop.f32.mrf.mxu1  ;;  %4760 = vmatpush1.bf16.msra.mxu1 %v8103_v29 }
 0x32b   :  { %13219 = vst [vmem:[#allocation142_spill] sm:$0xff] %v10856_v55  ;;  %v10861_v4 = vadd.f32 %v3134_v46, %v10496_v27  ;;  %v10864_v26 = vadd.f32 %v3445_v18, %v10766_v61  ;;  %v8111_v46 = vld [vmem:[#allocation4 + $0x284] ss:$8 sps:$4 sm:$0xff]   ;;  %4703 = vmatpush2.bf16.msra.mxu0 %v8106_v23 }
 0x32c   :  { %v10866_v28 = vpop.f32.mrf.mxu0  ;;  %v10868_v60 = vpop.f32.mrf.mxu1  ;;  %v2219_v61 = vld [vmem:[%s12738_s2] sm:$0x3f]  ;;  %4761 = vmatprep.subr.bf16.mxu1 %v8111_v46  ;;  %v8117_v46 = vld [vmem:[#allocation4 + $0x74] ss:$8 sps:$4 sm:$0xff]  }
 0x32d   :  { %13221 = vst [vmem:[#allocation144_spill] sm:$0xff] %v10864_v26  ;;  %13222 = vst [vmem:[#allocation145_spill] sm:$0xff] %v10866_v28  ;;  %v8114_v55 = vld [vmem:[#allocation4 + $0x204] ss:$8 sps:$4 sm:$0xff]   ;;  %v10891_v23 = vrot.slane %v2219_v61, %v2235_v47  ;;  %v13231_v47 = vsub.s32 1, %v10858_v44 }
 0x32e   :  { %13223 = vst [vmem:[#allocation146_spill] sm:$0xff] %v10868_v60  ;;  %v3338_v7 = vpop.f32.mrf.mxu0  ;;  %v3451_v27 = vpop.f32.mrf.mxu1  ;;  %4762 = vmatpush1.bf16.msra.mxu1 %v8109_v36  ;;  %4704 = vmatprep.subr.bf16.mxu0 %v8114_v55  ;;  %v13232_v36 = vld [vmem:[#allocation53_spill] sm:$0xff] }
 0x32f   :  { %v10876_v25 = vadd.f32 %v3338_v7, %v10513_v33  ;;  %v10879_v18 = vadd.f32 %v3451_v27, %v10779_v43  ;;  %v8112_v33 = vld [vmem:[#allocation4 + $0x200] ss:$8 sps:$4 sm:$0xff]   ;;  %v10889_v43 = vrot.slane %v2219_v61, %v2231_v56  ;;  %13227 = vst [vmem:[#allocation150_spill] sm:$0xff] %v10891_v23  ;;  %5060 = vmatprep.subr.bf16.mxu1 %v8117_v46 }
 0x330   :  { %v3340_v29 = vpop.f32.mrf.mxu0  ;;  %v3453_v26 = vpop.f32.mrf.mxu1  ;;  %4705 = vmatpush2.bf16.msra.mxu0 %v8112_v33  ;;  %v10909_v55 = vrot.slane %v2219_v61, %v13231_v47  ;;  %v2239_v33 = vsub.s32 4, %v10858_v44  ;;  %v13238_v47 = vld [vmem:[#allocation56_spill] sm:$0xff] }
 0x331   :  { %13224 = vst [vmem:[#allocation147_spill] sm:$0xff] %v10879_v18  ;;  %v10884_v60 = vadd.f32 %v3340_v29, %v10521_v51  ;;  %v10887_v28 = vadd.f32 %v3453_v26, %v10786_v9  ;;  %13226 = vst [vmem:[#allocation149_spill] sm:$0xff] %v10889_v43  ;;  %v13230_v26 = vsub.s32 0, %v10858_v44  ;;  %v13241_v18 = vld [vmem:[#allocation57_spill] sm:$0xff]  ;;  %5133 = vmatprep.subr.bf16.mxu0 %v8120_v38 }
 0x332   :  { %v3342_v7 = vpop.f32.mrf.mxu0  ;;  %v3455_v27 = vpop.f32.mrf.mxu1  ;;  %v10969_v53 = vrot.slane %v2219_v61, %v2239_v33  ;;  %v13256_v33 = vld [vmem:[#allocation63_spill] sm:$0xff] }
 0x333   :  { %13225 = vst [vmem:[#allocation148_spill] sm:$0xff] %v10887_v28  ;;  %v10894_v8 = vadd.f32 %v3342_v7, %v10527_v48  ;;  %v10897_v5 = vadd.f32 %v3455_v27, %v10791_v11  ;;  %v10905_v56 = vrot.slane %v2219_v61, %v13230_v26  ;;  %v10913_v48 = vadd.f32 %v10889_v43, %v13232_v36  ;;  %v13234_v11 = vld [vmem:[#allocation54_spill] sm:$0xff]  ;;  %v13236_v26 = vld [vmem:[#allocation55_spill] sm:$0xff] }
 0x334   :  { %v10899_v51 = vpop.f32.mrf.mxu0  ;;  %v10901_v9 = vpop.f32.mrf.mxu1  ;;  %v10917_v29 = vadd.f32 %v10891_v23, %v13234_v11  ;;  %v2243_v7 = vsub.s32 5, %v10858_v44  ;;  %v10927_v28 = vadd.f32 %v10891_v23, %v13238_v47  ;;  %v13243_v44 = vld [vmem:[#allocation58_spill] sm:$0xff]  ;;  %v13247_v47 = vld [vmem:[#allocation60_spill] sm:$0xff] }
 0x335   :  { %13228 = vst [vmem:[#allocation151_spill] sm:$0xff] %v10897_v5  ;;  %13229 = vst [vmem:[#allocation152_spill] sm:$0xff] %v10901_v9  ;;  %v10923_v5 = vadd.f32 %v10889_v43, %v13236_v26  ;;  %v10937_v9 = vadd.f32 %v10889_v43, %v13241_v18  ;;  %v10941_v12 = vadd.f32 %v10891_v23, %v13243_v44  ;;  %v13245_v26 = vld [vmem:[#allocation59_spill] sm:$0xff]  ;;  %v13250_v18 = vld [vmem:[#allocation62_spill] sm:$0xff] }
 0x336   :  { %13233 = vst [vmem:[#allocation53_spill] sm:$0xff] %v10913_v48  ;;  %13235 = vst [vmem:[#allocation54_spill] sm:$0xff] %v10917_v29  ;;  %v3348_v27 = vpop.f32.mrf.mxu0  ;;  %v3461_v46 = vpop.f32.mrf.mxu1  ;;  %v10945_v49 = vadd.f32 %v10889_v43, %v13245_v26  ;;  %v10949_v14 = vadd.f32 %v10891_v23, %v13247_v47  ;;  %v10967_v47 = vadd.f32 %v10909_v55, %v13253_v31  ;;  %v13278_v29 = vld [vmem:[#allocation74_spill] sm:$0xff] }
 0x337   :  { %13237 = vst [vmem:[#allocation55_spill] sm:$0xff] %v10923_v5  ;;  %13239 = vst [vmem:[#allocation56_spill] sm:$0xff] %v10927_v28  ;;  %v10930_v36 = vadd.f32 %v3348_v27, %v10543_v58  ;;  %v10933_v11 = vadd.f32 %v3461_v46, %v10804_v34  ;;  %v13249_v34 = vld [vmem:[#allocation61_spill] sm:$0xff]  ;;  %v10971_v20 = vrot.slane %v2219_v61, %v2243_v7  ;;  %v13276_v5 = vld [vmem:[#allocation11_spill] sm:$0xff] }
 0x338   :  { %13242 = vst [vmem:[#allocation57_spill] sm:$0xff] %v10937_v9  ;;  %13244 = vst [vmem:[#allocation58_spill] sm:$0xff] %v10941_v12  ;;  %v3350_v58 = vpop.f32.mrf.mxu0  ;;  %v3463_v27 = vpop.f32.mrf.mxu1  ;;  %v10953_v46 = vadd.f32 %v10905_v56, %v13249_v34  ;;  %v10996_v61 = vadd.f32 %v10891_v23, %v13256_v33  ;;  %v13258_v7 = vld [vmem:[#allocation65_spill] sm:$0xff]  ;;  %v13281_v9 = vld [vmem:[#allocation12_spill] sm:$0xff] }
 0x339   :  { %13240 = vst [vmem:[#allocation153_spill] sm:$0xff] %v10933_v11  ;;  %13246 = vst [vmem:[#allocation59_spill] sm:$0xff] %v10945_v49  ;;  %v10957_v11 = vadd.f32 %v10889_v43, %v13250_v18  ;;  %v10960_v44 = vadd.f32 %v3350_v58, %v10551_v24  ;;  %v10963_v26 = vadd.f32 %v3463_v27, %v10811_v52  ;;  %v13259_v18 = vld [vmem:[#allocation66_spill] sm:$0xff] }
 0x33a   :  { %13248 = vst [vmem:[#allocation60_spill] sm:$0xff] %v10949_v14  ;;  %v3352_v34 = vpop.f32.mrf.mxu0  ;;  %v3465_v63 = vpop.f32.mrf.mxu1  ;;  %13257 = vst [vmem:[#allocation63_spill] sm:$0xff] %v10996_v61  ;;  %v11000_v31 = vadd.f32 %v10905_v56, %v13258_v7  ;;  %v11004_v38 = vadd.f32 %v10889_v43, %v13259_v18 }
 0x33b   :  { %13251 = vst [vmem:[#allocation61_spill] sm:$0xff] %v10957_v11  ;;  %13252 = vst [vmem:[#allocation62_spill] sm:$0xff] %v10963_v26  ;;  %v10976_v24 = vadd.f32 %v3352_v34, %v10557_v37  ;;  %v10979_v52 = vadd.f32 %v3465_v63, %v10816_v32  ;;  %v13262_v32 = vld [vmem:[#allocation67_spill] sm:$0xff]  ;;  %v13265_v26 = vld [vmem:[#allocation68_spill] sm:$0xff] }
 0x33c   :  { %v10985_v58 = vpop.f32.mrf.mxu0  ;;  %v10987_v27 = vpop.f32.mrf.mxu1  ;;  %13260 = vst [vmem:[#allocation65_spill] sm:$0xff] %v11004_v38  ;;  %v11012_v34 = vadd.f32 %v10891_v23, %v13262_v32  ;;  %v11022_v18 = vadd.f32 %v10905_v56, %v13265_v26  ;;  %v13266_v11 = vld [vmem:[#allocation69_spill] sm:$0xff]  ;;  %v13269_v32 = vld [vmem:[#allocation10_spill] sm:$0xff]  ;;  %v13272_v26 = vld [vmem:[#allocation72_spill] sm:$0xff] }
 0x33d   :  { %13254 = vst [vmem:[#allocation8_spill] sm:$0xff] %v10979_v52  ;;  %13255 = vst [vmem:[#allocation154_spill] sm:$0xff] %v10987_v27  ;;  %v13261_v52 = vld [vmem:[#allocation9_spill] sm:$0xff]  ;;  %v11026_v14 = vadd.f32 %v10889_v43, %v13266_v11  ;;  %v11034_v12 = vadd.f32 %v10891_v23, %v13269_v32 }
 0x33e   :  { %v3358_v10 = vpop.f32.mrf.mxu0  ;;  %v3471_v37 = vpop.f32.mrf.mxu1  ;;  %v11008_v63 = vadd.f32 %v10909_v55, %v13261_v52  ;;  %13263 = vst [vmem:[#allocation66_spill] sm:$0xff] %v11012_v34  ;;  %v13268_v52 = vld [vmem:[#allocation70_spill] sm:$0xff]  ;;  %v13275_v32 = vld [vmem:[#allocation73_spill] sm:$0xff] }
 0x33f   :  { %v11015_v33 = vadd.f32 %v3358_v10, %v10573_v59  ;;  %v11018_v7 = vadd.f32 %v3471_v37, %v10825_v13  ;;  %13267 = vst [vmem:[#allocation67_spill] sm:$0xff] %v11026_v14  ;;  %v11030_v49 = vadd.f32 %v10909_v55, %v13268_v52  ;;  %13270 = vst [vmem:[#allocation68_spill] sm:$0xff] %v11034_v12  ;;  %v13271_v13 = vld [vmem:[#allocation71_spill] sm:$0xff]  ;;  %v13283_v14 = vld [vmem:[#allocation13_spill] sm:$0xff] }
 0x340   :  { %v3360_v59 = vpop.f32.mrf.mxu0  ;;  %v3473_v10 = vpop.f32.mrf.mxu1  ;;  %v11038_v37 = vadd.f32 %v10905_v56, %v13271_v13  ;;  %v11053_v28 = vadd.f32 %v10909_v55, %v13275_v32  ;;  %v11057_v13 = vadd.f32 %v10891_v23, %v13276_v5 }
 0x341   :  { %13264 = vst [vmem:[#allocation9_spill] sm:$0xff] %v11018_v7  ;;  %v11042_v7 = vadd.f32 %v10889_v43, %v13272_v26  ;;  %v11045_v11 = vadd.f32 %v3360_v59, %v10581_v6  ;;  %v11048_v52 = vadd.f32 %v3473_v10, %v10831_v41  ;;  %v11061_v26 = vadd.f32 %v10905_v56, %v13278_v29 }
 0x342   :  { %13277 = vst [vmem:[#allocation10_spill] sm:$0xff] %v11057_v13  ;;  %v3362_v48 = vpop.f32.mrf.mxu0  ;;  %v3475_v6 = vpop.f32.mrf.mxu1  ;;  %v11088_v29 = vadd.f32 %v10889_v43, %v13281_v9  ;;  %v11092_v41 = vadd.f32 %v10909_v55, %v13283_v14  ;;  %v13290_v14 = vld [vmem:[#allocation25_spill] sm:$0xff] }
 0x343   :  { %13273 = vst [vmem:[#allocation69_spill] sm:$0xff] %v11042_v7  ;;  %13274 = vst [vmem:[#allocation70_spill] sm:$0xff] %v11048_v52  ;;  %v11066_v10 = vadd.f32 %v3362_v48, %v10585_v21  ;;  %v11069_v32 = vadd.f32 %v3475_v6, %v10837_v54  ;;  %v13284_v21 = vld [vmem:[#allocation17_spill] sm:$0xff]  ;;  %v13288_v6 = vld [vmem:[#allocation22_spill] sm:$0xff]  ;;  %v11114_v7 = vadd.f32 %v10909_v55, %v13290_v14 }
 0x344   :  { %v11075_v61 = vpop.f32.mrf.mxu0  ;;  %v11077_v27 = vpop.f32.mrf.mxu1  ;;  %13282 = vst [vmem:[#allocation73_spill] sm:$0xff] %v11088_v29  ;;  %v11096_v48 = vadd.f32 %v10891_v23, %v13284_v21  ;;  %v13287_v52 = vld [vmem:[#allocation37_spill] sm:$0xff]  ;;  %v11110_v13 = vadd.f32 %v10889_v43, %v13288_v6  ;;  %v13291_v21 = vld [vmem:[#allocation23_spill] sm:$0xff]  ;;  %v13304_v29 = vld [vmem:[#allocation14_spill] sm:$0xff] }
 0x345   :  { %13279 = vst [vmem:[#allocation71_spill] sm:$0xff] %v11069_v32  ;;  %13280 = vst [vmem:[#allocation72_spill] sm:$0xff] %v11077_v27  ;;  %v11106_v9 = vadd.f32 %v10905_v56, %v13287_v52  ;;  %v11118_v12 = vadd.f32 %v10891_v23, %v13291_v21  ;;  %v13294_v52 = vld [vmem:[#allocation24_spill] sm:$0xff]  ;;  %v13297_v21 = vld [vmem:[#allocation38_spill] sm:$0xff]  ;;  %v11163_v50 = vadd.f32 %v10909_v55, %v13304_v29 }
 0x346   :  { %v3368_v59 = vpop.f32.mrf.mxu0  ;;  %v3481_v32 = vpop.f32.mrf.mxu1  ;;  %13285 = vst [vmem:[#allocation11_spill] sm:$0xff] %v11096_v48  ;;  %13289 = vst [vmem:[#allocation12_spill] sm:$0xff] %v11110_v13  ;;  %v11137_v38 = vadd.f32 %v10909_v55, %v13297_v21  ;;  %v13298_v27 = vld [vmem:[#allocation28_spill] sm:$0xff]  ;;  %v13307_v29 = vld [vmem:[#allocation31_spill] sm:$0xff] }
 0x347   :  { %v11099_v54 = vadd.f32 %v3368_v59, %v10601_v16  ;;  %v11102_v5 = vadd.f32 %v3481_v32, %v10847_v40  ;;  %13292 = vst [vmem:[#allocation13_spill] sm:$0xff] %v11118_v12  ;;  %v13293_v40 = vld [vmem:[#allocation27_spill] sm:$0xff] }
 0x348   :  { %v3370_v16 = vpop.f32.mrf.mxu0  ;;  %v3483_v59 = vpop.f32.mrf.mxu1  ;;  %v11122_v32 = vadd.f32 %v10905_v56, %v13293_v40  ;;  %v11141_v40 = vadd.f32 %v10891_v23, %v13298_v27  ;;  %13305 = vst [vmem:[#allocation27_spill] sm:$0xff] %v11163_v50 }
 0x349   :  { %13286 = vst [vmem:[#allocation74_spill] sm:$0xff] %v11102_v5  ;;  %v11126_v5 = vadd.f32 %v10889_v43, %v13294_v52  ;;  %v11129_v6 = vadd.f32 %v3370_v16, %v10609_v0  ;;  %v11132_v14 = vadd.f32 %v3483_v59, %v10853_v57  ;;  %v11145_v52 = vadd.f32 %v10905_v56, %v13300_v62  ;;  %v13301_v57 = vld [vmem:[#allocation26_spill] sm:$0xff]  ;;  %v13317_v62 = vld [vmem:[#allocation75_spill] sm:$0xff] }
 0x34a   :  { %13299 = vst [vmem:[#allocation22_spill] sm:$0xff] %v11141_v40  ;;  %v3372_v19 = vpop.f32.mrf.mxu0  ;;  %v3485_v0 = vpop.f32.mrf.mxu1  ;;  %v11150_v59 = vadd.f32 %v10889_v43, %v13301_v57  ;;  %v13309_v43 = vld [vmem:[#allocation29_spill] sm:$0xff] }
 0x34b   :  { %13295 = vst [vmem:[#allocation17_spill] sm:$0xff] %v11126_v5  ;;  %13296 = vst [vmem:[#allocation37_spill] sm:$0xff] %v11132_v14  ;;  %v11153_v34 = vadd.f32 %v3372_v19, %v10613_v35  ;;  %v11156_v21 = vadd.f32 %v3485_v0, %v10861_v4  ;;  %v11183_v19 = vadd.f32 %v10891_v23, %v13309_v43  ;;  %v13311_v14 = vld [vmem:[#allocation40_spill] sm:$0xff]  ;;  %v13319_v23 = vld [vmem:[#allocation34_spill] sm:$0xff] }
 0x34c   :  { %13302 = vst [vmem:[#allocation25_spill] sm:$0xff] %v11150_v59  ;;  %v11165_v16 = vpop.f32.mrf.mxu0  ;;  %v11167_v57 = vpop.f32.mrf.mxu1  ;;  %v11192_v4 = vadd.f32 %v10909_v55, %v13311_v14  ;;  %v13314_v35 = vld [vmem:[#allocation32_spill] sm:$0xff]  ;;  %v11214_v5 = vadd.f32 %v10909_v55, %v13317_v62 }
 0x34d   :  { %13303 = vst [vmem:[#allocation23_spill] sm:$0xff] %v11156_v21  ;;  %13306 = vst [vmem:[#allocation24_spill] sm:$0xff] %v11167_v57  ;;  %v11178_v21 = vadd.f32 %v10905_v56, %v13307_v29  ;;  %v13312_v29 = vld [vmem:[#allocation30_spill] sm:$0xff]  ;;  %v11200_v59 = vadd.f32 %v10909_v55, %v13314_v35  ;;  %v13318_v35 = vld [vmem:[#allocation21_spill] sm:$0xff] }
 0x34e   :  { %v3378_v13 = vpop.f32.mrf.mxu0  ;;  %v3695_v48 = vpop.f32.mrf.mxu1  ;;  %13310 = vst [vmem:[#allocation28_spill] sm:$0xff] %v11183_v19  ;;  %v11196_v40 = vadd.f32 %v10905_v56, %v13312_v29  ;;  %v11218_v12 = vadd.f32 %v10905_v56, %v13318_v35  ;;  %v13330_v29 = vld [vmem:[#allocation44_spill] sm:$0xff] }
 0x34f   :  { %13308 = vst [vmem:[#allocation38_spill] sm:$0xff] %v11178_v21  ;;  %v11186_v0 = vadd.f32 %v3378_v13, %v10629_v30  ;;  %v3940_v27 = vadd.f32 %v3695_v48, %v10876_v25  ;;  %13315 = vst [vmem:[#allocation26_spill] sm:$0xff] %v11200_v59  ;;  %v13316_v30 = vld [vmem:[#allocation33_spill] sm:$0xff]  ;;  %v13322_v59 = vmax.f32 %v10967_v47, 0.0 }
 0x350   :  { %13313 = vst [vmem:[#allocation39_spill] sm:$0xff] %v11196_v40  ;;  %v3380_v43 = vpop.f32.mrf.mxu0  ;;  %v3697_v19 = vpop.f32.mrf.mxu1  ;;  %v11204_v13 = vadd.f32 %v10905_v56, %v13316_v30  ;;  %v11222_v30 = vadd.f32 %v10909_v55, %v13319_v23  ;;  %v3590_v23 = vadd.f32 %v10899_v51, %v10533_v15 }
 0x351   :  { %v4012_v25 = vadd.f32 %v3940_v27, %v10905_v56  ;;  %v11208_v48 = vadd.f32 %v3380_v43, %v10637_v1  ;;  %v3941_v14 = vadd.f32 %v3697_v19, %v10884_v60 }
 0x352   :  { %v3382_v27 = vpop.f32.mrf.mxu0  ;;  %v3699_v57 = vpop.f32.mrf.mxu1 }
 0x353   :  { %v4084_v1 = vmax.f32 %v4012_v25, 0.0  ;;  %v4013_v43 = vadd.f32 %v3941_v14, %v10909_v55  ;;  %v11226_v60 = vadd.f32 %v3382_v27, %v10641_v39  ;;  %v3946_v19 = vadd.f32 %v3699_v57, %v10894_v8 }
 0x354   :  { %v11234_v21 = vpop.f32.mrf.mxu0  ;;  %v3701_v50 = vpop.f32.mrf.mxu1  ;;  %v13320_v14 = vmax.f32 %v10953_v46, 0.0 }
 0x355   :  { %v4085_v27 = vmax.f32 %v4013_v43, 0.0  ;;  %v4018_v8 = vadd.f32 %v3946_v19, %v10905_v56  ;;  %v3947_v62 = vadd.f32 %v3701_v50, %v3590_v23  ;;  %v13323_v43 = vld [vmem:[#allocation41_spill] sm:$0xff]  ;;  %v13325_v50 = vld [vmem:[#allocation36_spill] sm:$0xff] }
 0x356   :  { %v11239_v39 = vmax.f32 %v13320_v14, %v4084_v1  ;;  %v3388_v15 = vpop.f32.mrf.mxu0  ;;  %v3705_v51 = vpop.f32.mrf.mxu1  ;;  %v11255_v19 = vadd.f32 %v10969_v53, %v13323_v43  ;;  %v13324_v14 = vld [vmem:[#allocation35_spill] sm:$0xff]  ;;  %v11263_v23 = vadd.f32 %v10969_v53, %v13325_v50  ;;  %v13328_v43 = vld [vmem:[#allocation42_spill] sm:$0xff] }
 0x357   :  { %v11247_v40 = vmax.f32 %v13322_v59, %v4085_v27  ;;  %v4090_v25 = vmax.f32 %v4018_v8, 0.0  ;;  %v11250_v46 = vadd.f32 %v3388_v15, %v10657_v3  ;;  %v3952_v1 = vadd.f32 %v3705_v51, %v10930_v36  ;;  %v13329_v50 = vld [vmem:[#allocation43_spill] sm:$0xff] }
 0x358   :  { %13321 = vst [vmem:[#allocation14_spill] sm:$0xff] %v11239_v39  ;;  %v11259_v35 = vadd.f32 %v10971_v20, %v13324_v14  ;;  %v4019_v47 = vadd.f32 %v3947_v62, %v10909_v55  ;;  %v3390_v59 = vpop.f32.mrf.mxu0  ;;  %v3707_v27 = vpop.f32.mrf.mxu1  ;;  %v13326_v3 = vmax.f32 %v11000_v31, 0.0  ;;  %v11277_v14 = vadd.f32 %v10971_v20, %v13328_v43  ;;  %v13341_v43 = vld [vmem:[#allocation119_spill] sm:$0xff] }
 0x359   :  { %v4024_v36 = vadd.f32 %v3952_v1, %v10905_v56  ;;  %v11272_v15 = vadd.f32 %v3390_v59, %v10665_v2  ;;  %v3953_v51 = vadd.f32 %v3707_v27, %v10960_v44  ;;  %v11281_v62 = vadd.f32 %v10969_v53, %v13329_v50  ;;  %v13335_v27 = vld [vmem:[#allocation45_spill] sm:$0xff] }
 0x35a   :  { %v11268_v8 = vmax.f32 %v13326_v3, %v4090_v25  ;;  %v11285_v31 = vadd.f32 %v10971_v20, %v13330_v29  ;;  %v4091_v25 = vmax.f32 %v4019_v47, 0.0  ;;  %v3392_v3 = vpop.f32.mrf.mxu0  ;;  %v3709_v1 = vpop.f32.mrf.mxu1  ;;  %v3602_v50 = vadd.f32 %v10985_v58, %v10563_v42  ;;  %v13339_v58 = vld [vmem:[#allocation47_spill] sm:$0xff] }
 0x35b   :  { %v4096_v57 = vmax.f32 %v4024_v36, 0.0  ;;  %v4025_v2 = vadd.f32 %v3953_v51, %v10909_v55  ;;  %v11289_v44 = vadd.f32 %v3392_v3, %v10669_v45  ;;  %v3958_v59 = vadd.f32 %v3709_v1, %v10976_v24 }
 0x35c   :  { %13327 = vst [vmem:[#allocation31_spill] sm:$0xff] %v11268_v8  ;;  %13331 = vst [vmem:[#allocation29_spill] sm:$0xff] %v11285_v31  ;;  %v13332_v29 = vmax.f32 %v11008_v63, 0.0  ;;  %v11300_v8 = vpop.f32.mrf.mxu0  ;;  %v3711_v36 = vpop.f32.mrf.mxu1  ;;  %v13333_v45 = vmax.f32 %v11022_v18, 0.0  ;;  %v11315_v51 = vadd.f32 %v10969_v53, %v13335_v27  ;;  %v13336_v18 = vmax.f32 %v11030_v49, 0.0 }
 0x35d   :  { %v4097_v24 = vmax.f32 %v4025_v2, 0.0  ;;  %v4030_v1 = vadd.f32 %v3958_v59, %v10905_v56  ;;  %v3959_v63 = vadd.f32 %v3711_v36, %v3602_v50  ;;  %v11328_v50 = vadd.f32 %v10969_v53, %v13339_v58  ;;  %v13340_v36 = vld [vmem:[#allocation76_spill] sm:$0xff] }
 0x35e   :  { %v11298_v47 = vmax.f32 %v13332_v29, %v4091_v25  ;;  %v11305_v3 = vmax.f32 %v13333_v45, %v4096_v57  ;;  %v11311_v25 = vpop.f32.mrf.mxu0  ;;  %v3715_v29 = vpop.f32.mrf.mxu1  ;;  %v13338_v45 = vld [vmem:[#allocation46_spill] sm:$0xff] }
 0x35f   :  { %v11319_v57 = vmax.f32 %v13336_v18, %v4097_v24  ;;  %v4102_v2 = vmax.f32 %v4030_v1, 0.0  ;;  %v3964_v59 = vadd.f32 %v3715_v29, %v11015_v33  ;;  %v11324_v42 = vadd.f32 %v10971_v20, %v13338_v45  ;;  %v13342_v24 = vld [vmem:[#allocation78_spill] sm:$0xff]  ;;  %v13346_v45 = vld [vmem:[#allocation79_spill] sm:$0xff] }
 0x360   :  { %13334 = vst [vmem:[#allocation40_spill] sm:$0xff] %v11305_v3  ;;  %v2735_v3 = vadd.f32 %v13341_v43, %v13340_v36  ;;  %v4031_v27 = vadd.f32 %v3959_v63, %v10909_v55  ;;  %v11333_v39 = vpop.f32.mrf.mxu0  ;;  %v3717_v49 = vpop.f32.mrf.mxu1  ;;  %v11337_v1 = vadd.f32 %v10971_v20, %v13342_v24  ;;  %v13344_v33 = vmax.f32 %v11038_v37, 0.0  ;;  %v13348_v63 = vld [vmem:[#allocation48_spill] sm:$0xff] }
 0x361   :  { %13337 = vst [vmem:[#allocation30_spill] sm:$0xff] %v11319_v57  ;;  %v4036_v18 = vadd.f32 %v3964_v59, %v10905_v56  ;;  %v3965_v58 = vadd.f32 %v3717_v49, %v11045_v11  ;;  %v11347_v43 = vadd.f32 %v10969_v53, %v13346_v45  ;;  %v11351_v36 = vadd.f32 %v10971_v20, %v13348_v63 }
 0x362   :  { %13343 = vst [vmem:[#allocation32_spill] sm:$0xff] %v11337_v1  ;;  %v11341_v29 = vmax.f32 %v13344_v33, %v4102_v2  ;;  %v3263_v57 = vadd.f32 %v10589_v22, %v2735_v3  ;;  %v4103_v24 = vmax.f32 %v4031_v27, 0.0  ;;  %v11354_v31 = vpop.f32.mrf.mxu0  ;;  %v3719_v37 = vpop.f32.mrf.mxu1  ;;  %v13355_v2 = vld [vmem:[#allocation81_spill] sm:$0xff] }
 0x363   :  { %13347 = vst [vmem:[#allocation75_spill] sm:$0xff] %v11347_v43  ;;  %13349 = vst [vmem:[#allocation21_spill] sm:$0xff] %v11351_v36  ;;  %v4108_v33 = vmax.f32 %v4036_v18, 0.0  ;;  %v4037_v59 = vadd.f32 %v3965_v58, %v10909_v55  ;;  %v3970_v11 = vadd.f32 %v3719_v37, %v11066_v10  ;;  %v13351_v18 = vmax.f32 %v11061_v26, 0.0 }
 0x364   :  { %13345 = vst [vmem:[#allocation33_spill] sm:$0xff] %v11341_v29  ;;  %v3614_v63 = vadd.f32 %v11075_v61, %v3263_v57  ;;  %v13350_v29 = vmax.f32 %v11053_v28, 0.0  ;;  %v11366_v3 = vpop.f32.mrf.mxu0  ;;  %v3721_v27 = vpop.f32.mrf.mxu1  ;;  %v13353_v57 = vld [vmem:[#allocation49_spill] sm:$0xff]  ;;  %v11384_v26 = vadd.f32 %v10971_v20, %v13355_v2  ;;  %v13359_v61 = vld [vmem:[#allocation82_spill] sm:$0xff] }
 0x365   :  { %v11371_v58 = vmax.f32 %v13351_v18, %v4108_v33  ;;  %v4109_v10 = vmax.f32 %v4037_v59, 0.0  ;;  %v4042_v37 = vadd.f32 %v3970_v11, %v10905_v56  ;;  %v11378_v28 = vadd.f32 %v10969_v53, %v13353_v57  ;;  %v13361_v57 = vld [vmem:[#allocation84_spill] sm:$0xff] }
 0x366   :  { %v11364_v22 = vmax.f32 %v13350_v29, %v4103_v24  ;;  %v3971_v29 = vadd.f32 %v3721_v27, %v3614_v63  ;;  %v11380_v24 = vpop.f32.mrf.mxu0  ;;  %v3725_v49 = vpop.f32.mrf.mxu1  ;;  %13356 = vst [vmem:[#allocation35_spill] sm:$0xff] %v11384_v26  ;;  %v13357_v33 = vmax.f32 %v11092_v41, 0.0  ;;  %v11393_v45 = vadd.f32 %v10969_v53, %v13359_v61  ;;  %v13363_v27 = vld [vmem:[#allocation77_spill] sm:$0xff] }
 0x367   :  { %13352 = vst [vmem:[#allocation34_spill] sm:$0xff] %v11371_v58  ;;  %13354 = vst [vmem:[#allocation41_spill] sm:$0xff] %v11378_v28  ;;  %v4114_v11 = vmax.f32 %v4042_v37, 0.0  ;;  %v3976_v18 = vadd.f32 %v3725_v49, %v11099_v54  ;;  %v11397_v63 = vadd.f32 %v10971_v20, %v13361_v57  ;;  %v13364_v58 = vld [vmem:[#allocation122_spill] sm:$0xff]  ;;  %v13367_v54 = vmax.f32 %v11106_v9, 0.0 }
 0x368   :  { %v11388_v59 = vmax.f32 %v13357_v33, %v4109_v10  ;;  %13360 = vst [vmem:[#allocation42_spill] sm:$0xff] %v11393_v45  ;;  %v2745_v36 = vadd.f32 %v13364_v58, %v13363_v27  ;;  %v4043_v2 = vadd.f32 %v3971_v29, %v10909_v55  ;;  %v11402_v43 = vpop.f32.mrf.mxu0  ;;  %v3727_v41 = vpop.f32.mrf.mxu1  ;;  %v13365_v10 = vld [vmem:[#allocation15_spill] sm:$0xff]  ;;  %v13369_v58 = vld [vmem:[#allocation50_spill] sm:$0xff]  ;;  %v13371_v57 = vmax.f32 %v11114_v7, 0.0  ;;  %v13377_v7 = vld [vmem:[#allocation88_spill] sm:$0xff] }
 0x369   :  { %13362 = vst [vmem:[#allocation43_spill] sm:$0xff] %v11397_v63  ;;  %v11406_v37 = vadd.f32 %v10969_v53, %v13365_v10  ;;  %v11410_v49 = vmax.f32 %v13367_v54, %v4114_v11  ;;  %v4048_v61 = vadd.f32 %v3976_v18, %v10905_v56  ;;  %v3977_v33 = vadd.f32 %v3727_v41, %v11129_v6  ;;  %v13375_v6 = vld [vmem:[#allocation86_spill] sm:$0xff] }
 0x36a   :  { %13358 = vst [vmem:[#allocation36_spill] sm:$0xff] %v11388_v59  ;;  %v11417_v29 = vadd.f32 %v10971_v20, %v13369_v58  ;;  %v3275_v27 = vadd.f32 %v10617_v17, %v2745_v36  ;;  %v4115_v1 = vmax.f32 %v4043_v2, 0.0  ;;  %v11420_v59 = vpop.f32.mrf.mxu0  ;;  %v3729_v10 = vpop.f32.mrf.mxu1  ;;  %v13383_v41 = vld [vmem:[#allocation90_spill] sm:$0xff] }
 0x36b   :  { %13366 = vst [vmem:[#allocation44_spill] sm:$0xff] %v11406_v37  ;;  %13368 = vst [vmem:[#allocation45_spill] sm:$0xff] %v11410_v49  ;;  %v4120_v11 = vmax.f32 %v4048_v61, 0.0  ;;  %v4049_v54 = vadd.f32 %v3977_v33, %v10909_v55  ;;  %v3982_v18 = vadd.f32 %v3729_v10, %v11153_v34  ;;  %v13373_v61 = vmax.f32 %v11122_v32, 0.0  ;;  %v13379_v32 = vld [vmem:[#allocation16_spill] sm:$0xff] }
 0x36c   :  { %13370 = vst [vmem:[#allocation46_spill] sm:$0xff] %v11417_v29  ;;  %v3626_v58 = vadd.f32 %v11165_v16, %v3275_v27  ;;  %v11430_v17 = vmax.f32 %v13371_v57, %v4115_v1  ;;  %v11432_v36 = vpop.f32.mrf.mxu0  ;;  %v3731_v2 = vpop.f32.mrf.mxu1  ;;  %v11443_v16 = vadd.f32 %v10969_v53, %v13375_v6  ;;  %v11447_v1 = vadd.f32 %v10971_v20, %v13377_v7  ;;  %v13385_v7 = vld [vmem:[#allocation92_spill] sm:$0xff] }
 0x36d   :  { %v11437_v33 = vmax.f32 %v13373_v61, %v4120_v11  ;;  %v4121_v34 = vmax.f32 %v4049_v54, 0.0  ;;  %v4054_v10 = vadd.f32 %v3982_v18, %v10905_v56  ;;  %v11453_v11 = vadd.f32 %v10969_v53, %v13379_v32  ;;  %v13388_v49 = vld [vmem:[#allocation124_spill] sm:$0xff] }
 0x36e   :  { %13372 = vst [vmem:[#allocation47_spill] sm:$0xff] %v11430_v17  ;;  %13376 = vst [vmem:[#allocation119_spill] sm:$0xff] %v11443_v16  ;;  %v3983_v57 = vadd.f32 %v3731_v2, %v3626_v58  ;;  %v11449_v27 = vpop.f32.mrf.mxu0  ;;  %v3735_v9 = vpop.f32.mrf.mxu1  ;;  %v13381_v54 = vmax.f32 %v11137_v38, 0.0  ;;  %v11466_v58 = vadd.f32 %v10969_v53, %v13385_v7  ;;  %v13387_v2 = vld [vmem:[#allocation80_spill] sm:$0xff] }
 0x36f   :  { %13374 = vst [vmem:[#allocation76_spill] sm:$0xff] %v11437_v33  ;;  %13378 = vst [vmem:[#allocation78_spill] sm:$0xff] %v11447_v1  ;;  %v4126_v61 = vmax.f32 %v4054_v10, 0.0  ;;  %v3988_v6 = vadd.f32 %v3735_v9, %v11186_v0  ;;  %v11462_v33 = vadd.f32 %v10971_v20, %v13383_v41  ;;  %v2755_v29 = vadd.f32 %v13388_v49, %v13387_v2 }
 0x370   :  { %13380 = vst [vmem:[#allocation79_spill] sm:$0xff] %v11453_v11  ;;  %v11457_v18 = vmax.f32 %v13381_v54, %v4121_v34  ;;  %13386 = vst [vmem:[#allocation81_spill] sm:$0xff] %v11466_v58  ;;  %v4055_v32 = vadd.f32 %v3983_v57, %v10909_v55  ;;  %v11471_v37 = vpop.f32.mrf.mxu0  ;;  %v3737_v38 = vpop.f32.mrf.mxu1  ;;  %v13389_v34 = vld [vmem:[#allocation52_spill] sm:$0xff]  ;;  %v13391_v0 = vmax.f32 %v11145_v52, 0.0  ;;  %v13393_v57 = vld [vmem:[#allocation129_spill] sm:$0xff] }
 0x371   :  { %13384 = vst [vmem:[#allocation49_spill] sm:$0xff] %v11462_v33  ;;  %v11475_v10 = vadd.f32 %v10971_v20, %v13389_v34  ;;  %v4060_v41 = vadd.f32 %v3988_v6, %v10905_v56  ;;  %v3989_v54 = vadd.f32 %v3737_v38, %v11208_v48  ;;  %v3287_v2 = vadd.f32 %v13393_v57, %v2755_v29  ;;  %v13400_v6 = vld [vmem:[#allocation83_spill] sm:$0xff]  ;;  %v13401_v48 = vld [vmem:[#allocation125_spill] sm:$0xff] }
 0x372   :  { %13382 = vst [vmem:[#allocation48_spill] sm:$0xff] %v11457_v18  ;;  %v11479_v9 = vmax.f32 %v13391_v0, %v4126_v61  ;;  %v4127_v63 = vmax.f32 %v4055_v32, 0.0  ;;  %v11486_v45 = vpop.f32.mrf.mxu0  ;;  %v3739_v18 = vpop.f32.mrf.mxu1  ;;  %v13394_v0 = vld [vmem:[#allocation27_spill] sm:$0xff] }
 0x373   :  { %13390 = vst [vmem:[#allocation82_spill] sm:$0xff] %v11475_v10  ;;  %v4132_v26 = vmax.f32 %v4060_v41, 0.0  ;;  %v4061_v52 = vadd.f32 %v3989_v54, %v10909_v55  ;;  %v3994_v61 = vadd.f32 %v3739_v18, %v11226_v60  ;;  %v3638_v38 = vadd.f32 %v11234_v21, %v3287_v2  ;;  %v13397_v41 = vld [vmem:[#allocation38_spill] sm:$0xff]  ;;  %v13402_v21 = vld [vmem:[#allocation87_spill] sm:$0xff]  ;;  %v13406_v10 = vld [vmem:[#allocation96_spill] sm:$0xff] }
 0x374   :  { %13392 = vst [vmem:[#allocation84_spill] sm:$0xff] %v11479_v9  ;;  %v13395_v49 = vmax.f32 %v13394_v0, 0.0  ;;  %v11498_v32 = vpop.f32.mrf.mxu0  ;;  %v3741_v57 = vpop.f32.mrf.mxu1  ;;  %v13398_v7 = vmax.f32 %v13397_v41, 0.0  ;;  %v2765_v9 = vadd.f32 %v13401_v48, %v13400_v6  ;;  %v13403_v2 = vld [vmem:[#allocation126_spill] sm:$0xff]  ;;  %v13407_v41 = vld [vmem:[#allocation128_spill] sm:$0xff]  ;;  %v13410_v48 = vld [vmem:[#allocation99_spill] sm:$0xff] }
 0x375   :  { %v4133_v60 = vmax.f32 %v4061_v52, 0.0  ;;  %v4066_v18 = vadd.f32 %v3994_v61, %v10905_v56  ;;  %v2901_v0 = vadd.f32 %v13403_v2, %v13402_v21  ;;  %v3995_v33 = vadd.f32 %v3741_v57, %v3638_v38  ;;  %v13412_v2 = vld [vmem:[#allocation131_spill] sm:$0xff]  ;;  %v13414_v38 = vld [vmem:[#allocation134_spill] sm:$0xff] }
 0x376   :  { %v11496_v29 = vmax.f32 %v13395_v49, %v4127_v63  ;;  %v11503_v54 = vmax.f32 %v13398_v7, %v4132_v26  ;;  %v13404_v63 = vld [vmem:[#allocation93_spill] sm:$0xff]  ;;  %v13405_v49 = vld [vmem:[#allocation127_spill] sm:$0xff]  ;;  %v11512_v11 = vpop.f32.mrf.mxu0  ;;  %v3745_v34 = vpop.f32.mrf.mxu1  ;;  %v2921_v26 = vadd.f32 %v13407_v41, %v13406_v10  ;;  %v13408_v7 = vmax.f32 %v11192_v4, 0.0 }
 0x377   :  { %v2911_v58 = vadd.f32 %v13405_v49, %v13404_v63  ;;  %v4138_v61 = vmax.f32 %v4066_v18, 0.0  ;;  %v4000_v6 = vadd.f32 %v3745_v34, %v11250_v46  ;;  %v3299_v1 = vadd.f32 %v13412_v2, %v2765_v9  ;;  %v13413_v63 = vld [vmem:[#allocation102_spill] sm:$0xff]  ;;  %v13415_v41 = vld [vmem:[#allocation135_spill] sm:$0xff]  ;;  %v13420_v9 = vld [vmem:[#allocation136_spill] sm:$0xff] }
 0x378   :  { %13396 = vst [vmem:[#allocation77_spill] sm:$0xff] %v11496_v29  ;;  %13399 = vst [vmem:[#allocation122_spill] sm:$0xff] %v11503_v54  ;;  %v11518_v52 = vmax.f32 %v13408_v7, %v4133_v60  ;;  %v13411_v54 = vld [vmem:[#allocation130_spill] sm:$0xff]  ;;  %v2941_v57 = vadd.f32 %v13414_v38, %v13413_v63  ;;  %v4067_v49 = vadd.f32 %v3995_v33, %v10909_v55  ;;  %v11527_v16 = vpop.f32.mrf.mxu0  ;;  %v3747_v10 = vpop.f32.mrf.mxu1  ;;  %v13416_v60 = vld [vmem:[#allocation39_spill] sm:$0xff] }
 0x379   :  { %v2931_v21 = vadd.f32 %v13411_v54, %v13410_v48  ;;  %v3243_v4 = vadd.f32 %v13415_v41, %v2901_v0  ;;  %v13417_v7 = vmax.f32 %v13416_v60, 0.0  ;;  %v4072_v46 = vadd.f32 %v4000_v6, %v10905_v56  ;;  %v13419_v54 = vld [vmem:[#allocation105_spill] sm:$0xff]  ;;  %v13422_v38 = vld [vmem:[#allocation107_spill] sm:$0xff]  ;;  %v13424_v41 = vld [vmem:[#allocation138_spill] sm:$0xff] }
 0x37a   :  { %13409 = vst [vmem:[#allocation15_spill] sm:$0xff] %v11518_v52  ;;  %v4001_v34 = vadd.f32 %v3747_v10, %v11272_v15  ;;  %v2951_v48 = vadd.f32 %v13420_v9, %v13419_v54  ;;  %v13421_v2 = vld [vmem:[#allocation137_spill] sm:$0xff]  ;;  %v13423_v33 = vld [vmem:[#allocation95_spill] sm:$0xff]  ;;  %v4139_v29 = vmax.f32 %v4067_v49, 0.0  ;;  %v11541_v28 = vpop.f32.mrf.mxu0  ;;  %v3749_v0 = vpop.f32.mrf.mxu1  ;;  %v11544_v60 = vadd.f32 %v13424_v41, %v2921_v26  ;;  %v13425_v10 = vld [vmem:[#allocation110_spill] sm:$0xff] }
 0x37b   :  { %v11532_v18 = vmax.f32 %v13417_v7, %v4138_v61  ;;  %v3255_v63 = vadd.f32 %v13421_v2, %v2911_v58  ;;  %v3241_v52 = vadd.f32 %v13423_v33, %v13422_v38  ;;  %v4144_v61 = vmax.f32 %v4072_v46, 0.0  ;;  %v13426_v7 = vld [vmem:[#allocation108_spill] sm:$0xff]  ;;  %v13427_v9 = vld [vmem:[#allocation109_spill] sm:$0xff]  ;;  %v13428_v49 = vld [vmem:[#allocation26_spill] sm:$0xff] }
 0x37c   :  { %v4073_v6 = vadd.f32 %v4001_v34, %v10909_v55  ;;  %v4006_v15 = vadd.f32 %v3749_v0, %v11289_v44  ;;  %v3253_v54 = vadd.f32 %v13426_v7, %v13425_v10  ;;  %v11551_v58 = vadd.f32 %v13427_v9, %v2931_v21  ;;  %v3751_v26 = vpop.f32.mrf.mxu1  ;;  %v13431_v46 = vld [vmem:[#allocation132_spill] sm:$0xff]  ;;  %v13434_v7 = vld [vmem:[#allocation101_spill] sm:$0xff] }
 0x37d   :  { %13418 = vst [vmem:[#allocation50_spill] sm:$0xff] %v11532_v18  ;;  %v3650_v2 = vadd.f32 %v11300_v8, %v3299_v1  ;;  %v13429_v38 = vmax.f32 %v13428_v49, 0.0  ;;  %v11558_v18 = vpop.f32.mrf.mxu0  ;;  %v3587_v34 = vadd.f32 %v11311_v25, %v13431_v46  ;;  %v13432_v44 = vmax.f32 %v11204_v13, 0.0  ;;  %v13433_v10 = vld [vmem:[#allocation112_spill] sm:$0xff]  ;;  %v13435_v1 = vld [vmem:[#allocation139_spill] sm:$0xff]  ;;  %v13438_v46 = vld [vmem:[#allocation85_spill] sm:$0xff] }
 0x37e   :  { %v4145_v41 = vmax.f32 %v4073_v6, 0.0  ;;  %v4078_v21 = vadd.f32 %v4006_v15, %v10905_v56  ;;  %v3265_v8 = vadd.f32 %v13434_v7, %v13433_v10  ;;  %v11570_v9 = vadd.f32 %v13435_v1, %v2941_v57  ;;  %v13437_v49 = vld [vmem:[#allocation104_spill] sm:$0xff]  ;;  %v3881_v25 = vpop.f32.mrf.mxu1 }
 0x37f   :  { %v11556_v33 = vmax.f32 %v13429_v38, %v4139_v29  ;;  %v11564_v0 = vmax.f32 %v13432_v44, %v4144_v61  ;;  %v13436_v29 = vld [vmem:[#allocation116_spill] sm:$0xff]  ;;  %v11574_v17 = vpop.f32.mrf.mxu0  ;;  %v3588_v13 = vadd.f32 %v11333_v39, %v13438_v46  ;;  %v13439_v61 = vmax.f32 %v11214_v5, 0.0  ;;  %v13440_v44 = vld [vmem:[#allocation114_spill] sm:$0xff]  ;;  %v13444_v46 = vld [vmem:[#allocation133_spill] sm:$0xff] }
 0x380   :  { %v3277_v38 = vadd.f32 %v13437_v49, %v13436_v29  ;;  %v4150_v56 = vmax.f32 %v4078_v21, 0.0  ;;  %v3944_v15 = vadd.f32 %v3881_v25, %v3587_v34  ;;  %v11583_v10 = vadd.f32 %v13440_v44, %v2951_v48  ;;  %v13441_v57 = vld [vmem:[#allocation120_spill] sm:$0xff]  ;;  %v13443_v29 = vld [vmem:[#allocation141_spill] sm:$0xff]  ;;  %v3883_v39 = vpop.f32.mrf.mxu1  ;;  %v13446_v25 = vld [vmem:[#allocation123_spill] sm:$0xff] }
 0x381   :  { %13430 = vst [vmem:[#allocation86_spill] sm:$0xff] %v11556_v33  ;;  %v4007_v33 = vadd.f32 %v3751_v26, %v3650_v2  ;;  %v11580_v6 = vmax.f32 %v13439_v61, %v4145_v41  ;;  %v13442_v7 = vld [vmem:[#allocation140_spill] sm:$0xff]  ;;  %v11588_v2 = vadd.f32 %v13443_v29, %v3241_v52  ;;  %v11591_v49 = vpop.f32.mrf.mxu0  ;;  %v3593_v5 = vadd.f32 %v11354_v31, %v13444_v46  ;;  %v13447_v61 = vld [vmem:[#allocation145_spill] sm:$0xff]  ;;  %v13448_v52 = vld [vmem:[#allocation146_spill] sm:$0xff] }
 0x382   :  { %v3289_v1 = vadd.f32 %v13442_v7, %v13441_v57  ;;  %v13445_v41 = vmax.f32 %v11218_v12, 0.0  ;;  %v4016_v48 = vadd.f32 %v3944_v15, %v10969_v53  ;;  %v3945_v21 = vadd.f32 %v3883_v39, %v3588_v13  ;;  %v3885_v31 = vpop.f32.mrf.mxu1  ;;  %v13450_v46 = vld [vmem:[#allocation154_spill] sm:$0xff]  ;;  %v13451_v39 = vld [vmem:[#allocation72_spill] sm:$0xff] }
 0x383   :  { %v4079_v26 = vadd.f32 %v4007_v33, %v10909_v55  ;;  %v3301_v44 = vadd.f32 %v13447_v61, %v13446_v25  ;;  %v11603_v57 = vadd.f32 %v13448_v52, %v3253_v54  ;;  %v13449_v55 = vld [vmem:[#allocation152_spill] sm:$0xff]  ;;  %v11608_v29 = vpop.f32.mrf.mxu0  ;;  %v11611_v12 = vadd.f32 %v13450_v46, %v3277_v38  ;;  %v13454_v38 = vld [vmem:[#allocation89_spill] sm:$0xff]  ;;  %v13456_v46 = vld [vmem:[#allocation51_spill] sm:$0xff] }
 0x384   :  { %v11597_v34 = vmax.f32 %v13445_v41, %v4150_v56  ;;  %v11606_v33 = vadd.f32 %v13449_v55, %v3265_v8  ;;  %v4088_v56 = vmax.f32 %v4016_v48, 0.0  ;;  %v4017_v15 = vadd.f32 %v3945_v21, %v10971_v20  ;;  %v13452_v25 = vld [vmem:[#allocation24_spill] sm:$0xff]  ;;  %v3887_v55 = vpop.f32.mrf.mxu1 }
 0x385   :  { %v4151_v7 = vmax.f32 %v4079_v26, 0.0  ;;  %v3950_v13 = vadd.f32 %v3885_v31, %v3593_v5  ;;  %v11615_v41 = vadd.f32 %v13451_v39, %v3289_v1  ;;  %v11618_v54 = vadd.f32 %v13452_v25, %v3301_v44  ;;  %v3570_v52 = vpop.f32.mrf.mxu0  ;;  %v13457_v39 = vld [vmem:[#allocation91_spill] sm:$0xff] }
 0x386   :  { %v3594_v8 = vadd.f32 %v11366_v3, %v3243_v4  ;;  %v13453_v26 = vmax.f32 %v11222_v30, 0.0  ;;  %v3599_v48 = vadd.f32 %v11380_v24, %v13454_v38  ;;  %v13455_v21 = vmax.f32 %v11255_v19, 0.0  ;;  %v3891_v25 = vpop.f32.mrf.mxu1  ;;  %v13460_v38 = vld [vmem:[#allocation94_spill] sm:$0xff] }
 0x387   :  { %v4089_v31 = vmax.f32 %v4017_v15, 0.0  ;;  %v4022_v1 = vadd.f32 %v3950_v13, %v10969_v53  ;;  %v3600_v44 = vadd.f32 %v11402_v43, %v13456_v46  ;;  %v3605_v3 = vadd.f32 %v11420_v59, %v13457_v39  ;;  %v13459_v15 = vld [vmem:[#allocation103_spill] sm:$0xff] }
 0x388   :  { %v11623_v61 = vmax.f32 %v13453_v26, %v4151_v7  ;;  %v4160_v5 = vmax.f32 %v13455_v21, %v4088_v56  ;;  %v3606_v30 = vadd.f32 %v11432_v36, %v3255_v63  ;;  %v3951_v4 = vadd.f32 %v3887_v55, %v3594_v8  ;;  %v3574_v7 = vpop.f32.mrf.mxu0  ;;  %v13461_v21 = vld [vmem:[#allocation18_spill] sm:$0xff]  ;;  %v3893_v55 = vpop.f32.mrf.mxu1 }
 0x389   :  { %v13458_v24 = vmax.f32 %v11259_v35, 0.0  ;;  %v4094_v56 = vmax.f32 %v4022_v1, 0.0  ;;  %v11641_v13 = vadd.f32 %v3574_v7, %v13459_v15  ;;  %v3611_v43 = vadd.f32 %v11449_v27, %v13460_v38  ;;  %v13464_v1 = vld [vmem:[#allocation64_spill] sm:$0xff]  ;;  %v13467_v38 = vld [vmem:[#allocation19_spill] sm:$0xff] }
 0x38a   :  { %v4229_v26 = vmax.f32 %v11247_v40, %v4160_v5  ;;  %v3612_v59 = vadd.f32 %v11471_v37, %v13461_v21  ;;  %v4023_v36 = vadd.f32 %v3951_v4, %v10971_v20  ;;  %v3956_v63 = vadd.f32 %v3891_v25, %v3599_v48  ;;  %v3576_v8 = vpop.f32.mrf.mxu0  ;;  %v13462_v40 = vld [vmem:[#allocation106_spill] sm:$0xff]  ;;  %v13465_v37 = vld [vmem:[#allocation97_spill] sm:$0xff] }
 0x38b   :  { %v11638_v19 = vmax.f32 %v13458_v24, %v4089_v31  ;;  %v3617_v35 = vadd.f32 %v11486_v45, %v13462_v40  ;;  %v13463_v5 = vmax.f32 %v11263_v23, 0.0  ;;  %v11653_v46 = vadd.f32 %v3576_v8, %v13464_v1  ;;  %v3895_v45 = vpop.f32.mrf.mxu1 }
 0x38c   :  { %v3957_v39 = vadd.f32 %v3893_v55, %v3600_v44  ;;  %v11657_v27 = vadd.f32 %v11498_v32, %v11544_v60  ;;  %v11661_v4 = vadd.f32 %v11512_v11, %v13465_v37  ;;  %v4095_v48 = vmax.f32 %v4023_v36, 0.0  ;;  %v3578_v25 = vpop.f32.mrf.mxu0  ;;  %v13468_v60 = vld [vmem:[#allocation98_spill] sm:$0xff] }
 0x38d   :  { %v4166_v31 = vmax.f32 %v13463_v5, %v4094_v56  ;;  %v4028_v7 = vadd.f32 %v3956_v63, %v10969_v53  ;;  %v13466_v56 = vld [vmem:[#allocation113_spill] sm:$0xff]  ;;  %v3962_v44 = vadd.f32 %v3895_v45, %v3605_v3  ;;  %v11671_v32 = vadd.f32 %v11527_v16, %v13467_v38  ;;  %v3897_v8 = vpop.f32.mrf.mxu1  ;;  %v13470_v5 = vld [vmem:[#allocation100_spill] sm:$0xff] }
 0x38e   :  { %v4029_v24 = vadd.f32 %v3957_v39, %v10971_v20  ;;  %v11667_v15 = vadd.f32 %v3578_v25, %v13466_v56  ;;  %v11675_v11 = vadd.f32 %v11541_v28, %v13468_v60  ;;  %v13469_v21 = vmax.f32 %v11277_v14, 0.0  ;;  %v13471_v28 = vld [vmem:[#allocation20_spill] sm:$0xff]  ;;  %v13476_v56 = vld [vmem:[#allocation111_spill] sm:$0xff] }
 0x38f   :  { %v4232_v23 = vmax.f32 %v11298_v47, %v4166_v31  ;;  %v4100_v63 = vmax.f32 %v4028_v7, 0.0  ;;  %v3580_v47 = vpop.f32.mrf.mxu0  ;;  %v11683_v55 = vadd.f32 %v11558_v18, %v11551_v58  ;;  %v4034_v40 = vadd.f32 %v3962_v44, %v10969_v53  ;;  %v13473_v18 = vld [vmem:[#allocation29_spill] sm:$0xff]  ;;  %v13477_v44 = vld [vmem:[#allocation30_spill] sm:$0xff] }
 0x390   :  { %v11679_v36 = vmax.f32 %v13469_v21, %v4095_v48  ;;  %v4101_v3 = vmax.f32 %v4029_v24, 0.0  ;;  %v3963_v16 = vadd.f32 %v3897_v8, %v3606_v30  ;;  %v11688_v31 = vadd.f32 %v11574_v17, %v13470_v5  ;;  %v3901_v48 = vpop.f32.mrf.mxu1  ;;  %v13475_v17 = vld [vmem:[#allocation115_spill] sm:$0xff] }
 0x391   :  { %v11692_v14 = vadd.f32 %v11591_v49, %v13471_v28  ;;  %v13472_v1 = vmax.f32 %v11281_v62, 0.0  ;;  %v3788_v37 = vpop.f32.mrf.mxu0  ;;  %v11696_v7 = vpack.c.bf16 %v4232_v23, %v4229_v26  ;;  %v13474_v58 = vmax.f32 %v13473_v18, 0.0  ;;  %v13482_v18 = vld [vmem:[#allocation150_spill] sm:$0xff] }
 0x392   :  { %v4106_v30 = vmax.f32 %v4034_v40, 0.0  ;;  %v4035_v45 = vadd.f32 %v3963_v16, %v10971_v20  ;;  %v3942_v24 = vadd.f32 %v3788_v37, %v13475_v17  ;;  %v11706_v49 = vadd.f32 %v11608_v29, %v13476_v56  ;;  %v3903_v60 = vpop.f32.mrf.mxu1  ;;  %v13480_v16 = vld [vmem:[#allocation117_spill] sm:$0xff] }
 0x393   :  { %v4172_v39 = vmax.f32 %v13472_v1, %v4100_v63  ;;  %v11700_v25 = vmax.f32 %v13474_v58, %v4101_v3  ;;  %v11709_v62 = vadd.f32 %v3570_v52, %v11570_v9  ;;  %v3968_v26 = vadd.f32 %v3901_v48, %v3611_v43  ;;  %v3790_v23 = vpop.f32.mrf.mxu0  ;;  %v13479_v3 = vld [vmem:[#allocation149_spill] sm:$0xff] }
 0x394   :  { %v13478_v21 = vmax.f32 %v11315_v51, 0.0  ;;  %v4107_v8 = vmax.f32 %v4035_v45, 0.0  ;;  %v4014_v40 = vadd.f32 %v3942_v24, %v13479_v3  ;;  %v3943_v5 = vadd.f32 %v3790_v23, %v13480_v16  ;;  %v3905_v1 = vpop.f32.mrf.mxu1 }
 0x395   :  { %v4235_v38 = vmax.f32 %v13477_v44, %v4172_v39  ;;  %v11717_v28 = vadd.f32 %v3580_v47, %v11583_v10  ;;  %v4040_v29 = vadd.f32 %v3968_v26, %v10969_v53  ;;  %v3969_v9 = vadd.f32 %v3903_v60, %v3612_v59  ;;  %v3792_v52 = vpop.f32.mrf.mxu0  ;;  %v13483_v47 = vld [vmem:[#allocation118_spill] sm:$0xff]  ;;  %v13484_v44 = vld [vmem:[#allocation53_spill] sm:$0xff] }
 0x396   :  { %v4178_v63 = vmax.f32 %v13478_v21, %v4106_v30  ;;  %v4398_v43 = vrot.slane %v11696_v7, 4  ;;  %v13481_v51 = vmax.f32 %v11324_v42, 0.0  ;;  %v4086_v48 = vmax.f32 %v4014_v40, 0.0  ;;  %v3907_v24 = vpop.f32.mrf.mxu1 }
 0x397   :  { %v4015_v58 = vadd.f32 %v3943_v5, %v13482_v18  ;;  %v4112_v30 = vmax.f32 %v4040_v29, 0.0  ;;  %v4041_v10 = vadd.f32 %v3969_v9, %v10971_v20  ;;  %v3948_v45 = vadd.f32 %v3792_v52, %v13483_v47  ;;  %v3794_v59 = vpop.f32.mrf.mxu0 }
 0x398   :  { %v4238_v39 = vmax.f32 %v11364_v22, %v4178_v63  ;;  %v11724_v37 = vmax.f32 %v13481_v51, %v4107_v8  ;;  %v3974_v17 = vadd.f32 %v3905_v1, %v3617_v35  ;;  %v13485_v26 = vmax.f32 %v13484_v44, 0.0  ;;  %v3911_v35 = vpop.f32.mrf.mxu1  ;;  %v13493_v44 = vld [vmem:[#allocation121_spill] sm:$0xff] }
 0x399   :  { %v4087_v23 = vmax.f32 %v4015_v58, 0.0  ;;  %v3949_v42 = vadd.f32 %v3794_v59, %v11588_v2  ;;  %v13486_v60 = vmax.f32 %v11328_v50, 0.0  ;;  %v4113_v63 = vmax.f32 %v4041_v10, 0.0  ;;  %v3798_v16 = vpop.f32.mrf.mxu0  ;;  %v13489_v2 = vld [vmem:[#allocation36_spill] sm:$0xff] }
 0x39a   :  { %v11729_v56 = vpack.c.bf16 %v4238_v39, %v4235_v38  ;;  %v4158_v22 = vmax.f32 %v13485_v26, %v4086_v48  ;;  %v4020_v8 = vadd.f32 %v3948_v45, %v13479_v3  ;;  %v4046_v40 = vadd.f32 %v3974_v17, %v10969_v53  ;;  %v13487_v38 = vld [vmem:[#allocation54_spill] sm:$0xff]  ;;  %v13490_v50 = vld [vmem:[#allocation32_spill] sm:$0xff]  ;;  %v3913_v47 = vpop.f32.mrf.mxu1 }
 0x39b   :  { %v4184_v21 = vmax.f32 %v13486_v60, %v4112_v30  ;;  %v13488_v29 = vmax.f32 %v13487_v38, 0.0  ;;  %v4021_v52 = vadd.f32 %v3949_v42, %v13482_v18  ;;  %v3975_v1 = vadd.f32 %v3907_v24, %v11657_v27  ;;  %v3800_v10 = vpop.f32.mrf.mxu0  ;;  %v13492_v45 = vld [vmem:[#allocation14_spill] sm:$0xff] }
 0x39c   :  { %v4230_v5 = vmax.f32 %v4158_v22, %v11638_v19  ;;  %v13491_v51 = vmax.f32 %v13490_v50, 0.0  ;;  %v4092_v58 = vmax.f32 %v4020_v8, 0.0  ;;  %v4118_v30 = vmax.f32 %v4046_v40, 0.0  ;;  %v13494_v22 = vld [vmem:[#allocation55_spill] sm:$0xff]  ;;  %v3915_v38 = vpop.f32.mrf.mxu1 }
 0x39d   :  { %v4159_v9 = vmax.f32 %v13488_v29, %v4087_v23  ;;  %v4241_v39 = vmax.f32 %v13489_v2, %v4184_v21  ;;  %v4093_v19 = vmax.f32 %v4021_v52, 0.0  ;;  %v4047_v59 = vadd.f32 %v3975_v1, %v10971_v20  ;;  %v13496_v23 = vld [vmem:[#allocation75_spill] sm:$0xff]  ;;  %v3802_v40 = vpop.f32.mrf.mxu0  ;;  %v13499_v29 = vld [vmem:[#allocation56_spill] sm:$0xff] }
 0x39e   :  { %v11746_v48 = vmax.f32 %v13491_v51, %v4113_v63  ;;  %v3954_v26 = vadd.f32 %v3798_v16, %v13493_v44  ;;  %v13495_v27 = vmax.f32 %v13494_v22, 0.0  ;;  %v13497_v42 = vmax.f32 %v13496_v23, 0.0  ;;  %v13498_v63 = vld [vmem:[#allocation142_spill] sm:$0xff]  ;;  %v13501_v51 = vld [vmem:[#allocation47_spill] sm:$0xff]  ;;  %v13503_v22 = vld [vmem:[#allocation21_spill] sm:$0xff] }
 0x39f   :  { %v4228_v17 = vmax.f32 %v13492_v45, %v4159_v9  ;;  %v3980_v21 = vadd.f32 %v3911_v35, %v11661_v4  ;;  %v3955_v8 = vadd.f32 %v3800_v10, %v13498_v63  ;;  %v13500_v9 = vmax.f32 %v13499_v29, 0.0  ;;  %v3804_v35 = vpop.f32.mrf.mxu0  ;;  %v3917_v10 = vpop.f32.mrf.mxu1  ;;  %v13502_v45 = vld [vmem:[#allocation31_spill] sm:$0xff] }
 0x3a0   :  { %v4164_v24 = vmax.f32 %v13495_v27, %v4092_v58  ;;  %v4190_v60 = vmax.f32 %v13497_v42, %v4118_v30  ;;  %v4119_v2 = vmax.f32 %v4047_v59, 0.0  ;;  %v4026_v1 = vadd.f32 %v3954_v26, %v13479_v3 }
 0x3a1   :  { %v4165_v52 = vmax.f32 %v13500_v9, %v4093_v19  ;;  %v3981_v16 = vadd.f32 %v3913_v47, %v11671_v32  ;;  %v4052_v30 = vadd.f32 %v3980_v21, %v10969_v53  ;;  %v4027_v4 = vadd.f32 %v3955_v8, %v13482_v18  ;;  %v3808_v23 = vpop.f32.mrf.mxu0  ;;  %v3921_v42 = vpop.f32.mrf.mxu1  ;;  %v13505_v21 = vld [vmem:[#allocation57_spill] sm:$0xff]  ;;  %v13507_v9 = vld [vmem:[#allocation144_spill] sm:$0xff] }
 0x3a2   :  { %v4233_v50 = vmax.f32 %v4164_v24, %v11679_v36  ;;  %v4244_v58 = vmax.f32 %v13501_v51, %v4190_v60  ;;  %v13504_v27 = vmax.f32 %v13503_v22, 0.0  ;;  %v4098_v59 = vmax.f32 %v4026_v1, 0.0  ;;  %v13508_v1 = vld [vmem:[#allocation41_spill] sm:$0xff] }
 0x3a3   :  { %v4231_v44 = vmax.f32 %v13502_v45, %v4165_v52  ;;  %v4053_v26 = vadd.f32 %v3981_v16, %v10971_v20  ;;  %v4124_v47 = vmax.f32 %v4052_v30, 0.0  ;;  %v4099_v24 = vmax.f32 %v4027_v4, 0.0  ;;  %v3810_v30 = vpop.f32.mrf.mxu0 }
 0x3a4   :  { %v11768_v19 = vmax.f32 %v13504_v27, %v4119_v2  ;;  %v11771_v32 = vpack.c.bf16 %v4233_v50, %v4230_v5  ;;  %v11773_v36 = vpack.c.bf16 %v4244_v58, %v4241_v39  ;;  %v13506_v63 = vmax.f32 %v13505_v21, 0.0  ;;  %v13510_v50 = vld [vmem:[#allocation58_spill] sm:$0xff] }
 0x3a5   :  { %v11775_v60 = vpack.c.bf16 %v4231_v44, %v4228_v17  ;;  %v4125_v29 = vmax.f32 %v4053_v26, 0.0  ;;  %v3960_v52 = vadd.f32 %v3802_v40, %v13507_v9  ;;  %v13509_v16 = vmax.f32 %v13508_v1, 0.0  ;;  %v3923_v17 = vpop.f32.mrf.mxu1  ;;  %v13512_v44 = vld [vmem:[#allocation35_spill] sm:$0xff] }
 0x3a6   :  { %v4170_v8 = vmax.f32 %v13506_v63, %v4098_v59  ;;  %v4401_v2 = vrot.slane %v11771_v32, 4  ;;  %v13511_v39 = vmax.f32 %v13510_v50, 0.0  ;;  %v3986_v58 = vadd.f32 %v3915_v38, %v11675_v11  ;;  %v13514_v59 = vld [vmem:[#allocation48_spill] sm:$0xff]  ;;  %v3812_v38 = vpop.f32.mrf.mxu0 }
 0x3a7   :  { %v4196_v5 = vmax.f32 %v13509_v16, %v4124_v47  ;;  %v4395_v4 = vrot.slane %v11775_v60, 4  ;;  %v13513_v22 = vmax.f32 %v13512_v44, 0.0  ;;  %v4032_v27 = vadd.f32 %v3960_v52, %v13479_v3  ;;  %v13515_v47 = vld [vmem:[#allocation40_spill] sm:$0xff]  ;;  %v3925_v63 = vpop.f32.mrf.mxu1  ;;  %v13518_v44 = vld [vmem:[#allocation59_spill] sm:$0xff] }
 0x3a8   :  { %v11785_v51 = vmax.f32 %v13511_v39, %v4099_v24  ;;  %v4236_v45 = vmax.f32 %v4170_v8, %v11700_v25  ;;  %v4058_v21 = vadd.f32 %v3986_v58, %v10969_v53  ;;  %v12839_v11 = vrot.slane %v11729_v56, 4  ;;  %v13517_v50 = vld [vmem:[#allocation148_spill] sm:$0xff] }
 0x3a9   :  { %v11792_v40 = vmax.f32 %v13513_v22, %v4125_v29  ;;  %v4247_v26 = vmax.f32 %v13514_v59, %v4196_v5  ;;  %v4104_v9 = vmax.f32 %v4032_v27, 0.0  ;;  %v3961_v25 = vadd.f32 %v3804_v35, %v11603_v57  ;;  %v13516_v29 = vld [vmem:[#allocation147_spill] sm:$0xff]  ;;  %v3927_v58 = vpop.f32.mrf.mxu1 }
 0x3aa   :  { %v4234_v24 = vmax.f32 %v13515_v47, %v11785_v51  ;;  %v3987_v8 = vadd.f32 %v3917_v10, %v11683_v55  ;;  %v3966_v1 = vadd.f32 %v3808_v23, %v13516_v29  ;;  %v4130_v16 = vmax.f32 %v4058_v21, 0.0  ;;  %v3814_v51 = vpop.f32.mrf.mxu0  ;;  %v13520_v23 = vld [vmem:[#allocation42_spill] sm:$0xff] }
 0x3ab   :  { %v4400_v52 = vsel %vm4394_vm1, %v4398_v43, %v12839_v11  ;;  %v3992_v5 = vadd.f32 %v3921_v42, %v11688_v31  ;;  %v3967_v39 = vadd.f32 %v3810_v30, %v13517_v50  ;;  %v13519_v22 = vmax.f32 %v13518_v44, 0.0  ;;  %v3931_v44 = vpop.f32.mrf.mxu1  ;;  %v13533_v11 = vld [vmem:[#allocation33_spill] sm:$0xff] }
 0x3ac   :  { %4706 = vmatprep.mubr.bf16.mxu0 %v4400_v52  ;;  %v4033_v55 = vadd.f32 %v3961_v25, %v13482_v18  ;;  %v4059_v35 = vadd.f32 %v3987_v8, %v10971_v20  ;;  %v4038_v10 = vadd.f32 %v3966_v1, %v13479_v3  ;;  %v13521_v27 = vmax.f32 %v13520_v23, 0.0  ;;  %v3818_v30 = vpop.f32.mrf.mxu0  ;;  %v13522_v25 = vld [vmem:[#allocation77_spill] sm:$0xff] }
 0x3ad   :  { %v4176_v57 = vmax.f32 %v13519_v22, %v4104_v9  ;;  %v4064_v43 = vadd.f32 %v3992_v5, %v10969_v53  ;;  %v4039_v31 = vadd.f32 %v3967_v39, %v13482_v18  ;;  %v3993_v42 = vadd.f32 %v3923_v17, %v11692_v14  ;;  %v13523_v5 = vld [vmem:[#allocation60_spill] sm:$0xff]  ;;  %v13525_v14 = vld [vmem:[#allocation43_spill] sm:$0xff] }
 0x3ae   :  { %v4202_v59 = vmax.f32 %v13521_v27, %v4130_v16  ;;  %v4105_v21 = vmax.f32 %v4033_v55, 0.0  ;;  %v4131_v9 = vmax.f32 %v4059_v35, 0.0  ;;  %v4110_v29 = vmax.f32 %v4038_v10, 0.0  ;;  %v3820_v16 = vpop.f32.mrf.mxu0  ;;  %v13529_v10 = vld [vmem:[#allocation44_spill] sm:$0xff] }
 0x3af   :  { %v4239_v47 = vmax.f32 %v4176_v57, %v11724_v37  ;;  %v4136_v8 = vmax.f32 %v4064_v43, 0.0  ;;  %v4111_v50 = vmax.f32 %v4039_v31, 0.0  ;;  %v4065_v1 = vadd.f32 %v3993_v42, %v10971_v20  ;;  %v13527_v37 = vld [vmem:[#allocation61_spill] sm:$0xff]  ;;  %v13531_v31 = vld [vmem:[#allocation63_spill] sm:$0xff] }
 0x3b0   :  { %v4250_v52 = vmax.f32 %v13522_v25, %v4202_v59  ;;  %v13524_v39 = vmax.f32 %v13523_v5, 0.0  ;;  %v13526_v17 = vmax.f32 %v13525_v14, 0.0  ;;  %v13528_v57 = vmax.f32 %v13527_v37, 0.0  ;;  %v13537_v37 = vld [vmem:[#allocation46_spill] sm:$0xff] }
 0x3b1   :  { %v11823_v22 = vpack.c.bf16 %v4239_v47, %v4236_v45  ;;  %v13530_v59 = vmax.f32 %v13529_v10, 0.0  ;;  %v13532_v42 = vmax.f32 %v13531_v31, 0.0  ;;  %v4137_v45 = vmax.f32 %v4065_v1, 0.0  ;;  %v3822_v47 = vpop.f32.mrf.mxu0  ;;  %v3933_v1 = vpop.f32.mrf.mxu1 }
 0x3b2   :  { %v4177_v23 = vmax.f32 %v13524_v39, %v4105_v21  ;;  %v11829_v27 = vmax.f32 %v13526_v17, %v4131_v9  ;;  %v4182_v55 = vmax.f32 %v13528_v57, %v4110_v29  ;;  %v11833_v35 = vpack.c.bf16 %v4250_v52, %v4247_v26  ;;  %v13534_v39 = vld [vmem:[#allocation151_spill] sm:$0xff]  ;;  %v13536_v26 = vld [vmem:[#allocation34_spill] sm:$0xff] }
 0x3b3   :  { %v4208_v43 = vmax.f32 %v13530_v59, %v4136_v8  ;;  %v4183_v25 = vmax.f32 %v13532_v42, %v4111_v50  ;;  %v3972_v9 = vadd.f32 %v3812_v38, %v13534_v39  ;;  %v3998_v14 = vadd.f32 %v3925_v63, %v11706_v49  ;;  %v13535_v17 = vld [vmem:[#allocation15_spill] sm:$0xff]  ;;  %v3824_v10 = vpop.f32.mrf.mxu0  ;;  %v13539_v63 = vld [vmem:[#allocation153_spill] sm:$0xff] }
 0x3b4   :  { %v4237_v5 = vmax.f32 %v13533_v11, %v4177_v23  ;;  %v4242_v21 = vmax.f32 %v4182_v55, %v11746_v48  ;;  %v13538_v57 = vmax.f32 %v13537_v37, 0.0  ;;  %v3973_v50 = vadd.f32 %v3814_v51, %v11606_v33  ;;  %v3935_v37 = vpop.f32.mrf.mxu1 }
 0x3b5   :  { %v4253_v29 = vmax.f32 %v13535_v17, %v4208_v43  ;;  %v4240_v52 = vmax.f32 %v13536_v26, %v4183_v25  ;;  %v4044_v48 = vadd.f32 %v3972_v9, %v13479_v3  ;;  %v4070_v11 = vadd.f32 %v3998_v14, %v10969_v53  ;;  %v13540_v43 = vld [vmem:[#allocation62_spill] sm:$0xff]  ;;  %v3828_v42 = vpop.f32.mrf.mxu0 }
 0x3b6   :  { %v11847_v8 = vmax.f32 %v13538_v57, %v4137_v45  ;;  %v11850_v59 = vpack.c.bf16 %v4237_v5, %v4234_v24  ;;  %v3999_v49 = vadd.f32 %v3927_v58, %v11709_v62  ;;  %v4045_v38 = vadd.f32 %v3973_v50, %v13482_v18  ;;  %v13545_v57 = vld [vmem:[#allocation66_spill] sm:$0xff] }
 0x3b7   :  { %v3978_v23 = vadd.f32 %v3818_v30, %v13539_v63  ;;  %v4004_v55 = vadd.f32 %v3931_v44, %v11641_v13  ;;  %v3979_v31 = vadd.f32 %v3820_v16, %v13540_v43  ;;  %v4116_v33 = vmax.f32 %v4044_v48, 0.0  ;;  %v3830_v39 = vpop.f32.mrf.mxu0  ;;  %v13541_v30 = vld [vmem:[#allocation65_spill] sm:$0xff]  ;;  %v13543_v44 = vld [vmem:[#allocation119_spill] sm:$0xff]  ;;  %v13547_v63 = vld [vmem:[#allocation86_spill] sm:$0xff] }
 0x3b8   :  { %v4142_v51 = vmax.f32 %v4070_v11, 0.0  ;;  %v4071_v24 = vadd.f32 %v3999_v49, %v10971_v20  ;;  %v4005_v25 = vadd.f32 %v3933_v1, %v11653_v46  ;;  %v4117_v45 = vmax.f32 %v4045_v38, 0.0 }
 0x3b9   :  { %v4050_v5 = vadd.f32 %v3978_v23, %v13479_v3  ;;  %v4076_v62 = vadd.f32 %v4004_v55, %v10969_v53  ;;  %v4051_v58 = vadd.f32 %v3979_v31, %v13482_v18  ;;  %v13542_v9 = vmax.f32 %v13541_v30, 0.0  ;;  %v3832_v49 = vpop.f32.mrf.mxu0  ;;  %v13548_v55 = vld [vmem:[#allocation78_spill] sm:$0xff] }
 0x3ba   :  { %v13544_v16 = vmax.f32 %v13543_v44, 0.0  ;;  %v4143_v17 = vmax.f32 %v4071_v24, 0.0  ;;  %v4077_v26 = vadd.f32 %v4005_v25, %v10971_v20  ;;  %v13546_v46 = vmax.f32 %v13545_v57, 0.0  ;;  %v13551_v25 = vld [vmem:[#allocation67_spill] sm:$0xff] }
 0x3bb   :  { %v4188_v13 = vmax.f32 %v13542_v9, %v4116_v33  ;;  %v4122_v1 = vmax.f32 %v4050_v5, 0.0  ;;  %v4148_v48 = vmax.f32 %v4076_v62, 0.0  ;;  %v4123_v11 = vmax.f32 %v4051_v58, 0.0  ;;  %v13555_v58 = vld [vmem:[#allocation68_spill] sm:$0xff] }
 0x3bc   :  { %v4214_v14 = vmax.f32 %v13544_v16, %v4142_v51  ;;  %v4189_v50 = vmax.f32 %v13546_v46, %v4117_v45  ;;  %v13549_v43 = vmax.f32 %v13548_v55, 0.0  ;;  %v4149_v33 = vmax.f32 %v4077_v26, 0.0  ;;  %v13550_v51 = vld [vmem:[#allocation45_spill] sm:$0xff]  ;;  %v13553_v45 = vld [vmem:[#allocation79_spill] sm:$0xff]  ;;  %v13559_v46 = vld [vmem:[#allocation8_spill] sm:$0xff] }
 0x3bd   :  { %v4245_v38 = vmax.f32 %v4188_v13, %v11768_v19  ;;  %v13552_v30 = vmax.f32 %v13551_v25, 0.0  ;;  %v13554_v5 = vmax.f32 %v13553_v45, 0.0  ;;  %v13556_v44 = vmax.f32 %v13555_v58, 0.0  ;;  %v11890_v13 = vpop.f32.mrf.mxu0  ;;  %v13561_v25 = vld [vmem:[#allocation9_spill] sm:$0xff] }
 0x3be   :  { %v4256_v23 = vmax.f32 %v13547_v63, %v4214_v14  ;;  %v11875_v31 = vmax.f32 %v13549_v43, %v4143_v17  ;;  %v4243_v24 = vmax.f32 %v13550_v51, %v4189_v50  ;;  %v13557_v17 = vld [vmem:[#allocation49_spill] sm:$0xff]  ;;  %v3984_v50 = vadd.f32 %v3822_v47, %v13559_v46 }
 0x3bf   :  { %v11880_v9 = vmax.f32 %v13552_v30, %v4122_v1  ;;  %v11884_v62 = vmax.f32 %v13554_v5, %v4148_v48  ;;  %v11888_v19 = vmax.f32 %v13556_v44, %v4123_v11  ;;  %v11892_v16 = vpack.c.bf16 %v4245_v38, %v4242_v21  ;;  %v3937_v1 = vpop.f32.mrf.mxu1  ;;  %v13560_v21 = vld [vmem:[#allocation76_spill] sm:$0xff]  ;;  %v13563_v44 = vld [vmem:[#allocation69_spill] sm:$0xff] }
 0x3c0   :  { %v11894_v14 = vpack.c.bf16 %v4256_v23, %v4253_v29  ;;  %v13558_v26 = vmax.f32 %v13557_v17, 0.0  ;;  %v11901_v63 = vpack.c.bf16 %v4243_v24, %v4240_v52  ;;  %v11909_v29 = vpop.f32.mrf.mxu0  ;;  %v8115_v23 = vld [vmem:[#allocation4 + $0x70] ss:$8 sps:$4 sm:$0xff]   ;;  %v4056_v55 = vadd.f32 %v3984_v50, %v13479_v3  ;;  %v8123_v5 = vld [vmem:[#allocation4 + $0x64] ss:$8 sps:$4 sm:$0xff]  }
 0x3c1   :  { %v4248_v48 = vmax.f32 %v11880_v9, %v11792_v40  ;;  %v4259_v11 = vmax.f32 %v11580_v6, %v11884_v62  ;;  %v4246_v38 = vmax.f32 %v13560_v21, %v11888_v19  ;;  %v4010_v43 = vadd.f32 %v3935_v37, %v11667_v15  ;;  %v8121_v50 = vld [vmem:[#allocation4 + $0x60] ss:$8 sps:$4 sm:$0xff]  }
 0x3c2   :  { %v11898_v57 = vmax.f32 %v13558_v26, %v4149_v33  ;;  %v4402_v47 = vrot.slane %v11823_v22, 4  ;;  %v3985_v52 = vadd.f32 %v3824_v10, %v11611_v12  ;;  %v8118_v33 = vld [vmem:[#allocation4 + $0x170] ss:$8 sps:$4 sm:$0xff]   ;;  %v4011_v40 = vadd.f32 %v3937_v1, %v11717_v28  ;;  %v8126_v12 = vld [vmem:[#allocation4 + $0x164] ss:$8 sps:$4 sm:$0xff]   ;;  %v3840_v58 = vpop.f32.mrf.mxu0 }
 0x3c3   :  { %v4396_v51 = vrot.slane %v11850_v59, 4  ;;  %v4406_v24 = vrot.slane %v11773_v36, 4  ;;  %v3990_v30 = vadd.f32 %v3828_v42, %v13561_v25  ;;  %v4128_v9 = vmax.f32 %v4056_v55, 0.0  ;;  %v8124_v1 = vld [vmem:[#allocation4 + $0x160] ss:$8 sps:$4 sm:$0xff]   ;;  %v13566_v25 = vld [vmem:[#allocation71_spill] sm:$0xff] }
 0x3c4   :  { %v4082_v45 = vadd.f32 %v4010_v43, %v10969_v53  ;;  %v4403_v15 = vsel %vm4394_vm1, %v4401_v2, %v4402_v47  ;;  %v4057_v37 = vadd.f32 %v3985_v52, %v13482_v18  ;;  %v4083_v28 = vadd.f32 %v4011_v40, %v10971_v20  ;;  %v8129_v40 = vld [vmem:[#allocation4 + $0x54] ss:$8 sps:$4 sm:$0xff]   ;;  %v8148_v6 = vld [vmem:[#allocation4 + $0x120] ss:$8 sps:$4 sm:$0xff]  }
 0x3c5   :  { %4780 = vmatmul.mubr.bf16.vlgmr.msra.gmra.mxu1 %v4403_v15  ;;  %v4397_v10 = vsel %vm4394_vm1, %v4395_v4, %v4396_v51  ;;  %v13562_v42 = vrot.slane %v11729_v56, 4  ;;  %v4062_v2 = vadd.f32 %v3990_v30, %v13479_v3  ;;  %v13564_v17 = vmax.f32 %v13563_v44, 0.0  ;;  %v13565_v4 = vld [vmem:[#allocation70_spill] sm:$0xff] }
 0x3c6   :  { %v4154_v46 = vmax.f32 %v4082_v45, 0.0  ;;  %5061 = vmatpush1.bf16.msra.mxu1 %v8115_v23  ;;  %v4129_v20 = vmax.f32 %v4057_v37, 0.0  ;;  %4707 = vmatmul.mubr.bf16.vlgmr.msra.gmra.mxu0 %v4397_v10  ;;  %v3991_v55 = vadd.f32 %v3830_v39, %v13565_v4  ;;  %v4155_v43 = vmax.f32 %v4083_v28, 0.0  ;;  %v13567_v45 = vld [vmem:[#allocation81_spill] sm:$0xff]  ;;  %v13569_v10 = vld [vmem:[#allocation10_spill] sm:$0xff] }
 0x3c7   :  { %v11933_v53 = vsel %vm4394_vm1, %v13562_v42, %v4406_v24  ;;  %v4200_v26 = vmax.f32 %v13564_v17, %v4128_v9  ;;  %5134 = vmatpush1.bf16.msra.mxu0 %v8118_v33  ;;  %v4134_v52 = vmax.f32 %v4062_v2, 0.0  ;;  %v3996_v30 = vadd.f32 %v3832_v49, %v13566_v25  ;;  %5062 = vmatprep.subr.bf16.mxu1 %v8123_v5  ;;  %v8132_v39 = vld [vmem:[#allocation4 + $0x154] ss:$8 sps:$4 sm:$0xff]   ;;  %v13573_v49 = vld [vmem:[#allocation73_spill] sm:$0xff] }
 0x3c8   :  { %4716 = vmatprep.mubr.bf16.mxu0 %v11933_v53  ;;  %v4408_v15 = vrot.slane %v11892_v16, 4  ;;  %v13568_v23 = vmax.f32 %v13567_v45, 0.0  ;;  %v13570_v42 = vmax.f32 %v13569_v10, 0.0  ;;  %5135 = vmatprep.subr.bf16.mxu0 %v8126_v12  ;;  %v4404_v33 = vrot.slane %v11901_v63, 4  ;;  %v13571_v28 = vld [vmem:[#allocation82_spill] sm:$0xff]  ;;  %v3842_v45 = vpop.f32.mrf.mxu0  ;;  %v13576_v12 = vld [vmem:[#allocation84_spill] sm:$0xff] }
 0x3c9   :  { %v4251_v9 = vmax.f32 %v4200_v26, %v11829_v27  ;;  %v13572_v2 = vmax.f32 %v13571_v28, 0.0  ;;  %v13574_v4 = vmax.f32 %v13573_v49, 0.0  ;;  %v4063_v27 = vadd.f32 %v3991_v55, %v13482_v18  ;;  %v13578_v28 = vld [vmem:[#allocation11_spill] sm:$0xff] }
 0x3ca   :  { %v11945_v37 = vmax.f32 %v13568_v23, %v4154_v46  ;;  %v4201_v44 = vmax.f32 %v13570_v42, %v4129_v20  ;;  %v13575_v26 = vmov 0   ;;  %v4068_v46 = vadd.f32 %v3996_v30, %v13479_v3  ;;  %5063 = vmatpush1.bf16.msra.mxu1 %v8121_v50  ;;  %v8130_v30 = vld [vmem:[#allocation4 + $0x150] ss:$8 sps:$4 sm:$0xff]   ;;  %v8135_v50 = vld [vmem:[#allocation4 + $0x44] ss:$8 sps:$4 sm:$0xff]   ;;  %v3844_v49 = vpop.f32.mrf.mxu0 }
 0x3cb   :  { %v11952_v17 = vmax.f32 %v13572_v2, %v4155_v43  ;;  %v4206_v25 = vmax.f32 %v13574_v4, %v4134_v52  ;;  %4789 = vmatprep.mubr.bf16.mxu1 %v13575_v26  ;;  %v11959_v20 = vpack.c.bf16 %v4251_v9, %v4248_v48  ;;  %v8127_v43 = vld [vmem:[#allocation4 + $0x50] ss:$8 sps:$4 sm:$0xff]   ;;  %v11965_v10 = vsel %vm4394_vm1, %v4402_v47, %v4408_v15  ;;  %v13580_v2 = vld [vmem:[#allocation12_spill] sm:$0xff] }
 0x3cc   :  { %v4262_v5 = vmax.f32 %v11623_v61, %v11945_v37  ;;  %v4249_v23 = vmax.f32 %v13576_v12, %v4201_v44  ;;  %v4135_v55 = vmax.f32 %v4063_v27, 0.0  ;;  %5136 = vmatpush1.bf16.msra.mxu0 %v8124_v1  ;;  %5064 = vmatprep.subr.bf16.mxu1 %v8129_v40  ;;  %v4140_v42 = vmax.f32 %v4068_v46, 0.0  ;;  %v13577_v1 = vld [vmem:[#allocation74_spill] sm:$0xff]  ;;  %v8138_v44 = vld [vmem:[#allocation4 + $0x144] ss:$8 sps:$4 sm:$0xff]   ;;  %v13583_v27 = vld [vmem:[#allocation23_spill] sm:$0xff] }
 0x3cd   :  { %v4254_v52 = vmax.f32 %v4206_v25, %v11847_v8  ;;  %v3997_v48 = vadd.f32 %v11890_v13, %v11615_v41  ;;  %5137 = vmatprep.subr.bf16.mxu0 %v8132_v39  ;;  %v11978_v47 = vsel %vm4394_vm1, %v4396_v51, %v4404_v33  ;;  %v4412_v8 = vrot.slane %v11833_v35, 4  ;;  %4790 = vmatmul.mubr.bf16.gmra.mxu1 %v11965_v10  ;;  %v13582_v39 = vld [vmem:[#allocation37_spill] sm:$0xff]  ;;  %v8153_v61 = vld [vmem:[#allocation4 + $0x14] ss:$8 sps:$4 sm:$0xff]  }
 0x3ce   :  { %v11973_v9 = vpack.c.bf16 %v4249_v23, %v4246_v38  ;;  %v4002_v40 = vadd.f32 %v11909_v29, %v13577_v1  ;;  %v13579_v41 = vmax.f32 %v13578_v28, 0.0  ;;  %v13581_v19 = vmax.f32 %v13580_v2, 0.0  ;;  %5065 = vmatpush1.bf16.msra.mxu1 %v8127_v43  ;;  %4717 = vmatmul.mubr.bf16.gmra.mxu0 %v11978_v47  ;;  %v8133_v4 = vld [vmem:[#allocation4 + $0x40] ss:$8 sps:$4 sm:$0xff]   ;;  %v13584_v23 = vld [vmem:[#allocation122_spill] sm:$0xff] }
 0x3cf   :  { %v4069_v38 = vadd.f32 %v3997_v48, %v13482_v18  ;;  %v4003_v51 = vadd.f32 %v3840_v58, %v13582_v39  ;;  %v11996_v29 = vsel %vm4394_vm1, %v4406_v24, %v4412_v8  ;;  %v4008_v46 = vadd.f32 %v3842_v45, %v13583_v27  ;;  %v8141_v24 = vld [vmem:[#allocation4 + $0x34] ss:$8 sps:$4 sm:$0xff]   ;;  %5066 = vmatprep.subr.bf16.mxu1 %v8135_v50 }
 0x3d0   :  { %v4207_v13 = vmax.f32 %v13579_v41, %v4135_v55  ;;  %v4212_v21 = vmax.f32 %v13581_v19, %v4140_v42  ;;  %v4074_v25 = vadd.f32 %v4002_v40, %v13479_v3  ;;  %v4414_v12 = vrot.slane %v11959_v20, 4  ;;  %5138 = vmatpush1.bf16.msra.mxu0 %v8130_v30  ;;  %4726 = vmatprep.mubr.bf16.mxu0 %v11996_v29  ;;  %v8136_v42 = vld [vmem:[#allocation4 + $0x140] ss:$8 sps:$4 sm:$0xff]   ;;  %v8144_v28 = vld [vmem:[#allocation4 + $0x134] ss:$8 sps:$4 sm:$0xff]  }
 0x3d1   :  { %v4141_v55 = vmax.f32 %v4069_v38, 0.0  ;;  %v4075_v48 = vadd.f32 %v4003_v51, %v13482_v18  ;;  %5139 = vmatprep.subr.bf16.mxu0 %v8138_v44  ;;  %v4080_v40 = vadd.f32 %v4008_v46, %v13479_v3  ;;  %v13585_v41 = vld [vmem:[#allocation13_spill] sm:$0xff]  ;;  %4799 = vmatprep.mubr.bf16.mxu1 %v13575_v26  ;;  %v4410_v50 = vrot.slane %v11973_v9, 4  ;;  %v8139_v38 = vld [vmem:[#allocation4 + $0x30] ss:$8 sps:$4 sm:$0xff]  }
 0x3d2   :  { %v4252_v58 = vmax.f32 %v13584_v23, %v4207_v13  ;;  %v4257_v43 = vmax.f32 %v4212_v21, %v11875_v31  ;;  %v4146_v1 = vmax.f32 %v4074_v25, 0.0  ;;  %v12009_v45 = vsel %vm4394_vm1, %v4408_v15, %v4414_v12  ;;  %v13587_v44 = vld [vmem:[#allocation17_spill] sm:$0xff]  ;;  %5067 = vmatpush1.bf16.msra.mxu1 %v8133_v4  ;;  %v8142_v46 = vld [vmem:[#allocation4 + $0x130] ss:$8 sps:$4 sm:$0xff]   ;;  %v13592_v4 = vld [vmem:[#allocation28_spill] sm:$0xff] }
 0x3d3   :  { %v4009_v31 = vadd.f32 %v3844_v49, %v11618_v54  ;;  %v13586_v13 = vmax.f32 %v13585_v41, 0.0  ;;  %v4147_v19 = vmax.f32 %v4075_v48, 0.0  ;;  %v13588_v3 = vmax.f32 %v13587_v44, 0.0  ;;  %v13590_v49 = vld [vmem:[#allocation22_spill] sm:$0xff]  ;;  %5068 = vmatprep.subr.bf16.mxu1 %v8141_v24  ;;  %v8150_v41 = vld [vmem:[#allocation4 + $0x124] ss:$8 sps:$4 sm:$0xff]  }
 0x3d4   :  { %v12012_v30 = vpack.c.bf16 %v4257_v43, %v4254_v52  ;;  %v4152_v15 = vmax.f32 %v4080_v40, 0.0  ;;  %v4418_v54 = vrot.slane %v11894_v14, 4  ;;  %v13589_v52 = vld [vmem:[#allocation50_spill] sm:$0xff]  ;;  %v13591_v25 = vmax.f32 %v13590_v49, 0.0  ;;  %5140 = vmatpush1.bf16.msra.mxu0 %v8136_v42 }
 0x3d5   :  { %v4213_v2 = vmax.f32 %v13586_v13, %v4141_v55  ;;  %v4218_v21 = vmax.f32 %v13588_v3, %v4146_v1  ;;  %v4081_v39 = vadd.f32 %v4009_v31, %v13482_v18  ;;  %v12028_v23 = vsel %vm4394_vm1, %v4404_v33, %v4410_v50  ;;  %v13593_v18 = vld [vmem:[#allocation25_spill] sm:$0xff]  ;;  %5141 = vmatprep.subr.bf16.mxu0 %v8144_v28  ;;  %v8168_v49 = vld [vmem:[#allocation4 + $0x374] ss:$8 sps:$4 sm:$0xff]  }
 0x3d6   :  { %v4219_v27 = vmax.f32 %v13591_v25, %v4147_v19  ;;  %v2392_v43 = vmax.f32 %v13592_v4, 0.0  ;;  %v13594_v48 = vmax.f32 %v13593_v18, 0.0  ;;  %v8147_v31 = vld [vmem:[#allocation4 + $0x24] ss:$8 sps:$4 sm:$0xff]   ;;  %4800 = vmatmul.mubr.bf16.gmra.mxu1 %v12009_v45  ;;  %4727 = vmatmul.mubr.bf16.gmra.mxu0 %v12028_v23  ;;  %v4420_v28 = vrot.slane %v12012_v30, 4 }
 0x3d7   :  { %v4255_v51 = vmax.f32 %v13589_v52, %v4213_v2  ;;  %v4260_v55 = vmax.f32 %v4218_v21, %v11898_v57  ;;  %v4153_v40 = vmax.f32 %v4081_v39, 0.0  ;;  %v12044_v57 = vpack.c.bf16 %v4262_v5, %v4259_v11  ;;  %5069 = vmatpush1.bf16.msra.mxu1 %v8139_v38  ;;  %4809 = vmatprep.mubr.bf16.mxu1 %v13575_v26  ;;  %v8151_v19 = vld [vmem:[#allocation4 + $0x10] ss:$8 sps:$4 sm:$0xff]   ;;  %v8159_v3 = vld [vmem:[#allocation4 + $0x4] ss:$8 sps:$4 sm:$0xff]  }
 0x3d8   :  { %v4224_v1 = vmax.f32 %v13594_v48, %v4152_v15  ;;  %v4258_v42 = vmax.f32 %v11564_v0, %v4219_v27  ;;  %v12051_v0 = vsel %vm4394_vm1, %v4412_v8, %v4418_v54  ;;  %5142 = vmatpush1.bf16.msra.mxu0 %v8142_v46  ;;  %5070 = vmatprep.subr.bf16.mxu1 %v8147_v31  ;;  %v8154_v21 = vld [vmem:[#allocation4 + $0x110] ss:$8 sps:$4 sm:$0xff]   ;;  %v8171_v27 = vld [vmem:[#allocation4 + $0xe4] ss:$8 sps:$4 sm:$0xff]   ;;  %v8169_v4 = vld [vmem:[#allocation4 + $0xe0] ss:$8 sps:$4 sm:$0xff]  }
 0x3d9   :  { %v12034_v13 = vpack.c.bf16 %v4255_v51, %v4252_v58  ;;  %v4225_v24 = vmax.f32 %v2392_v43, %v4153_v40  ;;  %v8145_v58 = vld [vmem:[#allocation4 + $0x20] ss:$8 sps:$4 sm:$0xff]   ;;  %4736 = vmatprep.mubr.bf16.mxu0 %v12051_v0  ;;  %v5711_v62 = vrot.slane %v12044_v57, 4  ;;  %5143 = vmatprep.subr.bf16.mxu0 %v8150_v41  ;;  %v12069_v44 = vsel %vm4394_vm1, %v4414_v12, %v4420_v28  ;;  %v8163_v25 = vld [vmem:[#allocation4 + $0xf0] ss:$8 sps:$4 sm:$0xff]  }
 0x3da   :  { %v4263_v33 = vmax.f32 %v4224_v1, %v11952_v17  ;;  %v8156_v17 = vld [vmem:[#allocation4 + $0x114] ss:$8 sps:$4 sm:$0xff]   ;;  %v8157_v12 = vld [vmem:[#allocation4] ss:$8 sps:$4 sm:$0xff]   ;;  %v8174_v46 = vld [vmem:[#allocation4 + $0x364] ss:$8 sps:$4 sm:$0xff]  }
 0x3db   :  { %v4261_v37 = vmax.f32 %v11597_v34, %v4225_v24  ;;  %v4416_v5 = vrot.slane %v12034_v13, 4  ;;  %v12062_v8 = vsel %vm4394_vm1, %v4418_v54, %v5711_v62  ;;  %5071 = vmatpush1.bf16.msra.mxu1 %v8145_v58  ;;  %v8162_v54 = vld [vmem:[#allocation4 + $0x104] ss:$8 sps:$4 sm:$0xff]   ;;  %v8160_v51 = vld [vmem:[#allocation4 + $0x100] ss:$8 sps:$4 sm:$0xff]  }
 0x3dc   :  { %v12056_v11 = vpack.c.bf16 %v4263_v33, %v4260_v55  ;;  %5144 = vmatpush1.bf16.msra.mxu0 %v8148_v6  ;;  %5072 = vmatprep.subr.bf16.mxu1 %v8153_v61  ;;  %v8177_v43 = vld [vmem:[#allocation4 + $0xd4] ss:$8 sps:$4 sm:$0xff]   ;;  %v8172_v55 = vld [vmem:[#allocation4 + $0x360] ss:$8 sps:$4 sm:$0xff]   ;;  %v8175_v48 = vld [vmem:[#allocation4 + $0xd0] ss:$8 sps:$4 sm:$0xff]  }
 0x3dd   :  { %v12064_v2 = vpack.c.bf16 %v4261_v37, %v4258_v42  ;;  %5145 = vmatprep.subr.bf16.mxu0 %v8156_v17  ;;  %v12073_v38 = vsel %vm4394_vm1, %v4410_v50, %v4416_v5  ;;  %v8165_v50 = vld [vmem:[#allocation4 + $0xf4] ss:$8 sps:$4 sm:$0xff]   ;;  %v8183_v1 = vld [vmem:[#allocation4 + $0xc4] ss:$8 sps:$4 sm:$0xff]   ;;  %v8178_v40 = vld [vmem:[#allocation4 + $0x350] ss:$8 sps:$4 sm:$0xff]  }
 0x3de   :  { %v5713_v34 = vrot.slane %v12056_v11, 4  ;;  %4810 = vmatmul.mubr.bf16.gmra.mxu1 %v12069_v44  ;;  %4737 = vmatmul.mubr.bf16.gmra.mxu0 %v12073_v38  ;;  %v8180_v18 = vld [vmem:[#allocation4 + $0x354] ss:$8 sps:$4 sm:$0xff]   ;;  %v8186_v31 = vld [vmem:[#allocation4 + $0x344] ss:$8 sps:$4 sm:$0xff]  }
 0x3df   :  { %v5709_v39 = vrot.slane %v12064_v2, 4  ;;  %5073 = vmatpush1.bf16.msra.mxu1 %v8151_v19  ;;  %5092 = vmatprep.mubr.bf16.mxu1 %v11696_v7  ;;  %v8166_v7 = vld [vmem:[#allocation4 + $0x370] ss:$8 sps:$4 sm:$0xff]   ;;  %v8181_v41 = vld [vmem:[#allocation4 + $0xc0] ss:$8 sps:$4 sm:$0xff]  }
 0x3e0   :  { %v12076_v15 = vsel %vm4394_vm1, %v4420_v28, %v5713_v34  ;;  %5074 = vmatprep.subr.bf16.mxu1 %v8159_v3  ;;  %5146 = vmatpush1.bf16.msra.mxu0 %v8154_v21  ;;  %v8184_v42 = vld [vmem:[#allocation4 + $0x340] ss:$8 sps:$4 sm:$0xff]   ;;  %v8192_v33 = vld [vmem:[#allocation4 + $0x334] ss:$8 sps:$4 sm:$0xff]   ;;  %v8187_v24 = vld [vmem:[#allocation4 + $0xb0] ss:$8 sps:$4 sm:$0xff]  }
 0x3e1   :  { %v12082_v52 = vsel %vm4394_vm1, %v4416_v5, %v5709_v39  ;;  %5165 = vmatprep.mubr.bf16.mxu0 %v13575_v26  ;;  %5147 = vmatprep.subr.bf16.mxu0 %v8162_v54  ;;  %v8195_v58 = vld [vmem:[#allocation4 + $0xa4] ss:$8 sps:$4 sm:$0xff]   ;;  %v8190_v28 = vld [vmem:[#allocation4 + $0x330] ss:$8 sps:$4 sm:$0xff]   ;;  %v8193_v61 = vld [vmem:[#allocation4 + $0xa0] ss:$8 sps:$4 sm:$0xff]  }
 0x3e2   :  { %v8198_v6 = vld [vmem:[#allocation4 + $0x324] ss:$8 sps:$4 sm:$0xff]   ;;  %v8201_v62 = vld [vmem:[#allocation4 + $0x94] ss:$8 sps:$4 sm:$0xff]   ;;  %v8196_v37 = vld [vmem:[#allocation4 + $0x320] ss:$8 sps:$4 sm:$0xff]  }
 0x3e3   :  { %5075 = vmatpush1.bf16.msra.mxu1 %v8157_v12  ;;  %v8204_v17 = vld [vmem:[#allocation4 + $0x314] ss:$8 sps:$4 sm:$0xff]   ;;  %v8199_v5 = vld [vmem:[#allocation4 + $0x90] ss:$8 sps:$4 sm:$0xff]   ;;  %v8207_v19 = vld [vmem:[#allocation4 + $0x84] ss:$8 sps:$4 sm:$0xff]  }
 0x3e4   :  { %5076 = vmatprep.subr.bf16.mxu1 %v8165_v50  ;;  %5148 = vmatpush1.bf16.msra.mxu0 %v8160_v51  ;;  %v8202_v34 = vld [vmem:[#allocation4 + $0x310] ss:$8 sps:$4 sm:$0xff]   ;;  %v8210_v3 = vld [vmem:[#allocation4 + $0x304] ss:$8 sps:$4 sm:$0xff]   ;;  %v8205_v21 = vld [vmem:[#allocation4 + $0x80] ss:$8 sps:$4 sm:$0xff]  }
 0x3e5   :  { %5495 = vmatprep.subr.bf16.mxu0 %v8168_v49  ;;  %v8213_v39 = vld [vmem:[#allocation4 + $0x474] ss:$8 sps:$4 sm:$0xff]   ;;  %v8208_v54 = vld [vmem:[#allocation4 + $0x300] ss:$8 sps:$4 sm:$0xff]   ;;  %v8211_v50 = vld [vmem:[#allocation4 + $0x470] ss:$8 sps:$4 sm:$0xff]  }
 0x3e6   :  { %v8216_v12 = vld [vmem:[#allocation4 + $0x3f4] ss:$8 sps:$4 sm:$0xff]   ;;  %v8219_v51 = vld [vmem:[#allocation4 + $0x464] ss:$8 sps:$4 sm:$0xff]   ;;  %v8214_v49 = vld [vmem:[#allocation4 + $0x3f0] ss:$8 sps:$4 sm:$0xff]  }
 0x3e7   :  { %5077 = vmatpush2.bf16.msra.mxu1 %v8163_v25  ;;  %5166 = vmatmul.mubr.bf16.vlgmr.msra.gmra.mxu0 %v11771_v32  ;;  %v8189_v32 = vld [vmem:[#allocation4 + $0xb4] ss:$8 sps:$4 sm:$0xff]   ;;  %v8222_v25 = vld [vmem:[#allocation4 + $0x3e4] ss:$8 sps:$4 sm:$0xff]  }
 0x3e8   :  { %5078 = vmatprep.subr.bf16.mxu1 %v8171_v27  ;;  %5496 = vmatpush1.bf16.msra.mxu0 %v8166_v7  ;;  %v8217_v27 = vld [vmem:[#allocation4 + $0x460] ss:$8 sps:$4 sm:$0xff]   ;;  %v8225_v7 = vld [vmem:[#allocation4 + $0x454] ss:$8 sps:$4 sm:$0xff]  }
 0x3e9   :  { %5175 = vmatprep.mubr.bf16.mxu0 %v13575_v26  ;;  %5497 = vmatprep.subr.bf16.mxu0 %v8174_v46  ;;  %v8220_v46 = vld [vmem:[#allocation4 + $0x3e0] ss:$8 sps:$4 sm:$0xff]  }
 0x3eb   :  { %5079 = vmatpush2.bf16.msra.mxu1 %v8169_v4  ;;  %v8228_v4 = vld [vmem:[#allocation4 + $0x3d4] ss:$8 sps:$4 sm:$0xff]  }
 0x3ec   :  { %5080 = vmatprep.subr.bf16.mxu1 %v8177_v43  ;;  %5498 = vmatpush1.bf16.msra.mxu0 %v8172_v55  ;;  %v8223_v43 = vld [vmem:[#allocation4 + $0x450] ss:$8 sps:$4 sm:$0xff]   ;;  %v8231_v55 = vld [vmem:[#allocation4 + $0x444] ss:$8 sps:$4 sm:$0xff]  }
 0x3ed   :  { %5499 = vmatprep.subr.bf16.mxu0 %v8180_v18  ;;  %v8226_v18 = vld [vmem:[#allocation4 + $0x3d0] ss:$8 sps:$4 sm:$0xff]  }
 0x3ef   :  { %5081 = vmatpush2.bf16.msra.mxu1 %v8175_v48  ;;  %5176 = vmatmul.mubr.bf16.gmra.mxu0 %v11823_v22  ;;  %v8237_v48 = vld [vmem:[#allocation4 + $0x434] ss:$8 sps:$4 sm:$0xff]  }
 0x3f0   :  { %5082 = vmatprep.subr.bf16.mxu1 %v8183_v1  ;;  %5500 = vmatpush1.bf16.msra.mxu0 %v8178_v40  ;;  %v8232_v1 = vld [vmem:[#allocation4 + $0x3c0] ss:$8 sps:$4 sm:$0xff]   ;;  %v8240_v40 = vld [vmem:[#allocation4 + $0x3b4] ss:$8 sps:$4 sm:$0xff]  }
 0x3f1   :  { %5185 = vmatprep.mubr.bf16.mxu0 %v13575_v26  ;;  %5501 = vmatprep.subr.bf16.mxu0 %v8186_v31  ;;  %v8235_v31 = vld [vmem:[#allocation4 + $0x430] ss:$8 sps:$4 sm:$0xff]  }
 0x3f3   :  { %5083 = vmatpush2.bf16.msra.mxu1 %v8181_v41  ;;  %v8243_v41 = vld [vmem:[#allocation4 + $0x424] ss:$8 sps:$4 sm:$0xff]  }
 0x3f4   :  { %5084 = vmatprep.subr.bf16.mxu1 %v8189_v32  ;;  %5502 = vmatpush1.bf16.msra.mxu0 %v8184_v42  ;;  %v8238_v32 = vld [vmem:[#allocation4 + $0x3b0] ss:$8 sps:$4 sm:$0xff]   ;;  %v8246_v42 = vld [vmem:[#allocation4 + $0x3a4] ss:$8 sps:$4 sm:$0xff]  }
 0x3f5   :  { %5503 = vmatprep.subr.bf16.mxu0 %v8192_v33  ;;  %v8241_v33 = vld [vmem:[#allocation4 + $0x420] ss:$8 sps:$4 sm:$0xff]  }
 0x3f7   :  { %5085 = vmatpush2.bf16.msra.mxu1 %v8187_v24  ;;  %5186 = vmatmul.mubr.bf16.gmra.mxu0 %v11892_v16  ;;  %v8249_v24 = vld [vmem:[#allocation4 + $0x414] ss:$8 sps:$4 sm:$0xff]  }
 0x3f8   :  { %5086 = vmatprep.subr.bf16.mxu1 %v8195_v58  ;;  %5504 = vmatpush1.bf16.msra.mxu0 %v8190_v28  ;;  %v8244_v58 = vld [vmem:[#allocation4 + $0x3a0] ss:$8 sps:$4 sm:$0xff]   ;;  %v8252_v28 = vld [vmem:[#allocation4 + $0x394] ss:$8 sps:$4 sm:$0xff]  }
 0x3f9   :  { %5195 = vmatprep.mubr.bf16.mxu0 %v13575_v26  ;;  %5505 = vmatprep.subr.bf16.mxu0 %v8198_v6  ;;  %v8247_v6 = vld [vmem:[#allocation4 + $0x410] ss:$8 sps:$4 sm:$0xff]  }
 0x3fb   :  { %5087 = vmatpush2.bf16.msra.mxu1 %v8193_v61  ;;  %v8255_v61 = vld [vmem:[#allocation4 + $0x404] ss:$8 sps:$4 sm:$0xff]  }
 0x3fc   :  { %5088 = vmatprep.subr.bf16.mxu1 %v8201_v62  ;;  %5506 = vmatpush1.bf16.msra.mxu0 %v8196_v37  ;;  %v8250_v62 = vld [vmem:[#allocation4 + $0x390] ss:$8 sps:$4 sm:$0xff]   ;;  %v8258_v37 = vld [vmem:[#allocation4 + $0x384] ss:$8 sps:$4 sm:$0xff]  }
 0x3fd   :  { %5507 = vmatprep.subr.bf16.mxu0 %v8204_v17  ;;  %v8253_v17 = vld [vmem:[#allocation4 + $0x400] ss:$8 sps:$4 sm:$0xff]  }
 0x3ff   :  { %5089 = vmatpush2.bf16.msra.mxu1 %v8199_v5  ;;  %5196 = vmatmul.mubr.bf16.gmra.mxu0 %v11959_v20  ;;  %v8261_v5 = vld [vmem:[#allocation4 + $0x4f4] ss:$8 sps:$4 sm:$0xff]  }
 0x400   :  { %5090 = vmatprep.subr.bf16.mxu1 %v8207_v19  ;;  %5508 = vmatpush1.bf16.msra.mxu0 %v8202_v34  ;;  %v8256_v19 = vld [vmem:[#allocation4 + $0x380] ss:$8 sps:$4 sm:$0xff]   ;;  %v8264_v34 = vld [vmem:[#allocation4 + $0x5f4] ss:$8 sps:$4 sm:$0xff]  }
 0x401   :  { %5527 = vmatprep.mubr.bf16.mxu0 %v11729_v56  ;;  %5509 = vmatprep.subr.bf16.mxu0 %v8210_v3  ;;  %v8259_v3 = vld [vmem:[#allocation4 + $0x4f0] ss:$8 sps:$4 sm:$0xff]  }
 0x403   :  { %5091 = vmatpush2.bf16.msra.mxu1 %v8205_v21  ;;  %v8267_v21 = vld [vmem:[#allocation4 + $0x4e4] ss:$8 sps:$4 sm:$0xff]  }
 0x404   :  { %5568 = vmatprep.subr.bf16.mxu1 %v8213_v39  ;;  %5510 = vmatpush1.bf16.msra.mxu0 %v8208_v54  ;;  %v8262_v39 = vld [vmem:[#allocation4 + $0x5f0] ss:$8 sps:$4 sm:$0xff]   ;;  %v8270_v54 = vld [vmem:[#allocation4 + $0x5e4] ss:$8 sps:$4 sm:$0xff]  }
 0x405   :  { %5511 = vmatprep.subr.bf16.mxu0 %v8216_v12  ;;  %v8265_v12 = vld [vmem:[#allocation4 + $0x4e0] ss:$8 sps:$4 sm:$0xff]  }
 0x406   :  { %5093 = vmatmul.mubr.bf16.vlgmr.msra.gmra.mxu1 %v11775_v60  ;;  %v8234_v60 = vld [vmem:[#allocation4 + $0x3c4] ss:$8 sps:$4 sm:$0xff]  }
 0x407   :  { %5102 = vmatprep.mubr.bf16.mxu1 %v11729_v56  ;;  %5569 = vmatpush1.bf16.msra.mxu1 %v8211_v50  ;;  %v8229_v56 = vld [vmem:[#allocation4 + $0x440] ss:$8 sps:$4 sm:$0xff]   ;;  %v8273_v50 = vld [vmem:[#allocation4 + $0x4d4] ss:$8 sps:$4 sm:$0xff]  }
 0x408   :  { %5570 = vmatprep.subr.bf16.mxu1 %v8219_v51  ;;  %5512 = vmatpush2.bf16.msra.mxu0 %v8214_v49  ;;  %v8268_v51 = vld [vmem:[#allocation4 + $0x5e0] ss:$8 sps:$4 sm:$0xff]   ;;  %v8276_v49 = vld [vmem:[#allocation4 + $0x5d4] ss:$8 sps:$4 sm:$0xff]  }
 0x409   :  { %5513 = vmatprep.subr.bf16.mxu0 %v8222_v25  ;;  %v8271_v25 = vld [vmem:[#allocation4 + $0x4d0] ss:$8 sps:$4 sm:$0xff]  }
 0x40b   :  { %5571 = vmatpush1.bf16.msra.mxu1 %v8217_v27  ;;  %v8274_v27 = vld [vmem:[#allocation4 + $0x5d0] ss:$8 sps:$4 sm:$0xff]  }
 0x40c   :  { %5572 = vmatprep.subr.bf16.mxu1 %v8225_v7  ;;  %5514 = vmatpush2.bf16.msra.mxu0 %v8220_v46  ;;  %v8282_v7 = vld [vmem:[#allocation4 + $0x5c4] ss:$8 sps:$4 sm:$0xff]   ;;  %v8285_v46 = vld [vmem:[#allocation4 + $0x4b4] ss:$8 sps:$4 sm:$0xff]  }
 0x40d   :  { %5515 = vmatprep.subr.bf16.mxu0 %v8228_v4  ;;  %v8280_v4 = vld [vmem:[#allocation4 + $0x5c0] ss:$8 sps:$4 sm:$0xff]  }
 0x40e   :  { %5103 = vmatmul.mubr.bf16.gmra.mxu1 %v11850_v59 }
 0x40f   :  { %5112 = vmatprep.mubr.bf16.mxu1 %v11773_v36  ;;  %5573 = vmatpush1.bf16.msra.mxu1 %v8223_v43  ;;  %v8288_v43 = vld [vmem:[#allocation4 + $0x5b4] ss:$8 sps:$4 sm:$0xff]  }
 0x410   :  { %5574 = vmatprep.subr.bf16.mxu1 %v8231_v55  ;;  %5516 = vmatpush2.bf16.msra.mxu0 %v8226_v18  ;;  %v8283_v55 = vld [vmem:[#allocation4 + $0x4b0] ss:$8 sps:$4 sm:$0xff]   ;;  %v8291_v18 = vld [vmem:[#allocation4 + $0x4a4] ss:$8 sps:$4 sm:$0xff]  }
 0x411   :  { %5517 = vmatprep.subr.bf16.mxu0 %v8234_v60  ;;  %v8286_v60 = vld [vmem:[#allocation4 + $0x5b0] ss:$8 sps:$4 sm:$0xff]  }
 0x413   :  { %5575 = vmatpush1.bf16.msra.mxu1 %v8229_v56  ;;  %v8294_v56 = vld [vmem:[#allocation4 + $0x5a4] ss:$8 sps:$4 sm:$0xff]  }
 0x414   :  { %5576 = vmatprep.subr.bf16.mxu1 %v8237_v48  ;;  %5518 = vmatpush2.bf16.msra.mxu0 %v8232_v1  ;;  %v8289_v48 = vld [vmem:[#allocation4 + $0x4a0] ss:$8 sps:$4 sm:$0xff]   ;;  %v8297_v1 = vld [vmem:[#allocation4 + $0x494] ss:$8 sps:$4 sm:$0xff]  }
 0x415   :  { %5519 = vmatprep.subr.bf16.mxu0 %v8240_v40  ;;  %v8292_v40 = vld [vmem:[#allocation4 + $0x5a0] ss:$8 sps:$4 sm:$0xff]  }
 0x416   :  { %5113 = vmatmul.mubr.bf16.gmra.mxu1 %v11901_v63 }
 0x417   :  { %5122 = vmatprep.mubr.bf16.mxu1 %v11833_v35  ;;  %5577 = vmatpush1.bf16.msra.mxu1 %v8235_v31  ;;  %v8300_v31 = vld [vmem:[#allocation4 + $0x594] ss:$8 sps:$4 sm:$0xff]  }
 0x418   :  { %5578 = vmatprep.subr.bf16.mxu1 %v8243_v41  ;;  %5520 = vmatpush2.bf16.msra.mxu0 %v8238_v32  ;;  %v8295_v41 = vld [vmem:[#allocation4 + $0x490] ss:$8 sps:$4 sm:$0xff]   ;;  %v8303_v32 = vld [vmem:[#allocation4 + $0x484] ss:$8 sps:$4 sm:$0xff]  }
 0x419   :  { %5521 = vmatprep.subr.bf16.mxu0 %v8246_v42  ;;  %v8298_v42 = vld [vmem:[#allocation4 + $0x590] ss:$8 sps:$4 sm:$0xff]  }
 0x41b   :  { %5579 = vmatpush1.bf16.msra.mxu1 %v8241_v33  ;;  %v8306_v33 = vld [vmem:[#allocation4 + $0x584] ss:$8 sps:$4 sm:$0xff]  }
 0x41c   :  { %5580 = vmatprep.subr.bf16.mxu1 %v8249_v24  ;;  %5522 = vmatpush2.bf16.msra.mxu0 %v8244_v58  ;;  %v8301_v24 = vld [vmem:[#allocation4 + $0x480] ss:$8 sps:$4 sm:$0xff]   ;;  %v8309_v58 = vld [vmem:[#allocation4 + $0x574] ss:$8 sps:$4 sm:$0xff]  }
 0x41d   :  { %5523 = vmatprep.subr.bf16.mxu0 %v8252_v28  ;;  %v8304_v28 = vld [vmem:[#allocation4 + $0x580] ss:$8 sps:$4 sm:$0xff]  }
 0x41e   :  { %5123 = vmatmul.mubr.bf16.gmra.mxu1 %v11973_v9 }
 0x41f   :  { %5581 = vmatpush1.bf16.msra.mxu1 %v8247_v6  ;;  %5600 = vmatprep.mubr.bf16.mxu1 %v13575_v26  ;;  %v8312_v6 = vld [vmem:[#allocation4 + $0x674] ss:$8 sps:$4 sm:$0xff]  }
 0x420   :  { %5582 = vmatprep.subr.bf16.mxu1 %v8255_v61  ;;  %5524 = vmatpush2.bf16.msra.mxu0 %v8250_v62  ;;  %v8307_v61 = vld [vmem:[#allocation4 + $0x570] ss:$8 sps:$4 sm:$0xff]   ;;  %v8315_v62 = vld [vmem:[#allocation4 + $0x564] ss:$8 sps:$4 sm:$0xff]  }
 0x421   :  { %5525 = vmatprep.subr.bf16.mxu0 %v8258_v37  ;;  %v8310_v37 = vld [vmem:[#allocation4 + $0x670] ss:$8 sps:$4 sm:$0xff]  }
 0x423   :  { %5583 = vmatpush1.bf16.msra.mxu1 %v8253_v17  ;;  %v8318_v17 = vld [vmem:[#allocation4 + $0x664] ss:$8 sps:$4 sm:$0xff]  }
 0x424   :  { %5958 = vmatprep.subr.bf16.mxu1 %v8261_v5  ;;  %5526 = vmatpush2.bf16.msra.mxu0 %v8256_v19  ;;  %v8321_v5 = vld [vmem:[#allocation4 + $0x554] ss:$8 sps:$4 sm:$0xff]   ;;  %v8316_v19 = vld [vmem:[#allocation4 + $0x660] ss:$8 sps:$4 sm:$0xff]  }
 0x425   :  { %6031 = vmatprep.subr.bf16.mxu0 %v8264_v34  ;;  %v8324_v34 = vld [vmem:[#allocation4 + $0x654] ss:$8 sps:$4 sm:$0xff]  }
 0x426   :  { %5601 = vmatmul.mubr.bf16.vlgmr.msra.gmra.mxu1 %v11823_v22  ;;  %v8279_v22 = vld [vmem:[#allocation4 + $0x4c4] ss:$8 sps:$4 sm:$0xff]  }
 0x427   :  { %5959 = vmatpush1.bf16.msra.mxu1 %v8259_v3  ;;  %5610 = vmatprep.mubr.bf16.mxu1 %v13575_v26  ;;  %v8319_v3 = vld [vmem:[#allocation4 + $0x550] ss:$8 sps:$4 sm:$0xff]  }
 0x428   :  { %5528 = vmatmul.mubr.bf16.vlgmr.msra.gmra.mxu0 %v11850_v59  ;;  %5960 = vmatprep.subr.bf16.mxu1 %v8267_v21  ;;  %v8277_v59 = vld [vmem:[#allocation4 + $0x4c0] ss:$8 sps:$4 sm:$0xff]   ;;  %v8327_v21 = vld [vmem:[#allocation4 + $0x544] ss:$8 sps:$4 sm:$0xff]  }
 0x429   :  { %5537 = vmatprep.mubr.bf16.mxu0 %v11773_v36  ;;  %6032 = vmatpush1.bf16.msra.mxu0 %v8262_v39  ;;  %v8322_v39 = vld [vmem:[#allocation4 + $0x650] ss:$8 sps:$4 sm:$0xff]  }
 0x42a   :  { %6033 = vmatprep.subr.bf16.mxu0 %v8270_v54  ;;  %v8330_v54 = vld [vmem:[#allocation4 + $0x644] ss:$8 sps:$4 sm:$0xff]  }
 0x42b   :  { %5961 = vmatpush1.bf16.msra.mxu1 %v8265_v12  ;;  %v8325_v12 = vld [vmem:[#allocation4 + $0x540] ss:$8 sps:$4 sm:$0xff]  }
 0x42c   :  { %5962 = vmatprep.subr.bf16.mxu1 %v8273_v50  ;;  %v8328_v50 = vld [vmem:[#allocation4 + $0x640] ss:$8 sps:$4 sm:$0xff]  }
 0x42d   :  { %6034 = vmatpush1.bf16.msra.mxu0 %v8268_v51  ;;  %v8336_v51 = vld [vmem:[#allocation4 + $0x634] ss:$8 sps:$4 sm:$0xff]  }
 0x42e   :  { %5611 = vmatmul.mubr.bf16.gmra.mxu1 %v11892_v16  ;;  %6035 = vmatprep.subr.bf16.mxu0 %v8276_v49  ;;  %v8331_v49 = vld [vmem:[#allocation4 + $0x530] ss:$8 sps:$4 sm:$0xff]  }
 0x42f   :  { %5963 = vmatpush1.bf16.msra.mxu1 %v8271_v25  ;;  %5620 = vmatprep.mubr.bf16.mxu1 %v13575_v26  ;;  %v8339_v25 = vld [vmem:[#allocation4 + $0x524] ss:$8 sps:$4 sm:$0xff]  }
 0x430   :  { %5538 = vmatmul.mubr.bf16.gmra.mxu0 %v11901_v63  ;;  %5964 = vmatprep.subr.bf16.mxu1 %v8279_v22  ;;  %v8334_v22 = vld [vmem:[#allocation4 + $0x630] ss:$8 sps:$4 sm:$0xff]  }
 0x431   :  { %5547 = vmatprep.mubr.bf16.mxu0 %v11833_v35  ;;  %6036 = vmatpush1.bf16.msra.mxu0 %v8274_v27  ;;  %v8342_v27 = vld [vmem:[#allocation4 + $0x624] ss:$8 sps:$4 sm:$0xff]  }
 0x432   :  { %6037 = vmatprep.subr.bf16.mxu0 %v8282_v7  ;;  %v8337_v7 = vld [vmem:[#allocation4 + $0x520] ss:$8 sps:$4 sm:$0xff]  }
 0x433   :  { %5965 = vmatpush1.bf16.msra.mxu1 %v8277_v59  ;;  %v8340_v59 = vld [vmem:[#allocation4 + $0x620] ss:$8 sps:$4 sm:$0xff]  }
 0x434   :  { %5966 = vmatprep.subr.bf16.mxu1 %v8285_v46  ;;  %v8348_v46 = vld [vmem:[#allocation4 + $0x614] ss:$8 sps:$4 sm:$0xff]  }
 0x435   :  { %6038 = vmatpush1.bf16.msra.mxu0 %v8280_v4  ;;  %v8343_v4 = vld [vmem:[#allocation4 + $0x510] ss:$8 sps:$4 sm:$0xff]  }
 0x436   :  { %5621 = vmatmul.mubr.bf16.gmra.mxu1 %v11959_v20  ;;  %6039 = vmatprep.subr.bf16.mxu0 %v8288_v43  ;;  %v8351_v43 = vld [vmem:[#allocation4 + $0x504] ss:$8 sps:$4 sm:$0xff]  }
 0x437   :  { %5967 = vmatpush1.bf16.msra.mxu1 %v8283_v55  ;;  %5630 = vmatprep.mubr.bf16.mxu1 %v13575_v26  ;;  %v8346_v55 = vld [vmem:[#allocation4 + $0x610] ss:$8 sps:$4 sm:$0xff]  }
 0x438   :  { %5548 = vmatmul.mubr.bf16.gmra.mxu0 %v11973_v9  ;;  %5968 = vmatprep.subr.bf16.mxu1 %v8291_v18  ;;  %v8354_v18 = vld [vmem:[#allocation4 + $0x604] ss:$8 sps:$4 sm:$0xff]  }
 0x439   :  { %5557 = vmatprep.mubr.bf16.mxu0 %v11894_v14  ;;  %6040 = vmatpush1.bf16.msra.mxu0 %v8286_v60  ;;  %v8349_v60 = vld [vmem:[#allocation4 + $0x500] ss:$8 sps:$4 sm:$0xff]  }
 0x43a   :  { %6041 = vmatprep.subr.bf16.mxu0 %v8294_v56  ;;  %v8352_v56 = vld [vmem:[#allocation4 + $0x600] ss:$8 sps:$4 sm:$0xff]  }
 0x43b   :  { %5969 = vmatpush1.bf16.msra.mxu1 %v8289_v48  ;;  %v8360_v48 = vld [vmem:[#allocation4 + $0x6f4] ss:$8 sps:$4 sm:$0xff]  }
 0x43c   :  { %5970 = vmatprep.subr.bf16.mxu1 %v8297_v1  ;;  %v8355_v1 = vld [vmem:[#allocation4 + $0x770] ss:$8 sps:$4 sm:$0xff]  }
 0x43d   :  { %6042 = vmatpush1.bf16.msra.mxu0 %v8292_v40  ;;  %v8363_v40 = vld [vmem:[#allocation4 + $0x764] ss:$8 sps:$4 sm:$0xff]  }
 0x43e   :  { %5631 = vmatmul.mubr.bf16.gmra.mxu1 %v12012_v30  ;;  %6043 = vmatprep.subr.bf16.mxu0 %v8300_v31  ;;  %v8358_v31 = vld [vmem:[#allocation4 + $0x6f0] ss:$8 sps:$4 sm:$0xff]  }
 0x43f   :  { %5971 = vmatpush1.bf16.msra.mxu1 %v8295_v41  ;;  %5990 = vmatprep.mubr.bf16.mxu1 %v11933_v53  ;;  %v8313_v53 = vld [vmem:[#allocation4 + $0x560] ss:$8 sps:$4 sm:$0xff]   ;;  %v8366_v41 = vld [vmem:[#allocation4 + $0x6e4] ss:$8 sps:$4 sm:$0xff]  }
 0x440   :  { %5558 = vmatmul.mubr.bf16.gmra.mxu0 %v12034_v13  ;;  %5972 = vmatprep.subr.bf16.mxu1 %v8303_v32  ;;  %v8369_v32 = vld [vmem:[#allocation4 + $0x754] ss:$8 sps:$4 sm:$0xff]  }
 0x441   :  { %6044 = vmatpush1.bf16.msra.mxu0 %v8298_v42  ;;  %6063 = vmatprep.mubr.bf16.mxu0 %v13575_v26  ;;  %v8372_v42 = vld [vmem:[#allocation4 + $0x6d4] ss:$8 sps:$4 sm:$0xff]  }
 0x442   :  { %6045 = vmatprep.subr.bf16.mxu0 %v8306_v33  ;;  %v8367_v33 = vld [vmem:[#allocation4 + $0x750] ss:$8 sps:$4 sm:$0xff]  }
 0x443   :  { %5973 = vmatpush1.bf16.msra.mxu1 %v8301_v24  ;;  %v8375_v24 = vld [vmem:[#allocation4 + $0x744] ss:$8 sps:$4 sm:$0xff]  }
 0x444   :  { %5974 = vmatprep.subr.bf16.mxu1 %v8309_v58  ;;  %v8370_v58 = vld [vmem:[#allocation4 + $0x6d0] ss:$8 sps:$4 sm:$0xff]  }
 0x445   :  { %6046 = vmatpush1.bf16.msra.mxu0 %v8304_v28  ;;  %v8381_v28 = vld [vmem:[#allocation4 + $0x734] ss:$8 sps:$4 sm:$0xff]  }
 0x446   :  { %6409 = vmatprep.subr.bf16.mxu0 %v8312_v6  ;;  %v8376_v6 = vld [vmem:[#allocation4 + $0x6c0] ss:$8 sps:$4 sm:$0xff]  }
 0x447   :  { %5975 = vmatpush2.bf16.msra.mxu1 %v8307_v61  ;;  %v8384_v61 = vld [vmem:[#allocation4 + $0x6b4] ss:$8 sps:$4 sm:$0xff]  }
 0x448   :  { %6064 = vmatmul.mubr.bf16.vlgmr.msra.gmra.mxu0 %v11965_v10  ;;  %5976 = vmatprep.subr.bf16.mxu1 %v8315_v62  ;;  %v8333_v10 = vld [vmem:[#allocation4 + $0x534] ss:$8 sps:$4 sm:$0xff]   ;;  %v8379_v62 = vld [vmem:[#allocation4 + $0x730] ss:$8 sps:$4 sm:$0xff]  }
 0x449   :  { %6410 = vmatpush1.bf16.msra.mxu0 %v8310_v37  ;;  %6073 = vmatprep.mubr.bf16.mxu0 %v13575_v26  ;;  %v8387_v37 = vld [vmem:[#allocation4 + $0x724] ss:$8 sps:$4 sm:$0xff]  }
 0x44a   :  { %6411 = vmatprep.subr.bf16.mxu0 %v8318_v17  ;;  %v8382_v17 = vld [vmem:[#allocation4 + $0x6b0] ss:$8 sps:$4 sm:$0xff]  }
 0x44b   :  { %5977 = vmatpush2.bf16.msra.mxu1 %v8313_v53  ;;  %v8393_v53 = vld [vmem:[#allocation4 + $0x714] ss:$8 sps:$4 sm:$0xff]  }
 0x44c   :  { %5978 = vmatprep.subr.bf16.mxu1 %v8321_v5  ;;  %v8388_v5 = vld [vmem:[#allocation4 + $0x6a0] ss:$8 sps:$4 sm:$0xff]  }
 0x44d   :  { %6412 = vmatpush1.bf16.msra.mxu0 %v8316_v19  ;;  %v8396_v19 = vld [vmem:[#allocation4 + $0x694] ss:$8 sps:$4 sm:$0xff]  }
 0x44e   :  { %6413 = vmatprep.subr.bf16.mxu0 %v8324_v34  ;;  %v8391_v34 = vld [vmem:[#allocation4 + $0x710] ss:$8 sps:$4 sm:$0xff]  }
 0x44f   :  { %5979 = vmatpush2.bf16.msra.mxu1 %v8319_v3  ;;  %v8399_v3 = vld [vmem:[#allocation4 + $0x704] ss:$8 sps:$4 sm:$0xff]  }
 0x450   :  { %6074 = vmatmul.mubr.bf16.gmra.mxu0 %v12009_v45  ;;  %5980 = vmatprep.subr.bf16.mxu1 %v8327_v21  ;;  %v8345_v45 = vld [vmem:[#allocation4 + $0x514] ss:$8 sps:$4 sm:$0xff]   ;;  %v8394_v21 = vld [vmem:[#allocation4 + $0x690] ss:$8 sps:$4 sm:$0xff]  }
 0x451   :  { %6414 = vmatpush1.bf16.msra.mxu0 %v8322_v39  ;;  %6083 = vmatprep.mubr.bf16.mxu0 %v13575_v26  ;;  %v8400_v39 = vld [vmem:[#allocation4 + $0x680] ss:$8 sps:$4 sm:$0xff]  }
 0x452   :  { %6415 = vmatprep.subr.bf16.mxu0 %v8330_v54 }
 0x453   :  { %5981 = vmatpush2.bf16.msra.mxu1 %v8325_v12 }
 0x454   :  { %5982 = vmatprep.subr.bf16.mxu1 %v8333_v10 }
 0x455   :  { %6416 = vmatpush1.bf16.msra.mxu0 %v8328_v50 }
 0x456   :  { %6417 = vmatprep.subr.bf16.mxu0 %v8336_v51 }
 0x457   :  { %5983 = vmatpush2.bf16.msra.mxu1 %v8331_v49 }
 0x458   :  { %6084 = vmatmul.mubr.bf16.gmra.mxu0 %v12069_v44  ;;  %5984 = vmatprep.subr.bf16.mxu1 %v8339_v25  ;;  %v8357_v44 = vld [vmem:[#allocation4 + $0x774] ss:$8 sps:$4 sm:$0xff]  }
 0x459   :  { %6418 = vmatpush1.bf16.msra.mxu0 %v8334_v22  ;;  %6093 = vmatprep.mubr.bf16.mxu0 %v13575_v26 }
 0x45a   :  { %6419 = vmatprep.subr.bf16.mxu0 %v8342_v27 }
 0x45b   :  { %5985 = vmatpush2.bf16.msra.mxu1 %v8337_v7 }
 0x45c   :  { %5986 = vmatprep.subr.bf16.mxu1 %v8345_v45 }
 0x45d   :  { %6420 = vmatpush1.bf16.msra.mxu0 %v8340_v59 }
 0x45e   :  { %6421 = vmatprep.subr.bf16.mxu0 %v8348_v46 }
 0x45f   :  { %5987 = vmatpush2.bf16.msra.mxu1 %v8343_v4 }
 0x460   :  { %6094 = vmatmul.mubr.bf16.gmra.mxu0 %v12076_v15  ;;  %5988 = vmatprep.subr.bf16.mxu1 %v8351_v43  ;;  %v8361_v15 = vld [vmem:[#allocation4 + $0x760] ss:$8 sps:$4 sm:$0xff]  }
 0x461   :  { %6422 = vmatpush1.bf16.msra.mxu0 %v8346_v55  ;;  %6441 = vmatprep.mubr.bf16.mxu0 %v11773_v36  ;;  %v8364_v36 = vld [vmem:[#allocation4 + $0x6e0] ss:$8 sps:$4 sm:$0xff]  }
 0x462   :  { %6423 = vmatprep.subr.bf16.mxu0 %v8354_v18 }
 0x463   :  { %5989 = vmatpush2.bf16.msra.mxu1 %v8349_v60 }
 0x464   :  { %6482 = vmatprep.subr.bf16.mxu1 %v8357_v44 }
 0x465   :  { %6424 = vmatpush1.bf16.msra.mxu0 %v8352_v56 }
 0x466   :  { %5991 = vmatmul.mubr.bf16.vlgmr.msra.gmra.mxu1 %v11978_v47  ;;  %6425 = vmatprep.subr.bf16.mxu0 %v8360_v48  ;;  %v8378_v47 = vld [vmem:[#allocation4 + $0x6c4] ss:$8 sps:$4 sm:$0xff]  }
 0x467   :  { %6000 = vmatprep.mubr.bf16.mxu1 %v11996_v29  ;;  %6483 = vmatpush1.bf16.msra.mxu1 %v8355_v1  ;;  %v8373_v29 = vld [vmem:[#allocation4 + $0x740] ss:$8 sps:$4 sm:$0xff]  }
 0x468   :  { %6484 = vmatprep.subr.bf16.mxu1 %v8363_v40 }
 0x469   :  { %6426 = vmatpush2.bf16.msra.mxu0 %v8358_v31 }
 0x46a   :  { %6427 = vmatprep.subr.bf16.mxu0 %v8366_v41 }
 0x46b   :  { %6485 = vmatpush1.bf16.msra.mxu1 %v8361_v15 }
 0x46c   :  { %6486 = vmatprep.subr.bf16.mxu1 %v8369_v32 }
 0x46d   :  { %6428 = vmatpush2.bf16.msra.mxu0 %v8364_v36 }
 0x46e   :  { %6001 = vmatmul.mubr.bf16.gmra.mxu1 %v12028_v23  ;;  %6429 = vmatprep.subr.bf16.mxu0 %v8372_v42  ;;  %v8390_v23 = vld [vmem:[#allocation4 + $0x6a4] ss:$8 sps:$4 sm:$0xff]  }
 0x46f   :  { %6010 = vmatprep.mubr.bf16.mxu1 %v12051_v0  ;;  %6487 = vmatpush1.bf16.msra.mxu1 %v8367_v33  ;;  %v8385_v0 = vld [vmem:[#allocation4 + $0x720] ss:$8 sps:$4 sm:$0xff]  }
 0x470   :  { %6488 = vmatprep.subr.bf16.mxu1 %v8375_v24 }
 0x471   :  { %6430 = vmatpush2.bf16.msra.mxu0 %v8370_v58 }
 0x472   :  { %6431 = vmatprep.subr.bf16.mxu0 %v8378_v47 }
 0x473   :  { %6489 = vmatpush1.bf16.msra.mxu1 %v8373_v29 }
 0x474   :  { %6490 = vmatprep.subr.bf16.mxu1 %v8381_v28 }
 0x475   :  { %6432 = vmatpush2.bf16.msra.mxu0 %v8376_v6 }
 0x476   :  { %6011 = vmatmul.mubr.bf16.gmra.mxu1 %v12073_v38  ;;  %6433 = vmatprep.subr.bf16.mxu0 %v8384_v61  ;;  %v8402_v38 = vld [vmem:[#allocation4 + $0x684] ss:$8 sps:$4 sm:$0xff]  }
 0x477   :  { %6020 = vmatprep.mubr.bf16.mxu1 %v12062_v8  ;;  %6491 = vmatpush1.bf16.msra.mxu1 %v8379_v62  ;;  %v8397_v8 = vld [vmem:[#allocation4 + $0x700] ss:$8 sps:$4 sm:$0xff]  }
 0x478   :  { %6492 = vmatprep.subr.bf16.mxu1 %v8387_v37 }
 0x479   :  { %6434 = vmatpush2.bf16.msra.mxu0 %v8382_v17 }
 0x47a   :  { %6435 = vmatprep.subr.bf16.mxu0 %v8390_v23  ;;  %v6639_v23 = vld [vmem:[%s12741_s5 + $0x78] sm:$0xff] }
 0x47b   :  { %6493 = vmatpush1.bf16.msra.mxu1 %v8385_v0 }
 0x47c   :  { %6494 = vmatprep.subr.bf16.mxu1 %v8393_v53  ;;  %v12840_v53 = vmov 0.0  }
 0x47d   :  { %6436 = vmatpush2.bf16.msra.mxu0 %v8388_v5  ;;  %v6638_v5 = vld [vmem:[%s12741_s5 + $0x70] sm:$0xff] }
 0x47e   :  { %6021 = vmatmul.mubr.bf16.gmra.mxu1 %v12082_v52  ;;  %6437 = vmatprep.subr.bf16.mxu0 %v8396_v19  ;;  %v6637_v19 = vld [vmem:[%s12741_s5 + $0x68] sm:$0xff] }
 0x47f   :  { %6495 = vmatpush1.bf16.msra.mxu1 %v8391_v34  ;;  %6514 = vmatprep.mubr.bf16.mxu1 %v13575_v26 }
 0x480   :  { %6496 = vmatprep.subr.bf16.mxu1 %v8399_v3  ;;  %v6636_v3 = vld [vmem:[%s12741_s5 + $0x60] sm:$0xff] }
 0x481   :  { %6438 = vmatpush2.bf16.msra.mxu0 %v8394_v21  ;;  %v7619_v21 = vld [vmem:[%s12741_s5 + $0xf8] sm:$0xff] }
 0x482   :  { %6439 = vmatprep.subr.bf16.mxu0 %v8402_v38  ;;  %v6635_v38 = vld [vmem:[%s12741_s5 + $0x58] sm:$0xff] }
 0x483   :  { %6497 = vmatpush1.bf16.msra.mxu1 %v8397_v8 }
 0x484   :  { %7739 = vmatprep.subr.mxu1 %v12840_v53 }
 0x485   :  { %6440 = vmatpush2.bf16.msra.mxu0 %v8400_v39  ;;  %v4781_v54 = vpop.f32.mrf.mxu1 }
 0x486   :  { %6515 = vmatmul.mubr.bf16.vlgmr.msra.gmra.mxu1 %v11892_v16  ;;  %v4708_v12 = vpop.f32.mrf.mxu0  ;;  %7774 = vmatprep.subr.mxu0 %v12840_v53 }
 0x487   :  { %6524 = vmatprep.mubr.bf16.mxu1 %v13575_v26  ;;  %v12137_v52 = vadd.f32 %v4781_v54, %v4708_v12  ;;  %v4783_v10 = vpop.f32.mrf.mxu1  ;;  %7740 = vmatpush3.msra.mxu1 %v7619_v21  ;;  %v7618_v12 = vld [vmem:[%s12741_s5 + $0xf0] sm:$0xff] }
 0x488   :  { %6442 = vmatmul.mubr.bf16.vlgmr.msra.gmra.mxu0 %v11901_v63  ;;  %v4710_v50 = vpop.f32.mrf.mxu0  ;;  %7741 = vmatprep.subr.mxu1 %v12840_v53  ;;  %v7610_v21 = vld [vmem:[%s12741_s5 + $0xb0] sm:$0xff] }
 0x489   :  { %6451 = vmatprep.mubr.bf16.mxu0 %v11833_v35  ;;  %v12140_v51 = vadd.f32 %v4783_v10, %v4710_v50  ;;  %v4785_v49 = vpop.f32.mrf.mxu1  ;;  %7775 = vmatpush3.msra.mxu0 %v6639_v23  ;;  %v6634_v10 = vld [vmem:[%s12741_s5 + $0x50] sm:$0xff]  ;;  %v7617_v50 = vld [vmem:[%s12741_s5 + $0xe8] sm:$0xff] }
 0x48a   :  { %v4712_v25 = vpop.f32.mrf.mxu0  ;;  %7776 = vmatprep.subr.mxu0 %v12840_v53  ;;  %7742 = vmatpush3.msra.mxu1 %v7618_v12 }
 0x48b   :  { %v12142_v22 = vadd.f32 %v4785_v49, %v4712_v25  ;;  %v4787_v27 = vpop.f32.mrf.mxu1  ;;  %7777 = vmatpush3.msra.mxu0 %v6638_v5  ;;  %7743 = vmatprep.subr.mxu1 %v12840_v53 }
 0x48c   :  { %v4714_v16 = vpop.f32.mrf.mxu0  ;;  %7778 = vmatprep.subr.mxu0 %v12840_v53  ;;  %7744 = vmatpush3.msra.mxu1 %v7617_v50  ;;  %v6625_v50 = vld [vmem:[%s12741_s5 + $0x8] sm:$0xff] }
 0x48d   :  { %v12145_v7 = vadd.f32 %v4787_v27, %v4714_v16  ;;  %v4791_v45 = vpop.f32.mrf.mxu1  ;;  %7779 = vmatpush3.msra.mxu0 %v6637_v19  ;;  %7745 = vmatprep.subr.mxu1 %v12840_v53  ;;  %v7611_v19 = vld [vmem:[%s12741_s5 + $0xb8] sm:$0xff] }
 0x48e   :  { %6525 = vmatmul.mubr.bf16.gmra.mxu1 %v11959_v20  ;;  %v4718_v63 = vpop.f32.mrf.mxu0  ;;  %7780 = vmatprep.subr.mxu0 %v12840_v53 }
 0x48f   :  { %6534 = vmatprep.mubr.bf16.mxu1 %v13575_v26  ;;  %v12149_v35 = vadd.f32 %v4791_v45, %v4718_v63  ;;  %v4793_v59 = vpop.f32.mrf.mxu1  ;;  %7781 = vmatpush3.msra.mxu0 %v6636_v3 }
 0x490   :  { %6452 = vmatmul.mubr.bf16.gmra.mxu0 %v11973_v9  ;;  %v4720_v46 = vpop.f32.mrf.mxu0  ;;  %7782 = vmatprep.subr.mxu0 %v12840_v53 }
 0x491   :  { %6461 = vmatprep.mubr.bf16.mxu0 %v11894_v14  ;;  %v12152_v4 = vadd.f32 %v4793_v59, %v4720_v46  ;;  %v4795_v43 = vpop.f32.mrf.mxu1  ;;  %7783 = vmatpush3.msra.mxu0 %v6635_v38 }
 0x492   :  { %v4722_v55 = vpop.f32.mrf.mxu0  ;;  %7784 = vmatprep.subr.mxu0 %v12840_v53 }
 0x493   :  { %v12154_v18 = vadd.f32 %v4795_v43, %v4722_v55  ;;  %v4797_v20 = vpop.f32.mrf.mxu1  ;;  %7785 = vmatpush3.msra.mxu0 %v6634_v10 }
 0x494   :  { %v4724_v60 = vpop.f32.mrf.mxu0  ;;  %7786 = vmatprep.subr.mxu0 %v12840_v53 }
 0x495   :  { %v12157_v44 = vadd.f32 %v4797_v20, %v4724_v60 }
 0x496   :  { %6535 = vmatmul.mubr.bf16.gmra.mxu1 %v12012_v30  ;;  %v4801_v56 = vpop.f32.mrf.mxu1  ;;  %v4728_v9 = vpop.f32.mrf.mxu0 }
 0x497   :  { %6544 = vmatprep.mubr.bf16.mxu1 %v13575_v26  ;;  %v12161_v14 = vadd.f32 %v4801_v56, %v4728_v9  ;;  %v6632_v9 = vld [vmem:[%s12741_s5 + $0x40] sm:$0xff] }
 0x498   :  { %6462 = vmatmul.mubr.bf16.gmra.mxu0 %v12034_v13  ;;  %v4803_v48 = vpop.f32.mrf.mxu1  ;;  %v4730_v1 = vpop.f32.mrf.mxu0 }
 0x499   :  { %6471 = vmatprep.mubr.bf16.mxu0 %v12044_v57  ;;  %v12164_v40 = vadd.f32 %v4803_v48, %v4730_v1 }
 0x49a   :  { %v4805_v31 = vpop.f32.mrf.mxu1  ;;  %v4732_v41 = vpop.f32.mrf.mxu0 }
 0x49b   :  { %v12166_v15 = vadd.f32 %v4805_v31, %v4732_v41 }
 0x49c   :  { %v4807_v30 = vpop.f32.mrf.mxu1  ;;  %v4734_v32 = vpop.f32.mrf.mxu0 }
 0x49d   :  { %v12169_v36 = vadd.f32 %v4807_v30, %v4734_v32  ;;  %v7615_v32 = vld [vmem:[%s12741_s5 + $0xd8] sm:$0xff] }
 0x49e   :  { %6545 = vmatmul.mubr.bf16.gmra.mxu1 %v12056_v11  ;;  %v4811_v26 = vpop.f32.mrf.mxu1  ;;  %v4738_v13 = vpop.f32.mrf.mxu0 }
 0x49f   :  { %v12172_v33 = vadd.f32 %v4811_v26, %v4738_v13  ;;  %v6631_v26 = vld [vmem:[%s12741_s5 + $0x38] sm:$0xff]  ;;  %7771 = vmatprep.mubr.msk.f32.mxu1 %vm8520_vm2, %v12840_v53 }
 0x4a0   :  { %6472 = vmatmul.mubr.bf16.gmra.mxu0 %v12064_v2  ;;  %v4813_v42 = vpop.f32.mrf.mxu1  ;;  %v4740_v57 = vpop.f32.mrf.mxu0 }
 0x4a1   :  { %v12174_v58 = vadd.f32 %v4813_v42, %v4740_v57  ;;  %v6630_v42 = vld [vmem:[%s12741_s5 + $0x30] sm:$0xff]  ;;  %7806 = vmatprep.mubr.msk.f32.mxu0 %vm8520_vm2, %v12840_v53 }
 0x4a2   :  { %v4815_v24 = vpop.f32.mrf.mxu1  ;;  %v4742_v47 = vpop.f32.mrf.mxu0 }
 0x4a3   :  { %v12176_v29 = vadd.f32 %v4815_v24, %v4742_v47 }
 0x4a4   :  { %v4817_v28 = vpop.f32.mrf.mxu1  ;;  %v4744_v6 = vpop.f32.mrf.mxu0 }
 0x4a5   :  { %v12178_v61 = vadd.f32 %v4817_v28, %v4744_v6 }
 0x4a7   :  { %v5167_v11 = vpop.f32.mrf.mxu0 }
 0x4a9   :  { %v5169_v62 = vpop.f32.mrf.mxu0 }
 0x4ab   :  { %v5171_v37 = vpop.f32.mrf.mxu0 }
 0x4ad   :  { %v5173_v17 = vpop.f32.mrf.mxu0 }
 0x4af   :  { %v5177_v2 = vpop.f32.mrf.mxu0 }
 0x4b1   :  { %v5179_v0 = vpop.f32.mrf.mxu0 }
 0x4b3   :  { %v5181_v34 = vpop.f32.mrf.mxu0 }
 0x4b5   :  { %v5183_v8 = vpop.f32.mrf.mxu0 }
 0x4b7   :  { %v5187_v16 = vpop.f32.mrf.mxu0 }
 0x4b9   :  { %v5189_v55 = vpop.f32.mrf.mxu0 }
 0x4c6   :  { %v5094_v39 = vpop.f32.mrf.mxu1 }
 0x4c7   :  { %v5095_v54 = vadd.f32 %v5094_v39, %v12137_v52  ;;  %v6633_v52 = vld [vmem:[%s12741_s5 + $0x48] sm:$0xff] }
 0x4c8   :  { %v5096_v49 = vpop.f32.mrf.mxu1  ;;  %7787 = vmatpush3.msra.mxu0 %v6633_v52 }
 0x4c9   :  { %v12219_v25 = vadd.f32 %v5167_v11, %v5095_v54  ;;  %v5097_v27 = vadd.f32 %v5096_v49, %v12140_v51  ;;  %7788 = vmatprep.subr.mxu0 %v12840_v53  ;;  %v6629_v11 = vld [vmem:[%s12741_s5 + $0x28] sm:$0xff] }
 0x4ca   :  { %v5098_v45 = vpop.f32.mrf.mxu1  ;;  %7789 = vmatpush3.msra.mxu0 %v6632_v9 }
 0x4cb   :  { %v12224_v63 = vadd.f32 %v5169_v62, %v5097_v27  ;;  %v5099_v59 = vadd.f32 %v5098_v45, %v12142_v22  ;;  %v7616_v22 = vld [vmem:[%s12741_s5 + $0xe0] sm:$0xff]  ;;  %7790 = vmatprep.subr.mxu0 %v12840_v53 }
 0x4cc   :  { %v5100_v46 = vpop.f32.mrf.mxu1  ;;  %7746 = vmatpush3.msra.mxu1 %v7616_v22  ;;  %7791 = vmatpush3.msra.mxu0 %v6631_v26 }
 0x4cd   :  { %v12229_v43 = vadd.f32 %v5171_v37, %v5099_v59  ;;  %v5101_v51 = vadd.f32 %v5100_v46, %v12145_v7  ;;  %7747 = vmatprep.subr.mxu1 %v12840_v53  ;;  %7792 = vmatprep.subr.mxu0 %v12840_v53 }
 0x4ce   :  { %v5104_v20 = vpop.f32.mrf.mxu1  ;;  %7748 = vmatpush3.msra.mxu1 %v7615_v32  ;;  %7793 = vmatpush3.msra.mxu0 %v6630_v42 }
 0x4cf   :  { %v12232_v60 = vadd.f32 %v5173_v17, %v5101_v51  ;;  %v5105_v56 = vadd.f32 %v5104_v20, %v12149_v35  ;;  %v5191_v35 = vpop.f32.mrf.mxu0  ;;  %7749 = vmatprep.subr.mxu1 %v12840_v53  ;;  %7794 = vmatprep.subr.mxu0 %v12840_v53  ;;  %v7607_v51 = vld [vmem:[%s12741_s5 + $0x98] sm:$0xff] }
 0x4d0   :  { %v5106_v48 = vpop.f32.mrf.mxu1  ;;  %7795 = vmatpush3.msra.mxu0 %v6629_v11 }
 0x4d1   :  { %v12241_v1 = vadd.f32 %v5177_v2, %v5105_v56  ;;  %v5107_v7 = vadd.f32 %v5106_v48, %v12152_v4  ;;  %v7614_v4 = vld [vmem:[%s12741_s5 + $0xd0] sm:$0xff]  ;;  %v5193_v24 = vpop.f32.mrf.mxu0  ;;  %7796 = vmatprep.subr.mxu0 %v12840_v53  ;;  %v6628_v2 = vld [vmem:[%s12741_s5 + $0x20] sm:$0xff] }
 0x4d2   :  { %v5108_v31 = vpop.f32.mrf.mxu1  ;;  %7750 = vmatpush3.msra.mxu1 %v7614_v4  ;;  %7797 = vmatpush3.msra.mxu0 %v6628_v2 }
 0x4d3   :  { %v12246_v41 = vadd.f32 %v5179_v0, %v5107_v7  ;;  %v5109_v30 = vadd.f32 %v5108_v31, %v12154_v18  ;;  %7751 = vmatprep.subr.mxu1 %v12840_v53  ;;  %v5197_v23 = vpop.f32.mrf.mxu0  ;;  %7798 = vmatprep.subr.mxu0 %v12840_v53  ;;  %v7605_v7 = vld [vmem:[%s12741_s5 + $0x88] sm:$0xff] }
 0x4d4   :  { %v5110_v13 = vpop.f32.mrf.mxu1 }
 0x4d5   :  { %v12261_v18 = vadd.f32 %v5181_v34, %v5109_v30  ;;  %v5111_v57 = vadd.f32 %v5110_v13, %v12157_v44  ;;  %v7613_v44 = vld [vmem:[%s12741_s5 + $0xc8] sm:$0xff]  ;;  %v6627_v34 = vld [vmem:[%s12741_s5 + $0x18] sm:$0xff]  ;;  %v5199_v39 = vpop.f32.mrf.mxu0 }
 0x4d6   :  { %v5114_v47 = vpop.f32.mrf.mxu1  ;;  %7752 = vmatpush3.msra.mxu1 %v7613_v44  ;;  %7799 = vmatpush3.msra.mxu0 %v6627_v34 }
 0x4d7   :  { %v12266_v28 = vadd.f32 %v5183_v8, %v5111_v57  ;;  %v5115_v6 = vadd.f32 %v5114_v47, %v12161_v14  ;;  %7753 = vmatprep.subr.mxu1 %v12840_v53  ;;  %v7612_v14 = vld [vmem:[%s12741_s5 + $0xc0] sm:$0xff]  ;;  %7800 = vmatprep.subr.mxu0 %v12840_v53  ;;  %v5201_v45 = vpop.f32.mrf.mxu0 }
 0x4d8   :  { %v5116_v62 = vpop.f32.mrf.mxu1  ;;  %7754 = vmatpush3.msra.mxu1 %v7612_v14 }
 0x4d9   :  { %v12277_v37 = vadd.f32 %v5187_v16, %v5115_v6  ;;  %v5117_v17 = vadd.f32 %v5116_v62, %v12164_v40  ;;  %7755 = vmatprep.subr.mxu1 %v12840_v53  ;;  %v6624_v16 = vld [vmem:[%s12741_s5] sm:$0xff]  ;;  %v5203_v22 = vpop.f32.mrf.mxu0 }
 0x4da   :  { %v5118_v0 = vpop.f32.mrf.mxu1  ;;  %7756 = vmatpush3.msra.mxu1 %v7611_v19 }
 0x4db   :  { %v12288_v5 = vadd.f32 %v5189_v55, %v5117_v17  ;;  %v5119_v40 = vadd.f32 %v5118_v0, %v12166_v15  ;;  %v6626_v15 = vld [vmem:[%s12741_s5 + $0x10] sm:$0xff]  ;;  %7757 = vmatprep.subr.mxu1 %v12840_v53 }
 0x4dc   :  { %v5120_v3 = vpop.f32.mrf.mxu1  ;;  %7758 = vmatpush3.msra.mxu1 %v7610_v21  ;;  %7801 = vmatpush3.msra.mxu0 %v6626_v15  ;;  %v7606_v55 = vld [vmem:[%s12741_s5 + $0x90] sm:$0xff] }
 0x4dd   :  { %v12305_v38 = vadd.f32 %v5191_v35, %v5119_v40  ;;  %v5121_v8 = vadd.f32 %v5120_v3, %v12169_v36  ;;  %7759 = vmatprep.subr.mxu1 %v12840_v53  ;;  %7802 = vmatprep.subr.mxu0 %v12840_v53  ;;  %v7609_v36 = vld [vmem:[%s12741_s5 + $0xa8] sm:$0xff] }
 0x4de   :  { %v5124_v54 = vpop.f32.mrf.mxu1  ;;  %7760 = vmatpush3.msra.mxu1 %v7609_v36  ;;  %7803 = vmatpush3.msra.mxu0 %v6625_v50 }
 0x4df   :  { %v12310_v12 = vadd.f32 %v5193_v24, %v5121_v8  ;;  %v5125_v10 = vadd.f32 %v5124_v54, %v12172_v33  ;;  %7761 = vmatprep.subr.mxu1 %v12840_v53  ;;  %7804 = vmatprep.subr.mxu0 %v12840_v53  ;;  %v7608_v33 = vld [vmem:[%s12741_s5 + $0xa0] sm:$0xff] }
 0x4e0   :  { %v5126_v49 = vpop.f32.mrf.mxu1  ;;  %7762 = vmatpush3.msra.mxu1 %v7608_v33  ;;  %7805 = vmatpush3.msra.mxu0 %v6624_v16 }
 0x4e1   :  { %v12321_v52 = vadd.f32 %v5197_v23, %v5125_v10  ;;  %v5127_v27 = vadd.f32 %v5126_v49, %v12174_v58  ;;  %7763 = vmatprep.subr.mxu1 %v12840_v53  ;;  %7844 = vmatprep.subr.mxu0 %v12840_v53 }
 0x4e2   :  { %v5128_v59 = vpop.f32.mrf.mxu1  ;;  %7764 = vmatpush3.msra.mxu1 %v7607_v51 }
 0x4e3   :  { %v12332_v46 = vadd.f32 %v5199_v39, %v5127_v27  ;;  %v5129_v58 = vadd.f32 %v5128_v59, %v12176_v29  ;;  %7765 = vmatprep.subr.mxu1 %v12840_v53 }
 0x4e4   :  { %v5130_v20 = vpop.f32.mrf.mxu1  ;;  %7766 = vmatpush3.msra.mxu1 %v7606_v55 }
 0x4e5   :  { %v12345_v56 = vadd.f32 %v5201_v45, %v5129_v58  ;;  %v5131_v29 = vadd.f32 %v5130_v20, %v12178_v61  ;;  %7767 = vmatprep.subr.mxu1 %v12840_v53  ;;  %v7604_v61 = vld [vmem:[%s12741_s5 + $0x80] sm:$0xff] }
 0x4e6   :  { %v5602_v9 = vpop.f32.mrf.mxu1  ;;  %7768 = vmatpush3.msra.mxu1 %v7605_v7 }
 0x4e7   :  { %v5204_v48 = vadd.f32 %v5203_v22, %v5131_v29  ;;  %7769 = vmatprep.subr.mxu1 %v12840_v53 }
 0x4e8   :  { %v5529_v35 = vpop.f32.mrf.mxu0  ;;  %v5604_v31 = vpop.f32.mrf.mxu1  ;;  %7770 = vmatpush3.msra.mxu1 %v7604_v61 }
 0x4e9   :  { %v5603_v30 = vadd.f32 %v5602_v9, %v5529_v35  ;;  %7809 = vmatprep.subr.mxu1 %v12840_v53 }
 0x4ea   :  { %v5531_v32 = vpop.f32.mrf.mxu0  ;;  %v12359_v26 = vpop.f32.mrf.mxu1 }
 0x4eb   :  { %v12362_v4 = vadd.f32 %v5603_v30, %v12219_v25  ;;  %v5605_v13 = vadd.f32 %v5604_v31, %v5531_v32 }
 0x4ec   :  { %v12365_v42 = vpop.f32.mrf.mxu0  ;;  %v12367_v57 = vpop.f32.mrf.mxu1 }
 0x4ed   :  { %v12370_v24 = vadd.f32 %v5605_v13, %v12224_v63 }
 0x4ee   :  { %v12372_v47 = vpop.f32.mrf.mxu0  ;;  %v5612_v6 = vpop.f32.mrf.mxu1 }
 0x4f0   :  { %v5539_v44 = vpop.f32.mrf.mxu0  ;;  %v5614_v11 = vpop.f32.mrf.mxu1 }
 0x4f1   :  { %v5613_v62 = vadd.f32 %v5612_v6, %v5539_v44 }
 0x4f2   :  { %v5541_v17 = vpop.f32.mrf.mxu0  ;;  %v12374_v14 = vpop.f32.mrf.mxu1 }
 0x4f3   :  { %v12377_v25 = vadd.f32 %v5613_v62, %v12241_v1  ;;  %v5615_v2 = vadd.f32 %v5614_v11, %v5541_v17 }
 0x4f4   :  { %v12379_v23 = vpop.f32.mrf.mxu0  ;;  %v12381_v0 = vpop.f32.mrf.mxu1 }
 0x4f5   :  { %v12384_v63 = vadd.f32 %v5615_v2, %v12246_v41 }
 0x4f6   :  { %v12386_v40 = vpop.f32.mrf.mxu0  ;;  %v5622_v19 = vpop.f32.mrf.mxu1 }
 0x4f8   :  { %v5549_v34 = vpop.f32.mrf.mxu0  ;;  %v5624_v3 = vpop.f32.mrf.mxu1 }
 0x4f9   :  { %v5623_v21 = vadd.f32 %v5622_v19, %v5549_v34 }
 0x4fa   :  { %v5551_v15 = vpop.f32.mrf.mxu0  ;;  %v5626_v8 = vpop.f32.mrf.mxu1 }
 0x4fb   :  { %v12389_v39 = vadd.f32 %v5623_v21, %v12277_v37  ;;  %v5625_v1 = vadd.f32 %v5624_v3, %v5551_v15 }
 0x4fc   :  { %v5553_v54 = vpop.f32.mrf.mxu0  ;;  %v5628_v10 = vpop.f32.mrf.mxu1 }
 0x4fd   :  { %v12392_v36 = vadd.f32 %v5625_v1, %v12288_v5  ;;  %v5627_v50 = vadd.f32 %v5626_v8, %v5553_v54 }
 0x4fe   :  { %v5555_v41 = vpop.f32.mrf.mxu0  ;;  %v5632_v49 = vpop.f32.mrf.mxu1 }
 0x4ff   :  { %v12395_v27 = vadd.f32 %v5627_v50, %v12305_v38  ;;  %v5629_v33 = vadd.f32 %v5628_v10, %v5555_v41 }
 0x500   :  { %v5559_v16 = vpop.f32.mrf.mxu0  ;;  %v5634_v45 = vpop.f32.mrf.mxu1 }
 0x501   :  { %v12398_v59 = vadd.f32 %v5629_v33, %v12310_v12  ;;  %v5633_v37 = vadd.f32 %v5632_v49, %v5559_v16 }
 0x502   :  { %v5561_v58 = vpop.f32.mrf.mxu0  ;;  %v5636_v51 = vpop.f32.mrf.mxu1 }
 0x503   :  { %v12401_v55 = vadd.f32 %v5633_v37, %v12321_v52  ;;  %v5635_v5 = vadd.f32 %v5634_v45, %v5561_v58 }
 0x504   :  { %v5563_v20 = vpop.f32.mrf.mxu0  ;;  %v5638_v38 = vpop.f32.mrf.mxu1 }
 0x505   :  { %v12404_v29 = vadd.f32 %v5635_v5, %v12332_v46  ;;  %v5637_v22 = vadd.f32 %v5636_v51, %v5563_v20  ;;  %v5607_v51 = vadd.f32 %v12359_v26, %v12365_v42 }
 0x506   :  { %v5565_v9 = vpop.f32.mrf.mxu0 }
 0x507   :  { %13595 = vst [vmem:[#allocation88_spill] sm:$0xff] %v12404_v29  ;;  %v12407_v7 = vadd.f32 %v5637_v22, %v12345_v56  ;;  %v5639_v35 = vadd.f32 %v5638_v38, %v5565_v9  ;;  %v6571_v22 = vld [vmem:[%s12740_s4] sm:$0x3]  ;;  %v5609_v9 = vadd.f32 %v12367_v57, %v12372_v47  ;;  %v5643_v42 = vadd.f32 %v5607_v51, %v12229_v43 }
 0x508   :  { %v6065_v31 = vpop.f32.mrf.mxu0 }
 0x509   :  { %13596 = vst [vmem:[#allocation16_spill] sm:$0xff] %v12407_v7  ;;  %v12409_v12 = vadd.f32 %v5639_v35, %v5204_v48 }
 0x50a   :  { %v6067_v30 = vpop.f32.mrf.mxu0 }
 0x50b   :  { %13597 = vst [vmem:[#allocation90_spill] sm:$0xff] %v12409_v12 }
 0x50c   :  { %v6069_v61 = vpop.f32.mrf.mxu0 }
 0x50e   :  { %v6071_v32 = vpop.f32.mrf.mxu0 }
 0x510   :  { %v6075_v52 = vpop.f32.mrf.mxu0 }
 0x512   :  { %v12411_v13 = vpop.f32.mrf.mxu0 }
 0x514   :  { %v12413_v6 = vpop.f32.mrf.mxu0 }
 0x516   :  { %v12415_v46 = vpop.f32.mrf.mxu0 }
 0x518   :  { %v12417_v62 = vpop.f32.mrf.mxu0 }
 0x51a   :  { %v12419_v2 = vpop.f32.mrf.mxu0 }
 0x51c   :  { %v12421_v34 = vpop.f32.mrf.mxu0 }
 0x51e   :  { %v12423_v15 = vpop.f32.mrf.mxu0 }
 0x520   :  { %v12429_v54 = vpop.f32.mrf.mxu0 }
 0x522   :  { %v12435_v41 = vpop.f32.mrf.mxu0 }
 0x524   :  { %v12441_v16 = vpop.f32.mrf.mxu0 }
 0x525   :  { %13598 = vst [vmem:[#allocation92_spill] sm:$0xff] %v12441_v16 }
 0x526   :  { %v5992_v44 = vpop.f32.mrf.mxu1  ;;  %v12449_v5 = vpop.f32.mrf.mxu0 }
 0x527   :  { %v6066_v58 = vadd.f32 %v6065_v31, %v5992_v44  ;;  %13601 = vst [vmem:[#allocation52_spill] sm:$0xff] %v12449_v5  ;;  %v13602_v44 = vld [vmem:[#allocation143_spill] sm:$0xff] }
 0x528   :  { %v5994_v11 = vpop.f32.mrf.mxu1  ;;  %v13604_v29 = vsub.s32 1, %v13602_v44 }
 0x529   :  { %v6068_v38 = vadd.f32 %v6067_v30, %v5994_v11  ;;  %v6104_v12 = vadd.f32 %v6066_v58, %v12362_v4  ;;  %v5644_v4 = vadd.f32 %v5609_v9, %v12232_v60 }
 0x52a   :  { %v5996_v56 = vpop.f32.mrf.mxu1  ;;  %v12464_v16 = vrot.slane %v6571_v22, %v13604_v29  ;;  %v5617_v29 = vadd.f32 %v12374_v14, %v12379_v23 }
 0x52b   :  { %v6070_v7 = vadd.f32 %v6069_v61, %v5996_v56  ;;  %v6105_v57 = vadd.f32 %v6068_v38, %v12370_v24 }
 0x52c   :  { %v5998_v17 = vpop.f32.mrf.mxu1 }
 0x52d   :  { %v6072_v47 = vadd.f32 %v6071_v32, %v5998_v17 }
 0x52e   :  { %v6002_v48 = vpop.f32.mrf.mxu1 }
 0x52f   :  { %v6076_v61 = vadd.f32 %v6075_v52, %v6002_v48 }
 0x530   :  { %v6004_v19 = vpop.f32.mrf.mxu1 }
 0x531   :  { %v6108_v17 = vadd.f32 %v6076_v61, %v12377_v25 }
 0x532   :  { %v6006_v3 = vpop.f32.mrf.mxu1 }
 0x533   :  { %v6080_v48 = vadd.f32 %v12413_v6, %v6006_v3 }
 0x534   :  { %v6008_v21 = vpop.f32.mrf.mxu1 }
 0x535   :  { %v6082_v9 = vadd.f32 %v12415_v46, %v6008_v21 }
 0x536   :  { %v12425_v8 = vpop.f32.mrf.mxu1 }
 0x537   :  { %v6086_v3 = vadd.f32 %v12417_v62, %v12425_v8 }
 0x538   :  { %v12427_v1 = vpop.f32.mrf.mxu1 }
 0x53a   :  { %v12431_v10 = vpop.f32.mrf.mxu1 }
 0x53c   :  { %v12433_v50 = vpop.f32.mrf.mxu1 }
 0x53e   :  { %v12437_v49 = vpop.f32.mrf.mxu1 }
 0x540   :  { %v12439_v33 = vpop.f32.mrf.mxu1 }
 0x542   :  { %v12443_v45 = vpop.f32.mrf.mxu1 }
 0x543   :  { %13599 = vst [vmem:[#allocation80_spill] sm:$0xff] %v12443_v45 }
 0x544   :  { %v12445_v37 = vpop.f32.mrf.mxu1 }
 0x545   :  { %13600 = vst [vmem:[#allocation124_spill] sm:$0xff] %v12445_v37  ;;  %v13603_v37 = vsub.s32 0, %v13602_v44  ;;  %v5647_v44 = vadd.f32 %v5617_v29, %v12261_v18  ;;  %v6088_v18 = vadd.f32 %v12419_v2, %v12427_v1 }
 0x546   :  { %v6516_v20 = vpop.f32.mrf.mxu1 }
 0x547   :  { %v12459_v26 = vrot.slane %v6571_v22, %v13603_v37  ;;  %v6106_v37 = vadd.f32 %v6070_v7, %v5643_v42  ;;  %v5619_v22 = vadd.f32 %v12381_v0, %v12386_v40  ;;  %v6078_v7 = vadd.f32 %v12411_v13, %v6004_v19 }
 0x548   :  { %v6443_v35 = vpop.f32.mrf.mxu0  ;;  %v6518_v53 = vpop.f32.mrf.mxu1 }
 0x549   :  { %v6517_v31 = vadd.f32 %v6516_v20, %v6443_v35  ;;  %v5648_v6 = vadd.f32 %v5619_v22, %v12266_v28  ;;  %v6109_v19 = vadd.f32 %v6078_v7, %v12384_v63  ;;  %v6090_v63 = vadd.f32 %v12421_v34, %v12431_v10 }
 0x54a   :  { %v6445_v5 = vpop.f32.mrf.mxu0  ;;  %v6520_v30 = vpop.f32.mrf.mxu1  ;;  %v6113_v34 = vadd.f32 %v6088_v18, %v12392_v36  ;;  %v6096_v36 = vadd.f32 %v12429_v54, %v12437_v49  ;;  %v6098_v54 = vadd.f32 %v12435_v41, %v12439_v33 }
 0x54b   :  { %v6555_v11 = vadd.f32 %v6517_v31, %v6104_v12  ;;  %v6519_v45 = vadd.f32 %v6518_v53, %v6445_v5  ;;  %v6107_v12 = vadd.f32 %v6072_v47, %v5644_v4  ;;  %v6111_v61 = vadd.f32 %v6082_v9, %v5648_v6 }
 0x54c   :  { %v6447_v56 = vpop.f32.mrf.mxu0  ;;  %v6522_v58 = vpop.f32.mrf.mxu1 }
 0x54d   :  { %v6583_v20 = vadd.f32 %v12459_v26, %v6555_v11  ;;  %v6556_v43 = vadd.f32 %v6519_v45, %v6105_v57  ;;  %v6521_v51 = vadd.f32 %v6520_v30, %v6447_v56  ;;  %v6110_v11 = vadd.f32 %v6080_v48, %v5647_v44 }
 0x54e   :  { %v6449_v24 = vpop.f32.mrf.mxu0  ;;  %v6526_v32 = vpop.f32.mrf.mxu1 }
 0x54f   :  { %v6584_v53 = vadd.f32 %v12464_v16, %v6556_v43  ;;  %v6557_v60 = vadd.f32 %v6521_v51, %v6106_v37  ;;  %v6523_v52 = vadd.f32 %v6522_v58, %v6449_v24  ;;  %v6599_v45 = vmax.f32 %v6583_v20, 0.0 }
 0x550   :  { %v6453_v5 = vpop.f32.mrf.mxu0  ;;  %v6528_v38 = vpop.f32.mrf.mxu1  ;;  %v6112_v43 = vadd.f32 %v6086_v3, %v12389_v39  ;;  %v6114_v39 = vadd.f32 %v6090_v63, %v12395_v27  ;;  %v13606_v3 = vld [vmem:[#allocation80_spill] sm:$0xff] }
 0x551   :  { %v6600_v14 = vmax.f32 %v6584_v53, 0.0  ;;  %v6585_v23 = vadd.f32 %v12459_v26, %v6557_v60  ;;  %v6558_v0 = vadd.f32 %v6523_v52, %v6107_v12  ;;  %v6527_v40 = vadd.f32 %v6526_v32, %v6453_v5  ;;  %v7651_v12 = vld [vmem:[%s12741_s5 + $0x1f8] sm:$0xff] }
 0x552   :  { %v6455_v35 = vpop.f32.mrf.mxu0  ;;  %v6530_v31 = vpop.f32.mrf.mxu1  ;;  %v6092_v5 = vadd.f32 %v12423_v15, %v12433_v50  ;;  %v7649_v15 = vld [vmem:[%s12741_s5 + $0x1e8] sm:$0xff] }
 0x553   :  { %v6615_v42 = vmax.f32 %v6599_v45, %v6600_v14  ;;  %v6586_v25 = vadd.f32 %v12464_v16, %v6558_v0  ;;  %v6559_v13 = vadd.f32 %v6527_v40, %v6108_v17  ;;  %v6529_v30 = vadd.f32 %v6528_v38, %v6455_v35  ;;  %v7650_v45 = vld [vmem:[%s12741_s5 + $0x1f0] sm:$0xff] }
 0x554   :  { %v6457_v57 = vpop.f32.mrf.mxu0  ;;  %v6532_v47 = vpop.f32.mrf.mxu1  ;;  %v6601_v46 = vmax.f32 %v6585_v23, 0.0  ;;  %v13605_v0 = vmov 0.0   ;;  %v6115_v6 = vadd.f32 %v6092_v5, %v12398_v59  ;;  %v7647_v59 = vld [vmem:[%s12741_s5 + $0x1d8] sm:$0xff] }
 0x555   :  { %v6602_v21 = vmax.f32 %v6586_v25, 0.0  ;;  %v6531_v4 = vadd.f32 %v6530_v31, %v6457_v57  ;;  %v6587_v56 = vadd.f32 %v12459_v26, %v6559_v13  ;;  %v6560_v58 = vadd.f32 %v6529_v30, %v6109_v19  ;;  %v7648_v13 = vld [vmem:[%s12741_s5 + $0x1e0] sm:$0xff] }
 0x556   :  { %v6459_v28 = vpop.f32.mrf.mxu0  ;;  %v6536_v37 = vpop.f32.mrf.mxu1  ;;  %v6116_v19 = vadd.f32 %v6096_v36, %v12401_v55  ;;  %v13607_v30 = vld [vmem:[#allocation92_spill] sm:$0xff] }
 0x557   :  { %v6616_v62 = vmax.f32 %v6601_v46, %v6602_v21  ;;  %v6561_v8 = vadd.f32 %v6531_v4, %v6110_v11  ;;  %v6533_v20 = vadd.f32 %v6532_v47, %v6459_v28  ;;  %v6588_v51 = vadd.f32 %v12464_v16, %v6560_v58  ;;  %v13608_v55 = vld [vmem:[#allocation88_spill] sm:$0xff] }
 0x558   :  { %v6463_v29 = vpop.f32.mrf.mxu0  ;;  %v6538_v22 = vpop.f32.mrf.mxu1  ;;  %v6603_v10 = vmax.f32 %v6587_v56, 0.0  ;;  %v6100_v41 = vadd.f32 %v13607_v30, %v13606_v3  ;;  %v6117_v18 = vadd.f32 %v6098_v54, %v13608_v55  ;;  %v13609_v56 = vld [vmem:[#allocation124_spill] sm:$0xff]  ;;  %v7643_v54 = vld [vmem:[%s12741_s5 + $0x1b8] sm:$0xff]  ;;  %v7622_v55 = vld [vmem:[%s12741_s5 + $0x110] sm:$0xff] }
 0x559   :  { %v6623_v24 = vmax.f32 %v6615_v42, %v6616_v62  ;;  %v6589_v2 = vadd.f32 %v12459_v26, %v6561_v8  ;;  %v6562_v1 = vadd.f32 %v6533_v20, %v6111_v61  ;;  %v6537_v32 = vadd.f32 %v6536_v37, %v6463_v29  ;;  %v7635_v61 = vld [vmem:[%s12741_s5 + $0x178] sm:$0xff]  ;;  %v13610_v58 = vld [vmem:[#allocation52_spill] sm:$0xff]  ;;  %v7634_v29 = vld [vmem:[%s12741_s5 + $0x170] sm:$0xff] }
 0x55a   :  { %v6604_v53 = vmax.f32 %v6588_v51, 0.0  ;;  %v6465_v60 = vpop.f32.mrf.mxu0  ;;  %v6540_v52 = vpop.f32.mrf.mxu1  ;;  %v6102_v28 = vadd.f32 %v13610_v58, %v13609_v56  ;;  %v7628_v3 = vld [vmem:[%s12741_s5 + $0x140] sm:$0xff]  ;;  %v7000_v58 = vld [vmem:[%s12743_s7 + $0x78] sm:$0xff] }
 0x55b   :  { %v6590_v17 = vadd.f32 %v12464_v16, %v6562_v1  ;;  %v6563_v7 = vadd.f32 %v6537_v32, %v6112_v43  ;;  %v6539_v48 = vadd.f32 %v6538_v22, %v6465_v60  ;;  %7807 = vmatmul.mubr.f32.vlgmr.msra.gmra.mxu0 %v6623_v24  ;;  %v6605_v14 = vmax.f32 %v6589_v2, 0.0  ;;  %v7646_v22 = vld [vmem:[%s12741_s5 + $0x1d0] sm:$0xff]  ;;  %v13611_v24 = vld [vmem:[#allocation16_spill] sm:$0xff]  ;;  %v7645_v60 = vld [vmem:[%s12741_s5 + $0x1c8] sm:$0xff] }
 0x55c   :  { %v6617_v38 = vmax.f32 %v6603_v10, %v6604_v53  ;;  %7845 = vmatpush3.msra.mxu0 %v7651_v12  ;;  %v6467_v23 = vpop.f32.mrf.mxu0  ;;  %v6542_v27 = vpop.f32.mrf.mxu1  ;;  %7876 = vmatprep.mubr.msk.f32.mxu0 %vm8520_vm2, %v13605_v0  ;;  %v6118_v2 = vadd.f32 %v6100_v41, %v13611_v24  ;;  %v7633_v53 = vld [vmem:[%s12741_s5 + $0x168] sm:$0xff]  ;;  %v7640_v30 = vld [vmem:[%s12741_s5 + $0x1a0] sm:$0xff] }
 0x55d   :  { %v6606_v40 = vmax.f32 %v6590_v17, 0.0  ;;  %v6591_v9 = vadd.f32 %v12459_v26, %v6563_v7  ;;  %v6564_v35 = vadd.f32 %v6539_v48, %v6113_v34  ;;  %v6541_v31 = vadd.f32 %v6540_v52, %v6467_v23  ;;  %7846 = vmatprep.subr.mxu0 %v13605_v0  ;;  %v13612_v52 = vld [vmem:[#allocation90_spill] sm:$0xff]  ;;  %v7644_v23 = vld [vmem:[%s12741_s5 + $0x1c0] sm:$0xff] }
 0x55e   :  { %7847 = vmatpush3.msra.mxu0 %v7650_v45  ;;  %v6469_v50 = vpop.f32.mrf.mxu0  ;;  %v6546_v49 = vpop.f32.mrf.mxu1  ;;  %v7620_v56 = vld [vmem:[%s12741_s5 + $0x100] sm:$0xff] }
 0x55f   :  { %v6618_v44 = vmax.f32 %v6605_v14, %v6606_v40  ;;  %v6592_v42 = vadd.f32 %v12464_v16, %v6564_v35  ;;  %v6565_v25 = vadd.f32 %v6541_v31, %v6114_v39  ;;  %7848 = vmatprep.subr.mxu0 %v13605_v0  ;;  %v6543_v33 = vadd.f32 %v6542_v27, %v6469_v50  ;;  %v7632_v14 = vld [vmem:[%s12741_s5 + $0x160] sm:$0xff] }
 0x560   :  { %7849 = vmatpush3.msra.mxu0 %v7649_v15  ;;  %v6473_v57 = vpop.f32.mrf.mxu0  ;;  %v6548_v47 = vpop.f32.mrf.mxu1  ;;  %v6607_v46 = vmax.f32 %v6591_v9, 0.0  ;;  %v6119_v39 = vadd.f32 %v6102_v28, %v13612_v52  ;;  %v7631_v15 = vld [vmem:[%s12741_s5 + $0x158] sm:$0xff]  ;;  %v6999_v28 = vld [vmem:[%s12743_s7 + $0x70] sm:$0xff]  ;;  %v6989_v24 = vld [vmem:[%s12743_s7 + $0x20] sm:$0xff] }
 0x561   :  { %v6640_v11 = vmax.f32 %v6617_v38, %v6618_v44  ;;  %v6608_v21 = vmax.f32 %v6592_v42, 0.0  ;;  %v6547_v4 = vadd.f32 %v6546_v49, %v6473_v57  ;;  %7850 = vmatprep.subr.mxu0 %v13605_v0  ;;  %v6593_v37 = vadd.f32 %v12459_v26, %v6565_v25  ;;  %v7630_v44 = vld [vmem:[%s12741_s5 + $0x150] sm:$0xff]  ;;  %v7639_v57 = vld [vmem:[%s12741_s5 + $0x198] sm:$0xff] }
 0x562   :  { %v6566_v63 = vadd.f32 %v6543_v33, %v6115_v6  ;;  %7851 = vmatpush3.msra.mxu0 %v7648_v13  ;;  %v6475_v62 = vpop.f32.mrf.mxu0  ;;  %v6550_v8 = vpop.f32.mrf.mxu1  ;;  %v7642_v42 = vld [vmem:[%s12741_s5 + $0x1b0] sm:$0xff]  ;;  %v7641_v6 = vld [vmem:[%s12741_s5 + $0x1a8] sm:$0xff]  ;;  %v7627_v33 = vld [vmem:[%s12741_s5 + $0x138] sm:$0xff] }
 0x563   :  { %v12535_v20 = vmax.f32 %v6607_v46, %v6608_v21  ;;  %v6567_v43 = vadd.f32 %v6547_v4, %v6116_v19  ;;  %v6549_v51 = vadd.f32 %v6548_v47, %v6475_v62  ;;  %7852 = vmatprep.subr.mxu0 %v13605_v0  ;;  %7772 = vmatmul.mubr.f32.vlgmr.msra.gmra.mxu1 %v6640_v11  ;;  %v6609_v17 = vmax.f32 %v6593_v37, 0.0  ;;  %v7626_v47 = vld [vmem:[%s12741_s5 + $0x130] sm:$0xff]  ;;  %v7625_v46 = vld [vmem:[%s12741_s5 + $0x128] sm:$0xff]  ;;  %v7624_v4 = vld [vmem:[%s12741_s5 + $0x120] sm:$0xff] }
 0x564   :  { %v6594_v1 = vadd.f32 %v12464_v16, %v6566_v63  ;;  %7810 = vmatpush3.msra.mxu1 %v7635_v61  ;;  %7853 = vmatpush3.msra.mxu0 %v7647_v59  ;;  %v6477_v32 = vpop.f32.mrf.mxu0  ;;  %v6552_v48 = vpop.f32.mrf.mxu1  ;;  %v7638_v11 = vld [vmem:[%s12741_s5 + $0x190] sm:$0xff]  ;;  %v7637_v21 = vld [vmem:[%s12741_s5 + $0x188] sm:$0xff]  ;;  %v7636_v61 = vld [vmem:[%s12741_s5 + $0x180] sm:$0xff] }
 0x565   :  { %v6595_v12 = vadd.f32 %v12459_v26, %v6567_v43  ;;  %v6568_v34 = vadd.f32 %v6549_v51, %v6117_v18  ;;  %v6551_v10 = vadd.f32 %v6550_v8, %v6477_v32  ;;  %7811 = vmatprep.subr.mxu1 %v13605_v0  ;;  %7854 = vmatprep.subr.mxu0 %v13605_v0  ;;  %v7623_v59 = vld [vmem:[%s12741_s5 + $0x118] sm:$0xff]  ;;  %v7621_v18 = vld [vmem:[%s12741_s5 + $0x108] sm:$0xff]  ;;  %v6997_v63 = vld [vmem:[%s12743_s7 + $0x60] sm:$0xff] }
 0x566   :  { %v6610_v7 = vmax.f32 %v6594_v1, 0.0  ;;  %7812 = vmatpush3.msra.mxu1 %v7634_v29  ;;  %7855 = vmatpush3.msra.mxu0 %v7646_v22  ;;  %v6479_v45 = vpop.f32.mrf.mxu0  ;;  %v6998_v37 = vld [vmem:[%s12743_s7 + $0x68] sm:$0xff]  ;;  %v6996_v62 = vld [vmem:[%s12743_s7 + $0x58] sm:$0xff]  ;;  %v6995_v8 = vld [vmem:[%s12743_s7 + $0x50] sm:$0xff] }
 0x567   :  { %v6596_v5 = vadd.f32 %v12464_v16, %v6568_v34  ;;  %v6569_v36 = vadd.f32 %v6551_v10, %v6118_v2  ;;  %v6553_v38 = vadd.f32 %v6552_v48, %v6479_v45  ;;  %7813 = vmatprep.subr.mxu1 %v13605_v0  ;;  %7856 = vmatprep.subr.mxu0 %v13605_v0  ;;  %v6611_v40 = vmax.f32 %v6595_v12, 0.0  ;;  %v6993_v43 = vld [vmem:[%s12743_s7 + $0x40] sm:$0xff]  ;;  %v6992_v51 = vld [vmem:[%s12743_s7 + $0x38] sm:$0xff]  ;;  %v6991_v29 = vld [vmem:[%s12743_s7 + $0x30] sm:$0xff] }
 0x568   :  { %v12565_v27 = vmax.f32 %v6609_v17, %v6610_v7  ;;  %7814 = vmatpush3.msra.mxu1 %v7633_v53  ;;  %7857 = vmatpush3.msra.mxu0 %v7645_v60  ;;  %v6990_v22 = vld [vmem:[%s12743_s7 + $0x28] sm:$0xff]  ;;  %v6988_v2 = vld [vmem:[%s12743_s7 + $0x18] sm:$0xff]  ;;  %v6987_v1 = vld [vmem:[%s12743_s7 + $0x10] sm:$0xff] }
 0x569   :  { %v6612_v9 = vmax.f32 %v6596_v5, 0.0  ;;  %v6597_v35 = vadd.f32 %v12459_v26, %v6569_v36  ;;  %v6570_v31 = vadd.f32 %v6553_v38, %v6119_v39  ;;  %7815 = vmatprep.subr.mxu1 %v13605_v0  ;;  %7858 = vmatprep.subr.mxu0 %v13605_v0  ;;  %v6986_v32 = vld [vmem:[%s12743_s7 + $0x8] sm:$0xff]  ;;  %v6985_v12 = vld [vmem:[%s12743_s7] sm:$0xff] }
 0x56a   :  { %v6798_v50 = vmax.f32 %v12535_v20, %v12565_v27  ;;  %7816 = vmatpush3.msra.mxu1 %v7632_v14  ;;  %7859 = vmatpush3.msra.mxu0 %v7644_v23  ;;  %v6994_v20 = vld [vmem:[%s12743_s7 + $0x48] sm:$0xff]  ;;  %v7652_v45 = vld [vmem:[%s12742_s6] ss:$0 sm:$0xff] }
 0x56b   :  { %v6621_v49 = vmax.f32 %v6611_v40, %v6612_v9  ;;  %v6598_v26 = vadd.f32 %v12464_v16, %v6570_v31  ;;  %7817 = vmatprep.subr.mxu1 %v13605_v0  ;;  %7860 = vmatprep.subr.mxu0 %v13605_v0  ;;  %v6613_v25 = vmax.f32 %v6597_v35, 0.0  ;;  %v7629_v16 = vld [vmem:[%s12741_s5 + $0x148] sm:$0xff] }
 0x56c   :  { %7818 = vmatpush3.msra.mxu1 %v7631_v15  ;;  %7861 = vmatpush3.msra.mxu0 %v7643_v54 }
 0x56d   :  { %v6614_v13 = vmax.f32 %v6598_v26, 0.0  ;;  %7819 = vmatprep.subr.mxu1 %v13605_v0  ;;  %7862 = vmatprep.subr.mxu0 %v13605_v0 }
 0x56e   :  { %7820 = vmatpush3.msra.mxu1 %v7630_v44  ;;  %7863 = vmatpush3.msra.mxu0 %v7642_v42 }
 0x56f   :  { %v6622_v19 = vmax.f32 %v6613_v25, %v6614_v13  ;;  %7821 = vmatprep.subr.mxu1 %v13605_v0  ;;  %7864 = vmatprep.subr.mxu0 %v13605_v0 }
 0x570   :  { %7822 = vmatpush3.msra.mxu1 %v7629_v16  ;;  %7865 = vmatpush3.msra.mxu0 %v7641_v6 }
 0x571   :  { %v6887_v41 = vmax.f32 %v6621_v49, %v6622_v19  ;;  %7823 = vmatprep.subr.mxu1 %v13605_v0  ;;  %7866 = vmatprep.subr.mxu0 %v13605_v0 }
 0x572   :  { %7824 = vmatpush3.msra.mxu1 %v7628_v3  ;;  %7867 = vmatpush3.msra.mxu0 %v7640_v30 }
 0x573   :  { %7825 = vmatprep.subr.mxu1 %v13605_v0  ;;  %7868 = vmatprep.subr.mxu0 %v13605_v0 }
 0x574   :  { %7826 = vmatpush3.msra.mxu1 %v7627_v33  ;;  %7869 = vmatpush3.msra.mxu0 %v7639_v57 }
 0x575   :  { %7827 = vmatprep.subr.mxu1 %v13605_v0  ;;  %7870 = vmatprep.subr.mxu0 %v13605_v0 }
 0x576   :  { %7828 = vmatpush3.msra.mxu1 %v7626_v47  ;;  %7871 = vmatpush3.msra.mxu0 %v7638_v11 }
 0x577   :  { %7829 = vmatprep.subr.mxu1 %v13605_v0  ;;  %7872 = vmatprep.subr.mxu0 %v13605_v0 }
 0x578   :  { %7830 = vmatpush3.msra.mxu1 %v7625_v46  ;;  %7873 = vmatpush3.msra.mxu0 %v7637_v21 }
 0x579   :  { %7831 = vmatprep.subr.mxu1 %v13605_v0  ;;  %7874 = vmatprep.subr.mxu0 %v13605_v0 }
 0x57a   :  { %7832 = vmatpush3.msra.mxu1 %v7624_v4  ;;  %7875 = vmatpush3.msra.mxu0 %v7636_v61 }
 0x57b   :  { %7833 = vmatprep.subr.mxu1 %v13605_v0  ;;  %7877 = vmatmul.mubr.f32.vlgmr.msra.gmra.mxu0 %v6887_v41 }
 0x57c   :  { %7834 = vmatpush3.msra.mxu1 %v7623_v59  ;;  %7841 = vmatprep.mubr.msk.f32.mxu1 %vm8520_vm2, %v13605_v0 }
 0x57d   :  { %7835 = vmatprep.subr.mxu1 %v13605_v0 }
 0x57e   :  { %7836 = vmatpush3.msra.mxu1 %v7622_v55 }
 0x57f   :  { %7837 = vmatprep.subr.mxu1 %v13605_v0 }
 0x580   :  { %7838 = vmatpush3.msra.mxu1 %v7621_v18 }
 0x581   :  { %7839 = vmatprep.subr.mxu1 %v13605_v0 }
 0x582   :  { %7840 = vmatpush3.msra.mxu1 %v7620_v56 }
 0x583   :  { %7842 = vmatmul.mubr.f32.vlgmr.msra.gmra.mxu1 %v6798_v50  ;;  %7879 = vmatprep.subr.mxu1 %v13605_v0 }
 0x584   :  { %7911 = vmatprep.mubr.msk.f32.mxu1 %vm8520_vm2, %v13605_v0  ;;  %7880 = vmatpush3.msra.mxu1 %v7000_v58 }
 0x585   :  { %7881 = vmatprep.subr.mxu1 %v13605_v0 }
 0x586   :  { %7882 = vmatpush3.msra.mxu1 %v6999_v28 }
 0x587   :  { %7883 = vmatprep.subr.mxu1 %v13605_v0 }
 0x588   :  { %7884 = vmatpush3.msra.mxu1 %v6998_v37 }
 0x589   :  { %7885 = vmatprep.subr.mxu1 %v13605_v0 }
 0x58a   :  { %7886 = vmatpush3.msra.mxu1 %v6997_v63 }
 0x58b   :  { %7887 = vmatprep.subr.mxu1 %v13605_v0 }
 0x58c   :  { %7888 = vmatpush3.msra.mxu1 %v6996_v62 }
 0x58d   :  { %7889 = vmatprep.subr.mxu1 %v13605_v0 }
 0x58e   :  { %7890 = vmatpush3.msra.mxu1 %v6995_v8 }
 0x58f   :  { %7891 = vmatprep.subr.mxu1 %v13605_v0 }
 0x590   :  { %7892 = vmatpush3.msra.mxu1 %v6994_v20 }
 0x591   :  { %7893 = vmatprep.subr.mxu1 %v13605_v0 }
 0x592   :  { %7894 = vmatpush3.msra.mxu1 %v6993_v43 }
 0x593   :  { %7895 = vmatprep.subr.mxu1 %v13605_v0 }
 0x594   :  { %7896 = vmatpush3.msra.mxu1 %v6992_v51 }
 0x595   :  { %7897 = vmatprep.subr.mxu1 %v13605_v0 }
 0x596   :  { %7898 = vmatpush3.msra.mxu1 %v6991_v29 }
 0x597   :  { %7899 = vmatprep.subr.mxu1 %v13605_v0 }
 0x598   :  { %7900 = vmatpush3.msra.mxu1 %v6990_v22 }
 0x599   :  { %7901 = vmatprep.subr.mxu1 %v13605_v0 }
 0x59a   :  { %7902 = vmatpush3.msra.mxu1 %v6989_v24 }
 0x59b   :  { %7903 = vmatprep.subr.mxu1 %v13605_v0 }
 0x59c   :  { %7904 = vmatpush3.msra.mxu1 %v6988_v2 }
 0x59d   :  { %7905 = vmatprep.subr.mxu1 %v13605_v0 }
 0x59e   :  { %7906 = vmatpush3.msra.mxu1 %v6987_v1 }
 0x59f   :  { %7907 = vmatprep.subr.mxu1 %v13605_v0 }
 0x5a0   :  { %7908 = vmatpush3.msra.mxu1 %v6986_v32 }
 0x5a1   :  { %7909 = vmatprep.subr.mxu1 %v13605_v0  ;;  %v7653_v0 = vld [vmem:[%s12744_s8] ss:$0 sm:$0xff] }
 0x5a2   :  { %7910 = vmatpush3.msra.mxu1 %v6985_v12 }
 0x61b   :  { %v6794_v34 = vpop.f32.mrf.mxu0 }
 0x61d   :  { %v7808_v10 = vpop.f32.mrf.mxu0 }
 0x623   :  { %v6724_v53 = vpop.f32.mrf.mxu1 }
 0x624   :  { %v6795_v17 = vadd.f32 %v6794_v34, %v6724_v53 }
 0x625   :  { %v7773_v60 = vpop.f32.mrf.mxu1 }
 0x63b   :  { %v6971_v52 = vpop.f32.mrf.mxu0 }
 0x63d   :  { %v7878_v39 = vpop.f32.mrf.mxu0 }
 0x643   :  { %v6882_v7 = vpop.f32.mrf.mxu1 }
 0x644   :  { %v6886_v48 = vadd.f32 %v6882_v7, %v6795_v17 }
 0x645   :  { %v7843_v5 = vpop.f32.mrf.mxu1 }
 0x646   :  { %v6975_v36 = vadd.f32 %v6971_v52, %v6886_v48 }
 0x648   :  { %v6983_v38 = vadd.f32 %v7652_v45, %v6975_v36 }
 0x64a   :  { %v6984_v14 = vmax.f32 %v6983_v38, 0.0 }
 0x64c   :  { %7912 = vmatmul.mubr.f32.vlgmr.msra.gmra.mxu1 %v6984_v14 }
 0x70c   :  { %v7074_v23 = vpop.f32.mrf.mxu1 }
 0x70d   :  { %v7075_v27 = vadd.f32 %v7653_v0, %v7074_v23 }
 0x70e   :  { %v7913_v40 = vpop.f32.mrf.mxu1 }
 0x70f   :  { %v7079_v9 = vsel %vm7078_vm3, %v7075_v27, -inf }
 0x710   :  { %7080 = vmax.xlane.f32.xlu0 %v7079_v9 }
 0x799   :  { %v7081_v35 = vpop.xlane.xlu0 %7080 }
 0x79a   :  { %v7082_v31 = vsub.f32 %v7075_v27, %v7081_v35 }
 0x79c   :  { %v7083_v15 = vmul.f32 1.442695, %v7082_v31 }
 0x79e   :  { %8403 = vpow2.f32 %v7083_v15 }
 0x7ab   :  { %v8404_v54 = vpop.eup %8403 }
 0x7ac   :  { %v7085_v50 = vsel %vm7078_vm3, %v8404_v54, 0.0 }
 0x7ad   :  { %7086 = vadd.xlane.f32.xlu0 %v7085_v50 }
 0x836   :  { %v7087_v49 = vpop.xlane.xlu0 %7086 }
 0x837   :  { %8405 = vlog2.f32 %v7087_v49 }
 0x844   :  { %v8406_v26 = vpop.eup %8405 }
 0x845   :  { %v7089_v44 = vmul.f32 0.6931472, %v8406_v26 }
 0x847   :  { %v7090_v42 = vsub.f32 %v7082_v31, %v7089_v44 }
 0x849   :  { %7091 = vst.msk [vmem:[%s12745_s9] sm:$0xff] %vm7078_vm3, %v7090_v42 }
 0x84a   :  { %7096 = vsyncpa [#allocation3], 1 }
 0x84b   :  { %7097 = vsyncpa [#allocation5], 1 }

</bundles_post_ra>
